<compile_context>
chip_gen: v5e
topology: v5e:2x2
jax: 0.10.0
libtpu: 0.0.40
codegen_flags: <defaults>
</compile_context>

<pallas_src>
import math

import numpy as np
import jax
import jax.numpy as jnp
from jax.experimental import pallas as pl
from jax.experimental.pallas import tpu as pltpu


# ----------------------------- module constants -----------------------------

D_LAYERS = 8            # D
W_HID = 256             # W
INPUT_CH = 256          # input_ch
SKIPS = (4,)
IN_DIM = 6              # x_input last dim (b_normalAlbedo is (input_ch/2, 6))
IN_DIM_PAD = 8          # sublane-aligned pad of the 6-wide input
HALF_CH = INPUT_CH // 2 # 128
VIEW_W = W_HID // 2     # 128
RGB_PAD = 128           # lane-dense pad of the 3-wide rgb head
N_BIAS_ROWS = 16        # bias pack rows (11 used, padded to 16 sublanes)

_HIGHEST = jax.lax.Precision.HIGHEST


# --------------------------------- kernel -----------------------------------

def _neulf_kernel(x_ref, bAT_ref,
                  w0s, w0c, w1, w2, w3, w4,
                  w5s, w5c, w5h, w6, w7,
                  wf, wv, wr, b_ref, out_ref):
    two_pi = jnp.float32(2.0 * math.pi)
    x = x_ref[...] * two_pi                               # (tm, 8) f32

    # Fourier projection (K = 6) as VPU broadcast-FMAs in full f32.
    # (pre-activation is O(1e2-1e3) radians -> must not be rounded to bf16)
    z = x[:, 0:1] * bAT_ref[0:1, :]                       # (tm, 128)
    for k in range(1, IN_DIM):
        z = z + x[:, k:k + 1] * bAT_ref[k:k + 1, :]

    s = jnp.sin(z).astype(jnp.bfloat16)                   # (tm, 128)
    c = jnp.cos(z).astype(jnp.bfloat16)

    def dot(a, w_ref):
        # bf16 x bf16 -> f32 accumulation: single MXU pass.
        return jnp.dot(a, w_ref[...], preferred_element_type=jnp.float32)

    def finish(acc, brow, width=W_HID, relu=True):
        a = acc + b_ref[brow:brow + 1, :width]            # f32 bias add
        if relu:
            a = jnp.maximum(a, 0.0)
        return a.astype(jnp.bfloat16)

    # layer 0:  input_pts @ W0  ==  sin @ W0[:128] + cos @ W0[128:]
    h = finish(dot(s, w0s) + dot(c, w0c), 0)
    h = finish(dot(h, w1), 1)
    h = finish(dot(h, w2), 2)
    h = finish(dot(h, w3), 3)
    h4 = finish(dot(h, w4), 4)
    # skip:  cat([input_pts, h4]) @ W5 == sin@W5[:128] + cos@W5[128:256] + h4@W5[256:]
    h = finish(dot(s, w5s) + dot(c, w5c) + dot(h4, w5h), 5)
    h = finish(dot(h, w6), 6)
    h = finish(dot(h, w7), 7)

    feat = finish(dot(h, wf), 8, relu=False)              # feature_linear, no relu
    h = finish(dot(feat, wv), 9, width=VIEW_W)            # views_linears[0] + relu
    rgb = dot(h, wr) + b_ref[10:11, :RGB_PAD]             # (tm, 128) padded head, f32

    # sigmoid = 1 / (1 + exp(-x)); exp + approx reciprocal both live on the EUP.
    e = jnp.exp(-rgb)
    out_ref[...] = pl.reciprocal(1.0 + e, approx=True)


# --------------------------------- wrapper ----------------------------------

def _pick_tile(n_rows, requested):
    """Multiple of 8; at least 2 grid steps when the batch allows (v7x: 2 TCs)."""
    t = max(8, (int(requested) // 8) * 8)
    while t > 128 and pl.cdiv(n_rows, t) < 2:
        t //= 2
    return t


def neulf_forward(x, params, *, tile_rows=256):
    """x: (..., 6) float32. Returns (..., 3)."""
    lead = x.shape[:-1]
    N = int(np.prod(lead)) if lead else 1
    x2 = jnp.asarray(x, jnp.float32).reshape(N, IN_DIM)

    tm = _pick_tile(N, tile_rows)
    Np = ((N + tm - 1) // tm) * tm
    # Pad rows up to a tile multiple, and channels 6 -> 8 (zero rows of b.T make
    # the extra channels contribute nothing).
    x2 = jnp.pad(x2, ((0, Np - N), (0, IN_DIM_PAD - IN_DIM)))

    def wt(w):   # torch Linear weight (out, in) -> (in, out), f32
        return jnp.asarray(w, jnp.float32).T

    def bf16(w):
        return w.astype(jnp.bfloat16)

    # Fourier projection matrix stays f32 (VPU path), padded 6 -> 8 rows.
    bAT = jnp.pad(jnp.asarray(params["b_normalAlbedo"], jnp.float32).T,
                  ((0, IN_DIM_PAD - IN_DIM), (0, 0)))          # (8, 128) f32

    # ---- weights (bf16), with W0 / W5 split to remove in-kernel concats ----
    w0t = wt(params["pts_linears_rgb"][0][0])                  # (256, 256)
    weights = [bf16(w0t[:HALF_CH]), bf16(w0t[HALF_CH:])]       # w0_sin, w0_cos
    for i in range(1, 5):
        weights.append(bf16(wt(params["pts_linears_rgb"][i][0])))
    w5t = wt(params["pts_linears_rgb"][5][0])                  # (512, 256)
    weights += [bf16(w5t[:HALF_CH]),                           # w5_sin
                bf16(w5t[HALF_CH:INPUT_CH]),                   # w5_cos
                bf16(w5t[INPUT_CH:])]                          # w5_h
    for i in (6, 7):
        weights.append(bf16(wt(params["pts_linears_rgb"][i][0])))
    weights.append(bf16(wt(params["feature_linear_rgb"][0])))  # wf (256, 256)
    weights.append(bf16(wt(params["views_linears"][0])))       # wv (256, 128)
    Wr, br = params["rgb_linear"]
    wr_pad = jnp.zeros((VIEW_W, RGB_PAD), jnp.float32).at[:, :3].set(wt(Wr))
    weights.append(bf16(wr_pad))                               # wr (128, 128)

    # ---- biases packed into a single (16, 256) f32 operand ----
    bias_pack = jnp.zeros((N_BIAS_ROWS, W_HID), jnp.float32)
    for i in range(D_LAYERS):
        bias_pack = bias_pack.at[i, :].set(
            jnp.asarray(params["pts_linears_rgb"][i][1], jnp.float32))
    bias_pack = bias_pack.at[8, :].set(
        jnp.asarray(params["feature_linear_rgb"][1], jnp.float32))
    bias_pack = bias_pack.at[9, :VIEW_W].set(
        jnp.asarray(params["views_linears"][1], jnp.float32))
    bias_pack = bias_pack.at[10, :3].set(jnp.asarray(br, jnp.float32))

    def _const_spec(a):
        rank = len(a.shape)
        return pl.BlockSpec(a.shape, lambda i, _r=rank: (0,) * _r)

    grid = (Np // tm,)
    in_specs = ([pl.BlockSpec((tm, IN_DIM_PAD), lambda i: (i, 0)),
                 _const_spec(bAT)]
                + [_const_spec(w) for w in weights]
                + [_const_spec(bias_pack)])
    out_spec = pl.BlockSpec((tm, RGB_PAD), lambda i: (i, 0))

    macs_per_row = (IN_DIM * HALF_CH                       # Fourier (VPU)
                    + INPUT_CH * W_HID                     # layer 0 (split)
                    + 4 * W_HID * W_HID                    # layers 1-4
                    + (INPUT_CH + W_HID) * W_HID           # layer 5 (skip, split)
                    + 2 * W_HID * W_HID                    # layers 6-7
                    + W_HID * W_HID                        # feature
                    + W_HID * VIEW_W                       # views
                    + VIEW_W * RGB_PAD)                    # rgb head (padded)
    weight_bytes = (4 * int(bAT.size) + 4 * int(bias_pack.size)
                    + 2 * sum(int(w.size) for w in weights))
    cost = pl.CostEstimate(
        flops=2 * Np * macs_per_row,
        transcendentals=Np * (2 * HALF_CH + RGB_PAD),
        bytes_accessed=4 * Np * (IN_DIM_PAD + RGB_PAD) + weight_bytes)

    out = pl.pallas_call(
        _neulf_kernel,
        out_shape=jax.ShapeDtypeStruct((Np, RGB_PAD), jnp.float32),
        grid=grid,
        in_specs=in_specs,
        out_specs=out_spec,
        compiler_params=pltpu.CompilerParams(
            dimension_semantics=("parallel",)),
        cost_estimate=cost,
    )(x2, bAT, *weights, bias_pack)

    rgb = out[:N, :3]
    return rgb.reshape(*lead, 3)


# ----------------------------- pure-JAX reference ----------------------------

def neulf_ref(x, params):
    def rdot(a, b):
        return jnp.dot(a, b, precision=_HIGHEST)

    lead = x.shape[:-1]
    x2 = jnp.asarray(x, jnp.float32).reshape(-1, IN_DIM)
    bA = jnp.asarray(params["b_normalAlbedo"], jnp.float32)
    z = rdot(2.0 * np.pi * x2, bA.T)
    input_pts = jnp.concatenate([jnp.sin(z), jnp.cos(z)], axis=-1)
    h = input_pts
    feature = input_pts
    for i in range(D_LAYERS):
        Wl, bl = params["pts_linears_rgb"][i]
        h = jax.nn.relu(rdot(h, Wl.T) + bl)
        if i in SKIPS:
            h = jnp.concatenate([feature, h], axis=-1)
    Wf, bf_ = params["feature_linear_rgb"]
    feature = rdot(h, Wf.T) + bf_
    Wv, bv_ = params["views_linears"]
    h = jax.nn.relu(rdot(feature, Wv.T) + bv_)
    Wr, br_ = params["rgb_linear"]
    rgb = rdot(h, Wr.T) + br_
    rgb = 1.0 / (1.0 + jnp.exp(-rgb))
    return rgb.reshape(*lead, 3)


# ------------------------------------ main ------------------------------------

if __name__ == "__main__":
    key = jax.random.PRNGKey(0)
    keys = jax.random.split(key, 16)
    kit = iter(keys)

    def linear_params(k, out_f, in_f):
        kw, kb = jax.random.split(k)
        bound = 1.0 / math.sqrt(in_f)
        W = jax.random.uniform(kw, (out_f, in_f), jnp.float32, -bound, bound)
        b = jax.random.uniform(kb, (out_f,), jnp.float32, -bound, bound)
        return W, b

    params = {}
    params["b_normalAlbedo"] = 16.0 * jax.random.normal(
        next(kit), (HALF_CH, IN_DIM), jnp.float32)

    in_dims = [INPUT_CH] + [W_HID if i not in SKIPS else W_HID + INPUT_CH
                            for i in range(D_LAYERS - 1)]
    pts = []
    for d_in in in_dims:
        pts.append(linear_params(next(kit), W_HID, d_in))
    params["pts_linears_rgb"] = pts
    params["feature_linear_rgb"] = linear_params(next(kit), W_HID, W_HID)
    params["views_linears"] = linear_params(next(kit), VIEW_W, INPUT_CH)
    params["rgb_linear"] = linear_params(next(kit), 3, VIEW_W)

    # Example input: (batch=2, rays=128, channels=6) -> 256 rows (2 grid steps).
    x = jax.random.normal(next(kit), (2, 128, IN_DIM), dtype=jnp.float32)

    out = neulf_forward(x, params, tile_rows=256)
    out = jax.block_until_ready(out)
    assert out.shape == (2, 128, 3), out.shape

    ref = neulf_ref(x, params)
    # bf16 matmuls with f32 accumulation: loosen the tolerance accordingly.
    np.testing.assert_allclose(np.asarray(out), np.asarray(ref),
                               rtol=3e-2, atol=3e-2)

    print("KERNEL_OK")
</pallas_src>

<mosaic_0001>
module attributes {stable_mosaic.version = 11 : i64} {
  func.func @_neulf_kernel(%arg0: i32, %arg1: memref<128x8xf32, #tpu.memory_space<vmem>>, %arg2: memref<8x128xf32, #tpu.memory_space<vmem>>, %arg3: memref<128x256xbf16, #tpu.memory_space<vmem>>, %arg4: memref<128x256xbf16, #tpu.memory_space<vmem>>, %arg5: memref<256x256xbf16, #tpu.memory_space<vmem>>, %arg6: memref<256x256xbf16, #tpu.memory_space<vmem>>, %arg7: memref<256x256xbf16, #tpu.memory_space<vmem>>, %arg8: memref<256x256xbf16, #tpu.memory_space<vmem>>, %arg9: memref<128x256xbf16, #tpu.memory_space<vmem>>, %arg10: memref<128x256xbf16, #tpu.memory_space<vmem>>, %arg11: memref<256x256xbf16, #tpu.memory_space<vmem>>, %arg12: memref<256x256xbf16, #tpu.memory_space<vmem>>, %arg13: memref<256x256xbf16, #tpu.memory_space<vmem>>, %arg14: memref<256x256xbf16, #tpu.memory_space<vmem>>, %arg15: memref<256x128xbf16, #tpu.memory_space<vmem>>, %arg16: memref<128x128xbf16, #tpu.memory_space<vmem>>, %arg17: memref<16x256xf32, #tpu.memory_space<vmem>>, %arg18: memref<128x128xf32, #tpu.memory_space<vmem>>) attributes {dimension_semantics = [#tpu.dimension_semantics<parallel>], iteration_bounds = array<i64: 2>, scalar_prefetch = 0 : i64, scratch_operands = 0 : i64, tpu.core_type = #tpu.core_type<tc>, window_params = [{transform_indices = @transform_0, window_bounds = array<i64: 128, 8>}, {pipeline_mode = #tpu.pipeline_mode<synchronous>, transform_indices = @transform_1, window_bounds = array<i64: 8, 128>}, {pipeline_mode = #tpu.pipeline_mode<synchronous>, transform_indices = @transform_2, window_bounds = array<i64: 128, 256>}, {pipeline_mode = #tpu.pipeline_mode<synchronous>, transform_indices = @transform_3, window_bounds = array<i64: 128, 256>}, {pipeline_mode = #tpu.pipeline_mode<synchronous>, transform_indices = @transform_4, window_bounds = array<i64: 256, 256>}, {pipeline_mode = #tpu.pipeline_mode<synchronous>, transform_indices = @transform_5, window_bounds = array<i64: 256, 256>}, {pipeline_mode = #tpu.pipeline_mode<synchronous>, transform_indices = @transform_6, window_bounds = array<i64: 256, 256>}, {pipeline_mode = #tpu.pipeline_mode<synchronous>, transform_indices = @transform_7, window_bounds = array<i64: 256, 256>}, {pipeline_mode = #tpu.pipeline_mode<synchronous>, transform_indices = @transform_8, window_bounds = array<i64: 128, 256>}, {pipeline_mode = #tpu.pipeline_mode<synchronous>, transform_indices = @transform_9, window_bounds = array<i64: 128, 256>}, {pipeline_mode = #tpu.pipeline_mode<synchronous>, transform_indices = @transform_10, window_bounds = array<i64: 256, 256>}, {pipeline_mode = #tpu.pipeline_mode<synchronous>, transform_indices = @transform_11, window_bounds = array<i64: 256, 256>}, {pipeline_mode = #tpu.pipeline_mode<synchronous>, transform_indices = @transform_12, window_bounds = array<i64: 256, 256>}, {pipeline_mode = #tpu.pipeline_mode<synchronous>, transform_indices = @transform_13, window_bounds = array<i64: 256, 256>}, {pipeline_mode = #tpu.pipeline_mode<synchronous>, transform_indices = @transform_14, window_bounds = array<i64: 256, 128>}, {pipeline_mode = #tpu.pipeline_mode<synchronous>, transform_indices = @transform_15, window_bounds = array<i64: 128, 128>}, {pipeline_mode = #tpu.pipeline_mode<synchronous>, transform_indices = @transform_16, window_bounds = array<i64: 16, 256>}, {transform_indices = @transform_17, window_bounds = array<i64: 128, 128>}]} {
    %c0 = arith.constant 0 : index
    %c0_0 = arith.constant 0 : index
    %0 = vector.load %arg1[%c0, %c0_0] : memref<128x8xf32, #tpu.memory_space<vmem>>, vector<128x8xf32>
    %cst = arith.constant 6.28318548 : f32
    %1 = vector.broadcast %cst : f32 to vector<128x8xf32>
    %2 = arith.mulf %0, %1 : vector<128x8xf32>
    %3 = vector.extract_strided_slice %2 {offsets = [0, 0], sizes = [128, 1], strides = [1, 1]} : vector<128x8xf32> to vector<128x1xf32>
    %c0_1 = arith.constant 0 : index
    %c0_2 = arith.constant 0 : index
    %4 = vector.load %arg2[%c0_1, %c0_2] : memref<8x128xf32, #tpu.memory_space<vmem>>, vector<1x128xf32>
    %5 = vector.broadcast %3 : vector<128x1xf32> to vector<128x128xf32>
    %6 = vector.broadcast %4 : vector<1x128xf32> to vector<128x128xf32>
    %7 = arith.mulf %5, %6 : vector<128x128xf32>
    %8 = vector.extract_strided_slice %2 {offsets = [0, 1], sizes = [128, 1], strides = [1, 1]} : vector<128x8xf32> to vector<128x1xf32>
    %c1 = arith.constant 1 : index
    %c0_3 = arith.constant 0 : index
    %9 = vector.load %arg2[%c1, %c0_3] : memref<8x128xf32, #tpu.memory_space<vmem>>, vector<1x128xf32>
    %10 = vector.broadcast %8 : vector<128x1xf32> to vector<128x128xf32>
    %11 = vector.broadcast %9 : vector<1x128xf32> to vector<128x128xf32>
    %12 = arith.mulf %10, %11 : vector<128x128xf32>
    %13 = arith.addf %7, %12 : vector<128x128xf32>
    %14 = vector.extract_strided_slice %2 {offsets = [0, 2], sizes = [128, 1], strides = [1, 1]} : vector<128x8xf32> to vector<128x1xf32>
    %c2 = arith.constant 2 : index
    %c0_4 = arith.constant 0 : index
    %15 = vector.load %arg2[%c2, %c0_4] : memref<8x128xf32, #tpu.memory_space<vmem>>, vector<1x128xf32>
    %16 = vector.broadcast %14 : vector<128x1xf32> to vector<128x128xf32>
    %17 = vector.broadcast %15 : vector<1x128xf32> to vector<128x128xf32>
    %18 = arith.mulf %16, %17 : vector<128x128xf32>
    %19 = arith.addf %13, %18 : vector<128x128xf32>
    %20 = vector.extract_strided_slice %2 {offsets = [0, 3], sizes = [128, 1], strides = [1, 1]} : vector<128x8xf32> to vector<128x1xf32>
    %c3 = arith.constant 3 : index
    %c0_5 = arith.constant 0 : index
    %21 = vector.load %arg2[%c3, %c0_5] : memref<8x128xf32, #tpu.memory_space<vmem>>, vector<1x128xf32>
    %22 = vector.broadcast %20 : vector<128x1xf32> to vector<128x128xf32>
    %23 = vector.broadcast %21 : vector<1x128xf32> to vector<128x128xf32>
    %24 = arith.mulf %22, %23 : vector<128x128xf32>
    %25 = arith.addf %19, %24 : vector<128x128xf32>
    %26 = vector.extract_strided_slice %2 {offsets = [0, 4], sizes = [128, 1], strides = [1, 1]} : vector<128x8xf32> to vector<128x1xf32>
    %c4 = arith.constant 4 : index
    %c0_6 = arith.constant 0 : index
    %27 = vector.load %arg2[%c4, %c0_6] : memref<8x128xf32, #tpu.memory_space<vmem>>, vector<1x128xf32>
    %28 = vector.broadcast %26 : vector<128x1xf32> to vector<128x128xf32>
    %29 = vector.broadcast %27 : vector<1x128xf32> to vector<128x128xf32>
    %30 = arith.mulf %28, %29 : vector<128x128xf32>
    %31 = arith.addf %25, %30 : vector<128x128xf32>
    %32 = vector.extract_strided_slice %2 {offsets = [0, 5], sizes = [128, 1], strides = [1, 1]} : vector<128x8xf32> to vector<128x1xf32>
    %c5 = arith.constant 5 : index
    %c0_7 = arith.constant 0 : index
    %33 = vector.load %arg2[%c5, %c0_7] : memref<8x128xf32, #tpu.memory_space<vmem>>, vector<1x128xf32>
    %34 = vector.broadcast %32 : vector<128x1xf32> to vector<128x128xf32>
    %35 = vector.broadcast %33 : vector<1x128xf32> to vector<128x128xf32>
    %36 = arith.mulf %34, %35 : vector<128x128xf32>
    %37 = arith.addf %31, %36 : vector<128x128xf32>
    %38 = math.sin %37 : vector<128x128xf32>
    %39 = arith.truncf %38 : vector<128x128xf32> to vector<128x128xbf16>
    %40 = math.cos %37 : vector<128x128xf32>
    %41 = arith.truncf %40 : vector<128x128xf32> to vector<128x128xbf16>
    %c0_8 = arith.constant 0 : index
    %c0_9 = arith.constant 0 : index
    %42 = vector.load %arg3[%c0_8, %c0_9] : memref<128x256xbf16, #tpu.memory_space<vmem>>, vector<128x256xbf16>
    %cst_10 = arith.constant dense<0.000000e+00> : vector<128x256xf32>
    %43 = tpu.matmul %39, %42, %cst_10 {dimension_numbers = #tpu.dot_dimension_numbers<[1], [0], [0], [1], [0, 0, 1, 1], [], []>} : vector<128x128xbf16>, vector<128x256xbf16>, vector<128x256xf32> -> vector<128x256xf32>
    %c0_11 = arith.constant 0 : index
    %c0_12 = arith.constant 0 : index
    %44 = vector.load %arg4[%c0_11, %c0_12] : memref<128x256xbf16, #tpu.memory_space<vmem>>, vector<128x256xbf16>
    %cst_13 = arith.constant dense<0.000000e+00> : vector<128x256xf32>
    %45 = tpu.matmul %41, %44, %cst_13 {dimension_numbers = #tpu.dot_dimension_numbers<[1], [0], [0], [1], [0, 0, 1, 1], [], []>} : vector<128x128xbf16>, vector<128x256xbf16>, vector<128x256xf32> -> vector<128x256xf32>
    %46 = arith.addf %43, %45 : vector<128x256xf32>
    %c0_14 = arith.constant 0 : index
    %c0_15 = arith.constant 0 : index
    %47 = vector.load %arg17[%c0_14, %c0_15] : memref<16x256xf32, #tpu.memory_space<vmem>>, vector<1x256xf32>
    %48 = vector.broadcast %47 : vector<1x256xf32> to vector<128x256xf32>
    %49 = arith.addf %46, %48 : vector<128x256xf32>
    %cst_16 = arith.constant 0.000000e+00 : f32
    %50 = vector.broadcast %cst_16 : f32 to vector<128x256xf32>
    %51 = arith.maximumf %49, %50 : vector<128x256xf32>
    %52 = arith.truncf %51 : vector<128x256xf32> to vector<128x256xbf16>
    %c0_17 = arith.constant 0 : index
    %c0_18 = arith.constant 0 : index
    %53 = vector.load %arg5[%c0_17, %c0_18] : memref<256x256xbf16, #tpu.memory_space<vmem>>, vector<256x256xbf16>
    %cst_19 = arith.constant dense<0.000000e+00> : vector<128x256xf32>
    %54 = tpu.matmul %52, %53, %cst_19 {dimension_numbers = #tpu.dot_dimension_numbers<[1], [0], [0], [1], [0, 0, 1, 1], [], []>} : vector<128x256xbf16>, vector<256x256xbf16>, vector<128x256xf32> -> vector<128x256xf32>
    %c1_20 = arith.constant 1 : index
    %c0_21 = arith.constant 0 : index
    %55 = vector.load %arg17[%c1_20, %c0_21] : memref<16x256xf32, #tpu.memory_space<vmem>>, vector<1x256xf32>
    %56 = vector.broadcast %55 : vector<1x256xf32> to vector<128x256xf32>
    %57 = arith.addf %54, %56 : vector<128x256xf32>
    %cst_22 = arith.constant 0.000000e+00 : f32
    %58 = vector.broadcast %cst_22 : f32 to vector<128x256xf32>
    %59 = arith.maximumf %57, %58 : vector<128x256xf32>
    %60 = arith.truncf %59 : vector<128x256xf32> to vector<128x256xbf16>
    %c0_23 = arith.constant 0 : index
    %c0_24 = arith.constant 0 : index
    %61 = vector.load %arg6[%c0_23, %c0_24] : memref<256x256xbf16, #tpu.memory_space<vmem>>, vector<256x256xbf16>
    %cst_25 = arith.constant dense<0.000000e+00> : vector<128x256xf32>
    %62 = tpu.matmul %60, %61, %cst_25 {dimension_numbers = #tpu.dot_dimension_numbers<[1], [0], [0], [1], [0, 0, 1, 1], [], []>} : vector<128x256xbf16>, vector<256x256xbf16>, vector<128x256xf32> -> vector<128x256xf32>
    %c2_26 = arith.constant 2 : index
    %c0_27 = arith.constant 0 : index
    %63 = vector.load %arg17[%c2_26, %c0_27] : memref<16x256xf32, #tpu.memory_space<vmem>>, vector<1x256xf32>
    %64 = vector.broadcast %63 : vector<1x256xf32> to vector<128x256xf32>
    %65 = arith.addf %62, %64 : vector<128x256xf32>
    %cst_28 = arith.constant 0.000000e+00 : f32
    %66 = vector.broadcast %cst_28 : f32 to vector<128x256xf32>
    %67 = arith.maximumf %65, %66 : vector<128x256xf32>
    %68 = arith.truncf %67 : vector<128x256xf32> to vector<128x256xbf16>
    %c0_29 = arith.constant 0 : index
    %c0_30 = arith.constant 0 : index
    %69 = vector.load %arg7[%c0_29, %c0_30] : memref<256x256xbf16, #tpu.memory_space<vmem>>, vector<256x256xbf16>
    %cst_31 = arith.constant dense<0.000000e+00> : vector<128x256xf32>
    %70 = tpu.matmul %68, %69, %cst_31 {dimension_numbers = #tpu.dot_dimension_numbers<[1], [0], [0], [1], [0, 0, 1, 1], [], []>} : vector<128x256xbf16>, vector<256x256xbf16>, vector<128x256xf32> -> vector<128x256xf32>
    %c3_32 = arith.constant 3 : index
    %c0_33 = arith.constant 0 : index
    %71 = vector.load %arg17[%c3_32, %c0_33] : memref<16x256xf32, #tpu.memory_space<vmem>>, vector<1x256xf32>
    %72 = vector.broadcast %71 : vector<1x256xf32> to vector<128x256xf32>
    %73 = arith.addf %70, %72 : vector<128x256xf32>
    %cst_34 = arith.constant 0.000000e+00 : f32
    %74 = vector.broadcast %cst_34 : f32 to vector<128x256xf32>
    %75 = arith.maximumf %73, %74 : vector<128x256xf32>
    %76 = arith.truncf %75 : vector<128x256xf32> to vector<128x256xbf16>
    %c0_35 = arith.constant 0 : index
    %c0_36 = arith.constant 0 : index
    %77 = vector.load %arg8[%c0_35, %c0_36] : memref<256x256xbf16, #tpu.memory_space<vmem>>, vector<256x256xbf16>
    %cst_37 = arith.constant dense<0.000000e+00> : vector<128x256xf32>
    %78 = tpu.matmul %76, %77, %cst_37 {dimension_numbers = #tpu.dot_dimension_numbers<[1], [0], [0], [1], [0, 0, 1, 1], [], []>} : vector<128x256xbf16>, vector<256x256xbf16>, vector<128x256xf32> -> vector<128x256xf32>
    %c4_38 = arith.constant 4 : index
    %c0_39 = arith.constant 0 : index
    %79 = vector.load %arg17[%c4_38, %c0_39] : memref<16x256xf32, #tpu.memory_space<vmem>>, vector<1x256xf32>
    %80 = vector.broadcast %79 : vector<1x256xf32> to vector<128x256xf32>
    %81 = arith.addf %78, %80 : vector<128x256xf32>
    %cst_40 = arith.constant 0.000000e+00 : f32
    %82 = vector.broadcast %cst_40 : f32 to vector<128x256xf32>
    %83 = arith.maximumf %81, %82 : vector<128x256xf32>
    %84 = arith.truncf %83 : vector<128x256xf32> to vector<128x256xbf16>
    %c0_41 = arith.constant 0 : index
    %c0_42 = arith.constant 0 : index
    %85 = vector.load %arg9[%c0_41, %c0_42] : memref<128x256xbf16, #tpu.memory_space<vmem>>, vector<128x256xbf16>
    %cst_43 = arith.constant dense<0.000000e+00> : vector<128x256xf32>
    %86 = tpu.matmul %39, %85, %cst_43 {dimension_numbers = #tpu.dot_dimension_numbers<[1], [0], [0], [1], [0, 0, 1, 1], [], []>} : vector<128x128xbf16>, vector<128x256xbf16>, vector<128x256xf32> -> vector<128x256xf32>
    %c0_44 = arith.constant 0 : index
    %c0_45 = arith.constant 0 : index
    %87 = vector.load %arg10[%c0_44, %c0_45] : memref<128x256xbf16, #tpu.memory_space<vmem>>, vector<128x256xbf16>
    %cst_46 = arith.constant dense<0.000000e+00> : vector<128x256xf32>
    %88 = tpu.matmul %41, %87, %cst_46 {dimension_numbers = #tpu.dot_dimension_numbers<[1], [0], [0], [1], [0, 0, 1, 1], [], []>} : vector<128x128xbf16>, vector<128x256xbf16>, vector<128x256xf32> -> vector<128x256xf32>
    %89 = arith.addf %86, %88 : vector<128x256xf32>
    %c0_47 = arith.constant 0 : index
    %c0_48 = arith.constant 0 : index
    %90 = vector.load %arg11[%c0_47, %c0_48] : memref<256x256xbf16, #tpu.memory_space<vmem>>, vector<256x256xbf16>
    %cst_49 = arith.constant dense<0.000000e+00> : vector<128x256xf32>
    %91 = tpu.matmul %84, %90, %cst_49 {dimension_numbers = #tpu.dot_dimension_numbers<[1], [0], [0], [1], [0, 0, 1, 1], [], []>} : vector<128x256xbf16>, vector<256x256xbf16>, vector<128x256xf32> -> vector<128x256xf32>
    %92 = arith.addf %89, %91 : vector<128x256xf32>
    %c5_50 = arith.constant 5 : index
    %c0_51 = arith.constant 0 : index
    %93 = vector.load %arg17[%c5_50, %c0_51] : memref<16x256xf32, #tpu.memory_space<vmem>>, vector<1x256xf32>
    %94 = vector.broadcast %93 : vector<1x256xf32> to vector<128x256xf32>
    %95 = arith.addf %92, %94 : vector<128x256xf32>
    %cst_52 = arith.constant 0.000000e+00 : f32
    %96 = vector.broadcast %cst_52 : f32 to vector<128x256xf32>
    %97 = arith.maximumf %95, %96 : vector<128x256xf32>
    %98 = arith.truncf %97 : vector<128x256xf32> to vector<128x256xbf16>
    %c0_53 = arith.constant 0 : index
    %c0_54 = arith.constant 0 : index
    %99 = vector.load %arg12[%c0_53, %c0_54] : memref<256x256xbf16, #tpu.memory_space<vmem>>, vector<256x256xbf16>
    %cst_55 = arith.constant dense<0.000000e+00> : vector<128x256xf32>
    %100 = tpu.matmul %98, %99, %cst_55 {dimension_numbers = #tpu.dot_dimension_numbers<[1], [0], [0], [1], [0, 0, 1, 1], [], []>} : vector<128x256xbf16>, vector<256x256xbf16>, vector<128x256xf32> -> vector<128x256xf32>
    %c6 = arith.constant 6 : index
    %c0_56 = arith.constant 0 : index
    %101 = vector.load %arg17[%c6, %c0_56] : memref<16x256xf32, #tpu.memory_space<vmem>>, vector<1x256xf32>
    %102 = vector.broadcast %101 : vector<1x256xf32> to vector<128x256xf32>
    %103 = arith.addf %100, %102 : vector<128x256xf32>
    %cst_57 = arith.constant 0.000000e+00 : f32
    %104 = vector.broadcast %cst_57 : f32 to vector<128x256xf32>
    %105 = arith.maximumf %103, %104 : vector<128x256xf32>
    %106 = arith.truncf %105 : vector<128x256xf32> to vector<128x256xbf16>
    %c0_58 = arith.constant 0 : index
    %c0_59 = arith.constant 0 : index
    %107 = vector.load %arg13[%c0_58, %c0_59] : memref<256x256xbf16, #tpu.memory_space<vmem>>, vector<256x256xbf16>
    %cst_60 = arith.constant dense<0.000000e+00> : vector<128x256xf32>
    %108 = tpu.matmul %106, %107, %cst_60 {dimension_numbers = #tpu.dot_dimension_numbers<[1], [0], [0], [1], [0, 0, 1, 1], [], []>} : vector<128x256xbf16>, vector<256x256xbf16>, vector<128x256xf32> -> vector<128x256xf32>
    %c7 = arith.constant 7 : index
    %c0_61 = arith.constant 0 : index
    %109 = vector.load %arg17[%c7, %c0_61] : memref<16x256xf32, #tpu.memory_space<vmem>>, vector<1x256xf32>
    %110 = vector.broadcast %109 : vector<1x256xf32> to vector<128x256xf32>
    %111 = arith.addf %108, %110 : vector<128x256xf32>
    %cst_62 = arith.constant 0.000000e+00 : f32
    %112 = vector.broadcast %cst_62 : f32 to vector<128x256xf32>
    %113 = arith.maximumf %111, %112 : vector<128x256xf32>
    %114 = arith.truncf %113 : vector<128x256xf32> to vector<128x256xbf16>
    %c0_63 = arith.constant 0 : index
    %c0_64 = arith.constant 0 : index
    %115 = vector.load %arg14[%c0_63, %c0_64] : memref<256x256xbf16, #tpu.memory_space<vmem>>, vector<256x256xbf16>
    %cst_65 = arith.constant dense<0.000000e+00> : vector<128x256xf32>
    %116 = tpu.matmul %114, %115, %cst_65 {dimension_numbers = #tpu.dot_dimension_numbers<[1], [0], [0], [1], [0, 0, 1, 1], [], []>} : vector<128x256xbf16>, vector<256x256xbf16>, vector<128x256xf32> -> vector<128x256xf32>
    %c8 = arith.constant 8 : index
    %c0_66 = arith.constant 0 : index
    %117 = vector.load %arg17[%c8, %c0_66] : memref<16x256xf32, #tpu.memory_space<vmem>>, vector<1x256xf32>
    %118 = vector.broadcast %117 : vector<1x256xf32> to vector<128x256xf32>
    %119 = arith.addf %116, %118 : vector<128x256xf32>
    %120 = arith.truncf %119 : vector<128x256xf32> to vector<128x256xbf16>
    %c0_67 = arith.constant 0 : index
    %c0_68 = arith.constant 0 : index
    %121 = vector.load %arg15[%c0_67, %c0_68] : memref<256x128xbf16, #tpu.memory_space<vmem>>, vector<256x128xbf16>
    %cst_69 = arith.constant dense<0.000000e+00> : vector<128x128xf32>
    %122 = tpu.matmul %120, %121, %cst_69 {dimension_numbers = #tpu.dot_dimension_numbers<[1], [0], [0], [1], [0, 0, 1, 1], [], []>} : vector<128x256xbf16>, vector<256x128xbf16>, vector<128x128xf32> -> vector<128x128xf32>
    %c9 = arith.constant 9 : index
    %c0_70 = arith.constant 0 : index
    %123 = vector.load %arg17[%c9, %c0_70] : memref<16x256xf32, #tpu.memory_space<vmem>>, vector<1x128xf32>
    %124 = vector.broadcast %123 : vector<1x128xf32> to vector<128x128xf32>
    %125 = arith.addf %122, %124 : vector<128x128xf32>
    %cst_71 = arith.constant 0.000000e+00 : f32
    %126 = vector.broadcast %cst_71 : f32 to vector<128x128xf32>
    %127 = arith.maximumf %125, %126 : vector<128x128xf32>
    %128 = arith.truncf %127 : vector<128x128xf32> to vector<128x128xbf16>
    %c0_72 = arith.constant 0 : index
    %c0_73 = arith.constant 0 : index
    %129 = vector.load %arg16[%c0_72, %c0_73] : memref<128x128xbf16, #tpu.memory_space<vmem>>, vector<128x128xbf16>
    %cst_74 = arith.constant dense<0.000000e+00> : vector<128x128xf32>
    %130 = tpu.matmul %128, %129, %cst_74 {dimension_numbers = #tpu.dot_dimension_numbers<[1], [0], [0], [1], [0, 0, 1, 1], [], []>} : vector<128x128xbf16>, vector<128x128xbf16>, vector<128x128xf32> -> vector<128x128xf32>
    %c10 = arith.constant 10 : index
    %c0_75 = arith.constant 0 : index
    %131 = vector.load %arg17[%c10, %c0_75] : memref<16x256xf32, #tpu.memory_space<vmem>>, vector<1x128xf32>
    %132 = vector.broadcast %131 : vector<1x128xf32> to vector<128x128xf32>
    %133 = arith.addf %130, %132 : vector<128x128xf32>
    %cst_76 = arith.constant 0.000000e+00 : f32
    %134 = vector.broadcast %cst_76 : f32 to vector<128x128xf32>
    %135 = arith.subf %134, %133 : vector<128x128xf32>
    %136 = math.exp %135 : vector<128x128xf32>
    %cst_77 = arith.constant 1.000000e+00 : f32
    %137 = vector.broadcast %cst_77 : f32 to vector<128x128xf32>
    %138 = arith.addf %137, %136 : vector<128x128xf32>
    %139 = tpu.reciprocal %138 {approx = true} : vector<128x128xf32> -> vector<128x128xf32>
    %c0_78 = arith.constant 0 : index
    %c0_79 = arith.constant 0 : index
    %140 = vector.load %arg18[%c0_78, %c0_79] : memref<128x128xf32, #tpu.memory_space<vmem>>, vector<128x128xf32>
    tpu.vector_store %arg18[%c0_78, %c0_79], %139 {strides = array<i32>} : memref<128x128xf32, #tpu.memory_space<vmem>>, vector<128x128xf32>,
    return
  }
  func.func @transform_0(%arg0: i32) -> (i32, i32) {
    %c0_i32 = arith.constant 0 : i32
    %c0_i32_0 = arith.constant 0 : i32
    return %arg0, %c0_i32 : i32, i32
  }
  func.func @transform_1(%arg0: i32) -> (i32, i32) {
    %c0_i32 = arith.constant 0 : i32
    %c0_i32_0 = arith.constant 0 : i32
    %c0_i32_1 = arith.constant 0 : i32
    return %c0_i32, %c0_i32_0 : i32, i32
  }
  func.func @transform_2(%arg0: i32) -> (i32, i32) {
    %c0_i32 = arith.constant 0 : i32
    %c0_i32_0 = arith.constant 0 : i32
    %c0_i32_1 = arith.constant 0 : i32
    return %c0_i32, %c0_i32_0 : i32, i32
  }
  func.func @transform_3(%arg0: i32) -> (i32, i32) {
    %c0_i32 = arith.constant 0 : i32
    %c0_i32_0 = arith.constant 0 : i32
    %c0_i32_1 = arith.constant 0 : i32
    return %c0_i32, %c0_i32_0 : i32, i32
  }
  func.func @transform_4(%arg0: i32) -> (i32, i32) {
    %c0_i32 = arith.constant 0 : i32
    %c0_i32_0 = arith.constant 0 : i32
    %c0_i32_1 = arith.constant 0 : i32
    return %c0_i32, %c0_i32_0 : i32, i32
  }
  func.func @transform_5(%arg0: i32) -> (i32, i32) {
    %c0_i32 = arith.constant 0 : i32
    %c0_i32_0 = arith.constant 0 : i32
    %c0_i32_1 = arith.constant 0 : i32
    return %c0_i32, %c0_i32_0 : i32, i32
  }
  func.func @transform_6(%arg0: i32) -> (i32, i32) {
    %c0_i32 = arith.constant 0 : i32
    %c0_i32_0 = arith.constant 0 : i32
    %c0_i32_1 = arith.constant 0 : i32
    return %c0_i32, %c0_i32_0 : i32, i32
  }
  func.func @transform_7(%arg0: i32) -> (i32, i32) {
    %c0_i32 = arith.constant 0 : i32
    %c0_i32_0 = arith.constant 0 : i32
    %c0_i32_1 = arith.constant 0 : i32
    return %c0_i32, %c0_i32_0 : i32, i32
  }
  func.func @transform_8(%arg0: i32) -> (i32, i32) {
    %c0_i32 = arith.constant 0 : i32
    %c0_i32_0 = arith.constant 0 : i32
    %c0_i32_1 = arith.constant 0 : i32
    return %c0_i32, %c0_i32_0 : i32, i32
  }
  func.func @transform_9(%arg0: i32) -> (i32, i32) {
    %c0_i32 = arith.constant 0 : i32
    %c0_i32_0 = arith.constant 0 : i32
    %c0_i32_1 = arith.constant 0 : i32
    return %c0_i32, %c0_i32_0 : i32, i32
  }
  func.func @transform_10(%arg0: i32) -> (i32, i32) {
    %c0_i32 = arith.constant 0 : i32
    %c0_i32_0 = arith.constant 0 : i32
    %c0_i32_1 = arith.constant 0 : i32
    return %c0_i32, %c0_i32_0 : i32, i32
  }
  func.func @transform_11(%arg0: i32) -> (i32, i32) {
    %c0_i32 = arith.constant 0 : i32
    %c0_i32_0 = arith.constant 0 : i32
    %c0_i32_1 = arith.constant 0 : i32
    return %c0_i32, %c0_i32_0 : i32, i32
  }
  func.func @transform_12(%arg0: i32) -> (i32, i32) {
    %c0_i32 = arith.constant 0 : i32
    %c0_i32_0 = arith.constant 0 : i32
    %c0_i32_1 = arith.constant 0 : i32
    return %c0_i32, %c0_i32_0 : i32, i32
  }
  func.func @transform_13(%arg0: i32) -> (i32, i32) {
    %c0_i32 = arith.constant 0 : i32
    %c0_i32_0 = arith.constant 0 : i32
    %c0_i32_1 = arith.constant 0 : i32
    return %c0_i32, %c0_i32_0 : i32, i32
  }
  func.func @transform_14(%arg0: i32) -> (i32, i32) {
    %c0_i32 = arith.constant 0 : i32
    %c0_i32_0 = arith.constant 0 : i32
    %c0_i32_1 = arith.constant 0 : i32
    return %c0_i32, %c0_i32_0 : i32, i32
  }
  func.func @transform_15(%arg0: i32) -> (i32, i32) {
    %c0_i32 = arith.constant 0 : i32
    %c0_i32_0 = arith.constant 0 : i32
    %c0_i32_1 = arith.constant 0 : i32
    return %c0_i32, %c0_i32_0 : i32, i32
  }
  func.func @transform_16(%arg0: i32) -> (i32, i32) {
    %c0_i32 = arith.constant 0 : i32
    %c0_i32_0 = arith.constant 0 : i32
    %c0_i32_1 = arith.constant 0 : i32
    return %c0_i32, %c0_i32_0 : i32, i32
  }
  func.func @transform_17(%arg0: i32) -> (i32, i32) {
    %c0_i32 = arith.constant 0 : i32
    %c0_i32_0 = arith.constant 0 : i32
    return %arg0, %c0_i32 : i32, i32
  }
}

</mosaic_0001>

<bundles_post_ra>
// kernel: tpu_custom_call.1
= control target key start
LH: loop header
LB: loop body
LE: loop exit
PB: predicated region body
PF: predicated region fallthrough
CT: control target
= control target key end

     0   :  { %s19431_s0 = inlined_call_operand.vmem [shape: f32[256,8], index: 0, kind: input, shape index: {}]   ;;  %s19432_s1 = inlined_call_operand.vmem [shape: f32[8,128], index: 1, kind: input, shape index: {}]   ;;  %s19433_s2 = inlined_call_operand.hbm [shape: bf16[128,256], index: 2, kind: input, shape index: {}]   ;;  %s19434_s3 = inlined_call_operand.hbm [shape: bf16[128,256], index: 3, kind: input, shape index: {}]   ;;  %s19435_s4 = inlined_call_operand.vmem [shape: bf16[256,256], index: 4, kind: input, shape index: {}]   ;;  %s19436_s5 = inlined_call_operand.hbm [shape: bf16[256,256], index: 5, kind: input, shape index: {}]   ;;  %s19437_s6 = inlined_call_operand.hbm [shape: bf16[256,256], index: 6, kind: input, shape index: {}]   ;;  %s19438_s7 = inlined_call_operand.hbm [shape: bf16[256,256], index: 7, kind: input, shape index: {}]   ;;  %s19439_s8 = inlined_call_operand.hbm [shape: bf16[128,256], index: 8, kind: input, shape index: {}]   ;;  %s19440_s9 = inlined_call_operand.hbm [shape: bf16[128,256], index: 9, kind: input, shape index: {}]   ;;  %s19441_s10 = inlined_call_operand.hbm [shape: bf16[256,256], index: 10, kind: input, shape index: {}]   ;;  %s19442_s11 = inlined_call_operand.hbm [shape: bf16[256,256], index: 11, kind: input, shape index: {}]   ;;  %s19443_s12 = inlined_call_operand.hbm [shape: bf16[256,256], index: 12, kind: input, shape index: {}]   ;;  %s19444_s13 = inlined_call_operand.hbm [shape: bf16[256,256], index: 13, kind: input, shape index: {}]   ;;  %s19445_s14 = inlined_call_operand.hbm [shape: bf16[256,128], index: 14, kind: input, shape index: {}]   ;;  %s19446_s15 = inlined_call_operand.hbm [shape: bf16[128,128], index: 15, kind: input, shape index: {}]   ;;  %s19447_s16 = inlined_call_operand.hbm [shape: f32[16,256], index: 16, kind: input, shape index: {}]   ;;  %s19448_s17 = inlined_call_operand.hbm [shape: f32[256,128], index: 17, kind: output, shape index: {}]  }
   0x1   :  { %19668 = sst [smem:[#allocation103_spill]] %s19431_s0 }
   0x2   :  { %19669 = sst [smem:[#allocation104_spill]] %s19432_s1 }
   0x3   :  { %19670 = sst [smem:[#allocation105_spill]] %s19433_s2 }
   0x4   :  { %19671 = sst [smem:[#allocation106_spill]] %s19434_s3 }
   0x5   :  { %19672 = sst [smem:[#allocation107_spill]] %s19436_s5 }
   0x6   :  { %19673 = sst [smem:[#allocation108_spill]] %s19437_s6 }
   0x7   :  { %19674 = sst [smem:[#allocation109_spill]] %s19448_s17 }
   0x8   :  { %22 = vsyncpa [#allocation3], 0 }
   0x9   :  { %23 = vsyncpa [#allocation6], 0 }
   0xa   :  { %24 = vsyncpa [#allocation9], 0 }
   0xb   :  { %25 = vsyncpa [#allocation12], 0 }
   0xc   :  { %26 = vsyncpa [#allocation15], 0 }
   0xd   :  { %27 = vsyncpa [#allocation18], 0 }
   0xe   :  { %28 = vsyncpa [#allocation21], 0 }
   0xf   :  { %29 = vsyncpa [#allocation24], 0 }
  0x10   :  { %30 = vsyncpa [#allocation4], 0 }
  0x11   :  { %32 = vsyncpa [#allocation4 + $0x1], 0  ;;  %s14371_s24 = smov 0   ;;  %s14373_s25 = smov 0  }
  0x12   :  { %s14375_s26 = smov 0   ;;  %s14377_s27 = smov 0  }
  0x13 LB: > { %19675 = sst [smem:[#allocation35_spill]] %s14233_s24  ;;  %s14392_s28 = sadd.s32 4294967295, %s14245_s27   ;;  %s14245_s27 = sphi %s14377_s27, %s20118_s27   ;;  %s14241_s26 = sphi %s14375_s26, %s20120_s26   ;;  %s14237_s25 = sphi %s14373_s25, %s20122_s25   ;;  %s14233_s24 = sphi %s14371_s24, %s20121_s24  }
  0x14   : > { %19676 = sst [smem:[#allocation36_spill]] %s14241_s26  ;;  %s11475_s29 = sadd.s32 4294967294, %s14245_s27  }
  0x15   : > { %19677 = sst [smem:[#allocation37_spill]] %s14245_s27  ;;  %s14396_s0 = sadd.s32 1, %s14245_s27  }
  0x16   : > { %19678 = sst [smem:[#allocation38_spill]] %s14396_s0  ;;  %s407_s30 = sadd.s32 1, %s14241_s26 }
  0x17   : > { %s404_s18 = ssub.s32 %s14245_s27, %s14396_s0  ;;  %p417_p0 = scmp.ne.s32.totalorder %s14241_s26, %s14237_s25 }
  0x18   : > { %p405_p1 = scmp.eq.s32.totalorder %s404_s18, 0  ;;  %p418_p2 = scmp.eq.s32.totalorder %s14392_s28, 1 }
  0x19   : > { %p423_p3 = scmp.ne.s32.totalorder %s14237_s25, %s14233_s24  ;;  %p424_p4 = scmp.eq.s32.totalorder %s11475_s29, 1 }
  0x1a   : > { %s14407_s19 = scalar_select %p405_p1, %s14241_s26, %s407_s30  }
  0x1b   : > { %p14409_p5 = por %p418_p2, %p417_p0  ;;  %p14413_p6 = por %p424_p4, %p423_p3 }
  0x1c   : > { %19679 = sst [smem:[#allocation39_spill]] %s14407_s19  ;;  %p11476_p7 = scmp.ge.s32.totalorder %s14245_s27, 1 }
  0x1d   : > { %s19680_s1 = scalar_select %p14409_p5, 1, 0 }
  0x1e   : > { %s19682_s20 = scalar_select %p14413_p6, 1, 0 }
  0x1f   : > { %19681 = sst [smem:[#allocation40_spill]] %s19680_s1  ;;  %p431_p8 = scmp.lt.s32.totalorder %s14245_s27, 3 }
  0x20   : > { %19683 = sst [smem:[#allocation41_spill]] %s19682_s20  ;;  %p13461_p9 = scmp.eq.s32.totalorder %s14392_s28, 0 }
  0x21   : > { %p14420_p10 = pnand %p11476_p7, %p431_p8  ;;  %s19685_s3 = sld [smem:[#allocation106_spill]] }
  0x22   : > { %s19686_s6 = sld [smem:[#allocation108_spill]]  ;;  %s14247_s0 = smov [#allocation5]  }
  0x23   : > { %p13414_p11 = pneg %p14420_p10  ;;  %s461_s20 = sshll.u32 %s14247_s0, 4  ;;  %s462_s20 = int_to_ptr.vmem [resolvable:$true] %s461_s20 }
  0x24   : > { %s14248_s22 = smov 128   ;;  %s14249_s23 = smov 8  }
  0x25   : > { %p14434_p12 = pnand %p13461_p9, %p13414_p11  ;;  %s14250_s30 = smov [#allocation8]  }
  0x26   : > { %s492_s18 = sshll.u32 %s14250_s30, 4  ;;  %s518_s24 = sshll.u32 %s19439_s8, 4  ;;  %s493_s18 = int_to_ptr.vmem [resolvable:$true] %s492_s18  ;;  %s519_s24 = int_to_ptr.hbm [resolvable:$true] %s518_s24 }
  0x27   : > { %s459_s29 = sshll.u32 %s19685_s3, 4  ;;  %s546_s17 = sshll.u32 %s19441_s10, 4  ;;  %s460_s29 = int_to_ptr.hbm [resolvable:$true] %s459_s29  ;;  %s547_s17 = int_to_ptr.hbm [resolvable:$true] %s546_s17 }
  0x28   : > { %s490_s19 = sshll.u32 %s19686_s6, 4  ;;  %s14251_s1 = smov [#allocation11]   ;;  %s491_s19 = int_to_ptr.hbm [resolvable:$true] %s490_s19 }
  0x29   : > { %13420 = dma.hbm_to_vmem [thread:$0]  (!%p14434_p12), %s460_s29, 2048, %s462_s20, [#allocation6], %s14248_s22, %s14248_s22, %s14249_s23  }
  0x2a   : > { %13426 = dma.hbm_to_vmem [thread:$0]  (!%p14434_p12), %s491_s19, 4096, %s493_s18, [#allocation9], %s14248_s22, %s14248_s22, %s14249_s23  }
  0x2b   : > { %s520_s20 = sshll.u32 %s14251_s1, 4  ;;  %s14252_s3 = smov [#allocation14]   ;;  %s521_s20 = int_to_ptr.vmem [resolvable:$true] %s520_s20 }
  0x2c   : > { %13432 = dma.hbm_to_vmem [thread:$0]  (!%p14434_p12), %s519_s24, 2048, %s521_s20, [#allocation12], %s14248_s22, %s14248_s22, %s14249_s23  }
  0x2d   : > { %s548_s6 = sshll.u32 %s14252_s3, 4  ;;  %s574_s19 = sshll.u32 %s19443_s12, 4  ;;  %s549_s6 = int_to_ptr.vmem [resolvable:$true] %s548_s6  ;;  %s575_s19 = int_to_ptr.hbm [resolvable:$true] %s574_s19 }
  0x2e   : > { %13438 = dma.hbm_to_vmem [thread:$0]  (!%p14434_p12), %s547_s17, 4096, %s549_s6, [#allocation15], %s14248_s22, %s14248_s22, %s14249_s23  }
  0x2f   : > { %s602_s18 = sshll.u32 %s19445_s14, 4  ;;  %s14253_s0 = smov [#allocation17]   ;;  %s603_s18 = int_to_ptr.hbm [resolvable:$true] %s602_s18 }
  0x30   : > { %s576_s24 = sshll.u32 %s14253_s0, 4  ;;  %s14254_s20 = smov [#allocation20]   ;;  %s577_s24 = int_to_ptr.vmem [resolvable:$true] %s576_s24 }
  0x31   : > { %13444 = dma.hbm_to_vmem [thread:$0]  (!%p14434_p12), %s575_s19, 4096, %s577_s24, [#allocation18], %s14248_s22, %s14248_s22, %s14249_s23  }
  0x32   : > { %s604_s3 = sshll.u32 %s14254_s20, 4  ;;  %s19459_s29 = smov 64   ;;  %s605_s3 = int_to_ptr.vmem [resolvable:$true] %s604_s3 }
  0x33   : > { %s19460_s17 = smov 4   ;;  %s19688_s2 = sld [smem:[#allocation105_spill]] }
  0x34   : > { %13450 = dma.hbm_to_vmem [thread:$0]  (!%p14434_p12), %s603_s18, 2048, %s605_s3, [#allocation21], %s19459_s29, %s19459_s29, %s19460_s17  }
  0x35   : > { %s14257_s1 = smov [#allocation2]   ;;  %s19689_s5 = sld [smem:[#allocation107_spill]] }
  0x36   : > { %s447_s0 = sshll.u32 %s14257_s1, 4  ;;  %s14258_s18 = smov [#allocation7]   ;;  %s448_s0 = int_to_ptr.vmem [resolvable:$true] %s447_s0 }
  0x37   : > { %s478_s3 = sshll.u32 %s14258_s18, 4  ;;  %s504_s30 = sshll.u32 %s19438_s7, 4  ;;  %s479_s3 = int_to_ptr.vmem [resolvable:$true] %s478_s3  ;;  %s505_s30 = int_to_ptr.hbm [resolvable:$true] %s504_s30 }
  0x38   : > { %s532_s24 = sshll.u32 %s19440_s9, 4  ;;  %s14260_s29 = smov [#allocation13]   ;;  %s533_s24 = int_to_ptr.hbm [resolvable:$true] %s532_s24 }
  0x39   : > { %s445_s27 = sshll.u32 %s19688_s2, 4  ;;  %s534_s18 = sshll.u32 %s14260_s29, 4  ;;  %s446_s27 = int_to_ptr.hbm [resolvable:$true] %s445_s27  ;;  %s535_s18 = int_to_ptr.vmem [resolvable:$true] %s534_s18 }
  0x3a   : > { %13417 = dma.hbm_to_vmem [thread:$0]  (!%p14434_p12), %s446_s27, 2048, %s448_s0, [#allocation3], %s14248_s22, %s14248_s22, %s14249_s23  }
  0x3b   : > { %s476_s20 = sshll.u32 %s19689_s5, 4  ;;  %s14259_s27 = smov [#allocation10]   ;;  %s477_s20 = int_to_ptr.hbm [resolvable:$true] %s476_s20 }
  0x3c   : > { %13423 = dma.hbm_to_vmem [thread:$0]  (!%p14434_p12), %s477_s20, 4096, %s479_s3, [#allocation6], %s14248_s22, %s14248_s22, %s14249_s23  }
  0x3d   : > { %s506_s0 = sshll.u32 %s14259_s27, 4  ;;  %s560_s20 = sshll.u32 %s19442_s11, 4  ;;  %s507_s0 = int_to_ptr.vmem [resolvable:$true] %s506_s0  ;;  %s561_s20 = int_to_ptr.hbm [resolvable:$true] %s560_s20 }
  0x3e   : > { %13429 = dma.hbm_to_vmem [thread:$0]  (!%p14434_p12), %s505_s30, 4096, %s507_s0, [#allocation9], %s14248_s22, %s14248_s22, %s14249_s23  }
  0x3f   : > { %13435 = dma.hbm_to_vmem [thread:$0]  (!%p14434_p12), %s533_s24, 2048, %s535_s18, [#allocation12], %s14248_s22, %s14248_s22, %s14249_s23  }
  0x40   : > { %s588_s19 = sshll.u32 %s19444_s13, 4  ;;  %s14261_s27 = smov [#allocation16]   ;;  %s589_s19 = int_to_ptr.hbm [resolvable:$true] %s588_s19 }
  0x41   : > { %s562_s30 = sshll.u32 %s14261_s27, 4  ;;  %s14262_s17 = smov [#allocation19]   ;;  %s563_s30 = int_to_ptr.vmem [resolvable:$true] %s562_s30 }
  0x42   : > { %13441 = dma.hbm_to_vmem [thread:$0]  (!%p14434_p12), %s561_s20, 4096, %s563_s30, [#allocation15], %s14248_s22, %s14248_s22, %s14249_s23  }
  0x43   : > { %s590_s0 = sshll.u32 %s14262_s17, 4  ;;  %s616_s24 = sshll.u32 %s19446_s15, 4  ;;  %s591_s0 = int_to_ptr.vmem [resolvable:$true] %s590_s0  ;;  %s617_s24 = int_to_ptr.hbm [resolvable:$true] %s616_s24 }
  0x44   : > { %13447 = dma.hbm_to_vmem [thread:$0]  (!%p14434_p12), %s589_s19, 4096, %s591_s0, [#allocation18], %s14248_s22, %s14248_s22, %s14249_s23  }
  0x45   : > { %s630_s1 = sshll.u32 %s19447_s16, 4  ;;  %s14263_s27 = smov [#allocation22]   ;;  %s631_s1 = int_to_ptr.hbm [resolvable:$true] %s630_s1 }
  0x46   : > { %s618_s20 = sshll.u32 %s14263_s27, 4  ;;  %s19690_s30 = smov 4   ;;  %s619_s20 = int_to_ptr.vmem [resolvable:$true] %s618_s20 }
  0x47   : > { %s19691_s17 = smov 64   ;;  %s14264_s29 = smov [#allocation23]  }
  0x48   : > { %13453 = dma.hbm_to_vmem [thread:$0]  (!%p14434_p12), %s617_s24, 1024, %s619_s20, [#allocation21], %s19691_s17, %s19691_s17, %s19690_s30  }
  0x49   : > { %s632_s6 = sshll.u32 %s14264_s29, 4  ;;  %s14265_s2 = smov 256   ;;  %s633_s6 = int_to_ptr.vmem [resolvable:$true] %s632_s6 }
  0x4a   : > { %s14266_s5 = smov 16   ;;  %657 = sbr.rel (%p14420_p10) target bundleno = 2930 (0xb72), region = 88 }
  0x4b   : > { %13456 = dma.hbm_to_vmem [thread:$0]  (!%p14434_p12), %s631_s1, 512, %s633_s6, [#allocation24], %s14265_s2, %s14265_s2, %s14266_s5  }
  0x4f   : > { %14196 = dma.done.wait (%p13461_p9), [#allocation3], 2048  }
  0x50   : > { %14198 = vsyncadd (%p13461_p9), [#allocation3], 4294965248 }
  0x51   : > { %14200 = dma.done.wait (%p13461_p9), [#allocation6], 6144  }
  0x52   : > { %14202 = vsyncadd (%p13461_p9), [#allocation6], 4294961152 }
  0x53   : > { %14204 = dma.done.wait (%p13461_p9), [#allocation9], 8192  }
  0x54   : > { %14206 = vsyncadd (%p13461_p9), [#allocation9], 4294959104 }
  0x55   : > { %14208 = dma.done.wait (%p13461_p9), [#allocation12], 4096  }
  0x56   : > { %14210 = vsyncadd (%p13461_p9), [#allocation12], 4294963200 }
  0x57   : > { %14212 = dma.done.wait (%p13461_p9), [#allocation15], 8192  }
  0x58   : > { %14214 = vsyncadd (%p13461_p9), [#allocation15], 4294959104 }
  0x59   : > { %14216 = dma.done.wait (%p13461_p9), [#allocation18], 8192  }
  0x5a   : > { %14218 = vsyncadd (%p13461_p9), [#allocation18], 4294959104 }
  0x5b   : > { %14220 = dma.done.wait (%p13461_p9), [#allocation21], 3072  }
  0x5c   : > { %14222 = vsyncadd (%p13461_p9), [#allocation21], 4294964224 }
  0x5d   : > { %14224 = dma.done.wait (%p13461_p9), [#allocation24], 512  }
  0x5e   : > { %14226 = vsyncadd (%p13461_p9), [#allocation24], 4294966784  ;;  %s11508_s2 = sshll.u32 %s14392_s28, 4  ;;  %v19467_v0 = vmov 5   ;;  %v19471_v1 = vmov 2   ;;  %v19466_v2 = vmov 1  }
  0x5f   : > { %13562 = vset.pattern.permute.xlu0 %v19467_v0  ;;  %13557 = vset.pattern.permute.xlu2 %v19471_v1  ;;  %p776_p13 = scmp.lt.s32.totalorder %s11508_s2, 31  ;;  %s19692_s22 = sld [smem:[#allocation103_spill]]  ;;  %v19464_v9 = vmov 4   ;;  %v19462_v12 = vmov 3   ;;  %v19473_v19 = vmov 0  }
  0x60   : > { %13556 = vset.pattern.permute.xlu1 %v19466_v2  ;;  %s19694_s24 = sld [smem:[#allocation104_spill]]  ;;  %s13331_s0 = sshll.u32 %s14392_s28, 7 }
  0x61   : > { %s20124_s2 = smov (!%p776_p13, %s11508_s2), 31  ;;  %s20113_s27 = sld [smem:[#allocation109_spill]] }
  0x62   : > { %s11509_s5 = sshll.u32 %s20124_s2, 3 }
  0x65   : > { %s14582_s23 = scalar_lea.vmem %s19692_s22, %s11509_s5  ;;  %s772_s22 = sand.u32 1, %s14237_s25  }
  0x66   : > { %v787_v3 = vld [vmem:[%s14582_s23 + $0x28] sm:$0xff]  ;;  %v786_v4 = vld [vmem:[%s14582_s23 + $0x20] sm:$0xff]  ;;  %v789_v7 = vld [vmem:[%s14582_s23 + $0x38] sm:$0xff]  ;;  %s19695_s18 = smov %s19694_s24  ;;  %s11507_s19 = sshll.u32 %s772_s22, 7 }
  0x67   : > { %v14586_v5 = vmul.f32 6.2831855, %v787_v3  ;;  %v802_v6 = vmul.f32 6.2831855, %v786_v4  ;;  %v805_v8 = vmul.f32 6.2831855, %v789_v7  ;;  %s20114_s20 = smov %s20113_s27  ;;  %s11273_s30 = scalar_lea.hbm %s20113_s27, %s13331_s0 }
  0x68   : > { %v790_v10 = vld [vmem:[%s14582_s23 + $0x40] sm:$0xff]  ;;  %v793_v13 = vld [vmem:[%s14582_s23 + $0x58] sm:$0xff]  ;;  %v784_v15 = vld [vmem:[%s14582_s23 + $0x10] sm:$0xff]  ;;  %s11276_s29 = sshll.u32 %s11273_s30, 4  ;;  %s11262_s6 = scalar_lea.sflag [#allocation4], %s772_s22  ;;  %s11277_s29 = int_to_ptr.hbm [resolvable:$true] %s11276_s29 }
  0x69   : > { %1326 = vperm.xlu0 %13562, %v14586_v5   ;;  %1028 = vperm.xlu2 %13557, %v802_v6   ;;  %v14594_v11 = vmul.f32 6.2831855, %v790_v10  ;;  %v14602_v14 = vmul.f32 6.2831855, %v793_v13  ;;  %v788_v16 = vld [vmem:[%s14582_s23 + $0x30] sm:$0xff]  ;;  %v783_v20 = vld [vmem:[%s14582_s23 + $0x8] sm:$0xff] }
  0x6a   : > { %930 = vperm.xlu1 %13556, %v802_v6   ;;  %v14610_v17 = vmul.f32 6.2831855, %v784_v15  ;;  %v804_v18 = vmul.f32 6.2831855, %v788_v16  ;;  %v14619_v21 = vmul.f32 6.2831855, %v783_v20 }
  0x6b   : > { %v791_v22 = vld [vmem:[%s14582_s23 + $0x48] sm:$0xff]  ;;  %v782_v24 = vld [vmem:[%s14582_s23] sm:$0xff]  ;;  %v792_v43 = vld [vmem:[%s14582_s23 + $0x50] sm:$0xff]  ;;  %s14165_s2 = sshra.s32 %s11277_s29, 4  ;;  %s14171_s21 = scalar_lea.hbm %s20114_s20, 256  ;;  %s14166_s2 = int_to_ptr.hbm [resolvable:$true] %s14165_s2 }
  0x6c   : > { %v807_v23 = vmul.f32 6.2831855, %v791_v22  ;;  %v794_v25 = vld [vmem:[%s14582_s23 + $0x60] sm:$0xff]  ;;  %v798_v26 = vmul.f32 6.2831855, %v782_v24  ;;  %v795_v31 = vld [vmem:[%s14582_s23 + $0x68] sm:$0xff]  ;;  %p14172_p3 = scmp.lt.s32.totalorder %s14166_s2, %s20114_s20 }
  0x6d   : > { %v14642_v27 = vmul.f32 6.2831855, %v794_v25  ;;  %v14663_v33 = vmul.f32 6.2831855, %v795_v31  ;;  %v808_v45 = vmul.f32 6.2831855, %v792_v43 }
  0x6e   : > { %v785_v54 = vld [vmem:[%s14582_s23 + $0x18] sm:$0xff]  ;;  %v14767_v10 = vld [vmem:[%s19694_s24 + $0x1] ss:$0 sm:$0xff]  ;;  %v14796_v24 = vld [vmem:[%s19695_s18 + $0x4] ss:$0 sm:$0xff]  ;;  %s14167_s28 = scalar_lea.hbm %s14166_s2, 128 }
  0x6f   : > { %v14723_v55 = vmul.f32 6.2831855, %v785_v54  ;;  %p14168_p0 = scmp.ne.s32.totalorder %s14166_s2, %s14167_s28  ;;  %p14173_p4 = scmp.lt.s32.totalorder %s14171_s21, %s14167_s28 }
  0x71   : > { %13571 = vset.pattern.permute.xlu0 %v19464_v9  ;;  %1032 = vperm.xlu2 %13557, %v14586_v5   ;;  %p14169_p1 = pnand %p14168_p0, %p14409_p5  ;;  %p14174_p7 = por %p14173_p4, %p14172_p3 }
  0x72   : > { %934 = vperm.xlu1 %13556, %v14586_v5   ;;  %1236 = vperm.xlu0 %13571, %v805_v8  }
  0x73   : > { %p14170_p2 = pneg %p14169_p1 }
  0x75   : > { %p14175_p8 = pnand %p14174_p7, %p14170_p2 }
  0x79   : > { %13559 = vset.pattern.permute.xlu2 %v19464_v9 }
  0x7a   : > { %13558 = vset.pattern.permute.xlu1 %v19462_v12  ;;  %13576 = vset.pattern.permute.xlu0 %v19466_v2 }
  0x7b   : > { %1224 = vperm.xlu2 %13559, %v802_v6   ;;  %1130 = vperm.xlu1 %13558, %v14586_v5  }
  0x7c   : > { %946 = vperm.xlu0 %13576, %v14594_v11  }
  0x83   : > { %13561 = vset.pattern.permute.xlu2 %v19467_v0  ;;  %13560 = vset.pattern.permute.xlu1 %v19464_v9 }
  0x84   : > { %958 = vperm.xlu0 %13576, %v14602_v14   ;;  %1322 = vperm.xlu2 %13561, %v802_v6  }
  0x85   : > { %1228 = vperm.xlu1 %13560, %v14586_v5  }
  0x8c   : > { %13564 = vset.pattern.permute.xlu2 %v19473_v19  ;;  %922 = vperm.xlu0 %13576, %v14610_v17  }
  0x8d   : > { %13563 = vset.pattern.permute.xlu1 %v19473_v19  ;;  %852 = vperm.xlu2 %13564, %v805_v8  }
  0x8e   : > { %847 = vperm.xlu1 %13563, %v804_v18  }
  0x94   : > { %13601 = vset.pattern.permute.xlu0 %v19462_v12 }
  0x95   : > { %13566 = vset.pattern.permute.xlu2 %v19466_v2  ;;  %1126 = vperm.xlu0 %13601, %v802_v6  }
  0x96   : > { %13565 = vset.pattern.permute.xlu1 %v19466_v2  ;;  %942 = vperm.xlu2 %13566, %v805_v8  }
  0x97   : > { %938 = vperm.xlu1 %13565, %v804_v18  }
  0x9d   : > { %1114 = vperm.xlu0 %13601, %v14619_v21  }
  0x9e   : > { %13568 = vset.pattern.permute.xlu2 %v19462_v12 }
  0x9f   : > { %13567 = vset.pattern.permute.xlu1 %v19471_v1  ;;  %1134 = vperm.xlu2 %13568, %v804_v18  }
  0xa0   : > { %1040 = vperm.xlu1 %13567, %v805_v8  }
  0xa5   : > { %1154 = vperm.xlu0 %13601, %v14602_v14  }
  0xa7   : > { %13570 = vset.pattern.permute.xlu2 %v19464_v9 }
  0xa8   : > { %13569 = vset.pattern.permute.xlu1 %v19462_v12  ;;  %1232 = vperm.xlu2 %13570, %v804_v18  }
  0xa9   : > { %1138 = vperm.xlu1 %13569, %v805_v8  }
  0xad   : > { %1118 = vperm.xlu0 %13601, %v14610_v17  }
  0xb0   : > { %13573 = vset.pattern.permute.xlu2 %v19467_v0 }
  0xb1   : > { %13572 = vset.pattern.permute.xlu1 %v19467_v0  ;;  %1334 = vperm.xlu2 %13573, %v805_v8  }
  0xb2   : > { %1330 = vperm.xlu1 %13572, %v804_v18  }
  0xb5   : > { %13608 = vset.pattern.permute.xlu0 %v19473_v19 }
  0xb6   : > { %837 = vperm.xlu0 %13608, %v802_v6  }
  0xb9   : > { %13575 = vset.pattern.permute.xlu2 %v19473_v19 }
  0xba   : > { %13574 = vset.pattern.permute.xlu1 %v19473_v19  ;;  %862 = vperm.xlu2 %13575, %v807_v23  }
  0xbb   : > { %857 = vperm.xlu1 %13574, %v14594_v11  }
  0xbe   : > { %842 = vperm.xlu0 %13608, %v14586_v5  }
  0xc2   : > { %13578 = vset.pattern.permute.xlu2 %v19471_v1 }
  0xc3   : > { %13577 = vset.pattern.permute.xlu1 %v19466_v2  ;;  %1044 = vperm.xlu2 %13578, %v14594_v11   ;;  %v14650_v28 = vpop.permute.xlu2 %1028 }
  0xc4   : > { %950 = vperm.xlu1 %13577, %v807_v23  }
  0xc6   : > { %822 = vperm.xlu0 %13608, %v14619_v21  }
  0xcb   : > { %13580 = vset.pattern.permute.xlu2 %v19473_v19  ;;  %v14658_v30 = vpop.permute.xlu2 %1032 }
  0xcc   : > { %13579 = vset.pattern.permute.xlu1 %v19471_v1  ;;  %817 = vperm.xlu2 %13580, %v798_v26  }
  0xcd   : > { %1048 = vperm.xlu1 %13579, %v807_v23  }
  0xce   : > { %877 = vperm.xlu0 %13608, %v14642_v27  }
  0xd4   : > { %13582 = vset.pattern.permute.xlu2 %v19466_v2 }
  0xd5   : > { %13581 = vset.pattern.permute.xlu1 %v19466_v2  ;;  %918 = vperm.xlu2 %13582, %v14619_v21   ;;  %v14672_v35 = vpop.permute.xlu2 %1224 }
  0xd6   : > { %914 = vperm.xlu1 %13581, %v798_v26   ;;  %13615 = vset.pattern.permute.xlu0 %v19471_v1 }
  0xd7   : > { %1036 = vperm.xlu0 %13615, %v804_v18   ;;  %v14785_v18 = vld [vmem:[%s19695_s18 + $0x3] ss:$0 sm:$0xff] }
  0xdb   : > { %v14668_v34 = vpop.permute.xlu0 %1326 }
  0xdc   : > { %v14653_v29 = vpop.permute.xlu1 %930 }
  0xdd   : > { %13584 = vset.pattern.permute.xlu2 %v19462_v12 }
  0xde   : > { %13583 = vset.pattern.permute.xlu1 %v19462_v12  ;;  %1146 = vperm.xlu2 %13584, %v807_v23   ;;  %v14681_v38 = vpop.permute.xlu2 %1322 }
  0xdf   : > { %1142 = vperm.xlu1 %13583, %v14594_v11   ;;  %1012 = vperm.xlu0 %13615, %v798_v26  }
  0xe4   : > { %v14661_v32 = vpop.permute.xlu1 %934  ;;  %v14679_v37 = vpop.permute.xlu0 %1236 }
  0xe5   : > { %v1279_v31 = vmul.f32 %v14796_v24, %v14679_v37 }
  0xe6   : > { %13586 = vset.pattern.permute.xlu2 %v19464_v9 }
  0xe7   : > { %13585 = vset.pattern.permute.xlu1 %v19471_v1  ;;  %1240 = vperm.xlu2 %13586, %v14594_v11   ;;  %v14691_v41 = vpop.permute.xlu2 %852 }
  0xe8   : > { %1016 = vperm.xlu1 %13585, %v14619_v21   ;;  %1064 = vperm.xlu0 %13615, %v14663_v33  }
  0xed   : > { %v14674_v36 = vpop.permute.xlu1 %1130 }
  0xee   : > { %v14689_v40 = vpop.permute.xlu0 %946 }
  0xef   : > { %13588 = vset.pattern.permute.xlu2 %v19462_v12 }
  0xf0   : > { %13587 = vset.pattern.permute.xlu1 %v19464_v9  ;;  %1110 = vperm.xlu2 %13588, %v798_v26   ;;  %v943_v46 = vpop.permute.xlu2 %942 }
  0xf1   : > { %1244 = vperm.xlu1 %13587, %v807_v23   ;;  %13620 = vset.pattern.permute.xlu0 %v19467_v0  ;;  %v985_v16 = vmul.f32 %v14767_v10, %v943_v46  ;;  %v14805_v46 = vld [vmem:[%s19695_s18 + $0x5] ss:$0 sm:$0xff] }
  0xf2   : > { %1306 = vperm.xlu0 %13620, %v798_v26  }
  0xf6   : > { %v14700_v44 = vpop.permute.xlu0 %958 }
  0xf7   : > { %v14683_v39 = vpop.permute.xlu1 %1228 }
  0xf8   : > { %13590 = vset.pattern.permute.xlu2 %v19467_v0 }
  0xf9   : > { %13589 = vset.pattern.permute.xlu1 %v19467_v0  ;;  %1342 = vperm.xlu2 %13590, %v807_v23   ;;  %v14710_v49 = vpop.permute.xlu2 %1134 }
  0xfa   : > { %1338 = vperm.xlu1 %13589, %v14594_v11   ;;  %1350 = vperm.xlu0 %13620, %v14602_v14   ;;  %v14772_v11 = vld [vmem:[%s19695_s18] ss:$0 sm:$0xff] }
  0xfb   : > { %v903_v15 = vmul.f32 %v14772_v11, %v14691_v41 }
  0xfd   : > { %v1001_v22 = vadd.f32 %v985_v16, %v903_v15 }
  0xfe   : > { %v14708_v48 = vpop.permute.xlu0 %922 }
 0x100   : > { %v14693_v42 = vpop.permute.xlu1 %847 }
 0x101   : > { %13592 = vset.pattern.permute.xlu2 %v19464_v9 }
 0x102   : > { %13591 = vset.pattern.permute.xlu1 %v19464_v9  ;;  %1212 = vperm.xlu2 %13592, %v14619_v21   ;;  %v14717_v53 = vpop.permute.xlu2 %1232 }
 0x103   : > { %1208 = vperm.xlu1 %13591, %v798_v26   ;;  %1354 = vperm.xlu0 %13620, %v14642_v27  }
 0x107   : > { %v14715_v51 = vpop.permute.xlu0 %1126 }
 0x109   : > { %v14702_v47 = vpop.permute.xlu1 %938 }
 0x10a   : > { %13594 = vset.pattern.permute.xlu2 %v19473_v19 }
 0x10b   : > { %13593 = vset.pattern.permute.xlu1 %v19467_v0  ;;  %867 = vperm.xlu2 %13594, %v808_v45   ;;  %v1335_v58 = vpop.permute.xlu2 %1334 }
 0x10c   : > { %1310 = vperm.xlu1 %13593, %v14619_v21   ;;  %13629 = vset.pattern.permute.xlu0 %v19466_v2 }
 0x10f   : > { %v1115_v56 = vpop.permute.xlu0 %1114 }
 0x110   : > { %v1175_v15 = vmul.f32 %v14785_v18, %v1115_v56  ;;  %v986_v56 = vmul.f32 %v14767_v10, %v14689_v40 }
 0x112   : > { %v1041_v50 = vpop.permute.xlu1 %1040 }
 0x113   : > { %13596 = vset.pattern.permute.xlu2 %v19466_v2 }
 0x114   : > { %13595 = vset.pattern.permute.xlu1 %v19473_v19  ;;  %954 = vperm.xlu2 %13596, %v808_v45   ;;  %v14737_v61 = vpop.permute.xlu2 %862 }
 0x115   : > { %872 = vperm.xlu1 %13595, %v14602_v14  }
 0x117   : > { %v14733_v60 = vpop.permute.xlu0 %1154 }
 0x11b   : > { %v1139_v52 = vpop.permute.xlu1 %1138 }
 0x11c   : > { %13598 = vset.pattern.permute.xlu2 %v19471_v1  ;;  %v1181_v23 = vmul.f32 %v14785_v18, %v1139_v52  ;;  %v1377_v52 = vmul.f32 %v14805_v46, %v1335_v58 }
 0x11d   : > { %13597 = vset.pattern.permute.xlu1 %v19471_v1  ;;  %1056 = vperm.xlu2 %13598, %v14602_v14   ;;  %v1045_v3 = vpop.permute.xlu2 %1044 }
 0x11e   : > { %1052 = vperm.xlu1 %13597, %v808_v45  }
 0x11f   : > { %v14743_v63 = vpop.permute.xlu0 %1118 }
 0x120   : > { %19693 = vst [vmem:[#allocation42_spill] sm:$0xff] %v14743_v63 }
 0x124   : > { %v14725_v57 = vpop.permute.xlu1 %1330 }
 0x125   : > { %13600 = vset.pattern.permute.xlu2 %v19473_v19 }
 0x126   : > { %13599 = vset.pattern.permute.xlu1 %v19473_v19  ;;  %832 = vperm.xlu2 %13600, %v14723_v55   ;;  %v14755_v6 = vpop.permute.xlu2 %817 }
 0x127   : > { %827 = vperm.xlu1 %13599, %v14610_v17  }
 0x128   : > { %v14752_v5 = vpop.permute.xlu0 %837 }
 0x12d   : > { %v14731_v59 = vpop.permute.xlu1 %857 }
 0x12e   : > { %13603 = vset.pattern.permute.xlu2 %v19462_v12  ;;  %v904_v58 = vmul.f32 %v14772_v11, %v14731_v59  ;;  %v905_v59 = vmul.f32 %v14772_v11, %v14737_v61 }
 0x12f   : > { %13602 = vset.pattern.permute.xlu1 %v19466_v2  ;;  %1150 = vperm.xlu2 %13603, %v808_v45   ;;  %v919_v13 = vpop.permute.xlu2 %918 }
 0x130   : > { %926 = vperm.xlu1 %13602, %v14723_v55   ;;  %v14762_v8 = vpop.permute.xlu0 %842  ;;  %v979_v43 = vmul.f32 %v14767_v10, %v919_v13 }
 0x136   : > { %v14740_v62 = vpop.permute.xlu1 %950 }
 0x137   : > { %13605 = vset.pattern.permute.xlu2 %v19471_v1 }
 0x138   : > { %13604 = vset.pattern.permute.xlu1 %v19471_v1  ;;  %1024 = vperm.xlu2 %13605, %v14723_v55   ;;  %v823_v26 = vpop.permute.xlu0 %822 }
 0x139   : > { %1020 = vperm.xlu1 %13604, %v14610_v17  }
 0x13f   : > { %v14748_v4 = vpop.permute.xlu1 %1048 }
 0x140   : > { %13607 = vset.pattern.permute.xlu2 %v19464_v9 }
 0x141   : > { %13606 = vset.pattern.permute.xlu1 %v19464_v9  ;;  %1252 = vperm.xlu2 %13607, %v14602_v14   ;;  %v14777_v14 = vld [vmem:[%s19695_s18 + $0x2] ss:$0 sm:$0xff] }
 0x142   : > { %1248 = vperm.xlu1 %13606, %v808_v45   ;;  %v1083_v20 = vmul.f32 %v14777_v14, %v1041_v50  ;;  %v1147_v50 = vpop.permute.xlu2 %1146 }
 0x144   : > { %v1099_v25 = vadd.f32 %v1083_v20, %v1001_v22 }
 0x146   : > { %v1197_v41 = vadd.f32 %v1181_v23, %v1099_v25 }
 0x148   : > { %v14757_v7 = vpop.permute.xlu1 %914  ;;  %v1295_v16 = vadd.f32 %v1279_v31, %v1197_v41  ;;  %v1084_v41 = vmul.f32 %v14777_v14, %v1045_v3  ;;  %v987_v3 = vmul.f32 %v14767_v10, %v14740_v62  ;;  %v1183_v62 = vmul.f32 %v14785_v18, %v1147_v50 }
 0x149   : > { %13610 = vset.pattern.permute.xlu2 %v19467_v0  ;;  %v982_v50 = vmul.f32 %v14767_v10, %v14653_v29  ;;  %v1178_v29 = vmul.f32 %v14785_v18, %v14715_v51  ;;  %v19475_v51 = vmov 1326507024  }
 0x14a   : > { %13609 = vset.pattern.permute.xlu1 %v19462_v12  ;;  %1346 = vperm.xlu2 %13610, %v808_v45   ;;  %v897_v45 = vmul.f32 %v14772_v11, %v823_v26  ;;  %v14814_v22 = vadd.f32 %v1377_v52, %v1295_v16  ;;  %v1241_v25 = vpop.permute.xlu2 %1240 }
 0x14b   : > { %1122 = vperm.xlu1 %13609, %v14723_v55   ;;  %v1280_v52 = vmul.f32 %v14796_v24, %v1241_v25 }
 0x14c   : > { %v995_v20 = vadd.f32 %v979_v43, %v897_v45  ;;  %19696 = vst [vmem:[#allocation43_spill] sm:$0xff] %v14814_v22  ;;  %v2490_v26 = vand.u32 2139095040, %v14814_v22  ;;  %v1002_v43 = vadd.f32 %v986_v56, %v904_v58 }
 0x151   : > { %v1143_v21 = vpop.permute.xlu1 %1142 }
 0x152   : > { %13612 = vset.pattern.permute.xlu2 %v19464_v9  ;;  %v1182_v40 = vmul.f32 %v14785_v18, %v1143_v21  ;;  %v1003_v21 = vadd.f32 %v987_v3, %v905_v59 }
 0x153   : > { %13611 = vset.pattern.permute.xlu1 %v19464_v9  ;;  %1220 = vperm.xlu2 %13612, %v14723_v55  }
 0x154   : > { %1216 = vperm.xlu1 %13611, %v14610_v17  }
 0x15a   : > { %v1017_v54 = vpop.permute.xlu1 %1016 }
 0x15b   : > { %v1077_v37 = vmul.f32 %v14777_v14, %v1017_v54  ;;  %13614 = vset.pattern.permute.xlu2 %v19467_v0 }
 0x15c   : > { %13613 = vset.pattern.permute.xlu1 %v19467_v0  ;;  %1318 = vperm.xlu2 %13614, %v14723_v55   ;;  %v1100_v55 = vadd.f32 %v1084_v41, %v1002_v43  ;;  %v14848_v43 = vpop.permute.xlu0 %877 }
 0x15d   : > { %v1093_v13 = vadd.f32 %v1077_v37, %v995_v20  ;;  %1314 = vperm.xlu1 %13613, %v14610_v17   ;;  %v2491_v17 = vshrl.u32 %v2490_v26, 23  ;;  %v1085_v20 = vmul.f32 %v14777_v14, %v14748_v4  ;;  %19698 = vst [vmem:[#allocation45_spill] sm:$0xff] %v14848_v43  ;;  %v11728_v43 = vld [vmem:[#allocation2 + $0x70] sm:$0xf] }
 0x15e   : > { %v1198_v54 = vadd.f32 %v1182_v40, %v1100_v55  ;;  %v900_v40 = vmul.f32 %v14772_v11, %v14752_v5  ;;  %v1080_v5 = vmul.f32 %v14777_v14, %v14650_v28  ;;  %v1374_v28 = vmul.f32 %v14805_v46, %v14681_v38 }
 0x15f   : > { %v14816_v23 = vadd.f32 %v1175_v15, %v1093_v13  ;;  %v11531_v45 = vadd.s32 4294967169, %v2491_v17  ;;  %v14834_v15 = vpop.permute.xlu2 %1110  ;;  %v1101_v56 = vadd.f32 %v1085_v20, %v1003_v21  ;;  %v1081_v20 = vmul.f32 %v14777_v14, %v14658_v30 }
 0x160   : > { %v1296_v13 = vadd.f32 %v1280_v52, %v1198_v54  ;;  %v998_v3 = vadd.f32 %v982_v50, %v900_v40 }
 0x161   : > { %v2497_v61 = vadd.s32 1, %v11531_v45  ;;  %v1199_v25 = vadd.f32 %v1183_v62, %v1101_v56  ;;  %v901_v62 = vmul.f32 %v14772_v11, %v14762_v8  ;;  %v19485_v8 = vmov 2131351028  }
 0x163   : > { %v1245_v31 = vpop.permute.xlu1 %1244  ;;  %vm2498_vm0 = vcmp.gt.s32.totalorder %v2497_v61, 0 }
 0x164   : > { %13617 = vset.pattern.permute.xlu2 %v19466_v2  ;;  %v1281_v4 = vmul.f32 %v14796_v24, %v1245_v31  ;;  %v2499_v41 = vsel %vm2498_vm0, %v2497_v61, 0  ;;  %v1096_v61 = vadd.f32 %v1080_v5, %v998_v3  ;;  %v14880_v30 = vpop.permute.xlu0 %1036  ;;  %v19483_v3 = vmov 2475754826  }
 0x165   : > { %13616 = vset.pattern.permute.xlu1 %v19473_v19  ;;  %962 = vperm.xlu2 %13617, %v14642_v27   ;;  %v2501_v31 = vand.u32 31, %v2499_v41  ;;  %v14890_v38 = vshrl.u32 %v2499_v41, 5 }
 0x166   : > { %882 = vperm.xlu1 %13616, %v14663_v33   ;;  %v1297_v59 = vadd.f32 %v1281_v4, %v1199_v25  ;;  %v1194_v40 = vadd.f32 %v1178_v29, %v1096_v61  ;;  %v14907_v29 = vmul.f32 %v14767_v10, %v14700_v44 }
 0x167   : > { %v1343_v17 = vpop.permute.xlu2 %1342  ;;  %v14863_v54 = vsub.s32 32, %v2501_v31  ;;  %v2507_v5 = vshll.u32 %v19483_v3, %v2501_v31  ;;  %vm2522_vm2 = vcmp.lt.s32.totalorder %v14890_v38, 4  ;;  %vm2519_vm3 = vcmp.lt.s32.totalorder %v14890_v38, 1 }
 0x168   : > { %v1379_v55 = vmul.f32 %v14805_v46, %v1343_v17  ;;  %19700 = vst [vmem:[#allocation47_spill] sm:$0xff] %v14907_v29  ;;  %vm2521_vm4 = vcmp.lt.s32.totalorder %v14890_v38, 3  ;;  %vm19514_vm5 = vcmp.lt.s32.totalorder %v14890_v38, 2 }
 0x169   : > { %v2517_v56 = vshrl.u32 %v19475_v51, %v14863_v54  ;;  %v2508_v25 = vshrl.u32 %v19485_v8, %v14863_v54 }
 0x16a   : > { %v14859_v52 = vadd.f32 %v1379_v55, %v1297_v59  ;;  %v19481_v59 = vmov 2102212464  }
 0x16b   : > { %v2513_v61 = vshll.u32 %v19481_v59, %v2501_v31 }
 0x16c   : > { %v1339_v16 = vpop.permute.xlu1 %1338  ;;  %19699 = vst [vmem:[#allocation46_spill] sm:$0xff] %v14859_v52  ;;  %v2800_v21 = vand.u32 2139095040, %v14859_v52 }
 0x16d   : > { %v1378_v37 = vmul.f32 %v14805_v46, %v1339_v16  ;;  %13619 = vset.pattern.permute.xlu2 %v19471_v1 }
 0x16e   : > { %13618 = vset.pattern.permute.xlu1 %v19466_v2  ;;  %1060 = vperm.xlu2 %13619, %v14642_v27   ;;  %v2801_v55 = vshrl.u32 %v2800_v21, 23  ;;  %v14911_v21 = vor.u32 %v2508_v25, %v2507_v5  ;;  %v2505_v2 = vshrl.u32 %v19483_v3, %v14863_v54 }
 0x16f   : > { %966 = vperm.xlu1 %13618, %v14663_v33   ;;  %v14844_v58 = vadd.f32 %v1378_v37, %v1296_v13  ;;  %v1276_v37 = vmul.f32 %v14796_v24, %v14672_v35  ;;  %v14874_v13 = vmul.f32 %v14805_v46, %v14668_v34  ;;  %v19461_v35 = vand.u32 2147483647, %v14814_v22 }
 0x170   : > { %v983_v34 = vmul.f32 %v14767_v10, %v14661_v32  ;;  %v2511_v32 = vshrl.u32 %v19481_v59, %v14863_v54 }
 0x171   : > { %19697 = vst [vmem:[#allocation44_spill] sm:$0xff] %v14844_v58  ;;  %v2645_v26 = vand.u32 2139095040, %v14844_v58 }
 0x172   : > { %v999_v50 = vadd.f32 %v983_v34, %v901_v62  ;;  %v1292_v62 = vadd.f32 %v1276_v37, %v1194_v40  ;;  %v11537_v34 = vadd.s32 4294967169, %v2801_v55  ;;  %v14925_v37 = vmul.f32 %v14785_v18, %v14710_v49 }
 0x173   : > { %v2646_v45 = vshrl.u32 %v2645_v26, 23  ;;  %v19477_v26 = vmov 920167782  }
 0x174   : > { %v2516_v17 = vshll.u32 %v19477_v26, %v2501_v31  ;;  %v2514_v41 = vshrl.u32 %v19477_v26, %v14863_v54  ;;  %v14934_v55 = vadd.f32 %v1374_v28, %v1292_v62  ;;  %v14950_v28 = vmul.f32 %v14796_v24, %v14717_v53 }
 0x175   : > { %v11534_v16 = vadd.s32 4294967169, %v2646_v45  ;;  %v2494_v45 = vand.u32 8388607, %v19461_v35 }
 0x176   : > { %13622 = vset.pattern.permute.xlu2 %v19462_v12  ;;  %19701 = vst [vmem:[#allocation48_spill] sm:$0xff] %v14934_v55  ;;  %v2025_v53 = vand.u32 2139095040, %v14934_v55 }
 0x177   : > { %13621 = vset.pattern.permute.xlu1 %v19462_v12  ;;  %1162 = vperm.xlu2 %13622, %v14663_v33   ;;  %v2652_v4 = vadd.s32 1, %v11534_v16  ;;  %v2518_v16 = vor.u32 %v2517_v56, %v2516_v17  ;;  %v2515_v12 = vor.u32 %v2514_v41, %v2513_v61  ;;  %v1277_v17 = vmul.f32 %v14796_v24, %v14683_v39  ;;  %v1013_v39 = vpop.permute.xlu0 %1012 }
 0x178   : > { %1158 = vperm.xlu1 %13621, %v14642_v27   ;;  %v2495_v44 = vor.u32 8388608, %v2494_v45  ;;  %v902_v41 = vmul.f32 %v14772_v11, %v14693_v42 }
 0x179   : > { %vm2653_vm1 = vcmp.gt.s32.totalorder %v2652_v4, 0  ;;  %v2532_v25 = vsel %vm2522_vm2, %v2518_v16, 1326507024  ;;  %v14958_v16 = vmul.f32 %v14785_v18, %v14733_v60  ;;  %v896_v60 = vmul.f32 %v14772_v11, %v14755_v6 }
 0x17a   : > { %v2654_v56 = vsel %vm2653_vm1, %v2652_v4, 0  ;;  %v19479_v4 = vmov 683565275   ;;  %v14954_v42 = vshll.u32 %v2495_v44, 8  ;;  %v15004_v44 = vshrl.u32 %v2025_v53, 23 }
 0x17b   : > { %v2504_v40 = vshll.u32 %v19479_v4, %v2501_v31  ;;  %v2656_v49 = vand.u32 31, %v2654_v56  ;;  %19704 = vst [vmem:[#allocation51_spill] sm:$0xff] %v14958_v16 }
 0x17c   : > { %19703 = vst [vmem:[#allocation50_spill] sm:$0xff] %v14954_v42  ;;  %v14984_v62 = vand.u32 65535, %v14954_v42  ;;  %v15109_v63 = vadd.s32 4294967169, %v15004_v44 }
 0x17d   : > { %v14952_v45 = vor.u32 %v2505_v2, %v2504_v40  ;;  %v14968_v2 = vsub.s32 32, %v2656_v49 }
 0x17e   : > { %19706 = vst [vmem:[#allocation53_spill] sm:$0xff] %v14984_v62 }
 0x17f   : > { %13624 = vset.pattern.permute.xlu2 %v19464_v9  ;;  %19714 = vst [vmem:[#allocation60_spill] sm:$0xff] %v15109_v63 }
 0x180   : > { %13623 = vset.pattern.permute.xlu1 %v19464_v9  ;;  %1260 = vperm.xlu2 %13624, %v14663_v33   ;;  %v1097_v9 = vadd.f32 %v1081_v20, %v999_v50  ;;  %v984_v20 = vmul.f32 %v14767_v10, %v14702_v47  ;;  %v14946_v50 = vmul.f32 %v14767_v10, %v14708_v48 }
 0x181   : > { %1256 = vperm.xlu1 %13623, %v14642_v27   ;;  %v1179_v27 = vmul.f32 %v14785_v18, %v14674_v36  ;;  %v2510_v36 = vshll.u32 %v19485_v8, %v2501_v31  ;;  %v2533_v31 = vsel %vm2521_vm4, %v2515_v12, %v2532_v25  ;;  %v19469_v25 = vand.u32 2147483647, %v14859_v52  ;;  %v13002_v52 = vld [vmem:[#allocation2 + $0x74] sm:$0xf0] }
 0x182   : > { %19702 = vst [vmem:[#allocation49_spill] sm:$0xff] %v14946_v50  ;;  %v1000_v5 = vadd.f32 %v984_v20, %v902_v41  ;;  %v2669_v20 = vshrl.u32 %v19477_v26, %v14968_v2  ;;  %v19470_v41 = vand.u32 2147483647, %v14844_v58  ;;  %v19715_v50 = vmov 2131351028  }
 0x183   : > { %v14914_v35 = vor.u32 %v2511_v32, %v2510_v36  ;;  %v2807_v32 = vadd.s32 1, %v11537_v34  ;;  %v14987_v34 = vshrl.u32 %v14954_v42, 16 }
 0x185   : > { %v2531_v47 = vsel %vm2519_vm3, %v14911_v21, %v14914_v35  ;;  %vm2808_vm6 = vcmp.gt.s32.totalorder %v2807_v32, 0  ;;  %19707 = vst [vmem:[#allocation54_spill] sm:$0xff] %v14987_v34  ;;  %v14994_v6 = vsel %vm2522_vm2, %v14914_v35, 2102212464 }
 0x186   : > { %v14965_v48 = vsel %vm19514_vm5, %v2531_v47, %v2533_v31  ;;  %v2809_v11 = vsel %vm2808_vm6, %v2807_v32, 0  ;;  %v1174_v32 = vmul.f32 %v14785_v18, %v14834_v15  ;;  %v2666_v18 = vshrl.u32 %v19481_v59, %v14968_v2 }
 0x187   : > { %19705 = vst [vmem:[#allocation52_spill] sm:$0xff] %v14965_v48  ;;  %v15016_v31 = vand.u32 31, %v2809_v11 }
 0x188   : > { %13626 = vset.pattern.permute.xlu2 %v19473_v19 }
 0x189   : > { %13625 = vset.pattern.permute.xlu1 %v19467_v0  ;;  %v1209_v0 = vpop.permute.xlu1 %1208 }
 0x18a   : > { %1358 = vperm.xlu1 %13625, %v14663_v33   ;;  %v1195_v33 = vadd.f32 %v1179_v27, %v1097_v9  ;;  %v2503_v9 = vshrl.u32 %v19479_v4, %v14863_v54  ;;  %v14972_v27 = vmul.f32 %v14805_v46, %v14725_v57  ;;  %v978_v54 = vmul.f32 %v14767_v10, %v14757_v7 }
 0x18b   : > { %v1082_v57 = vmul.f32 %v14777_v14, %v14880_v30  ;;  %v14998_v7 = vsel %vm2522_vm2, %v2515_v12, 920167782  ;;  %v1076_v30 = vmul.f32 %v14777_v14, %v1013_v39  ;;  %v2672_v14 = vshrl.u32 %v19475_v51, %v14968_v2 }
 0x18c   : > { %v1293_v36 = vadd.f32 %v1277_v17, %v1195_v33  ;;  %v14981_v61 = vsel %vm2519_vm3, %v2503_v9, %v14952_v45  ;;  %v15001_v17 = vpop.permute.xlu0 %1064  ;;  %v994_v12 = vadd.f32 %v978_v54, %v896_v60  ;;  %v2668_v33 = vshll.u32 %v19481_v59, %v2656_v49 }
 0x18d   : > { %19708 = vst [vmem:[#allocation55_spill] sm:$0xff] %v15001_v17  ;;  %v1098_v47 = vadd.f32 %v1082_v57, %v1000_v5  ;;  %v15021_v39 = vshrl.u32 %v2654_v56, 5  ;;  %v2663_v9 = vshrl.u32 %v19485_v8, %v14968_v2  ;;  %v15031_v5 = vand.u32 8388607, %v19469_v25  ;;  %v11666_v17 = vld [vmem:[#allocation5 + $0x78] sm:$0xf0] }
 0x18e   : > { %v15011_v40 = vadd.f32 %v14874_v13, %v1293_v36  ;;  %v2660_v13 = vshrl.u32 %v19483_v3, %v14968_v2  ;;  %v1092_v15 = vadd.f32 %v1076_v30, %v994_v12  ;;  %v2670_v53 = vor.u32 %v2669_v20, %v2668_v33 }
 0x18f   : > { %v2671_v60 = vshll.u32 %v19477_v26, %v2656_v49  ;;  %v2649_v56 = vand.u32 8388607, %v19470_v41  ;;  %v2659_v36 = vshll.u32 %v19479_v4, %v2656_v49  ;;  %v2662_v54 = vshll.u32 %v19483_v3, %v2656_v49 }
 0x190   : > { %19709 = vst [vmem:[#allocation56_spill] sm:$0xff] %v15011_v40  ;;  %v2665_v57 = vshll.u32 %v19485_v8, %v2656_v49  ;;  %v2180_v10 = vand.u32 2139095040, %v15011_v40  ;;  %v15041_v30 = vadd.f32 %v14925_v37, %v1098_v47  ;;  %v15044_v12 = vsub.s32 32, %v15016_v31 }
 0x191   : > { %v2673_v20 = vor.u32 %v2672_v14, %v2671_v60  ;;  %v15046_v33 = vor.u32 %v2660_v13, %v2659_v36  ;;  %v15048_v25 = vor.u32 %v2663_v9, %v2662_v54  ;;  %vm2677_vm7 = vcmp.lt.s32.totalorder %v15021_v39, 4 }
 0x192   : > { %13627 = vset.pattern.permute.xlu1 %v19473_v19  ;;  %v15050_v41 = vor.u32 %v2666_v18, %v2665_v57  ;;  %v2805_v49 = vor.u32 8388608, %v15031_v5  ;;  %v2683_v1 = vsel %vm2677_vm7, %v2670_v53, 920167782  ;;  %v1190_v19 = vadd.f32 %v1174_v32, %v1092_v15 }
 0x193   : > { %v1272_v37 = vmul.f32 %v14796_v24, %v1209_v0  ;;  %v15057_v47 = vshrl.u32 %v2809_v11, 5  ;;  %v2814_v14 = vshll.u32 %v19479_v4, %v15016_v31  ;;  %v2817_v13 = vshll.u32 %v19483_v3, %v15016_v31  ;;  %v13018_v4 = vld [vmem:[#allocation5 + $0x74] sm:$0xf0] }
 0x194   : > { %v2650_v9 = vor.u32 8388608, %v2649_v56  ;;  %v1307_v18 = vpop.permute.xlu0 %1306  ;;  %v2823_v60 = vshll.u32 %v19481_v59, %v15016_v31  ;;  %vm2674_vm8 = vcmp.lt.s32.totalorder %v15021_v39, 1  ;;  %vm2676_vm9 = vcmp.lt.s32.totalorder %v15021_v39, 3  ;;  %v13017_v59 = vld [vmem:[#allocation5 + $0x74] sm:$0xf] }
 0x195   : > { %v2687_v0 = vsel %vm2677_vm7, %v2673_v20, 1326507024  ;;  %v2826_v11 = vshll.u32 %v19477_v26, %v15016_v31  ;;  %v2827_v32 = vshrl.u32 %v19475_v51, %v15044_v12  ;;  %v2682_v15 = vsel %vm2674_vm8, %v15046_v33, %v15048_v25 }
 0x196   : > { %v2684_v5 = vsel %vm2676_vm9, %v15050_v41, %v2683_v1  ;;  %v2824_v56 = vshrl.u32 %v19477_v26, %v15044_v12  ;;  %vm2675_vm10 = vcmp.lt.s32.totalorder %v15021_v39, 2  ;;  %v1288_v36 = vadd.f32 %v1272_v37, %v1190_v19  ;;  %v11664_v26 = vld [vmem:[#allocation5 + $0x70] sm:$0xf] }
 0x197   : > { %v1370_v54 = vmul.f32 %v14805_v46, %v1307_v18  ;;  %v2815_v57 = vshrl.u32 %v19483_v3, %v15044_v12  ;;  %v2818_v20 = vshrl.u32 %v19485_v8, %v15044_v12  ;;  %v2686_v51 = vsel %vm2674_vm8, %v15048_v25, %v15050_v41 }
 0x198   : > { %v2688_v1 = vsel %vm2676_vm9, %v2670_v53, %v2687_v0  ;;  %v19710_v19 = vmov 2102212464   ;;  %v15098_v18 = vsel %vm2675_vm10, %v2682_v15, %v2684_v5  ;;  %v11665_v8 = vor.u32 %v13018_v4, %v11664_v26 }
 0x199   : > { %v2821_v37 = vshrl.u32 %v19710_v19, %v15044_v12  ;;  %v15100_v3 = vadd.f32 %v1370_v54, %v1288_v36  ;;  %v2828_v22 = vor.u32 %v2827_v32, %v2826_v11  ;;  %v15102_v58 = vshll.u32 %v2650_v9, 8  ;;  %v1213_v9 = vpop.permute.xlu2 %1212  ;;  %v11656_v32 = vld [vmem:[#allocation5 + $0x60] sm:$0xf] }
 0x19a   : > { %v15104_v53 = vor.u32 %v13017_v59, %v11666_v17  ;;  %v15106_v0 = vor.u32 %v13002_v52, %v11728_v43  ;;  %v2820_v15 = vshll.u32 %v19715_v50, %v15016_v31  ;;  %v2825_v5 = vor.u32 %v2824_v56, %v2823_v60  ;;  %13332 = vmatpush.bf16.msra.mxu3 %v11665_v8 }
 0x19b   : > { %19711 = vst [vmem:[#allocation57_spill] sm:$0xff] %v15100_v3  ;;  %v15115_v26 = vsel %vm2675_vm10, %v2686_v51, %v2688_v1  ;;  %6474 = vmatpush.bf16.msra.mxu0 %v11665_v8  ;;  %v15117_v4 = vshrl.u32 %v2180_v10, 23  ;;  %v15119_v59 = vshll.u32 %v2805_v49, 8  ;;  %v19494_v43 = vshrl.u32 %v15098_v18, 16 }
 0x19c   : > { %19712 = vst [vmem:[#allocation58_spill] sm:$0xff] %v15104_v53  ;;  %v1405_v52 = vand.u32 2139095040, %v15100_v3  ;;  %13340 = vmatpush.bf16.msra.mxu1 %v15104_v53  ;;  %13348 = vmatpush.bf16.msra.mxu2 %v15106_v0  ;;  %v15125_v17 = vor.u32 %v2815_v57, %v2814_v14  ;;  %v15127_v44 = vor.u32 %v2818_v20, %v2817_v13  ;;  %vm2832_vm11 = vcmp.lt.s32.totalorder %v15057_v47, 4 }
 0x19d   : > { %19713 = vst [vmem:[#allocation59_spill] sm:$0xff] %v15106_v0  ;;  %v15129_v51 = vor.u32 %v2821_v37, %v2820_v15  ;;  %v2842_v8 = vsel %vm2832_vm11, %v2828_v22, 1326507024  ;;  %v2691_v10 = vand.u32 65535, %v15102_v58  ;;  %v19493_v31 = vshrl.u32 %v15115_v26, 16 }
 0x19e   : > { %19716 = vst [vmem:[#allocation61_spill] sm:$0xff] %v15117_v4  ;;  %v1406_v49 = vshrl.u32 %v1405_v52, 23  ;;  %v2525_v14 = vsel %vm2521_vm4, %v14911_v21, %v14994_v6  ;;  %v1294_v13 = vadd.f32 %v14950_v28, %v15041_v30  ;;  %v1273_v60 = vmul.f32 %v14796_v24, %v1213_v9  ;;  %v13016_v22 = vld [vmem:[#allocation5 + $0x64] sm:$0xf0]  ;;  %v13015_v9 = vld [vmem:[#allocation5 + $0x64] sm:$0xf] }
 0x19f   : > { %19717 = vst [vmem:[#allocation62_spill] sm:$0xff] %v15119_v59  ;;  %v2838_v11 = vsel %vm2832_vm11, %v2825_v5, 920167782  ;;  %vm2829_vm12 = vcmp.lt.s32.totalorder %v15057_v47, 1  ;;  %vm2831_vm13 = vcmp.lt.s32.totalorder %v15057_v47, 3  ;;  %v15149_v56 = vmul.u32 %v19494_v43, %v2691_v10 }
 0x1a0   : > { %v11510_v36 = vadd.s32 4294967169, %v1406_v49  ;;  %v2837_v28 = vsel %vm2829_vm12, %v15125_v17, %v15127_v44  ;;  %v2841_v24 = vsel %vm2829_vm12, %v15127_v44, %v15129_v51  ;;  %v2843_v6 = vsel %vm2831_vm13, %v2825_v5, %v2842_v8  ;;  %v11658_v52 = vld [vmem:[#allocation5 + $0x68] sm:$0xf0] }
 0x1a1   : > { %v2715_v30 = vand.u32 65535, %v15098_v18  ;;  %v2839_v54 = vsel %vm2831_vm13, %v15129_v51, %v2838_v11  ;;  %v15167_v57 = vmul.u32 %v19493_v31, %v2691_v10  ;;  %v11657_v1 = vor.u32 %v13016_v22, %v11656_v32 }
 0x1a2   : > { %v1412_v20 = vadd.s32 1, %v11510_v36  ;;  %v15172_v37 = vsel %vm19514_vm5, %v14981_v61, %v2525_v14  ;;  %v15178_v15 = vsel %vm2519_vm3, %v14952_v45, %v14911_v21  ;;  %vm2830_vm14 = vcmp.lt.s32.totalorder %v15057_v47, 2  ;;  %v1311_v14 = vpop.permute.xlu1 %1310 }
 0x1a3   : > { %19718 = vst [vmem:[#allocation63_spill] sm:$0xff] %v15172_v37  ;;  %v2692_v5 = vshrl.u32 %v15102_v58, 16  ;;  %v15184_v8 = vsel %vm2830_vm14, %v2841_v24, %v2843_v6  ;;  %v2693_v49 = vand.u32 65535, %v15115_v26  ;;  %v2721_v61 = vshll.u32 %v15149_v56, 16  ;;  %13333 = vmatpush.bf16.msra.mxu3 %v11657_v1  ;;  %6475 = vmatpush.bf16.msra.mxu0 %v11657_v1 }
 0x1a4   : > { %19719 = vst [vmem:[#allocation64_spill] sm:$0xff] %v15178_v15  ;;  %vm1413_vm15 = vcmp.gt.s32.totalorder %v1412_v20, 0  ;;  %v15189_v21 = vadd.f32 %v14972_v27, %v1294_v13  ;;  %v1289_v45 = vadd.f32 %v1273_v60, %v14816_v23  ;;  %v15194_v11 = vsel %vm2830_vm14, %v2837_v28, %v2839_v54 }
 0x1a5   : > { %v15196_v32 = vmul.u32 %v2715_v30, %v2692_v5  ;;  %v2699_v22 = vshll.u32 %v15167_v57, 16  ;;  %v2717_v36 = vmul.u32 %v2715_v30, %v2691_v10  ;;  %v1414_v24 = vsel %vm1413_vm15, %v1412_v20, 0 }
 0x1a6   : > { %19720 = vst [vmem:[#allocation65_spill] sm:$0xff] %v15189_v21  ;;  %v15199_v6 = vor.u32 %v13015_v9, %v11658_v52  ;;  %v15202_v31 = vand.u32 65535, %v15119_v59  ;;  %v1371_v23 = vmul.f32 %v14805_v46, %v1311_v14  ;;  %v2695_v28 = vmul.u32 %v2693_v49, %v2691_v10  ;;  %v15234_v14 = vpop.permute.xlu2 %867 }
 0x1a7   : > { %vm2725_vm0 = vc.u32 %v2717_v36, %v2721_v61  ;;  %v1416_v54 = vand.u32 31, %v1414_v24  ;;  %v15210_v20 = vmul.u32 %v2693_v49, %v2692_v5  ;;  %v15213_v9 = vadd.s32 %v2721_v61, %v2717_v36  ;;  %19728 = vst [vmem:[#allocation68_spill] sm:$0xff] %v15234_v14 }
 0x1a8   : > { %19721 = vst [vmem:[#allocation66_spill] sm:$0xff] %v15199_v6  ;;  %13341 = vmatpush.bf16.msra.mxu1 %v15199_v6  ;;  %vm15215_vm1 = vc.u32 %v2695_v28, %v2699_v22  ;;  %v2705_v46 = vadd.s32 %v2699_v22, %v2695_v28  ;;  %v19724_v60 = vmov 0   ;;  %v15223_v43 = vshrl.u32 %v1414_v24, 5 }
 0x1a9   : > { %v15220_v10 = vsub.s32 32, %v1416_v54  ;;  %v2726_v27 = vsel %vm2725_vm0, 1, %v19724_v60  ;;  %v19725_v30 = vmov 683565275   ;;  %v15226_v13 = vadd.f32 %v1371_v23, %v1289_v45 }
 0x1aa   : > { %v1419_v49 = vshll.u32 %v19725_v30, %v1416_v54  ;;  %v19727_v61 = vmov 2475754826   ;;  %v1428_v28 = vshll.u32 %v19710_v19, %v1416_v54  ;;  %v19729_v0 = vmov 920167782   ;;  %v873_v47 = vpop.permute.xlu1 %872 }
 0x1ab   : > { %19726 = vst [vmem:[#allocation67_spill] sm:$0xff] %v15226_v13  ;;  %v1420_v36 = vshrl.u32 %v19727_v61, %v15220_v10  ;;  %v1422_v1 = vshll.u32 %v19727_v61, %v1416_v54  ;;  %v1423_v22 = vshrl.u32 %v19715_v50, %v15220_v10  ;;  %v1426_v24 = vshrl.u32 %v19710_v19, %v15220_v10 }
 0x1ac   : > { %v1429_v40 = vshrl.u32 %v19729_v0, %v15220_v10  ;;  %v1431_v45 = vshll.u32 %v19729_v0, %v1416_v54  ;;  %v19730_v23 = vmov 1326507024   ;;  %v19731_v6 = vand.u32 2147483647, %v15100_v3 }
 0x1ad   : > { %v1432_v55 = vshrl.u32 %v19730_v23, %v15220_v10  ;;  %v15245_v34 = vor.u32 %v1420_v36, %v1419_v49  ;;  %v15247_v62 = vor.u32 %v1423_v22, %v1422_v1  ;;  %v1425_v14 = vshll.u32 %v19715_v50, %v1416_v54 }
 0x1ae   : > { %v1409_v53 = vand.u32 8388607, %v19731_v6  ;;  %v19734_v42 = vshrl.u32 %v15184_v8, 16  ;;  %v19735_v16 = vshrl.u32 %v15098_v18, 16  ;;  %v1430_v48 = vor.u32 %v1429_v40, %v1428_v28 }
 0x1af   : > { %19732 = vst [vmem:[#allocation69_spill] sm:$0xff] %v15245_v34  ;;  %v1433_v4 = vor.u32 %v1432_v55, %v1431_v45  ;;  %v2701_v15 = vshll.u32 %v15210_v20, 16  ;;  %v19736_v6 = vshll.u32 %v15196_v32, 16  ;;  %v15261_v1 = vor.u32 %v1426_v24, %v1425_v14 }
 0x1b0   : > { %19733 = vst [vmem:[#allocation70_spill] sm:$0xff] %v15247_v62  ;;  %v15253_v37 = vmul.u32 %v19734_v42, %v15202_v31  ;;  %v2720_v63 = vmul.u32 %v19735_v16, %v2692_v5  ;;  %v1560_v54 = vand.u32 2139095040, %v15226_v13  ;;  %v19737_v49 = vshrl.u32 %v15115_v26, 16 }
 0x1b1   : > { %vm2729_vm2 = vc.u32 %v15213_v9, %v19736_v6  ;;  %v2704_v42 = vsel %vm15215_vm1, 1, %v19724_v60  ;;  %vm1434_vm3 = vcmp.lt.s32.totalorder %v15223_v43, 1  ;;  %vm15270_vm6 = vc.u32 %v2705_v46, %v2701_v15 }
 0x1b2   : > { %v2698_v36 = vmul.u32 %v19737_v49, %v2692_v5  ;;  %v2728_v16 = vadd.s32 %v2726_v27, %v2720_v63  ;;  %v1410_v40 = vor.u32 8388608, %v1409_v53  ;;  %vm1437_vm15 = vcmp.lt.s32.totalorder %v15223_v43, 4 }
 0x1b3   : > { %v1442_v18 = vsel %vm1434_vm3, %v15245_v34, %v15247_v62  ;;  %v2730_v26 = vsel %vm2729_vm2, 1, %v19724_v60  ;;  %vm1436_vm0 = vcmp.lt.s32.totalorder %v15223_v43, 3  ;;  %v1443_v63 = vsel %vm1437_vm15, %v1430_v48, 920167782 }
 0x1b4   : > { %v1447_v15 = vsel %vm1437_vm15, %v1433_v4, 1326507024  ;;  %vm1435_vm1 = vcmp.lt.s32.totalorder %v15223_v43, 2  ;;  %v1444_v53 = vsel %vm1436_vm0, %v15261_v1, %v1443_v63  ;;  %v1446_v5 = vsel %vm1434_vm3, %v15247_v62, %v15261_v1 }
 0x1b5   : > { %v1561_v27 = vshrl.u32 %v1560_v54, 23  ;;  %v2847_v52 = vshrl.u32 %v15119_v59, 16  ;;  %v2706_v46 = vadd.s32 %v2704_v42, %v2698_v36  ;;  %v15296_v14 = vsel %vm1435_vm1, %v1442_v18, %v1444_v53  ;;  %v15315_v42 = vpop.permute.xlu2 %954 }
 0x1b6   : > { %v1448_v4 = vsel %vm1436_vm0, %v1430_v48, %v1447_v15  ;;  %v2854_v22 = vshll.u32 %v15253_v37, 16  ;;  %v19740_v28 = vshrl.u32 %v15194_v11, 16  ;;  %v2708_v45 = vsel %vm15270_vm6, 1, %v19724_v60  ;;  %19742 = vst [vmem:[#allocation71_spill] sm:$0xff] %v15315_v42 }
 0x1b7   : > { %v15309_v6 = vshll.u32 %v1410_v40, 8  ;;  %v19741_v49 = vand.u32 65535, %v15184_v8  ;;  %v2732_v48 = vadd.s32 %v2730_v26, %v2728_v16  ;;  %v15319_v18 = vsel %vm1435_vm1, %v1446_v5, %v1448_v4 }
 0x1b8   : > { %v15304_v24 = vmul.u32 %v19740_v28, %v15202_v31  ;;  %v19744_v55 = vand.u32 65535, %v15194_v11  ;;  %v11513_v28 = vadd.s32 4294967169, %v1561_v27  ;;  %v15332_v16 = vshrl.u32 %v19725_v30, %v15044_v12 }
 0x1b9   : > { %v2850_v36 = vmul.u32 %v19741_v49, %v15202_v31  ;;  %v19743_v63 = vmov %v19741_v49  ;;  %v19745_v26 = vshrl.u32 %v15184_v8, 16  ;;  %v2710_v5 = vadd.s32 %v2708_v45, %v2706_v46 }
 0x1ba   : > { %v15323_v15 = vmul.u32 %v19743_v63, %v2847_v52  ;;  %v15327_v40 = vmul.u32 %v19744_v55, %v2847_v52  ;;  %v2722_v4 = vshrl.u32 %v15149_v56, 16  ;;  %v2876_v63 = vshll.u32 %v15304_v24, 16 }
 0x1bb   : > { %v2853_v49 = vmul.u32 %v19745_v26, %v2847_v52  ;;  %vm2858_vm2 = vc.u32 %v2850_v36, %v2854_v22  ;;  %v1451_v54 = vand.u32 65535, %v15309_v6  ;;  %v1454_v55 = vshrl.u32 %v15319_v18, 16 }
 0x1bc   : > { %v19746_v27 = vand.u32 65535, %v15194_v11  ;;  %v19747_v12 = vshrl.u32 %v15194_v11, 16  ;;  %v2700_v8 = vshrl.u32 %v15167_v57, 16  ;;  %v2733_v26 = vadd.s32 %v2732_v48, %v2722_v4 }
 0x1bd   : > { %v2856_v46 = vshll.u32 %v15323_v15, 16  ;;  %v2878_v56 = vshll.u32 %v15327_v40, 16  ;;  %v19748_v45 = vshrl.u32 %v15296_v14, 16  ;;  %v1567_v59 = vadd.s32 1, %v11513_v28 }
 0x1be   : > { %v2872_v53 = vmul.u32 %v19746_v27, %v15202_v31  ;;  %v2875_v3 = vmul.u32 %v19747_v12, %v2847_v52  ;;  %v2859_v29 = vsel %vm2858_vm2, 1, %v19724_v60  ;;  %v2860_v62 = vadd.s32 %v2854_v22, %v2850_v36 }
 0x1bf   : > { %v15350_v42 = vmul.u32 %v19748_v45, %v1451_v54  ;;  %v2711_v34 = vadd.s32 %v2710_v5, %v2700_v8  ;;  %v2724_v31 = vshrl.u32 %v15196_v32, 16  ;;  %v15356_v57 = vmul.u32 %v1454_v55, %v1451_v54 }
 0x1c0   : > { %vm2880_vm6 = vc.u32 %v2872_v53, %v2876_v63  ;;  %v15354_v11 = vadd.s32 %v2876_v63, %v2872_v53  ;;  %v1475_v52 = vand.u32 65535, %v15296_v14  ;;  %v2658_v48 = vshrl.u32 %v19725_v30, %v14968_v2 }
 0x1c1   : > { %v2679_v28 = vsel %vm2677_vm7, %v15050_v41, 2102212464  ;;  %v2702_v4 = vshrl.u32 %v15210_v20, 16  ;;  %v2734_v22 = vadd.s32 %v2733_v26, %v2724_v31  ;;  %v1452_v36 = vshrl.u32 %v15309_v6, 16  ;;  %v15378_v20 = vpop.permute.xlu2 %1056 }
 0x1c2   : > { %v1453_v5 = vand.u32 65535, %v15319_v18  ;;  %v1481_v53 = vshll.u32 %v15350_v42, 16  ;;  %vm1568_vm2 = vcmp.gt.s32.totalorder %v1567_v59, 0  ;;  %vm15368_vm5 = vc.u32 %v2860_v62, %v2856_v46 }
 0x1c3   : > { %v2881_v2 = vsel %vm2880_vm6, 1, %v19724_v60  ;;  %v2678_v41 = vsel %vm2674_vm8, %v2658_v48, %v15046_v33  ;;  %v15376_v27 = vadd.s32 %v2711_v34, %v2702_v4  ;;  %v2680_v18 = vsel %vm2676_vm9, %v15048_v25, %v2679_v28 }
 0x1c4   : > { %v1459_v12 = vshll.u32 %v15356_v57, 16  ;;  %v1477_v62 = vmul.u32 %v1475_v52, %v1451_v54  ;;  %v15384_v8 = vmul.u32 %v1475_v52, %v1452_v36  ;;  %vm15389_vm7 = vc.u32 %v15354_v11, %v2878_v56 }
 0x1c5   : > { %v19753_v34 = vshll.u32 %v15196_v32, 16  ;;  %v2738_v46 = vadd.s32 1, %v2734_v22  ;;  %v1569_v45 = vsel %vm1568_vm2, %v1567_v59, 0  ;;  %v1455_v25 = vmul.u32 %v1453_v5, %v1451_v54 }
 0x1c6   : > { %v15398_v31 = vmul.u32 %v1453_v5, %v1452_v36  ;;  %vm1485_vm8 = vc.u32 %v1477_v62, %v1481_v53  ;;  %v15400_v52 = vadd.s32 %v1481_v53, %v1477_v62  ;;  %v2861_v48 = vadd.s32 %v2859_v29, %v2853_v49 }
 0x1c7   : > { %v15396_v33 = vadd.s32 %v15213_v9, %v19753_v34  ;;  %v2863_v28 = vsel %vm15368_vm5, 1, %v19724_v60  ;;  %v2681_v4 = vsel %vm2675_vm10, %v2678_v41, %v2680_v18  ;;  %vm1463_vm6 = vc.u32 %v1455_v25, %v1459_v12 }
 0x1c8   : > { %v1465_v32 = vadd.s32 %v1459_v12, %v1455_v25  ;;  %v1483_v59 = vshll.u32 %v15384_v8, 16  ;;  %v1571_v9 = vand.u32 31, %v1569_v45  ;;  %v2883_v54 = vadd.s32 %v2881_v2, %v2875_v3 }
 0x1c9   : > { %vm2737_vm9 = vc.u32 %v15376_v27, %v15396_v33  ;;  %v2885_v29 = vsel %vm15389_vm7, 1, %v19724_v60  ;;  %v1486_v49 = vsel %vm1485_vm8, 1, %v19724_v60  ;;  %v19515_v5 = vand.u32 2147483647, %v15226_v13 }
 0x1ca   : > { %v2739_v53 = vsel %vm2737_vm9, %v2738_v46, %v2734_v22  ;;  %v1461_v39 = vshll.u32 %v15398_v31, 16  ;;  %v19754_v63 = vshrl.u32 %v15296_v14, 16  ;;  %vm1489_vm5 = vc.u32 %v15400_v52, %v1483_v59 }
 0x1cb   : > { %v2834_v3 = vsel %vm2832_vm11, %v15129_v51, 2102212464  ;;  %v2865_v2 = vadd.s32 %v2863_v28, %v2861_v48  ;;  %v2735_v18 = vmul.u32 %v15102_v58, %v2681_v4  ;;  %v1464_v12 = vsel %vm1463_vm6, 1, %v19724_v60  ;;  %v15435_v51 = vpop.permute.xlu2 %832 }
 0x1cc   : > { %v1480_v41 = vmul.u32 %v19754_v63, %v1452_v36  ;;  %v1458_v62 = vmul.u32 %v1454_v55, %v1452_v36  ;;  %vm1467_vm10 = vc.u32 %v1465_v32, %v1461_v39  ;;  %v15426_v26 = vsub.s32 32, %v1571_v9  ;;  %19755 = vst [vmem:[#allocation72_spill] sm:$0xff] %v15435_v51 }
 0x1cd   : > { %v2887_v14 = vadd.s32 %v2885_v29, %v2883_v54  ;;  %v15428_v34 = vadd.s32 %v2739_v53, %v2735_v18  ;;  %v1490_v46 = vsel %vm1489_vm5, 1, %v19724_v60  ;;  %v15433_v25 = vand.u32 8388607, %v19515_v5 }
 0x1ce   : > { %v1488_v22 = vadd.s32 %v1486_v49, %v1480_v41  ;;  %v19756_v58 = vand.u32 2139095040, %v15189_v21  ;;  %v2833_v55 = vsel %vm2829_vm12, %v15332_v16, %v15125_v17  ;;  %v2855_v36 = vshrl.u32 %v15253_v37, 16  ;;  %v13003_v21 = vld [vmem:[#allocation5 + $0x4] sm:$0xf] }
 0x1cf   : > { %v1466_v28 = vadd.s32 %v1464_v12, %v1458_v62  ;;  %v2835_v4 = vsel %vm2831_vm13, %v15127_v44, %v2834_v3  ;;  %v2857_v32 = vshrl.u32 %v15323_v15, 16  ;;  %v2877_v54 = vshrl.u32 %v15304_v24, 16  ;;  %v12996_v15 = vld [vmem:[#allocation2 + $0x44] sm:$0xf0] }
 0x1d0   : > { %v15439_v48 = vshrl.u32 %v19756_v58, 23  ;;  %v1468_v29 = vsel %vm1467_vm10, 1, %v19724_v60  ;;  %v2866_v49 = vadd.s32 %v2865_v2, %v2855_v36  ;;  %v2879_v53 = vshrl.u32 %v15327_v40, 16  ;;  %v15577_v40 = vld [vmem:[%s19695_s18 + $0x2] ss:$0 sm:$0xff] }
 0x1d1   : > { %v1492_v39 = vadd.s32 %v1490_v46, %v1488_v22  ;;  %v1584_v17 = vshrl.u32 %v19729_v0, %v15426_v26  ;;  %v2888_v16 = vadd.s32 %v2887_v14, %v2877_v54  ;;  %v15456_v37 = vadd.s32 536870912, %v15428_v34  ;;  %19767 = vst [vmem:[#allocation78_spill] sm:$0xff] %v15577_v40 }
 0x1d2   : > { %v1418_v44 = vshrl.u32 %v19725_v30, %v15220_v10  ;;  %v1470_v63 = vadd.s32 %v1468_v29, %v1466_v28  ;;  %v1482_v24 = vshrl.u32 %v15350_v42, 16  ;;  %v1583_v41 = vshll.u32 %v19710_v19, %v1571_v9 }
 0x1d3   : > { %v1587_v3 = vshrl.u32 %v19730_v23, %v15426_v26  ;;  %v15465_v2 = vshrl.u32 %v1569_v45, 5  ;;  %v1575_v18 = vshrl.u32 %v19727_v61, %v15426_v26  ;;  %v1578_v12 = vshrl.u32 %v19715_v50, %v15426_v26  ;;  %v15490_v5 = vpop.permute.xlu2 %1150 }
 0x1d4   : > { %v1581_v10 = vshrl.u32 %v19710_v19, %v15426_v26  ;;  %v1460_v62 = vshrl.u32 %v15356_v57, 16  ;;  %v1493_v22 = vadd.s32 %v1492_v39, %v1482_v24  ;;  %v1585_v42 = vor.u32 %v1584_v17, %v1583_v41  ;;  %v13000_v41 = vld [vmem:[#allocation2 + $0x64] sm:$0xf0]  ;;  %19757 = vst [vmem:[#allocation73_spill] sm:$0xff] %v15490_v5  ;;  %v11610_v5 = vld [vmem:[#allocation5 + $0x8] sm:$0xf0] }
 0x1d5   : > { %v1586_v14 = vshll.u32 %v19729_v0, %v1571_v9  ;;  %v1439_v45 = vsel %vm1437_vm15, %v15261_v1, 2102212464  ;;  %v1574_v46 = vshll.u32 %v19725_v30, %v1571_v9  ;;  %v1577_v58 = vshll.u32 %v19727_v61, %v1571_v9  ;;  %v11720_v1 = vld [vmem:[#allocation2 + $0x60] sm:$0xf] }
 0x1d6   : > { %v1580_v36 = vshll.u32 %v19715_v50, %v1571_v9  ;;  %v1462_v28 = vshrl.u32 %v15398_v31, 16  ;;  %v1471_v54 = vadd.s32 %v1470_v63, %v1460_v62  ;;  %v1484_v29 = vshrl.u32 %v15384_v8, 16  ;;  %v15538_v8 = vld [vmem:[%s19695_s18] ss:$0 sm:$0xff] }
 0x1d7   : > { %v1588_v57 = vor.u32 %v1587_v3, %v1586_v14  ;;  %v15483_v39 = vor.u32 %v1575_v18, %v1574_v46  ;;  %v15485_v17 = vor.u32 %v1578_v12, %v1577_v58  ;;  %vm1592_vm11 = vcmp.lt.s32.totalorder %v15465_v2, 4  ;;  %v11648_v18 = vld [vmem:[#allocation5 + $0x50] sm:$0xf]  ;;  %v13014_v12 = vld [vmem:[#allocation5 + $0x54] sm:$0xf0] }
 0x1d8   : > { %v15487_v24 = vor.u32 %v1581_v10, %v1580_v36  ;;  %v15496_v31 = vsel %vm2521_vm4, %v14914_v35, %v14998_v7  ;;  %v15500_v9 = vsel %vm2830_vm14, %v2833_v55, %v2835_v4  ;;  %v1494_v63 = vadd.s32 %v1493_v22, %v1484_v29  ;;  %v19759_v14 = vld [vmem:[#allocation69_spill] sm:$0xff]  ;;  %v19760_v35 = vld [vmem:[#allocation70_spill] sm:$0xff]  ;;  %v13013_v55 = vld [vmem:[#allocation5 + $0x54] sm:$0xf] }
 0x1d9   : > { %v1598_v3 = vsel %vm1592_vm11, %v1585_v42, 920167782  ;;  %v15504_v10 = vadd.s32 %v2866_v49, %v2857_v32  ;;  %v15506_v62 = vadd.s32 %v2888_v16, %v2879_v53  ;;  %v1438_v46 = vsel %vm1434_vm3, %v1418_v44, %v19759_v14  ;;  %v11650_v4 = vld [vmem:[#allocation5 + $0x58] sm:$0xf0]  ;;  %v11712_v22 = vld [vmem:[#allocation2 + $0x50] sm:$0xf] }
 0x1da   : > { %v1440_v7 = vsel %vm1436_vm0, %v19760_v35, %v1439_v45  ;;  %v15514_v58 = vadd.s32 %v1471_v54, %v1462_v28  ;;  %vm1589_vm4 = vcmp.lt.s32.totalorder %v15465_v2, 1  ;;  %vm1591_vm12 = vcmp.lt.s32.totalorder %v15465_v2, 3  ;;  %v12998_v49 = vld [vmem:[#allocation2 + $0x54] sm:$0xf0]  ;;  %v11640_v36 = vld [vmem:[#allocation5 + $0x40] sm:$0xf] }
 0x1db   : > { %19758 = vst [vmem:[#allocation74_spill] sm:$0xff] %v15504_v10  ;;  %v1602_v32 = vsel %vm1592_vm11, %v1588_v57, 1326507024  ;;  %v15523_v53 = vadd.s32 %v15400_v52, %v1483_v59  ;;  %v1597_v16 = vsel %vm1589_vm4, %v15483_v39, %v15485_v17  ;;  %v1599_v44 = vsel %vm1591_vm12, %v15487_v24, %v1598_v3  ;;  %v13012_v28 = vld [vmem:[#allocation5 + $0x44] sm:$0xf0] }
 0x1dc   : > { %19761 = vst [vmem:[#allocation69_spill] sm:$0xff] %v15514_v58  ;;  %v15532_v45 = vor.u32 %v13000_v41, %v11720_v1  ;;  %v1498_v54 = vadd.s32 1, %v1494_v63  ;;  %vm1590_vm13 = vcmp.lt.s32.totalorder %v15465_v2, 2  ;;  %v907_v52 = vmul.f32 %v15538_v8, %v873_v47  ;;  %v13011_v29 = vld [vmem:[#allocation5 + $0x44] sm:$0xf] }
 0x1dd   : > { %19762 = vst [vmem:[#allocation70_spill] sm:$0xff] %v15523_v53  ;;  %v11649_v59 = vor.u32 %v13014_v12, %v11648_v18  ;;  %v11642_v57 = vld [vmem:[#allocation5 + $0x48] sm:$0xf0]  ;;  %v1601_v1 = vsel %vm1589_vm4, %v15485_v17, %v15487_v24  ;;  %v1603_v41 = vsel %vm1591_vm12, %v1585_v42, %v1602_v32  ;;  %v15548_v3 = vor.u32 %v13013_v55, %v11650_v4  ;;  %v11704_v47 = vld [vmem:[#allocation2 + $0x40] sm:$0xf] }
 0x1de   : > { %19763 = vst [vmem:[#allocation75_spill] sm:$0xff] %v15532_v45  ;;  %13349 = vmatpush.bf16.msra.mxu2 %v15532_v45  ;;  %v15550_v14 = vor.u32 %v12998_v49, %v11712_v22  ;;  %v11528_v35 = vadd.s32 4294967169, %v15439_v48  ;;  %vm1497_vm14 = vc.u32 %v15514_v58, %v15523_v53  ;;  %v15557_v18 = vsel %vm1590_vm13, %v1597_v16, %v1599_v44  ;;  %v11632_v32 = vld [vmem:[#allocation5 + $0x30] sm:$0xf]  ;;  %v13010_v49 = vld [vmem:[#allocation5 + $0x34] sm:$0xf0] }
 0x1df   : > { %13334 = vmatpush.bf16.msra.mxu3 %v11649_v59  ;;  %v11641_v12 = vor.u32 %v13012_v28, %v11640_v36  ;;  %6476 = vmatpush.bf16.msra.mxu0 %v11649_v59  ;;  %v15562_v42 = vadd.s32 %v15354_v11, %v2878_v56  ;;  %v1441_v48 = vsel %vm1435_vm1, %v1438_v46, %v1440_v7  ;;  %v19766_v55 = vor.u32 8388608, %v15433_v25  ;;  %v19768_v11 = vld [vmem:[#allocation47_spill] sm:$0xff]  ;;  %v13009_v46 = vld [vmem:[#allocation5 + $0x34] sm:$0xf]  ;;  %v11634_v7 = vld [vmem:[#allocation5 + $0x38] sm:$0xf0] }
 0x1e0   : > { %19764 = vst [vmem:[#allocation76_spill] sm:$0xff] %v15550_v14  ;;  %13342 = vmatpush.bf16.msra.mxu1 %v15548_v3  ;;  %v15571_v22 = vor.u32 %v13011_v29, %v11642_v57  ;;  %v2893_v16 = vadd.s32 1, %v15506_v62  ;;  %v1087_v43 = vmul.f32 %v15577_v40, %v15378_v20  ;;  %v15583_v56 = vsel %vm1590_vm13, %v1601_v1, %v1603_v41  ;;  %v797_v44 = vld [vmem:[%s14582_s23 + $0x78] sm:$0xff]  ;;  %v796_v29 = vld [vmem:[%s14582_s23 + $0x70] sm:$0xff]  ;;  %v15598_v57 = vpop.permute.xlu2 %1024  ;;  %v13007_v59 = vld [vmem:[#allocation5 + $0x24] sm:$0xf] }
 0x1e1   : > { %19765 = vst [vmem:[#allocation77_spill] sm:$0xff] %v15562_v42  ;;  %v15568_v4 = vshll.u32 %v19766_v55, 8  ;;  %v1005_v25 = vadd.f32 %v19768_v11, %v907_v52  ;;  %v15588_v36 = vshrl.u32 %v15456_v37, 30  ;;  %v1499_v28 = vsel %vm1497_vm14, %v1498_v54, %v1494_v63  ;;  %v11696_v1 = vld [vmem:[#allocation2 + $0x30] sm:$0xf]  ;;  %s19366_s23 = scalar_lea.vmem [#allocation25], %s11507_s19 }
 0x1e2   : > { %13350 = vmatpush.bf16.msra.mxu2 %v15550_v14  ;;  %v15595_v20 = vor.u32 %v12996_v15, %v11704_v47  ;;  %19771 = vst [vmem:[#allocation80_spill] sm:$0xff] %v15598_v57  ;;  %vm2892_vm3 = vc.u32 %v15504_v10, %v15562_v42  ;;  %v1495_v52 = vmul.u32 %v15309_v6, %v1441_v48  ;;  %v12994_v41 = vld [vmem:[#allocation2 + $0x34] sm:$0xf0]  ;;  %v11624_v55 = vld [vmem:[#allocation5 + $0x20] sm:$0xf]  ;;  %v19773_v6 = vld [vmem:[#allocation64_spill] sm:$0xff] }
 0x1e3   : > { %19769 = vst [vmem:[#allocation47_spill] sm:$0xff] %v15588_v36  ;;  %13335 = vmatpush.bf16.msra.mxu3 %v11641_v12  ;;  %v11633_v37 = vor.u32 %v13010_v49, %v11632_v32  ;;  %6477 = vmatpush.bf16.msra.mxu0 %v11641_v12  ;;  %v15604_v63 = vand.u32 65535, %v15568_v4  ;;  %v15608_v54 = vor.u32 %v13009_v46, %v11634_v7  ;;  %v15610_v47 = vmul.f32 6.2831855, %v797_v44  ;;  %v13008_v11 = vld [vmem:[#allocation5 + $0x24] sm:$0xf0] }
 0x1e4   : > { %19770 = vst [vmem:[#allocation79_spill] sm:$0xff] %v15595_v20  ;;  %13343 = vmatpush.bf16.msra.mxu1 %v15571_v22  ;;  %vm19774_vm15 = vcmp.lt.s32.totalorder %v14890_v38, 2  ;;  %v15618_v32 = vadd.s32 %v1499_v28, %v1495_v52  ;;  %v1103_v12 = vadd.f32 %v1087_v43, %v1005_v25  ;;  %v15620_v49 = vmul.f32 6.2831855, %v796_v29  ;;  %v11626_v15 = vld [vmem:[#allocation5 + $0x28] sm:$0xf0] }
 0x1e5   : > { %19772 = vst [vmem:[#allocation81_spill] sm:$0xff] %v15608_v54  ;;  %v15616_v48 = vsel %vm19774_vm15, %v19773_v6, %v15496_v31  ;;  %v19776_v14 = vld [vmem:[#allocation61_spill] sm:$0xff]  ;;  %v2894_v46 = vsel %vm2892_vm3, %v2893_v16, %v15506_v62  ;;  %v19777_v7 = vshrl.u32 %v15557_v18, 16  ;;  %v15633_v31 = vor.u32 %v12994_v41, %v11696_v1  ;;  %974 = vperm.xlu0 %13629, %v15610_v47   ;;  %v19779_v43 = vld [vmem:[#allocation52_spill] sm:$0xff]  ;;  %v11688_v16 = vld [vmem:[#allocation2 + $0x20] sm:$0xf] }
 0x1e6   : > { %19775 = vst [vmem:[#allocation64_spill] sm:$0xff] %v15616_v48  ;;  %v11525_v45 = vadd.s32 4294967169, %v19776_v14  ;;  %13351 = vmatpush.bf16.msra.mxu2 %v15595_v20  ;;  %v2342_v44 = vadd.s32 1, %v11528_v35  ;;  %v19780_v14 = vld [vmem:[#allocation62_spill] sm:$0xff]  ;;  %892 = vperm.xlu1 %13627, %v15610_v47   ;;  %v11625_v62 = vor.u32 %v13008_v11, %v11624_v55  ;;  %v12992_v29 = vld [vmem:[#allocation2 + $0x24] sm:$0xf0]  ;;  %v2736_v2 = vadd.s32 %v15396_v33, %v15376_v27 }
 0x1e7   : > { %v15630_v38 = vmul.u32 %v19777_v7, %v15604_v63  ;;  %19778 = vst [vmem:[#allocation61_spill] sm:$0xff] %v15633_v31  ;;  %v2890_v28 = vmul.u32 %v19780_v14, %v15500_v9  ;;  %13336 = vmatpush.bf16.msra.mxu3 %v11633_v37  ;;  %v2743_v52 = vshll.u32 %v15588_v36, 30  ;;  %v19781_v1 = vshrl.u32 %v15583_v56, 16  ;;  %887 = vperm.xlu2 %13626, %v15620_v49   ;;  %v11616_v35 = vld [vmem:[#allocation5 + $0x10] sm:$0xf]  ;;  %v19784_v36 = vld [vmem:[#allocation51_spill] sm:$0xff] }
 0x1e8   : > { %v1630_v6 = vand.u32 65535, %v15557_v18  ;;  %13344 = vmatpush.bf16.msra.mxu1 %v15608_v54  ;;  %v15649_v9 = vor.u32 %v13007_v59, %v11626_v15  ;;  %v13006_v7 = vld [vmem:[#allocation5 + $0x14] sm:$0xf0]  ;;  %v19783_v55 = vld [vmem:[#allocation60_spill] sm:$0xff]  ;;  %v1501_v25 = vadd.s32 536870912, %v15618_v32  ;;  %v15658_v42 = vadd.f32 %v19784_v36, %v1103_v12  ;;  %6478 = vmatpush.bf16.msra.mxu0 %v11633_v37  ;;  %v1253_v13 = vpop.permute.xlu2 %1252  ;;  %s11274_s17 = sshll.u32 %s19366_s23, 4  ;;  %s11275_s17 = int_to_ptr.vmem [resolvable:$true] %s11274_s17 }
 0x1e9   : > { %v15644_v41 = vmul.u32 %v19781_v1, %v15604_v63  ;;  %v15652_v11 = vadd.s32 1, %v19783_v55  ;;  %v15654_v14 = vadd.s32 %v2894_v46, %v2890_v28  ;;  %v13005_v20 = vld [vmem:[#allocation5 + $0x14] sm:$0xf]  ;;  %v11618_v1 = vld [vmem:[#allocation5 + $0x18] sm:$0xf0]  ;;  %v15660_v10 = vadd.s32 1, %v11525_v45 }
 0x1ea   : > { %19782 = vst [vmem:[#allocation62_spill] sm:$0xff] %v15649_v9  ;;  %v1608_v59 = vand.u32 65535, %v15583_v56  ;;  %v1636_v15 = vshll.u32 %v15630_v38, 16  ;;  %13352 = vmatpush.bf16.msra.mxu2 %v15633_v31  ;;  %v15665_v55 = vor.u32 %v12992_v29, %v11688_v16  ;;  %vm2343_vm0 = vcmp.gt.s32.totalorder %v2342_v44, 0  ;;  %v11680_v45 = vld [vmem:[#allocation2 + $0x10] sm:$0xf] }
 0x1eb   : > { %v15670_v57 = vshrl.u32 %v15568_v4, 16  ;;  %13337 = vmatpush.bf16.msra.mxu3 %v11625_v62  ;;  %v15672_v36 = vor.u32 %v13006_v7, %v11616_v35  ;;  %v12990_v37 = vld [vmem:[#allocation2 + $0x14] sm:$0xf0]  ;;  %v15675_v12 = vsub.s32 %v15428_v34, %v2743_v52  ;;  %v1614_v53 = vshll.u32 %v15644_v41, 16  ;;  %v11608_v31 = vld [vmem:[#allocation5] sm:$0xf] }
 0x1ec   : > { %19785 = vst [vmem:[#allocation60_spill] sm:$0xff] %v15665_v55  ;;  %v1632_v16 = vmul.u32 %v1630_v6, %v15604_v63  ;;  %13345 = vmatpush.bf16.msra.mxu1 %v15649_v9  ;;  %v15680_v29 = vor.u32 %v13005_v20, %v11618_v1  ;;  %v13004_v58 = vld [vmem:[#allocation5 + $0x4] sm:$0xf0]  ;;  %v19789_v46 = vld [vmem:[#allocation53_spill] sm:$0xff]  ;;  %v19790_v35 = vshrl.u32 %v19779_v43, 16  ;;  %v2896_v28 = vadd.s32 536870912, %v15654_v14  ;;  %6479 = vmatpush.bf16.msra.mxu0 %v11625_v62 }
 0x1ed   : > { %19788 = vst [vmem:[#allocation51_spill] sm:$0xff] %v15675_v12  ;;  %v15688_v34 = vshrl.u32 %v1501_v25, 30  ;;  %v15691_v52 = vmul.u32 %v1630_v6, %v15670_v57  ;;  %v1610_v20 = vmul.u32 %v1608_v59, %v15604_v63  ;;  %v15695_v1 = vmul.u32 %v1608_v59, %v15670_v57  ;;  %v13711_v63 = vld [vmem:[%s19695_s18 + $0x4] ss:$0 sm:$0xff]  ;;  %v11672_v40 = vld [vmem:[#allocation2] sm:$0xf] }
 0x1ee   : > { %v15685_v7 = vmul.u32 %v19790_v35, %v19789_v46  ;;  %vm15697_vm1 = vc.u32 %v1632_v16, %v1636_v15  ;;  %13353 = vmatpush.bf16.msra.mxu2 %v15665_v55  ;;  %v15702_v35 = vor.u32 %v12990_v37, %v11680_v45  ;;  %v15705_v25 = vsel %vm2343_vm0, %v2342_v44, 0  ;;  %v12988_v54 = vld [vmem:[#allocation2 + $0x4] sm:$0xf0] }
 0x1ef   : > { %19792 = vst [vmem:[#allocation83_spill] sm:$0xff] %v15688_v34  ;;  %v15707_v6 = vadd.s32 %v1636_v15, %v1632_v16  ;;  %13338 = vmatpush.bf16.msra.mxu3 %v15672_v36  ;;  %v19796_v62 = vmov 2   ;;  %v1283_v59 = vmul.f32 %v13711_v63, %v1253_v13  ;;  %v11609_v9 = vor.u32 %v13004_v58, %v11608_v31  ;;  %v1351_v16 = vpop.permute.xlu0 %1350 }
 0x1f0   : > { %19791 = vst [vmem:[#allocation82_spill] sm:$0xff] %v15685_v7  ;;  %13630 = vset.pattern.permute.xlu1 %v19796_v62  ;;  %v2746_v45 = vsub.s32 0, %v15675_v12  ;;  %vm15715_vm2 = vc.u32 %v1610_v20, %v1614_v53  ;;  %v1620_v44 = vadd.s32 %v1614_v53, %v1610_v20  ;;  %13346 = vmatpush.bf16.msra.mxu1 %v15680_v29  ;;  %v15723_v55 = vshrl.u32 %v2896_v28, 30 }
 0x1f1   : > { %19795 = vst [vmem:[#allocation84_spill] sm:$0xff] %v15702_v35  ;;  %1068 = vperm.xlu1 %13630, %v15620_v49   ;;  %v15721_v15 = vor.u32 %v13003_v21, %v11610_v5  ;;  %vm2745_vm7 = vcmp.lt.s32.totalorder %v15675_v12, 0  ;;  %v1503_v13 = vshll.u32 %v15688_v34, 30  ;;  %v19534_v58 = vshll.u32 %v15691_v52, 16  ;;  %6480 = vmatpush.bf16.msra.mxu0 %v15672_v36 }
 0x1f2   : > { %19799 = vst [vmem:[#allocation85_spill] sm:$0xff] %v15723_v55  ;;  %v19800_v31 = vmov 1   ;;  %v19801_v63 = vmov 4   ;;  %v1616_v53 = vshll.u32 %v15695_v1, 16  ;;  %v19802_v20 = vshrl.u32 %v15557_v18, 16  ;;  %13354 = vmatpush.bf16.msra.mxu2 %v15702_v35 }
 0x1f3   : > { %13628 = vset.pattern.permute.xlu2 %v19800_v31  ;;  %13634 = vset.pattern.permute.xlu0 %v19801_v63  ;;  %v1641_v5 = vsel %vm15697_vm1, 1, %v19724_v60  ;;  %v15738_v28 = vor.u32 %v12988_v54, %v11672_v40  ;;  %v1619_v31 = vsel %vm15715_vm2, 1, %v19724_v60  ;;  %vm15747_vm8 = vc.u32 %v15707_v6, %v19534_v58  ;;  %v13712_v40 = vld [vmem:[%s19695_s18 + $0x5] ss:$0 sm:$0xff] }
 0x1f4   : > { %v1635_v21 = vmul.u32 %v19802_v20, %v15670_v57  ;;  %970 = vperm.xlu2 %13628, %v15620_v49   ;;  %v1299_v51 = vadd.f32 %v1283_v59, %v15658_v42  ;;  %13339 = vmatpush.bf16.msra.mxu3 %v11609_v9  ;;  %v1381_v54 = vmul.f32 %v13712_v40, %v1351_v16  ;;  %v15757_v37 = vand.u32 31, %v15705_v25 }
 0x1f5   : > { %19803 = vst [vmem:[#allocation86_spill] sm:$0xff] %v15738_v28  ;;  %1264 = vperm.xlu0 %13634, %v15620_v49   ;;  %v2747_v20 = vsel %vm2745_vm7, %v2746_v45, %v15675_v12  ;;  %v19806_v58 = vshrl.u32 %v15583_v56, 16  ;;  %vm1622_vm9 = vc.u32 %v1620_v44, %v1616_v53  ;;  %13347 = vmatpush.bf16.msra.mxu1 %v15721_v15  ;;  %v19537_v42 = vshll.u32 %v15685_v7, 16 }
 0x1f6   : > { %v2561_v59 = vshrl.u32 %v15616_v48, 16  ;;  %v2898_v16 = vshll.u32 %v15723_v55, 30  ;;  %v1643_v40 = vadd.s32 %v1641_v5, %v1635_v21  ;;  %vm2033_vm6 = vcmp.gt.s32.totalorder %v15652_v11, 0  ;;  %13355 = vmatpush.bf16.msra.mxu2 %v15738_v28  ;;  %6481 = vmatpush.bf16.msra.mxu0 %v11609_v9 }
 0x1f7   : > { %v1613_v35 = vmul.u32 %v19806_v58, %v15670_v57  ;;  %vm2188_vm5 = vcmp.gt.s32.totalorder %v15660_v10, 0  ;;  %v1645_v56 = vsel %vm15747_vm8, 1, %v19724_v60  ;;  %v2748_v57 = vclz %v2747_v20 }
 0x1f8   : > { %v15777_v44 = vsub.s32 %v15618_v32, %v1503_v13  ;;  %v1623_v58 = vsel %vm1622_vm9, 1, %v19724_v60  ;;  %v15780_v53 = vadd.f32 %v1381_v54, %v1299_v51  ;;  %v19809_v36 = vand.u32 65535, %v19779_v43 }
 0x1f9   : > { %v1621_v45 = vadd.s32 %v1619_v31, %v1613_v35  ;;  %v19811_v35 = vld [vmem:[#allocation54_spill] sm:$0xff]  ;;  %v19812_v5 = vshrl.u32 %v19779_v43, 16  ;;  %v15794_v20 = vsub.s32 32, %v15757_v37  ;;  %v19814_v32 = vmov 3  }
 0x1fa   : > { %19807 = vst [vmem:[#allocation87_spill] sm:$0xff] %v15777_v44  ;;  %v15785_v21 = vmul.u32 %v19809_v36, %v19789_v46  ;;  %13632 = vset.pattern.permute.xlu1 %v19814_v32  ;;  %v15798_v13 = vmul.u32 %v2561_v59, %v19789_v46  ;;  %v2034_v51 = vsel %vm2033_vm6, %v15652_v11, 0  ;;  %v15802_v54 = vsub.s32 %v15654_v14, %v2898_v16  ;;  %v19819_v14 = vld [vmem:[#allocation58_spill] sm:$0xff] }
 0x1fb   : > { %19808 = vst [vmem:[#allocation88_spill] sm:$0xff] %v15780_v53  ;;  %v15790_v31 = vmul.u32 %v19812_v5, %v19811_v35  ;;  %v1647_v36 = vadd.s32 %v1645_v56, %v1643_v40  ;;  %1166 = vperm.xlu1 %13632, %v15620_v49   ;;  %v15811_v18 = vmul.u32 %v2561_v59, %v19811_v35  ;;  %v2189_v28 = vsel %vm2188_vm5, %v15660_v10, 0 }
 0x1fc   : > { %19810 = vst [vmem:[#allocation89_spill] sm:$0xff] %v15785_v21  ;;  %v15808_v5 = vadd.s32 %v19537_v42, %v15785_v21  ;;  %v1625_v11 = vadd.s32 %v1623_v58, %v1621_v45  ;;  %13631 = vset.pattern.permute.xlu2 %v19796_v62  ;;  %6523 = vmatpush.bf16.msrb.mxu0 %v19819_v14  ;;  %v11535_v16 = vadd.s32 4294967294, %v2748_v57  ;;  %v1506_v9 = vsub.s32 0, %v15777_v44 }
 0x1fd   : > { %19813 = vst [vmem:[#allocation90_spill] sm:$0xff] %v15790_v31  ;;  %v1637_v40 = vshrl.u32 %v15630_v38, 16  ;;  %v3110_v56 = vand.u32 2139095040, %v15780_v53  ;;  %1072 = vperm.xlu2 %13631, %v15610_v47   ;;  %v19820_v59 = vmov 5   ;;  %v15823_v42 = vand.u32 31, %v2034_v51 }
 0x1fe   : > { %19815 = vst [vmem:[#allocation91_spill] sm:$0xff] %v15798_v13  ;;  %13638 = vset.pattern.permute.xlu0 %v19820_v59  ;;  %v2359_v10 = vshrl.u32 %v19729_v0, %v15794_v20  ;;  %vm1505_vm10 = vcmp.lt.s32.totalorder %v15777_v44, 0  ;;  %v1615_v62 = vshrl.u32 %v15644_v41, 16  ;;  %v15829_v45 = vand.u32 31, %v2189_v28 }
 0x1ff   : > { %19816 = vst [vmem:[#allocation92_spill] sm:$0xff] %v15802_v54  ;;  %v2362_v38 = vshrl.u32 %v19730_v23, %v15794_v20  ;;  %v2901_v57 = vsub.s32 0, %v15802_v54  ;;  %v1648_v58 = vadd.s32 %v1647_v36, %v1637_v40  ;;  %v2358_v14 = vshll.u32 %v19710_v19, %v15757_v37 }
 0x200   : > { %19817 = vst [vmem:[#allocation93_spill] sm:$0xff] %v15808_v5  ;;  %v2361_v55 = vshll.u32 %v19729_v0, %v15757_v37  ;;  %vm2900_vm14 = vcmp.lt.s32.totalorder %v15802_v54, 0  ;;  %v1626_v34 = vadd.s32 %v1625_v11, %v1615_v62  ;;  %vm11536_vm3 = vcmp.lt.s32.totalorder %v11535_v16, 0 }
 0x201   : > { %19818 = vst [vmem:[#allocation94_spill] sm:$0xff] %v15811_v18  ;;  %v19821_v18 = vld [vmem:[#allocation66_spill] sm:$0xff]  ;;  %v1507_v41 = vsel %vm1505_vm10, %v1506_v9, %v15777_v44  ;;  %v1639_v31 = vshrl.u32 %v15691_v52, 16  ;;  %v3111_v46 = vshrl.u32 %v3110_v56, 23  ;;  %v15843_v13 = vshrl.u32 %v15705_v25, 5  ;;  %v19824_v25 = vld [vmem:[#allocation68_spill] sm:$0xff] }
 0x202   : > { %6524 = vmatpush.bf16.msrb.mxu0 %v19821_v18  ;;  %v15845_v36 = vor.u32 %v2359_v10, %v2358_v14  ;;  %v1594_v40 = vsel %vm1592_vm11, %v15487_v24, 2102212464  ;;  %v1617_v5 = vshrl.u32 %v15695_v1, 16  ;;  %v2363_v11 = vor.u32 %v2362_v38, %v2361_v55  ;;  %v15866_v24 = vld [vmem:[%s19695_s18 + $0x1] ss:$0 sm:$0xff] }
 0x203   : > { %v2902_v18 = vsel %vm2900_vm14, %v2901_v57, %v15802_v54  ;;  %v1573_v9 = vshrl.u32 %v19725_v30, %v15426_v26  ;;  %v1649_v62 = vadd.s32 %v1648_v58, %v1639_v31  ;;  %13635 = vset.pattern.permute.xlu1 %v19801_v63  ;;  %v15855_v56 = vsel %vm11536_vm3, 0, %v11535_v16  ;;  %19826 = vst [vmem:[#allocation95_spill] sm:$0xff] %v15866_v24  ;;  %v19827_v26 = vld [vmem:[#allocation71_spill] sm:$0xff]  ;;  %v1053_v58 = vpop.permute.xlu1 %1052 }
 0x204   : > { %19822 = vst [vmem:[#allocation58_spill] sm:$0xff] %v15845_v36  ;;  %v906_v10 = vmul.f32 %v15538_v8, %v19824_v25  ;;  %v1508_v14 = vclz %v1507_v41  ;;  %v15859_v44 = vadd.s32 %v1626_v34, %v1617_v5  ;;  %1268 = vperm.xlu1 %13635, %v15610_v47   ;;  %v988_v55 = vmul.f32 %v15866_v24, %v19827_v26 }
 0x205   : > { %19823 = vst [vmem:[#allocation66_spill] sm:$0xff] %v15855_v56  ;;  %v1593_v1 = vsel %vm1589_vm4, %v1573_v9, %v15483_v39  ;;  %v1595_v34 = vsel %vm1591_vm12, %v15485_v17, %v1594_v40  ;;  %v11543_v63 = vadd.s32 4294967169, %v3111_v46  ;;  %13633 = vset.pattern.permute.xlu2 %v19814_v32  ;;  %v15880_v31 = vsub.s32 32, %v15823_v42 }
 0x206   : > { %19825 = vst [vmem:[#allocation68_spill] sm:$0xff] %v15859_v44  ;;  %6525 = vmatpush.bf16.msrb.mxu0 %v15548_v3  ;;  %v15877_v3 = vshrl.u32 %v2034_v51, 5  ;;  %v2903_v5 = vclz %v2902_v18  ;;  %v19828_v16 = vshll.u32 %v15691_v52, 16  ;;  %1170 = vperm.xlu2 %13633, %v15610_v47   ;;  %v15888_v39 = vshrl.u32 %v2189_v28, 5 }
 0x207   : > { %v15891_v17 = vsub.s32 32, %v15829_v45  ;;  %v2756_v46 = vsub.s32 4294967266, %v15855_v56  ;;  %v1653_v32 = vadd.s32 1, %v1649_v62  ;;  %vm2367_vm11 = vcmp.lt.s32.totalorder %v15843_v13, 4 }
 0x208   : > { %v15885_v38 = vadd.s32 %v15707_v6, %v19828_v16  ;;  %v11511_v51 = vadd.s32 4294967294, %v1508_v14  ;;  %v1596_v57 = vsel %vm1590_vm13, %v1593_v1, %v1595_v34  ;;  %v15903_v52 = vsel %vm2367_vm11, %v15845_v36, 920167782  ;;  %v19834_v1 = vld [vmem:[#allocation81_spill] sm:$0xff] }
 0x209   : > { %19830 = vst [vmem:[#allocation96_spill] sm:$0xff] %v15903_v52  ;;  %v15907_v6 = vsel %vm2367_vm11, %v2363_v11, 1326507024  ;;  %v1004_v28 = vadd.f32 %v988_v55, %v906_v10  ;;  %v3117_v41 = vadd.s32 1, %v11543_v63  ;;  %v15909_v40 = vadd.s32 4294967294, %v2903_v5  ;;  %v19833_v11 = vld [vmem:[#allocation48_spill] sm:$0xff] }
 0x20a   : > { %19829 = vst [vmem:[#allocation71_spill] sm:$0xff] %v15885_v38  ;;  %vm1652_vm4 = vc.u32 %v15859_v44, %v15885_v38  ;;  %6526 = vmatpush.bf16.msrb.mxu0 %v15571_v22  ;;  %v2752_v18 = vsub.s32 32, %v15855_v56  ;;  %v15916_v9 = vadd.s32 127, %v2756_v46  ;;  %v1650_v25 = vmul.u32 %v15568_v4, %v1596_v57  ;;  %v19835_v63 = vld [vmem:[#allocation78_spill] sm:$0xff] }
 0x20b   : > { %19831 = vst [vmem:[#allocation97_spill] sm:$0xff] %v15909_v40  ;;  %v1654_v14 = vsel %vm1652_vm4, %v1653_v32, %v1649_v62  ;;  %v19545_v26 = vand.u32 2147483647, %v19833_v11  ;;  %vm11512_vm12 = vcmp.lt.s32.totalorder %v11511_v51, 0  ;;  %v19550_v10 = vand.u32 2147483647, %v15780_v53 }
 0x20c   : > { %19832 = vst [vmem:[#allocation98_spill] sm:$0xff] %v15916_v9  ;;  %v2040_v55 = vshrl.u32 %v19727_v61, %v15880_v31  ;;  %v2043_v27 = vshrl.u32 %v19715_v50, %v15880_v31  ;;  %13637 = vset.pattern.permute.xlu1 %v19820_v59  ;;  %vm3118_vm13 = vcmp.gt.s32.totalorder %v3117_v41, 0  ;;  %v2046_v33 = vshrl.u32 %v19710_v19, %v15880_v31  ;;  %v19837_v38 = vld [vmem:[#allocation62_spill] sm:$0xff]  ;;  %v19839_v53 = vld [vmem:[#allocation72_spill] sm:$0xff] }
 0x20d   : > { %v2049_v4 = vshrl.u32 %v19729_v0, %v15880_v31  ;;  %v2052_v62 = vshrl.u32 %v19730_v23, %v15880_v31  ;;  %1366 = vperm.xlu1 %13637, %v15610_v47   ;;  %v15934_v34 = vadd.s32 %v1654_v14, %v1650_v25  ;;  %v1086_v5 = vmul.f32 %v19835_v63, %v1053_v58 }
 0x20e   : > { %6527 = vmatpush.bf16.msrb.mxu0 %v19834_v1  ;;  %v2039_v16 = vshll.u32 %v19725_v30, %v15823_v42  ;;  %v2042_v46 = vshll.u32 %v19727_v61, %v15823_v42  ;;  %13636 = vset.pattern.permute.xlu2 %v19820_v59  ;;  %v2029_v32 = vand.u32 8388607, %v19545_v26  ;;  %v2045_v47 = vshll.u32 %v19715_v50, %v15823_v42 }
 0x20f   : > { %v2048_v57 = vshll.u32 %v19710_v19, %v15823_v42  ;;  %v2051_v58 = vshll.u32 %v19729_v0, %v15823_v42  ;;  %1362 = vperm.xlu2 %13636, %v15620_v49   ;;  %v3114_v25 = vand.u32 8388607, %v19550_v10  ;;  %v3119_v14 = vsel %vm3118_vm13, %v3117_v41, 0  ;;  %v13714_v41 = vld [vmem:[%s19695_s18 + $0x3] ss:$0 sm:$0xff] }
 0x210   : > { %v15954_v59 = vor.u32 %v2040_v55, %v2039_v16  ;;  %v15956_v1 = vor.u32 %v2043_v27, %v2042_v46  ;;  %v15958_v63 = vshrl.u32 %v2736_v2, %v2752_v18  ;;  %v2047_v22 = vor.u32 %v2046_v33, %v2045_v47  ;;  %v19841_v2 = vld [vmem:[#allocation73_spill] sm:$0xff]  ;;  %v828_v27 = vpop.permute.xlu1 %827 }
 0x211   : > { %v2050_v26 = vor.u32 %v2049_v4, %v2048_v57  ;;  %v2053_v54 = vor.u32 %v2052_v62, %v2051_v58  ;;  %v15963_v49 = vsel %vm11512_vm12, 0, %v11511_v51  ;;  %v15967_v10 = vmul.f32 %v15538_v8, %v19839_v53 }
 0x212   : > { %19836 = vst [vmem:[#allocation48_spill] sm:$0xff] %v15958_v63  ;;  %6528 = vmatpush.bf16.msrb.mxu0 %v19837_v38  ;;  %v15973_v18 = vmul.f32 %v13714_v41, %v19841_v2  ;;  %v15975_v55 = vadd.f32 %v1086_v5, %v1004_v28  ;;  %v15977_v38 = vand.u32 31, %v3119_v14  ;;  %v2030_v33 = vor.u32 8388608, %v2029_v32 }
 0x213   : > { %19838 = vst [vmem:[#allocation81_spill] sm:$0xff] %v15963_v49  ;;  %vm2054_vm15 = vcmp.lt.s32.totalorder %v15877_v3, 1  ;;  %v1656_v51 = vadd.s32 536870912, %v15934_v34  ;;  %v3115_v4 = vor.u32 8388608, %v3114_v25  ;;  %vm2057_vm0 = vcmp.lt.s32.totalorder %v15877_v3, 4 }
 0x214   : > { %19840 = vst [vmem:[#allocation78_spill] sm:$0xff] %v15967_v10  ;;  %v2062_v53 = vsel %vm2054_vm15, %v15954_v59, %v15956_v1  ;;  %vm2056_vm1 = vcmp.lt.s32.totalorder %v15877_v3, 3  ;;  %v2063_v28 = vsel %vm2057_vm0, %v2050_v26, 920167782  ;;  %v2066_v62 = vsel %vm2054_vm15, %v15956_v1, %v2047_v22 }
 0x215   : > { %19842 = vst [vmem:[#allocation62_spill] sm:$0xff] %v15973_v18  ;;  %v2067_v5 = vsel %vm2057_vm0, %v2053_v54, 1326507024  ;;  %v15996_v16 = vmul.f32 %v15538_v8, %v828_v27  ;;  %vm2055_vm2 = vcmp.lt.s32.totalorder %v15877_v3, 2  ;;  %v2064_v46 = vsel %vm2056_vm1, %v2047_v22, %v2063_v28 }
 0x216   : > { %19843 = vst [vmem:[#allocation72_spill] sm:$0xff] %v15975_v55  ;;  %6529 = vmatpush.bf16.msrb.mxu0 %v15680_v29  ;;  %v2068_v32 = vsel %vm2056_vm1, %v2050_v26, %v2067_v5  ;;  %v16004_v47 = vsub.s32 32, %v15977_v38  ;;  %v2065_v57 = vsel %vm2055_vm2, %v2062_v53, %v2064_v46  ;;  %v16010_v54 = vshll.u32 %v2030_v33, 8 }
 0x217   : > { %v2069_v29 = vsel %vm2055_vm2, %v2066_v62, %v2068_v32  ;;  %v16012_v8 = vshrl.u32 %v1656_v51, 30  ;;  %v2038_v58 = vshrl.u32 %v19725_v30, %v15880_v31  ;;  %v16016_v2 = vshll.u32 %v3115_v4, 8 }
 0x218   : > { %v2073_v25 = vand.u32 65535, %v2069_v29  ;;  %v2074_v41 = vshrl.u32 %v2069_v29, 16  ;;  %v2071_v26 = vand.u32 65535, %v16010_v54  ;;  %v2072_v27 = vshrl.u32 %v16010_v54, 16 }
 0x219   : > { %19844 = vst [vmem:[#allocation73_spill] sm:$0xff] %v16012_v8  ;;  %v2095_v28 = vand.u32 65535, %v2065_v57  ;;  %v16021_v53 = vshrl.u32 %v3119_v14, 5  ;;  %v3124_v33 = vshll.u32 %v19725_v30, %v15977_v38  ;;  %v3127_v51 = vshll.u32 %v19727_v61, %v15977_v38 }
 0x21a   : > { %19845 = vst [vmem:[#allocation99_spill] sm:$0xff] %v16016_v2  ;;  %6530 = vmatpush.bf16.msrb.mxu0 %v15721_v15  ;;  %v2096_v31 = vshrl.u32 %v2065_v57, 16  ;;  %v3125_v4 = vshrl.u32 %v19727_v61, %v16004_v47  ;;  %v3133_v62 = vshll.u32 %v19710_v19, %v15977_v38  ;;  %v2076_v5 = vmul.u32 %v2074_v41, %v2071_v26 }
 0x21b   : > { %v2077_v46 = vmul.u32 %v2073_v25, %v2072_v27  ;;  %v3128_v15 = vshrl.u32 %v19715_v50, %v16004_v47  ;;  %v3131_v14 = vshrl.u32 %v19710_v19, %v16004_v47  ;;  %v2099_v29 = vmul.u32 %v2095_v28, %v2072_v27 }
 0x21c   : > { %v2098_v32 = vmul.u32 %v2096_v31, %v2071_v26  ;;  %v3134_v42 = vshrl.u32 %v19729_v0, %v16004_v47  ;;  %v3136_v57 = vshll.u32 %v19729_v0, %v15977_v38  ;;  %v2075_v44 = vmul.u32 %v2073_v25, %v2071_v26 }
 0x21d   : > { %v2079_v63 = vshll.u32 %v2076_v5, 16  ;;  %v2059_v56 = vsel %vm2057_vm0, %v2047_v22, 2102212464  ;;  %v2078_v12 = vmul.u32 %v2074_v41, %v2072_v27  ;;  %v2097_v40 = vmul.u32 %v2095_v28, %v2071_v26 }
 0x21e   : > { %v2101_v49 = vshll.u32 %v2098_v32, 16  ;;  %v2081_v9 = vshll.u32 %v2077_v46, 16  ;;  %v2100_v55 = vmul.u32 %v2096_v31, %v2072_v27  ;;  %v2103_v43 = vshll.u32 %v2099_v29, 16 }
 0x21f   : > { %vm2083_vm7 = vc.u32 %v2075_v44, %v2079_v63  ;;  %v2085_v18 = vadd.s32 %v2079_v63, %v2075_v44  ;;  %v3137_v10 = vshrl.u32 %v19730_v23, %v16004_v47  ;;  %v2058_v22 = vsel %vm2054_vm15, %v2038_v58, %v15954_v59 }
 0x220   : > { %v2084_v48 = vsel %vm2083_vm7, 1, %v19724_v60  ;;  %vm2105_vm8 = vc.u32 %v2097_v40, %v2101_v49  ;;  %v2107_v35 = vadd.s32 %v2101_v49, %v2097_v40  ;;  %v2060_v63 = vsel %vm2056_vm1, %v15956_v1, %v2059_v56  ;;  %v19847_v1 = vld [vmem:[#allocation56_spill] sm:$0xff] }
 0x221   : > { %v2086_v25 = vadd.s32 %v2084_v48, %v2078_v12  ;;  %vm2087_vm9 = vc.u32 %v2085_v18, %v2081_v9  ;;  %v2106_v24 = vsel %vm2105_vm8, 1, %v19724_v60  ;;  %v2080_v40 = vshrl.u32 %v2076_v5, 16 }
 0x222   : > { %v2088_v41 = vsel %vm2087_vm9, 1, %v19724_v60  ;;  %v2108_v44 = vadd.s32 %v2106_v24, %v2100_v55  ;;  %vm2109_vm6 = vc.u32 %v2107_v35, %v2103_v43  ;;  %v16053_v48 = vor.u32 %v3125_v4, %v3124_v33 }
 0x223   : > { %v2090_v49 = vadd.s32 %v2088_v41, %v2086_v25  ;;  %v2110_v26 = vsel %vm2109_vm6, 1, %v19724_v60  ;;  %v3130_v12 = vshll.u32 %v19715_v50, %v15977_v38  ;;  %v2102_v9 = vshrl.u32 %v2098_v32, 16 }
 0x224   : > { %19846 = vst [vmem:[#allocation100_spill] sm:$0xff] %v16053_v48  ;;  %v2112_v18 = vadd.s32 %v2110_v26, %v2108_v44  ;;  %v3135_v59 = vor.u32 %v3134_v42, %v3133_v62  ;;  %v3138_v58 = vor.u32 %v3137_v10, %v3136_v57  ;;  %v2082_v27 = vshrl.u32 %v2077_v46, 16 }
 0x225   : > { %v2091_v24 = vadd.s32 %v2090_v49, %v2080_v40  ;;  %v2061_v55 = vsel %vm2055_vm2, %v2058_v22, %v2060_v63  ;;  %v2104_v28 = vshrl.u32 %v2099_v29, 16  ;;  %v19562_v31 = vand.u32 2147483647, %v19847_v1 }
 0x226   : > { %v2113_v56 = vadd.s32 %v2112_v18, %v2102_v9  ;;  %v16060_v5 = vor.u32 %v3128_v15, %v3127_v51  ;;  %v16062_v33 = vor.u32 %v3131_v14, %v3130_v12  ;;  %v16066_v38 = vadd.s32 %v2107_v35, %v2103_v43 }
 0x227   : > { %v16064_v4 = vadd.s32 %v2091_v24, %v2082_v27  ;;  %vm3139_vm5 = vcmp.lt.s32.totalorder %v16021_v53, 1  ;;  %vm3141_vm10 = vcmp.lt.s32.totalorder %v16021_v53, 3  ;;  %vm3142_vm14 = vcmp.lt.s32.totalorder %v16021_v53, 4 }
 0x228   : > { %19848 = vst [vmem:[#allocation101_spill] sm:$0xff] %v16060_v5  ;;  %v2114_v3 = vadd.s32 %v2113_v56, %v2104_v28  ;;  %v3148_v10 = vsel %vm3142_vm14, %v3135_v59, 920167782  ;;  %v3152_v42 = vsel %vm3142_vm14, %v3138_v58, 1326507024  ;;  %v2115_v51 = vmul.u32 %v16010_v54, %v2061_v55 }
 0x229   : > { %vm2117_vm3 = vc.u32 %v16064_v4, %v16066_v38  ;;  %v2184_v35 = vand.u32 8388607, %v19562_v31  ;;  %v2195_v62 = vshrl.u32 %v19727_v61, %v15891_v17  ;;  %v2198_v46 = vshrl.u32 %v19715_v50, %v15891_v17 }
 0x22a   : > { %v2118_v43 = vadd.s32 1, %v2114_v3  ;;  %v2194_v15 = vshll.u32 %v19725_v30, %v15829_v45  ;;  %v2201_v14 = vshrl.u32 %v19710_v19, %v15891_v17  ;;  %v2203_v54 = vshll.u32 %v19710_v19, %v15829_v45 }
 0x22b   : > { %v2204_v32 = vshrl.u32 %v19729_v0, %v15891_v17  ;;  %v2197_v57 = vshll.u32 %v19727_v61, %v15829_v45  ;;  %v2200_v25 = vshll.u32 %v19715_v50, %v15829_v45  ;;  %v2207_v22 = vshrl.u32 %v19730_v23, %v15891_v17 }
 0x22c   : > { %v2119_v29 = vsel %vm2117_vm3, %v2118_v43, %v2114_v3  ;;  %v3147_v41 = vsel %vm3139_vm5, %v16053_v48, %v16060_v5  ;;  %v3149_v44 = vsel %vm3141_vm10, %v16062_v33, %v3148_v10  ;;  %v16105_v49 = vor.u32 %v2195_v62, %v2194_v15 }
 0x22d   : > { %v2120_v63 = vadd.s32 %v2119_v29, %v2115_v51  ;;  %v2205_v40 = vor.u32 %v2204_v32, %v2203_v54  ;;  %v16107_v26 = vor.u32 %v2198_v46, %v2197_v57  ;;  %v16109_v12 = vor.u32 %v2201_v14, %v2200_v25  ;;  %v19849_v51 = vld [vmem:[#allocation49_spill] sm:$0xff] }
 0x22e   : > { %v2206_v9 = vshll.u32 %v19729_v0, %v15829_v45  ;;  %vm19577_vm4 = vcmp.lt.s32.totalorder %v16021_v53, 2  ;;  %v3151_v18 = vsel %vm3139_vm5, %v16060_v5, %v16062_v33  ;;  %v3153_v58 = vsel %vm3141_vm10, %v3135_v59, %v3152_v42 }
 0x22f   : > { %v2121_v27 = vadd.s32 536870912, %v2120_v63  ;;  %v16122_v24 = vsel %vm19577_vm4, %v3147_v41, %v3149_v44  ;;  %v2185_v55 = vor.u32 8388608, %v2184_v35  ;;  %vm2212_vm12 = vcmp.lt.s32.totalorder %v15888_v39, 4 }
 0x230   : > { %v2208_v28 = vor.u32 %v2207_v22, %v2206_v9  ;;  %vm2209_vm13 = vcmp.lt.s32.totalorder %v15888_v39, 1  ;;  %vm2211_vm15 = vcmp.lt.s32.totalorder %v15888_v39, 3  ;;  %v2218_v56 = vsel %vm2212_vm12, %v2205_v40, 920167782 }
 0x231   : > { %v16125_v45 = vshrl.u32 %v2121_v27, 30  ;;  %v1658_v59 = vshll.u32 %v16012_v8, 30  ;;  %v3154_v3 = vsel %vm19577_vm4, %v3151_v18, %v3153_v58  ;;  %v2217_v10 = vsel %vm2209_vm13, %v16105_v49, %v16107_v26 }
 0x232   : > { %v2219_v42 = vsel %vm2211_vm15, %v16109_v12, %v2218_v56  ;;  %v16143_v43 = vadd.f32 %v19849_v51, %v15996_v16  ;;  %v19563_v35 = vshrl.u32 %v16122_v24, 16  ;;  %v2221_v46 = vsel %vm2209_vm13, %v16107_v26, %v16109_v12 }
 0x233   : > { %v2123_v62 = vshll.u32 %v16125_v45, 30  ;;  %v3156_v15 = vand.u32 65535, %v16016_v2  ;;  %vm2210_vm0 = vcmp.lt.s32.totalorder %v15888_v39, 2  ;;  %v2222_v14 = vsel %vm2212_vm12, %v2208_v28, 1326507024 }
 0x234   : > { %19850 = vst [vmem:[#allocation49_spill] sm:$0xff] %v16143_v43  ;;  %v16155_v54 = vshll.u32 %v2185_v55, 8  ;;  %v3159_v16 = vshrl.u32 %v3154_v3, 16  ;;  %v2220_v29 = vsel %vm2210_vm0, %v2217_v10, %v2219_v42  ;;  %v2223_v57 = vsel %vm2211_vm15, %v2205_v40, %v2222_v14 }
 0x235   : > { %v2124_v32 = vsub.s32 %v2120_v63, %v2123_v62  ;;  %v16162_v25 = vsub.s32 %v15934_v34, %v1658_v59  ;;  %v16165_v22 = vshrl.u32 %v16016_v2, 16  ;;  %v3180_v41 = vand.u32 65535, %v16122_v24 }
 0x236   : > { %v2224_v44 = vsel %vm2210_vm0, %v2221_v46, %v2223_v57  ;;  %v3158_v9 = vand.u32 65535, %v3154_v3  ;;  %v16172_v63 = vmul.u32 %v19563_v35, %v3156_v15  ;;  %v2226_v40 = vand.u32 65535, %v16155_v54 }
 0x237   : > { %vm2125_vm1 = vcmp.lt.s32.totalorder %v2124_v32, 0  ;;  %v2126_v18 = vsub.s32 0, %v2124_v32  ;;  %v2228_v58 = vand.u32 65535, %v2224_v44  ;;  %v2229_v34 = vshrl.u32 %v2224_v44, 16 }
 0x238   : > { %19851 = vst [vmem:[#allocation102_spill] sm:$0xff] %v16172_v63  ;;  %v2251_v27 = vshrl.u32 %v2220_v29, 16  ;;  %v16175_v55 = vmul.u32 %v3159_v16, %v3156_v15  ;;  %v2227_v56 = vshrl.u32 %v16155_v54, 16  ;;  %v2250_v59 = vand.u32 65535, %v2220_v29 }
 0x239   : > { %v2127_v28 = vsel %vm2125_vm1, %v2126_v18, %v2124_v32  ;;  %v16178_v10 = vmul.u32 %v3180_v41, %v3156_v15  ;;  %v16181_v3 = vmul.u32 %v3180_v41, %v16165_v22  ;;  %v2231_v51 = vmul.u32 %v2229_v34, %v2226_v40 }
 0x23a   : > { %v2128_v42 = vclz %v2127_v28  ;;  %v3160_v62 = vmul.u32 %v3158_v9, %v3156_v15  ;;  %v16184_v46 = vmul.u32 %v3158_v9, %v16165_v22  ;;  %v2232_v14 = vmul.u32 %v2228_v58, %v2227_v56 }
 0x23b   : > { %v2253_v57 = vmul.u32 %v2251_v27, %v2226_v40  ;;  %v3186_v44 = vshll.u32 %v16172_v63, 16  ;;  %v2230_v18 = vmul.u32 %v2228_v58, %v2226_v40  ;;  %v2234_v35 = vshll.u32 %v2231_v51, 16 }
 0x23c   : > { %v11523_v31 = vadd.s32 4294967294, %v2128_v42  ;;  %v16188_v29 = vmul.u32 %v3159_v16, %v16165_v22  ;;  %v3164_v8 = vshll.u32 %v16175_v55, 16  ;;  %v2252_v41 = vmul.u32 %v2250_v59, %v2226_v40 }
 0x23d   : > { %v2256_v0 = vshll.u32 %v2253_v57, 16  ;;  %vm2238_vm7 = vc.u32 %v2230_v18, %v2234_v35  ;;  %v2240_v15 = vadd.s32 %v2234_v35, %v2230_v18  ;;  %v2254_v28 = vmul.u32 %v2250_v59, %v2227_v56 }
 0x23e   : > { %vm11524_vm2 = vcmp.lt.s32.totalorder %v11523_v31, 0  ;;  %v2233_v23 = vmul.u32 %v2229_v34, %v2227_v56  ;;  %v2236_v2 = vshll.u32 %v2232_v14, 16  ;;  %v2239_v43 = vsel %vm2238_vm7, 1, %v19724_v60 }
 0x23f   : > { %v2131_v9 = vsel %vm11524_vm2, 0, %v11523_v31  ;;  %vm16193_vm8 = vc.u32 %v16178_v10, %v3186_v44  ;;  %v2116_v16 = vadd.s32 %v16066_v38, %v16064_v4  ;;  %v2255_v21 = vmul.u32 %v2251_v27, %v2227_v56 }
 0x240   : > { %v2132_v42 = vsub.s32 32, %v2131_v9  ;;  %v2136_v40 = vsub.s32 4294967266, %v2131_v9  ;;  %v2235_v7 = vshrl.u32 %v2231_v51, 16  ;;  %v2241_v1 = vadd.s32 %v2239_v43, %v2233_v23 }
 0x241   : > { %vm2242_vm9 = vc.u32 %v2240_v15, %v2236_v2  ;;  %vm2260_vm6 = vc.u32 %v2252_v41, %v2256_v0  ;;  %v2133_v31 = vshll.u32 %v2124_v32, %v2131_v9  ;;  %v2258_v52 = vshll.u32 %v2254_v28, 16 }
 0x242   : > { %v2134_v35 = vshrl.u32 %v2116_v16, %v2132_v42  ;;  %v2137_v34 = vadd.s32 127, %v2136_v40  ;;  %v2243_v59 = vsel %vm2242_vm9, 1, %v19724_v60  ;;  %v2261_v63 = vsel %vm2260_vm6, 1, %v19724_v60 }
 0x243   : > { %v2245_v18 = vadd.s32 %v2243_v59, %v2241_v1  ;;  %v2262_v5 = vadd.s32 %v2256_v0, %v2252_v41  ;;  %v2214_v4 = vsel %vm2212_vm12, %v16109_v12, 2102212464  ;;  %v2263_v38 = vadd.s32 %v2261_v63, %v2255_v21 }
 0x244   : > { %v2135_v48 = vor.u32 %v2134_v35, %v2133_v31  ;;  %v2138_v36 = vshll.u32 %v2137_v34, 23  ;;  %vm16204_vm3 = vc.u32 %v3160_v62, %v3164_v8  ;;  %vm2024_vm1 = vcmp.lt.s32.totalorder %v19833_v11, 0 }
 0x245   : > { %v2193_v2 = vshrl.u32 %v19725_v30, %v15891_v17  ;;  %v2246_v1 = vadd.s32 %v2245_v18, %v2235_v7  ;;  %vm2264_vm2 = vc.u32 %v2262_v5, %v2258_v52  ;;  %v3170_v43 = vadd.s32 %v3164_v8, %v3160_v62  ;;  %v19859_v62 = vld [vmem:[#allocation65_spill] sm:$0xff] }
 0x246   : > { %v2139_v0 = vor.u32 4788187, %v2138_v36  ;;  %v2237_v32 = vshrl.u32 %v2232_v14, 16  ;;  %v2265_v27 = vsel %vm2264_vm2, 1, %v19724_v60  ;;  %v2215_v12 = vsel %vm2211_vm15, %v16107_v26, %v2214_v4 }
 0x247   : > { %v2213_v21 = vsel %vm2209_vm13, %v2193_v2, %v16105_v49  ;;  %v2257_v63 = vshrl.u32 %v2253_v57, 16  ;;  %v2267_v56 = vadd.s32 %v2265_v27, %v2263_v38  ;;  %v19856_v51 = vand.u32 2147483647, %v19833_v11 }
 0x248   : > { %v2140_v36 = vand.u32 2147483647, %v2139_v0  ;;  %v2142_v17 = vcvt.s32.f32 %v2135_v48  ;;  %v16224_v8 = vadd.s32 %v2246_v1, %v2237_v32  ;;  %v2332_v14 = vand.u32 2147483647, %v19859_v62 }
 0x249   : > { %vm16220_vm12 = vcmp.le.f32.partialorder %v19856_v51, 0.7853982  ;;  %v19860_v49 = vshrl.u32 %v16122_v24, 16  ;;  %v16231_v26 = vadd.s32 %v3186_v44, %v16178_v10  ;;  %v2259_v57 = vshrl.u32 %v2254_v28, 16 }
 0x24a   : > { %v2268_v15 = vadd.s32 %v2267_v56, %v2257_v63  ;;  %v3166_v9 = vshll.u32 %v16184_v46, 16  ;;  %v3188_v16 = vshll.u32 %v16181_v3, 16  ;;  %v2143_v42 = vmul.f32 %v2142_v17, %v2140_v36 }
 0x24b   : > { %v3185_v41 = vmul.u32 %v19860_v49, %v16165_v22  ;;  %v16235_v40 = vadd.s32 %v2262_v5, %v2258_v52  ;;  %v3169_v48 = vsel %vm16204_vm3, 1, %v19724_v60  ;;  %v3191_v24 = vsel %vm16193_vm8, 1, %v19724_v60 }
 0x24c   : > { %v2216_v22 = vsel %vm2210_vm0, %v2213_v21, %v2215_v12  ;;  %v2269_v10 = vadd.s32 %v2268_v15, %v2259_v57  ;;  %vm16245_vm13 = vc.u32 %v3170_v43, %v3166_v9  ;;  %v2144_v28 = vxor.u32 2147483648, %v2143_v42  ;;  %v19864_v9 = vld [vmem:[#allocation100_spill] sm:$0xff] }
 0x24d   : > { %vm2272_vm15 = vc.u32 %v16224_v8, %v16235_v40  ;;  %v2339_v52 = vand.u32 8388607, %v2332_v14  ;;  %vm3194_vm7 = vc.u32 %v16231_v26, %v3188_v16  ;;  %v2353_v39 = vshrl.u32 %v19715_v50, %v15794_v20 }
 0x24e   : > { %v2273_v5 = vadd.s32 1, %v2269_v10  ;;  %v2356_v58 = vshrl.u32 %v19710_v19, %v15794_v20  ;;  %v1661_v31 = vsub.s32 0, %v16162_v25  ;;  %v3193_v35 = vadd.s32 %v3191_v24, %v3185_v41 }
 0x24f   : > { %v2145_v34 = vsel %vm2024_vm1, %v2144_v28, %v2143_v42  ;;  %v2270_v59 = vmul.u32 %v16155_v54, %v2216_v22  ;;  %v3171_v18 = vadd.s32 %v3169_v48, %v16188_v29  ;;  %v2352_v38 = vshll.u32 %v19727_v61, %v15757_v37  ;;  %v19865_v48 = vld [vmem:[#allocation101_spill] sm:$0xff] }
 0x250   : > { %v2274_v4 = vsel %vm2272_vm15, %v2273_v5, %v2269_v10  ;;  %v2355_v23 = vshll.u32 %v19715_v50, %v15757_v37  ;;  %v3173_v2 = vsel %vm16245_vm13, 1, %v19724_v60  ;;  %v3195_v1 = vsel %vm3194_vm7, 1, %v19724_v60 }
 0x251   : > { %v2275_v43 = vadd.s32 %v2274_v4, %v2270_v59  ;;  %v2340_v0 = vor.u32 8388608, %v2339_v52  ;;  %v16276_v54 = vsel %vm16220_vm12, %v19833_v11, %v2145_v34  ;;  %v2350_v29 = vshrl.u32 %v19727_v61, %v15794_v20 }
 0x252   : > { %v16280_v32 = vor.u32 %v2353_v39, %v2352_v38  ;;  %v16282_v27 = vor.u32 %v2356_v58, %v2355_v23  ;;  %v3123_v21 = vshrl.u32 %v19725_v30, %v16004_v47  ;;  %v3144_v12 = vsel %vm3142_vm14, %v16062_v33, 2102212464  ;;  %v19867_v38 = vld [vmem:[#allocation96_spill] sm:$0xff] }
 0x253   : > { %v3165_v63 = vshrl.u32 %v16175_v55, 16  ;;  %v2276_v56 = vadd.s32 536870912, %v2275_v43  ;;  %v3175_v51 = vadd.s32 %v3173_v2, %v3171_v18  ;;  %v3197_v36 = vadd.s32 %v3195_v1, %v3193_v35  ;;  %v19863_v55 = vld [vmem:[#allocation58_spill] sm:$0xff] }
 0x254   : > { %v2146_v17 = vsub.s32 4, %v16125_v45  ;;  %v2349_v49 = vshll.u32 %v19725_v30, %v15757_v37  ;;  %v16295_v41 = vmul.f32 %v16276_v54, %v16276_v54  ;;  %vm2364_vm0 = vcmp.lt.s32.totalorder %v15843_v13, 1 }
 0x255   : > { %v16297_v57 = vshrl.u32 %v2276_v56, 30  ;;  %vm2366_vm14 = vcmp.lt.s32.totalorder %v15843_v13, 3  ;;  %v2376_v33 = vsel %vm2364_vm0, %v16280_v32, %v16282_v27  ;;  %v16311_v15 = vshll.u32 %v2340_v0, 8 }
 0x256   : > { %v16301_v47 = vor.u32 %v2350_v29, %v2349_v49  ;;  %v2378_v37 = vsel %vm2366_vm14, %v19863_v55, %v15907_v6  ;;  %v16316_v42 = vsel %vm3139_vm5, %v3123_v21, %v19864_v9  ;;  %v16321_v24 = vsel %vm3141_vm10, %v19865_v48, %v3144_v12  ;;  %v19866_v6 = vld [vmem:[#allocation102_spill] sm:$0xff] }
 0x257   : > { %v2278_v22 = vshll.u32 %v16297_v57, 30  ;;  %vm2365_vm8 = vcmp.lt.s32.totalorder %v15843_v13, 2  ;;  %v3167_v10 = vshrl.u32 %v16184_v46, 16  ;;  %v3176_v44 = vadd.s32 %v3175_v51, %v3165_v63  ;;  %v19868_v51 = vld [vmem:[#allocation56_spill] sm:$0xff] }
 0x258   : > { %v3187_v28 = vshrl.u32 %v19866_v6, 16  ;;  %v2379_v52 = vsel %vm2365_vm8, %v2376_v33, %v2378_v37  ;;  %v3189_v5 = vshrl.u32 %v16181_v3, 16  ;;  %v2147_v39 = vsel %vm2024_vm1, %v2146_v17, %v16125_v45 }
 0x259   : > { %v2158_v58 = vmul.f32 -0.00019511016, %v16295_v41  ;;  %v2279_v35 = vsub.s32 %v2275_v43, %v2278_v22  ;;  %v2372_v46 = vsel %vm2364_vm0, %v16301_v47, %v16280_v32  ;;  %v2381_v59 = vand.u32 65535, %v16311_v15 }
 0x25a   : > { %v3198_v34 = vadd.s32 %v3197_v36, %v3187_v28  ;;  %v2384_v18 = vshrl.u32 %v2379_v52, 16  ;;  %v2374_v23 = vsel %vm2366_vm14, %v16282_v27, %v19867_v38  ;;  %v2383_v45 = vand.u32 65535, %v2379_v52 }
 0x25b   : > { %vm2280_vm5 = vcmp.lt.s32.totalorder %v2279_v35, 0  ;;  %v2281_v4 = vsub.s32 0, %v2279_v35  ;;  %v16343_v2 = vadd.s32 %v3176_v44, %v3167_v10  ;;  %v16348_v1 = vadd.s32 %v16231_v26, %v3188_v16 }
 0x25c   : > { %v2149_v43 = vsel %vm16220_vm12, 0, %v2147_v39  ;;  %v16352_v0 = vmul.u32 %v2384_v18, %v2381_v59  ;;  %v2151_v29 = vmul.f32 -0.001358992, %v16295_v41  ;;  %v2159_v21 = vadd.f32 0.008332121, %v2158_v58 }
 0x25d   : > { %v2282_v12 = vsel %vm2280_vm5, %v2281_v4, %v2279_v35  ;;  %v2382_v63 = vshrl.u32 %v16311_v15, 16  ;;  %v16356_v56 = vadd.s32 %v3198_v34, %v3189_v5  ;;  %vm2179_vm10 = vcmp.lt.s32.totalorder %v19868_v51, 0 }
 0x25e   : > { %v2283_v36 = vclz %v2282_v12  ;;  %v2375_v3 = vsel %vm2365_vm8, %v2372_v46, %v2374_v23  ;;  %v2271_v7 = vadd.s32 %v16235_v40, %v16224_v8  ;;  %v16363_v26 = vand.u32 3, %v2149_v43 }
 0x25f   : > { %v2348_v16 = vshrl.u32 %v19725_v30, %v15794_v20  ;;  %v16367_v17 = vmul.u32 %v2383_v45, %v2382_v63  ;;  %v2166_v33 = vadd.s32 3, %v2149_v43  ;;  %v2385_v55 = vmul.u32 %v2383_v45, %v2381_v59 }
 0x260   : > { %v11526_v49 = vadd.s32 4294967294, %v2283_v36  ;;  %v2389_v37 = vshll.u32 %v16352_v0, 16  ;;  %v2152_v9 = vadd.f32 0.041655596, %v2151_v29  ;;  %v2160_v48 = vmul.f32 %v2159_v21, %v16295_v41  ;;  %v19872_v21 = vld [vmem:[#allocation82_spill] sm:$0xff]  ;;  %v19874_v36 = vld [vmem:[#allocation89_spill] sm:$0xff] }
 0x261   : > { %v2301_v22 = vsub.s32 4, %v16297_v57  ;;  %v2405_v10 = vand.u32 65535, %v2375_v3  ;;  %v19869_v8 = vand.u32 2147483647, %v19868_v51  ;;  %v2388_v20 = vmul.u32 %v2384_v18, %v2382_v63 }
 0x262   : > { %vm11527_vm6 = vcmp.lt.s32.totalorder %v11526_v49, 0  ;;  %vm2393_vm3 = vc.u32 %v2385_v55, %v2389_v37  ;;  %v2395_v44 = vadd.s32 %v2389_v37, %v2385_v55  ;;  %v2391_v28 = vshll.u32 %v16367_v17, 16 }
 0x263   : > { %vm16374_vm9 = vcmp.le.f32.partialorder %v19869_v8, 0.7853982  ;;  %v2286_v6 = vsel %vm11527_vm6, 0, %v11526_v49  ;;  %v2394_v52 = vsel %vm2393_vm3, 1, %v19724_v60  ;;  %v2406_v5 = vshrl.u32 %v2375_v3, 16 }
 0x264   : > { %v2287_v39 = vsub.s32 32, %v2286_v6  ;;  %v2291_v58 = vsub.s32 4294967266, %v2286_v6  ;;  %v16380_v34 = vand.u32 3, %v2166_v33  ;;  %v2369_v46 = vsel %vm2367_vm11, %v16282_v27, 2102212464 }
 0x265   : > { %v2153_v4 = vmul.f32 %v2152_v9, %v16295_v41  ;;  %v2396_v38 = vadd.s32 %v2394_v52, %v2388_v20  ;;  %vm2397_vm1 = vc.u32 %v2395_v44, %v2391_v28  ;;  %v2408_v18 = vmul.u32 %v2406_v5, %v2381_v59 }
 0x266   : > { %v2288_v23 = vshll.u32 %v2279_v35, %v2286_v6  ;;  %v2289_v45 = vshrl.u32 %v2271_v7, %v2287_v39  ;;  %v2292_v43 = vadd.s32 127, %v2291_v58  ;;  %v2398_v29 = vsel %vm2397_vm1, 1, %v19724_v60 }
 0x267   : > { %v19873_v12 = vshll.u32 %v19872_v21, 16  ;;  %v2161_v49 = vadd.f32 -0.16666654, %v2160_v48  ;;  %v2302_v27 = vsel %vm2179_vm10, %v2301_v22, %v16297_v57  ;;  %v2407_v33 = vmul.u32 %v2405_v10, %v2381_v59 }
 0x268   : > { %v2409_v55 = vmul.u32 %v2405_v10, %v2382_v63  ;;  %v2290_v37 = vor.u32 %v2289_v45, %v2288_v23  ;;  %v2293_v35 = vshll.u32 %v2292_v43, 23  ;;  %v2400_v7 = vadd.s32 %v2398_v29, %v2396_v38  ;;  %v19878_v43 = vld [vmem:[#allocation78_spill] sm:$0xff] }
 0x269   : > { %vm16390_vm2 = vc.u32 %v19874_v36, %v19873_v12  ;;  %v2411_v9 = vshll.u32 %v2408_v18, 16  ;;  %v2154_v8 = vadd.f32 -0.4999988, %v2153_v4  ;;  %v2368_v20 = vsel %vm2364_vm0, %v2348_v16, %v16301_v47  ;;  %v927_v16 = vpop.permute.xlu1 %926 }
 0x26a   : > { %v2370_v44 = vsel %vm2366_vm14, %v16280_v32, %v2369_v46  ;;  %v2390_v48 = vshrl.u32 %v16352_v0, 16  ;;  %v2294_v6 = vor.u32 4788187, %v2293_v35  ;;  %v2410_v28 = vmul.u32 %v2406_v5, %v2382_v63  ;;  %v19877_v0 = vld [vmem:[#allocation95_spill] sm:$0xff] }
 0x26b   : > { %vm2415_vm11 = vc.u32 %v2407_v33, %v2411_v9  ;;  %v2417_v57 = vadd.s32 %v2411_v9, %v2407_v33  ;;  %v2162_v59 = vmul.f32 %v2161_v49, %v16295_v41  ;;  %v2304_v22 = vsel %vm16374_vm9, 0, %v2302_v27  ;;  %v19879_v49 = vld [vmem:[#allocation54_spill] sm:$0xff] }
 0x26c   : > { %v2413_v10 = vshll.u32 %v2409_v55, 16  ;;  %v2416_v52 = vsel %vm2415_vm11, 1, %v19724_v60  ;;  %v2295_v39 = vand.u32 2147483647, %v2294_v6  ;;  %v2297_v47 = vcvt.s32.f32 %v2290_v37  ;;  %v19882_v6 = vld [vmem:[#allocation64_spill] sm:$0xff] }
 0x26d   : > { %v2401_v58 = vadd.s32 %v2400_v7, %v2390_v48  ;;  %v2418_v4 = vadd.s32 %v2416_v52, %v2410_v28  ;;  %v2155_v32 = vmul.f32 %v2154_v8, %v16295_v41  ;;  %v981_v46 = vmul.f32 %v19877_v0, %v927_v16  ;;  %v19880_v41 = vld [vmem:[#allocation52_spill] sm:$0xff]  ;;  %v19884_v52 = vld [vmem:[#allocation93_spill] sm:$0xff] }
 0x26e   : > { %v2371_v63 = vsel %vm2365_vm8, %v2368_v20, %v2370_v44  ;;  %vm2419_vm12 = vc.u32 %v2417_v57, %v2413_v10  ;;  %v2298_v5 = vmul.f32 %v2297_v47, %v2295_v39  ;;  %v16412_v38 = vand.u32 3, %v2304_v22  ;;  %v19885_v39 = vld [vmem:[#allocation91_spill] sm:$0xff]  ;;  %v19886_v16 = vld [vmem:[#allocation53_spill] sm:$0xff] }
 0x26f   : > { %v2392_v23 = vshrl.u32 %v16367_v17, 16  ;;  %v2420_v45 = vsel %vm2419_vm12, 1, %v19724_v60  ;;  %v16417_v29 = vadd.f32 %v981_v46, %v19878_v43  ;;  %v2412_v12 = vshrl.u32 %v2408_v18, 16  ;;  %v19888_v46 = vld [vmem:[#allocation90_spill] sm:$0xff] }
 0x270   : > { %v2422_v36 = vadd.s32 %v2420_v45, %v2418_v4  ;;  %v19881_v27 = vand.u32 65535, %v19880_v41  ;;  %v2163_v13 = vadd.f32 1.0, %v2162_v59  ;;  %v2299_v37 = vxor.u32 2147483648, %v2298_v5  ;;  %v16461_v4 = vld [vmem:[%s19695_s18 + $0x2] ss:$0 sm:$0xff] }
 0x271   : > { %v2321_v35 = vadd.s32 3, %v2304_v22  ;;  %v16424_v7 = vadd.s32 %v2401_v58, %v2392_v23  ;;  %v16426_v9 = vadd.f32 1.0, %v2155_v32  ;;  %v2414_v17 = vshrl.u32 %v2409_v55, 16  ;;  %v1021_v47 = vpop.permute.xlu1 %1020 }
 0x272   : > { %v16422_v33 = vmul.u32 %v19881_v27, %v19879_v49  ;;  %v2423_v8 = vadd.s32 %v2422_v36, %v2412_v12  ;;  %v2300_v18 = vsel %vm2179_vm10, %v2299_v37, %v2298_v5  ;;  %v16431_v44 = vadd.s32 %v2417_v57, %v2413_v10  ;;  %v19889_v12 = vld [vmem:[#allocation49_spill] sm:$0xff] }
 0x273   : > { %v2549_v48 = vsel %vm16390_vm2, 1, %v19724_v60  ;;  %v19883_v28 = vand.u32 65535, %v19882_v6  ;;  %v16444_v55 = vsel %vm16374_vm9, %v19868_v51, %v2300_v18  ;;  %v2566_v57 = vshll.u32 %v19885_v39, 16  ;;  %v19890_v18 = vld [vmem:[#allocation94_spill] sm:$0xff] }
 0x274   : > { %v2546_v20 = vshll.u32 %v16422_v33, 16  ;;  %v2424_v22 = vadd.s32 %v2423_v8, %v2414_v17  ;;  %v16449_v10 = vmul.f32 %v2163_v13, %v16276_v54  ;;  %v2305_v3 = vmul.f32 %v16444_v55, %v16444_v55 }
 0x275   : > { %v16439_v59 = vmul.u32 %v19883_v28, %v19879_v49  ;;  %vm2427_vm15 = vc.u32 %v16424_v7, %v16431_v44  ;;  %v19887_v40 = vmov %v19883_v28  ;;  %v1078_v32 = vmul.f32 %v16461_v4, %v1021_v47 }
 0x276   : > { %vm2552_vm13 = vc.u32 %v19884_v52, %v2546_v20  ;;  %v2562_v58 = vmul.u32 %v19887_v40, %v19886_v16  ;;  %v2425_v54 = vmul.u32 %v16311_v15, %v2371_v63  ;;  %v2428_v0 = vadd.s32 1, %v2424_v22 }
 0x277   : > { %v2551_v5 = vadd.s32 %v2549_v48, %v19888_v46  ;;  %v2306_v23 = vmul.f32 -0.001358992, %v2305_v3  ;;  %v2313_v45 = vmul.f32 -0.00019511016, %v2305_v3  ;;  %v2553_v43 = vsel %vm2552_vm13, 1, %v19724_v60 }
 0x278   : > { %vm2570_vm7 = vc.u32 %v2562_v58, %v2566_v57  ;;  %vm4652_vm0 = vcmp.eq.s32.totalorder %v16363_v26, 0  ;;  %v16469_v36 = vadd.f32 %v1078_v32, %v19889_v12  ;;  %v2429_v49 = vsel %vm2427_vm15, %v2428_v0, %v2424_v22 }
 0x279   : > { %v2568_v41 = vshll.u32 %v16439_v59, 16  ;;  %v2571_v27 = vsel %vm2570_vm7, 1, %v19724_v60  ;;  %v2307_v13 = vadd.f32 0.041655596, %v2306_v23  ;;  %v2314_v15 = vadd.f32 0.008332121, %v2313_v45  ;;  %v1249_v0 = vpop.permute.xlu1 %1248 }
 0x27a   : > { %vm2169_vm14 = vcmp.eq.s32.totalorder %v16380_v34, 0  ;;  %v2430_v63 = vadd.s32 %v2429_v49, %v2425_v54  ;;  %v2572_v37 = vadd.s32 %v2566_v57, %v2562_v58  ;;  %v2173_v17 = vxor.u32 2147483648, %v16426_v9  ;;  %v19892_v57 = vld [vmem:[#allocation62_spill] sm:$0xff]  ;;  %v1347_v54 = vpop.permute.xlu2 %1346 }
 0x27b   : > { %v16475_v8 = vand.u32 3, %v2321_v35  ;;  %v2555_v20 = vadd.s32 %v2553_v43, %v2551_v5  ;;  %v2573_v48 = vadd.s32 %v2571_v27, %v19890_v18  ;;  %v2308_v6 = vmul.f32 %v2307_v13, %v2305_v3  ;;  %v19891_v35 = vld [vmem:[#allocation72_spill] sm:$0xff]  ;;  %v16497_v23 = vld [vmem:[%s19695_s18 + $0x5] ss:$0 sm:$0xff]  ;;  %v16503_v45 = vld [vmem:[%s19695_s18 + $0x4] ss:$0 sm:$0xff] }
 0x27c   : > { %v2315_v28 = vmul.f32 %v2314_v15, %v2305_v3  ;;  %vm4655_vm8 = vcmp.eq.s32.totalorder %v16363_v26, 2  ;;  %vm2172_vm5 = vcmp.eq.s32.totalorder %v16380_v34, 2  ;;  %v2431_v22 = vadd.s32 536870912, %v2430_v63 }
 0x27d   : > { %vm2574_vm10 = vc.u32 %v2572_v37, %v2568_v41  ;;  %v2170_v52 = vxor.u32 2147483648, %v16449_v10  ;;  %vm4651_vm9 = vcmp.lt.s32.totalorder %v16363_v26, 2  ;;  %vm2168_vm6 = vcmp.lt.s32.totalorder %v16380_v34, 2 }
 0x27e   : > { %v1200_v47 = vadd.f32 %v19892_v57, %v19891_v35  ;;  %v2545_v16 = vshrl.u32 %v19872_v21, 16  ;;  %v2575_v40 = vsel %vm2574_vm10, 1, %v19724_v60  ;;  %v2309_v58 = vadd.f32 -0.4999988, %v2308_v6 }
 0x27f   : > { %v2316_v32 = vadd.f32 -0.16666654, %v2315_v28  ;;  %v16489_v46 = vshrl.u32 %v2431_v22, 30  ;;  %v2577_v5 = vadd.s32 %v2575_v40, %v2573_v48  ;;  %vm4806_vm3 = vcmp.eq.s32.totalorder %v16412_v38, 0 }
 0x280   : > { %vm4809_vm1 = vcmp.eq.s32.totalorder %v16412_v38, 2  ;;  %vm2324_vm2 = vcmp.eq.s32.totalorder %v16475_v8, 0  ;;  %v1380_v21 = vmul.f32 %v16497_v23, %v1347_v54  ;;  %v1282_v43 = vmul.f32 %v16503_v45, %v1249_v0 }
 0x281   : > { %v2556_v12 = vadd.s32 %v2555_v20, %v2545_v16  ;;  %v2567_v49 = vshrl.u32 %v19885_v39, 16  ;;  %vm2165_vm11 = vweird.f32 %v19833_v11  ;;  %v2310_v27 = vmul.f32 %v2309_v58, %v2305_v3 }
 0x282   : > { %v2317_v13 = vmul.f32 %v2316_v32, %v2305_v3  ;;  %vm4805_vm12 = vcmp.lt.s32.totalorder %v16412_v38, 2  ;;  %vm2323_vm13 = vcmp.lt.s32.totalorder %v16475_v8, 2  ;;  %vm2327_vm15 = vcmp.eq.s32.totalorder %v16475_v8, 2 }
 0x283   : > { %v2433_v15 = vshll.u32 %v16489_v46, 30  ;;  %vm2320_vm7 = vweird.f32 %v19868_v51  ;;  %v1298_v18 = vadd.f32 %v1282_v43, %v1200_v47  ;;  %v2547_v48 = vshrl.u32 %v16422_v33, 16 }
 0x284   : > { %v2569_v20 = vshrl.u32 %v16439_v59, 16  ;;  %v2578_v39 = vadd.s32 %v2577_v5, %v2567_v49  ;;  %vm1660_vm10 = vcmp.lt.s32.totalorder %v16162_v25, 0  ;;  %v2311_v6 = vadd.f32 1.0, %v2310_v27 }
 0x285   : > { %v2318_v3 = vadd.f32 1.0, %v2317_v13  ;;  %v4654_v28 = vsel %vm4652_vm0, %v16426_v9, %v2170_v52  ;;  %v16519_v22 = vsub.s32 %v2430_v63, %v2433_v15  ;;  %v2171_v35 = vsel %vm2169_vm14, %v16426_v9, %v2170_v52 }
 0x286   : > { %v16524_v57 = vadd.f32 %v1380_v21, %v1298_v18  ;;  %v16526_v33 = vadd.s32 %v2556_v12, %v2547_v48  ;;  %v2579_v47 = vadd.s32 %v2578_v39, %v2569_v20  ;;  %v2328_v40 = vxor.u32 2147483648, %v2311_v6  ;;  %v19896_v39 = vld [vmem:[#allocation98_spill] sm:$0xff] }
 0x287   : > { %v2319_v16 = vmul.f32 %v2318_v3, %v16444_v55  ;;  %vm2435_vm4 = vcmp.lt.s32.totalorder %v16519_v22, 0  ;;  %v2436_v58 = vsub.s32 0, %v16519_v22  ;;  %v4657_v63 = vsel %vm4655_vm8, %v2173_v17, %v16449_v10 }
 0x288   : > { %19893 = vst [vmem:[#allocation65_spill] sm:$0xff] %v16524_v57  ;;  %v2174_v9 = vsel %vm2172_vm5, %v2173_v17, %v16449_v10  ;;  %v2955_v52 = vand.u32 2139095040, %v16524_v57  ;;  %v16540_v32 = vadd.s32 %v2572_v37, %v2568_v41  ;;  %v4658_v54 = vsel %vm4651_vm9, %v4654_v28, %v4657_v63  ;;  %v19898_v28 = vld [vmem:[#allocation81_spill] sm:$0xff]  ;;  %v19902_v63 = vld [vmem:[#allocation63_spill] sm:$0xff] }
 0x289   : > { %v2325_v55 = vxor.u32 2147483648, %v2319_v16  ;;  %v2175_v0 = vsel %vm2168_vm6, %v2171_v35, %v2174_v9  ;;  %v2437_v5 = vsel %vm2435_vm4, %v2436_v58, %v16519_v22  ;;  %v2583_v10 = vadd.s32 1, %v2579_v47 }
 0x28a   : > { %v2956_v21 = vshrl.u32 %v2955_v52, 23  ;;  %v2438_v43 = vclz %v2437_v5  ;;  %vm2582_vm0 = vc.u32 %v16526_v33, %v16540_v32  ;;  %v4811_v41 = vsel %vm4809_vm1, %v2328_v40, %v2319_v16  ;;  %v19907_v5 = vld [vmem:[#allocation48_spill] sm:$0xff] }
 0x28b   : > { %v4808_v59 = vsel %vm4806_vm3, %v2311_v6, %v2325_v55  ;;  %v2326_v26 = vsel %vm2324_vm2, %v2311_v6, %v2325_v55  ;;  %v2329_v34 = vsel %vm2327_vm15, %v2328_v40, %v2319_v16  ;;  %v4659_v37 = vsel %vm2165_vm11, nan, %v4658_v54  ;;  %v19899_v16 = vld [vmem:[#allocation97_spill] sm:$0xff]  ;;  %v19904_v55 = vld [vmem:[#allocation51_spill] sm:$0xff]  ;;  %v19905_v54 = vld [vmem:[#allocation66_spill] sm:$0xff] }
 0x28c   : > { %v4812_v17 = vsel %vm4805_vm12, %v4808_v59, %v4811_v41  ;;  %v2330_v12 = vsel %vm2323_vm13, %v2326_v26, %v2329_v34  ;;  %v11540_v49 = vadd.s32 4294967169, %v2956_v21  ;;  %v2176_v13 = vsel %vm2165_vm11, nan, %v2175_v0 }
 0x28d   : > { %v4813_v27 = vsel %vm2320_vm7, nan, %v4812_v17  ;;  %v2331_v15 = vsel %vm2320_vm7, nan, %v2330_v12  ;;  %v11529_v18 = vadd.s32 4294967294, %v2438_v43  ;;  %v2584_v8 = vsel %vm2582_vm0, %v2583_v10, %v2579_v47 }
 0x28e   : > { %v16569_v48 = vpack.c.bf16 %v4813_v27, %v4659_v37  ;;  %v16571_v20 = vpack.c.bf16 %v2331_v15, %v2176_v13  ;;  %v2962_v38 = vadd.s32 1, %v11540_v49  ;;  %v19897_v6 = vshll.u32 %v19896_v39, 23 }
 0x28f   : > { %v1516_v35 = vsub.s32 4294967266, %v19898_v28  ;;  %v3203_v11 = vadd.s32 1, %v16356_v56  ;;  %vm11530_vm4 = vcmp.lt.s32.totalorder %v11529_v18, 0  ;;  %v1662_v51 = vsel %vm1660_vm10, %v1661_v31, %v16162_v25  ;;  %v19901_v31 = vld [vmem:[#allocation50_spill] sm:$0xff] }
 0x290   : > { %19894 = vst [vmem:[#allocation58_spill] sm:$0xff] %v16569_v48  ;;  %v2759_v3 = vor.u32 4788187, %v19897_v6  ;;  %vm3202_vm14 = vc.u32 %v16343_v2, %v16348_v1  ;;  %6492 = vmatmul.bf16.vlgmr.msra.gmra.mxu3 %v16569_v48  ;;  %6541 = vmatmul.bf16.vlgmr.msra.gmra.mxu1 %v16569_v48  ;;  %vm2963_vm8 = vcmp.gt.s32.totalorder %v2962_v38, 0  ;;  %v2441_v47 = vsel %vm11530_vm4, 0, %v11529_v18 }
 0x291   : > { %19895 = vst [vmem:[#allocation100_spill] sm:$0xff] %v16571_v20  ;;  %vm11539_vm5 = vcmp.lt.s32.totalorder %v19899_v16, 0  ;;  %vm19900_vm9 = vcmp.lt.s32.totalorder %v16021_v53, 2  ;;  %6670 = vmatmul.bf16.vlgmr.msra.gmra.mxu2 %v16571_v20  ;;  %v2446_v58 = vsub.s32 4294967266, %v2441_v47  ;;  %v19903_v9 = vmul.u32 %v19901_v31, %v19902_v63  ;;  %v19911_v31 = vld [vmem:[#allocation87_spill] sm:$0xff] }
 0x292   : > { %v3146_v40 = vsel %vm19900_vm9, %v16316_v42, %v16321_v24  ;;  %v19906_v0 = vshll.u32 %v19904_v55, %v19905_v54  ;;  %v2964_v43 = vsel %vm2963_vm8, %v2962_v38, 0  ;;  %v2442_v10 = vsub.s32 32, %v2441_v47  ;;  %v19908_v24 = vld [vmem:[#allocation99_spill] sm:$0xff]  ;;  %v19909_v38 = vld [vmem:[#allocation69_spill] sm:$0xff]  ;;  %v16627_v54 = vld [vmem:[%s19695_s18 + $0x3] ss:$0 sm:$0xff] }
 0x293   : > { %v2585_v52 = vadd.s32 %v2584_v8, %v19903_v9  ;;  %v1517_v59 = vadd.s32 127, %v1516_v35  ;;  %v1663_v41 = vclz %v1662_v51  ;;  %v3204_v26 = vsel %vm3202_vm14, %v3203_v11, %v16356_v56  ;;  %v19910_v8 = vld [vmem:[#allocation70_spill] sm:$0xff]  ;;  %19912 = vst [vmem:[#allocation101_spill] sm:$0xff] %v16627_v54 }
 0x294   : > { %v2755_v21 = vor.u32 %v19907_v5, %v19906_v0  ;;  %v16604_v53 = vsel %vm11539_vm5, 0, %v19899_v16  ;;  %v2760_v42 = vand.u32 2147483647, %v2759_v3  ;;  %v3200_v34 = vmul.u32 %v19908_v24, %v3146_v40 }
 0x295   : > { %v2426_v37 = vadd.s32 %v16431_v44, %v16424_v7  ;;  %v1512_v17 = vsub.s32 32, %v19898_v28  ;;  %v2966_v12 = vand.u32 31, %v2964_v43  ;;  %v2447_v49 = vadd.s32 127, %v2446_v58 }
 0x296   : > { %v2586_v27 = vadd.s32 536870912, %v2585_v52  ;;  %v2762_v13 = vcvt.s32.f32 %v2755_v21  ;;  %v3205_v15 = vadd.s32 %v3204_v26, %v3200_v34  ;;  %v1496_v56 = vadd.s32 %v19910_v8, %v19909_v38 }
 0x297   : > { %v2444_v18 = vshrl.u32 %v2426_v37, %v2442_v10  ;;  %v1518_v39 = vshll.u32 %v1517_v59, 23  ;;  %v11514_v6 = vadd.s32 4294967294, %v1663_v41  ;;  %v2911_v3 = vsub.s32 4294967266, %v16604_v53 }
 0x298   : > { %v16613_v35 = vmul.f32 %v2762_v13, %v2760_v42  ;;  %v2443_v11 = vshll.u32 %v16519_v22, %v2441_v47  ;;  %v1514_v7 = vshrl.u32 %v1496_v56, %v1512_v17  ;;  %v16616_v44 = vsub.s32 32, %v2966_v12  ;;  %v19913_v22 = vld [vmem:[#allocation42_spill] sm:$0xff] }
 0x299   : > { %v2448_v51 = vshll.u32 %v2447_v49, 23  ;;  %v16618_v16 = vshrl.u32 %v2586_v27, 30  ;;  %v3206_v40 = vadd.s32 536870912, %v3205_v15  ;;  %v1513_v63 = vshll.u32 %v19911_v31, %v19898_v28 }
 0x29a   : > { %v2445_v58 = vor.u32 %v2444_v18, %v2443_v11  ;;  %v16622_v9 = vor.u32 4788187, %v1518_v39  ;;  %vm11515_vm6 = vcmp.lt.s32.totalorder %v11514_v6, 0  ;;  %v16631_v47 = vmul.f32 %v16627_v54, %v19913_v22 }
 0x29b   : > { %v2449_v55 = vor.u32 4788187, %v2448_v51  ;;  %v16634_v5 = vadd.s32 127, %v2911_v3  ;;  %v2764_v21 = vxor.u32 2147483648, %v16613_v35  ;;  %v16637_v28 = vor.u32 %v1514_v7, %v1513_v63 }
 0x29c   : > { %v19914_v10 = vmov 1326507024   ;;  %v2588_v26 = vshll.u32 %v16618_v16, 30  ;;  %v16642_v42 = vsel %vm11515_vm6, 0, %v11514_v6  ;;  %v16644_v24 = vshrl.u32 %v3206_v40, 30  ;;  %v19917_v6 = vld [vmem:[#allocation44_spill] sm:$0xff] }
 0x29d   : > { %v2982_v59 = vshrl.u32 %v19914_v10, %v16616_v44  ;;  %v2450_v41 = vand.u32 2147483647, %v2449_v55  ;;  %v19916_v34 = vmov 920167782   ;;  %v2452_v17 = vcvt.s32.f32 %v2445_v58 }
 0x29e   : > { %19915 = vst [vmem:[#allocation102_spill] sm:$0xff] %v16644_v24  ;;  %v2979_v37 = vshrl.u32 %v19916_v34, %v16616_v44  ;;  %v1520_v49 = vand.u32 2147483647, %v16622_v9  ;;  %v19578_v27 = vand.u32 2147483647, %v16524_v57  ;;  %v16650_v13 = vshrl.u32 %v2964_v43, 5 }
 0x29f   : > { %v2981_v18 = vshll.u32 %v19916_v34, %v2966_v12  ;;  %v2973_v38 = vshrl.u32 %v19715_v50, %v16616_v44  ;;  %v2976_v8 = vshrl.u32 %v19710_v19, %v16616_v44  ;;  %v2978_v56 = vshll.u32 %v19710_v19, %v2966_v12 }
 0x2a0   : > { %v2453_v39 = vmul.f32 %v2452_v17, %v2450_v41  ;;  %vm19597_vm3 = vcmp.lt.s32.totalorder %v19917_v6, 0  ;;  %v1671_v3 = vsub.s32 4294967266, %v16642_v42  ;;  %v2970_v11 = vshrl.u32 %v19727_v61, %v16616_v44 }
 0x2a1   : > { %v2983_v43 = vor.u32 %v2982_v59, %v2981_v18  ;;  %v16662_v7 = vsub.s32 %v2585_v52, %v2588_v26  ;;  %v3208_v51 = vshll.u32 %v16644_v24, 30  ;;  %v2972_v40 = vshll.u32 %v19727_v61, %v2966_v12  ;;  %v19928_v24 = vld [vmem:[#allocation43_spill] sm:$0xff] }
 0x2a2   : > { %v2975_v58 = vshll.u32 %v19715_v50, %v2966_v12  ;;  %v2980_v31 = vor.u32 %v2979_v37, %v2978_v56  ;;  %v1667_v63 = vsub.s32 32, %v16642_v42  ;;  %v2959_v9 = vand.u32 8388607, %v19578_v27 }
 0x2a3   : > { %v2969_v55 = vshll.u32 %v19725_v30, %v2966_v12  ;;  %vm2334_vm1 = vcmp.lt.s32.totalorder %v19859_v62, 0  ;;  %v19918_v22 = vand.u32 2147483647, %v19917_v6  ;;  %v19919_v52 = vmov 0 }
 0x2a4   : > { %v16678_v59 = vor.u32 %v2973_v38, %v2972_v40  ;;  %v16680_v41 = vor.u32 %v2976_v8, %v2975_v58  ;;  %vm2987_vm11 = vcmp.lt.s32.totalorder %v16650_v13, 4  ;;  %v2454_v26 = vxor.u32 2147483648, %v2453_v39 }
 0x2a5   : > { %vm16674_vm2 = vcmp.le.f32.partialorder %v19918_v22, 0.7853982  ;;  %v16683_v37 = vor.u32 %v2970_v11, %v2969_v55  ;;  %v2997_v12 = vsel %vm2987_vm11, %v2983_v43, 1326507024  ;;  %vm2590_vm12 = vcmp.lt.s32.totalorder %v16662_v7, 0  ;;  %v19924_v55 = vld [vmem:[#allocation68_spill] sm:$0xff] }
 0x2a6   : > { %v19920_v52 = vsel %vm16674_vm2, 4294967295, %v19919_v52  ;;  %v2591_v17 = vsub.s32 0, %v16662_v7  ;;  %v1672_v18 = vadd.s32 127, %v1671_v3  ;;  %v16689_v56 = vsub.s32 %v3205_v15, %v3208_v51  ;;  %v19925_v22 = vld [vmem:[#allocation71_spill] sm:$0xff] }
 0x2a7   : > { %19921 = vst [vmem:[#allocation96_spill] sm:$0xff] %v19920_v52  ;;  %v2993_v38 = vsel %vm2987_vm11, %v2980_v31, 920167782  ;;  %v2455_v8 = vsel %vm2334_vm1, %v2454_v26, %v2453_v39  ;;  %v2960_v40 = vor.u32 8388608, %v2959_v9  ;;  %vm2984_vm13 = vcmp.lt.s32.totalorder %v16650_v13, 1  ;;  %v19930_v52 = vld [vmem:[#allocation67_spill] sm:$0xff] }
 0x2a8   : > { %vm2986_vm15 = vcmp.lt.s32.totalorder %v16650_v13, 3  ;;  %vm16699_vm7 = vcmp.le.f32.partialorder %v2332_v14, 0.7853982  ;;  %v2996_v15 = vsel %vm2984_vm13, %v16678_v59, %v16680_v41  ;;  %v2592_v43 = vsel %vm2590_vm12, %v2591_v17, %v16662_v7 }
 0x2a9   : > { %v2998_v3 = vsel %vm2986_vm15, %v2980_v31, %v2997_v12  ;;  %v16712_v39 = vsel %vm16699_vm7, %v19859_v62, %v2455_v8  ;;  %v2992_v14 = vsel %vm2984_vm13, %v16683_v37, %v16678_v59  ;;  %v2994_v51 = vsel %vm2986_vm15, %v16680_v41, %v2993_v38 }
 0x2aa   : > { %v16724_v58 = vmul.f32 %v16712_v39, %v16712_v39  ;;  %v2593_v31 = vclz %v2592_v43  ;;  %v2765_v9 = vsel %vm19597_vm3, %v2764_v21, %v16613_v35  ;;  %v1651_v26 = vadd.s32 %v19925_v22, %v19924_v55  ;;  %v19926_v43 = vld [vmem:[#allocation57_spill] sm:$0xff] }
 0x2ab   : > { %v1673_v12 = vshll.u32 %v1672_v18, 23  ;;  %vm19598_vm10 = vcmp.lt.s32.totalorder %v16650_v13, 2  ;;  %v1522_v17 = vcvt.s32.f32 %v16637_v28  ;;  %vm19596_vm0 = vcmp.lt.s32.totalorder %v19926_v43, 0 }
 0x2ac   : > { %v16735_v38 = vsel %vm19598_vm10, %v2996_v15, %v2998_v3  ;;  %v2468_v8 = vmul.f32 -0.00019511016, %v16724_v58  ;;  %v11532_v27 = vadd.s32 4294967294, %v2593_v31  ;;  %v1669_v0 = vshrl.u32 %v1651_v26, %v1667_v63 }
 0x2ad   : > { %v3211_v35 = vsub.s32 0, %v16689_v56  ;;  %v16742_v21 = vsel %vm19598_vm10, %v2992_v14, %v2994_v51  ;;  %v16744_v18 = vshll.u32 %v2960_v40, 8  ;;  %v16749_v28 = vsel %vm16674_vm2, %v19917_v6, %v2765_v9 }
 0x2ae   : > { %v1523_v15 = vmul.f32 %v1522_v17, %v1520_v49  ;;  %vm3210_vm4 = vcmp.lt.s32.totalorder %v16689_v56, 0  ;;  %vm11533_vm14 = vcmp.lt.s32.totalorder %v11532_v27, 0  ;;  %v1668_v63 = vshll.u32 %v16162_v25, %v16642_v42 }
 0x2af   : > { %v1674_v3 = vor.u32 4788187, %v1673_v12  ;;  %v19587_v31 = vshrl.u32 %v16735_v38, 16  ;;  %v2596_v55 = vsel %vm11533_vm14, 0, %v11532_v27  ;;  %v2469_v40 = vadd.f32 0.008332121, %v2468_v8 }
 0x2b0   : > { %v2581_v51 = vadd.s32 %v16540_v32, %v16526_v33  ;;  %v2597_v22 = vsub.s32 32, %v2596_v55  ;;  %v1670_v9 = vor.u32 %v1669_v0, %v1668_v63  ;;  %v3212_v49 = vsel %vm3210_vm4, %v3211_v35, %v16689_v56 }
 0x2b1   : > { %v3001_v26 = vand.u32 65535, %v16744_v18  ;;  %v2601_v17 = vsub.s32 4294967266, %v2596_v55  ;;  %v16762_v25 = vmul.f32 %v16749_v28, %v16749_v28  ;;  %v1524_v42 = vxor.u32 2147483648, %v1523_v15 }
 0x2b2   : > { %v2461_v27 = vmul.f32 -0.001358992, %v16724_v58  ;;  %v2599_v12 = vshrl.u32 %v2581_v51, %v2597_v22  ;;  %v1675_v14 = vand.u32 2147483647, %v1674_v3  ;;  %v2598_v33 = vshll.u32 %v16662_v7, %v2596_v55  ;;  %v19929_v55 = vld [vmem:[#allocation80_spill] sm:$0xff] }
 0x2b3   : > { %v16767_v8 = vmul.u32 %v19587_v31, %v3001_v26  ;;  %v2602_v32 = vadd.s32 127, %v2601_v17  ;;  %v3213_v0 = vclz %v3212_v49  ;;  %v19927_v35 = vshrl.u32 %v16742_v21, 16 }
 0x2b4   : > { %v2456_v48 = vsub.s32 4, %v16489_v46  ;;  %v2470_v20 = vmul.f32 %v2469_v40, %v16724_v58  ;;  %v1677_v57 = vcvt.s32.f32 %v1670_v9  ;;  %v3003_v51 = vand.u32 65535, %v16735_v38 }
 0x2b5   : > { %v16772_v63 = vmul.u32 %v19927_v35, %v3001_v26  ;;  %v2600_v3 = vor.u32 %v2599_v12, %v2598_v33  ;;  %v2603_v22 = vshll.u32 %v2602_v32, 23  ;;  %vm2489_vm8 = vcmp.lt.s32.totalorder %v19928_v24, 0 }
 0x2b6   : > { %v1525_v7 = vsel %vm19596_vm0, %v1524_v42, %v1523_v15  ;;  %v1079_v49 = vmul.f32 %v16461_v4, %v19929_v55  ;;  %v3025_v17 = vand.u32 65535, %v16742_v21  ;;  %v2462_v35 = vadd.f32 0.041655596, %v2461_v27 }
 0x2b7   : > { %v1678_v31 = vmul.f32 %v1677_v57, %v1675_v14  ;;  %v3002_v54 = vshrl.u32 %v16744_v18, 16  ;;  %v3009_v40 = vshll.u32 %v16767_v8, 16  ;;  %v2604_v9 = vor.u32 4788187, %v2603_v22 }
 0x2b8   : > { %vm19595_vm5 = vcmp.lt.s32.totalorder %v19930_v52, 0  ;;  %v11544_v12 = vadd.s32 4294967294, %v3213_v0  ;;  %v3031_v33 = vshll.u32 %v16772_v63, 16  ;;  %v2457_v15 = vsel %vm2334_vm1, %v2456_v48, %v16489_v46 }
 0x2b9   : > { %v2471_v42 = vadd.f32 -0.16666654, %v2470_v20  ;;  %v3005_v4 = vmul.u32 %v3003_v51, %v3001_v26  ;;  %v16790_v32 = vmul.u32 %v3003_v51, %v3002_v54  ;;  %v2605_v27 = vand.u32 2147483647, %v2604_v9 }
 0x2ba   : > { %v2607_v57 = vcvt.s32.f32 %v2600_v3  ;;  %v3027_v14 = vmul.u32 %v3025_v17, %v3001_v26  ;;  %v16792_v55 = vmul.u32 %v3025_v17, %v3002_v54  ;;  %v2463_v22 = vmul.f32 %v2462_v35, %v16724_v58 }
 0x2bb   : > { %v16796_v50 = vadd.f32 %v1079_v49, %v16417_v29  ;;  %v19932_v0 = vand.u32 2147483647, %v19926_v43  ;;  %v19935_v46 = vand.u32 2147483647, %v19930_v52  ;;  %v19936_v48 = vmov 0 }
 0x2bc   : > { %v1679_v20 = vxor.u32 2147483648, %v1678_v31  ;;  %vm3013_vm1 = vc.u32 %v3005_v4, %v3009_v40  ;;  %v3015_v26 = vadd.s32 %v3009_v40, %v3005_v4  ;;  %v2608_v51 = vmul.f32 %v2607_v57, %v2605_v27 }
 0x2bd   : > { %19931 = vst [vmem:[#allocation56_spill] sm:$0xff] %v16796_v50  ;;  %vm16800_vm9 = vcmp.le.f32.partialorder %v19932_v0, 0.7853982  ;;  %vm16806_vm6 = vcmp.le.f32.partialorder %v19935_v46, 0.7853982  ;;  %vm11545_vm12 = vcmp.lt.s32.totalorder %v11544_v12, 0  ;;  %vm3035_vm4 = vc.u32 %v3027_v14, %v3031_v33 }
 0x2be   : > { %v19937_v48 = vsel %vm16806_vm6, 4294967295, %v19936_v48  ;;  %v16810_v29 = vadd.s32 %v3031_v33, %v3027_v14  ;;  %v2472_v3 = vmul.f32 %v2471_v42, %v16724_v58  ;;  %v3011_v49 = vshll.u32 %v16790_v32, 16  ;;  %v16825_v42 = vpop.permute.xlu1 %1122 }
 0x2bf   : > { %19938 = vst [vmem:[#allocation82_spill] sm:$0xff] %v19937_v48  ;;  %v2459_v17 = vsel %vm16699_vm7, 0, %v2457_v15  ;;  %v19939_v35 = vand.u32 2147483647, %v19928_v24  ;;  %v2609_v0 = vxor.u32 2147483648, %v2608_v51  ;;  %v3014_v40 = vsel %vm3013_vm1, 1, %v19724_v60 }
 0x2c0   : > { %v19592_v4 = vshll.u32 %v16792_v55, 16  ;;  %v2464_v33 = vadd.f32 -0.4999988, %v2463_v22  ;;  %v2611_v27 = vsub.s32 4, %v16618_v16  ;;  %v19942_v57 = vshrl.u32 %v16735_v38, 16 }
 0x2c1   : > { %vm16818_vm14 = vcmp.le.f32.partialorder %v19939_v35, 0.7853982  ;;  %vm3017_vm7 = vc.u32 %v3015_v26, %v3011_v49  ;;  %v3036_v15 = vsel %vm3035_vm4, 1, %v19724_v60  ;;  %v2610_v14 = vsel %vm2489_vm8, %v2609_v0, %v2608_v51 }
 0x2c2   : > { %v3008_v11 = vmul.u32 %v19942_v57, %v3002_v54  ;;  %v19943_v46 = vshrl.u32 %v16742_v21, 16  ;;  %vm3039_vm1 = vc.u32 %v16810_v29, %v19592_v4  ;;  %v2473_v22 = vadd.f32 1.0, %v2472_v3 }
 0x2c3   : > { %v2613_v50 = vsel %vm16818_vm14, %v19928_v24, %v2610_v14  ;;  %v1680_v38 = vsel %vm19595_vm5, %v1679_v20, %v1678_v31  ;;  %v16843_v26 = vsel %vm11545_vm12, 0, %v11544_v12  ;;  %v3018_v21 = vsel %vm3017_vm7, 1, %v19724_v60 }
 0x2c4   : > { %v3030_v35 = vmul.u32 %v19943_v46, %v3002_v54  ;;  %v3016_v49 = vadd.s32 %v3014_v40, %v3008_v11  ;;  %v2615_v51 = vmul.f32 %v2613_v50, %v2613_v50  ;;  %v2465_v0 = vmul.f32 %v2464_v33, %v16724_v58 }
 0x2c5   : > { %v2612_v3 = vsel %vm2489_vm8, %v2611_v27, %v16618_v16  ;;  %v3040_v57 = vsel %vm3039_vm1, 1, %v19724_v60  ;;  %v2476_v4 = vadd.s32 3, %v2459_v17  ;;  %v16854_v31 = vsel %vm16800_vm9, %v19926_v43, %v1525_v7 }
 0x2c6   : > { %v3038_v54 = vadd.s32 %v3036_v15, %v3030_v35  ;;  %v2616_v14 = vmul.f32 -0.001358992, %v2615_v51  ;;  %v2623_v46 = vmul.f32 -0.00019511016, %v2615_v51  ;;  %v16859_v12 = vsel %vm16806_vm6, %v19930_v52, %v1680_v38 }
 0x2c7   : > { %v2474_v20 = vmul.f32 %v2473_v22, %v16712_v39  ;;  %v16865_v16 = vshrl.u32 %v19725_v30, %v16616_v44  ;;  %v2614_v40 = vsel %vm16818_vm14, 0, %v2612_v3  ;;  %v2989_v7 = vsel %vm2987_vm11, %v16680_v41, 2102212464  ;;  %v1217_v3 = vpop.permute.xlu1 %1216 }
 0x2c8   : > { %v2617_v33 = vadd.f32 0.041655596, %v2616_v14  ;;  %v2624_v27 = vadd.f32 0.008332121, %v2623_v46  ;;  %v3020_v11 = vadd.s32 %v3018_v21, %v3016_v49  ;;  %v3042_v15 = vadd.s32 %v3040_v57, %v3038_v54 }
 0x2c9   : > { %v2466_v35 = vadd.f32 1.0, %v2465_v0  ;;  %v4958_v60 = vand.u32 3, %v2459_v17  ;;  %v2477_v39 = vand.u32 3, %v2476_v4  ;;  %v3010_v22 = vshrl.u32 %v16767_v8, 16 }
 0x2ca   : > { %v2618_v38 = vmul.f32 %v2617_v33, %v2615_v51  ;;  %v2625_v58 = vmul.f32 %v2624_v27, %v2615_v51  ;;  %v3032_v44 = vshrl.u32 %v16772_v63, 16  ;;  %v2480_v48 = vxor.u32 2147483648, %v2474_v20 }
 0x2cb   : > { %v2631_v9 = vadd.s32 3, %v2614_v40  ;;  %v3012_v14 = vshrl.u32 %v16790_v32, 16  ;;  %vm2475_vm8 = vweird.f32 %v19859_v62  ;;  %v1192_v49 = vadd.f32 %v16631_v47, %v16469_v36 }
 0x2cc   : > { %v2619_v46 = vadd.f32 -0.4999988, %v2618_v38  ;;  %v2626_v41 = vadd.f32 -0.16666654, %v2625_v58  ;;  %v3021_v21 = vadd.s32 %v3020_v11, %v3010_v22  ;;  %v3034_v17 = vshrl.u32 %v16792_v55, 16 }
 0x2cd   : > { %v3043_v4 = vadd.s32 %v3042_v15, %v3032_v44  ;;  %v2483_v54 = vxor.u32 2147483648, %v2466_v35  ;;  %vm4960_vm11 = vcmp.eq.s32.totalorder %v4958_v60, 0  ;;  %vm2479_vm12 = vcmp.eq.s32.totalorder %v2477_v39, 0 }
 0x2ce   : > { %v2620_v8 = vmul.f32 %v2619_v46, %v2615_v51  ;;  %v2627_v0 = vmul.f32 %v2626_v41, %v2615_v51  ;;  %vm2630_vm4 = vweird.f32 %v19928_v24  ;;  %v4962_v63 = vsel %vm4960_vm11, %v2466_v35, %v2480_v48 }
 0x2cf   : > { %v5112_v32 = vand.u32 3, %v2614_v40  ;;  %v2481_v57 = vsel %vm2479_vm12, %v2466_v35, %v2480_v48  ;;  %v2632_v33 = vand.u32 3, %v2631_v9  ;;  %vm4963_vm14 = vcmp.eq.s32.totalorder %v4958_v60, 2 }
 0x2d0   : > { %v2621_v27 = vadd.f32 1.0, %v2620_v8  ;;  %v2628_v58 = vadd.f32 1.0, %v2627_v0  ;;  %vm2482_vm7 = vcmp.eq.s32.totalorder %v2477_v39, 2  ;;  %vm4959_vm1 = vcmp.lt.s32.totalorder %v4958_v60, 2 }
 0x2d1   : > { %v4965_v36 = vsel %vm4963_vm14, %v2483_v54, %v2474_v20  ;;  %vm2478_vm5 = vcmp.lt.s32.totalorder %v2477_v39, 2  ;;  %v2484_v47 = vsel %vm2482_vm7, %v2483_v54, %v2474_v20  ;;  %v16880_v22 = vadd.s32 %v3021_v21, %v3012_v14  ;;  %v1315_v20 = vpop.permute.xlu1 %1314 }
 0x2d2   : > { %v2629_v11 = vmul.f32 %v2628_v58, %v2613_v50  ;;  %v2638_v15 = vxor.u32 2147483648, %v2621_v27  ;;  %v4966_v38 = vsel %vm4959_vm1, %v4962_v63, %v4965_v36  ;;  %v2485_v51 = vsel %vm2478_vm5, %v2481_v57, %v2484_v47  ;;  %v19949_v63 = vld [vmem:[#allocation77_spill] sm:$0xff] }
 0x2d3   : > { %v3044_v44 = vadd.s32 %v3043_v4, %v3034_v17  ;;  %vm5113_vm0 = vcmp.lt.s32.totalorder %v5112_v32, 2  ;;  %vm5114_vm11 = vcmp.eq.s32.totalorder %v5112_v32, 0  ;;  %vm5117_vm12 = vcmp.eq.s32.totalorder %v5112_v32, 2 }
 0x2d4   : > { %v2635_v40 = vxor.u32 2147483648, %v2629_v11  ;;  %vm2633_vm3 = vcmp.lt.s32.totalorder %v2632_v33, 2  ;;  %vm2634_vm10 = vcmp.eq.s32.totalorder %v2632_v33, 0  ;;  %v4967_v48 = vsel %vm2475_vm8, nan, %v4966_v38 }
 0x2d5   : > { %v2486_v60 = vsel %vm2475_vm8, nan, %v2485_v51  ;;  %vm2637_vm14 = vcmp.eq.s32.totalorder %v2632_v33, 2  ;;  %v1274_v50 = vmul.f32 %v16503_v45, %v1217_v3  ;;  %v5119_v39 = vsel %vm5117_vm12, %v2638_v15, %v2629_v11  ;;  %v19953_v51 = vld [vmem:[#allocation92_spill] sm:$0xff] }
 0x2d6   : > { %v5116_v35 = vsel %vm5114_vm11, %v2621_v27, %v2635_v40  ;;  %v2636_v9 = vsel %vm2634_vm10, %v2621_v27, %v2635_v40  ;;  %v2639_v14 = vsel %vm2637_vm14, %v2638_v15, %v2629_v11  ;;  %v2988_v46 = vsel %vm2984_vm13, %v16865_v16, %v16683_v37 }
 0x2d7   : > { %v2990_v41 = vsel %vm2986_vm15, %v16678_v59, %v2989_v7  ;;  %v5120_v62 = vsel %vm5113_vm0, %v5116_v35, %v5119_v39  ;;  %v2640_v21 = vsel %vm2633_vm3, %v2636_v9, %v2639_v14  ;;  %v19944_v17 = vshll.u32 %v16792_v55, 16  ;;  %v19948_v55 = vld [vmem:[#allocation74_spill] sm:$0xff] }
 0x2d8   : > { %v5121_v4 = vsel %vm2630_vm4, nan, %v5120_v62  ;;  %v2641_v54 = vsel %vm2630_vm4, nan, %v2640_v21  ;;  %v1372_v37 = vmul.f32 %v16497_v23, %v1315_v20  ;;  %v19945_v16 = vsub.s32 4294967266, %v16843_v26 }
 0x2d9   : > { %v16898_v3 = vadd.s32 %v16810_v29, %v19944_v17  ;;  %v3048_v59 = vadd.s32 1, %v3044_v44  ;;  %v16907_v7 = vpack.c.bf16 %v5121_v4, %v4967_v48  ;;  %v16909_v0 = vpack.c.bf16 %v2641_v54, %v2486_v60 }
 0x2da   : > { %v3222_v8 = vadd.s32 127, %v19945_v16  ;;  %v2891_v29 = vadd.s32 %v19949_v63, %v19948_v55  ;;  %v16915_v32 = vmul.f32 %v16854_v31, %v16854_v31  ;;  %v1290_v24 = vadd.f32 %v1274_v50, %v1192_v49 }
 0x2db   : > { %19946 = vst [vmem:[#allocation89_spill] sm:$0xff] %v16907_v7  ;;  %vm3047_vm3 = vc.u32 %v16880_v22, %v16898_v3  ;;  %v2913_v23 = vshll.u32 %v16634_v5, 23  ;;  %v16922_v57 = vmul.f32 %v16859_v12, %v16859_v12  ;;  %v3217_v33 = vsub.s32 32, %v16843_v26  ;;  %6497 = vmatmul.bf16.gmra.mxu3 %v16907_v7  ;;  %6546 = vmatmul.bf16.gmra.mxu1 %v16907_v7 }
 0x2dc   : > { %19947 = vst [vmem:[#allocation95_spill] sm:$0xff] %v16909_v0  ;;  %vm19950_vm13 = vcmp.lt.s32.totalorder %v16650_v13, 2  ;;  %v19951_v58 = vsub.s32 32, %v16604_v53  ;;  %6675 = vmatmul.bf16.gmra.mxu2 %v16909_v0  ;;  %v16932_v49 = vadd.f32 %v1372_v37, %v1290_v24  ;;  %v2778_v5 = vmul.f32 -0.00019511016, %v16762_v25 }
 0x2dd   : > { %v2991_v27 = vsel %vm19950_vm13, %v2988_v46, %v2990_v41  ;;  %v3201_v47 = vadd.s32 %v16348_v1, %v16343_v2  ;;  %v3223_v11 = vshll.u32 %v3222_v8, 23  ;;  %v3049_v15 = vsel %vm3047_vm3, %v3048_v59, %v3044_v44 }
 0x2de   : > { %v2909_v36 = vshrl.u32 %v2891_v29, %v19951_v58  ;;  %19952 = vst [vmem:[#allocation78_spill] sm:$0xff] %v16932_v49  ;;  %v1538_v13 = vmul.f32 -0.00019511016, %v16915_v32  ;;  %v3045_v38 = vmul.u32 %v16744_v18, %v2991_v27  ;;  %v2908_v40 = vshll.u32 %v19953_v51, %v16604_v53 }
 0x2df   : > { %v2914_v48 = vor.u32 4788187, %v2913_v23  ;;  %v1693_v60 = vmul.f32 -0.00019511016, %v16922_v57  ;;  %v3219_v50 = vshrl.u32 %v3201_v47, %v3217_v33  ;;  %v1715_v35 = vand.u32 2139095040, %v16932_v49 }
 0x2e0   : > { %v3050_v20 = vadd.s32 %v3049_v15, %v3045_v38  ;;  %v2910_v39 = vor.u32 %v2909_v36, %v2908_v40  ;;  %v2779_v9 = vadd.f32 0.008332121, %v2778_v5  ;;  %v3218_v2 = vshll.u32 %v16689_v56, %v16843_v26  ;;  %v19954_v36 = vld [vmem:[#allocation46_spill] sm:$0xff] }
 0x2e1   : > { %v3224_v1 = vor.u32 4788187, %v3223_v11  ;;  %v1539_v44 = vadd.f32 0.008332121, %v1538_v13  ;;  %v2915_v14 = vand.u32 2147483647, %v2914_v48 }
 0x2e2   : > { %v1694_v46 = vadd.f32 0.008332121, %v1693_v60  ;;  %v3220_v18 = vor.u32 %v3219_v50, %v3218_v2  ;;  %v1716_v41 = vshrl.u32 %v1715_v35, 23  ;;  %v3051_v62 = vadd.s32 536870912, %v3050_v20  ;;  %v19955_v13 = vld [vmem:[#allocation88_spill] sm:$0xff]  ;;  %v19959_v60 = vld [vmem:[#allocation47_spill] sm:$0xff] }
 0x2e3   : > { %v2917_v53 = vcvt.s32.f32 %v2910_v39  ;;  %v2780_v21 = vmul.f32 %v2779_v9, %v16762_v25  ;;  %v3225_v17 = vand.u32 2147483647, %v3224_v1  ;;  %v1540_v54 = vmul.f32 %v1539_v44, %v16915_v32  ;;  %v19961_v44 = vld [vmem:[#allocation73_spill] sm:$0xff] }
 0x2e4   : > { %v11516_v4 = vadd.s32 4294967169, %v1716_v41  ;;  %v1695_v16 = vmul.f32 %v1694_v46, %v16922_v57  ;;  %v3227_v8 = vcvt.s32.f32 %v3220_v18  ;;  %v16948_v56 = vshrl.u32 %v3051_v62, 30 }
 0x2e5   : > { %v2918_v37 = vmul.f32 %v2917_v53, %v2915_v14  ;;  %v2781_v26 = vadd.f32 -0.16666654, %v2780_v21  ;;  %v1541_v63 = vadd.f32 -0.16666654, %v1540_v54  ;;  %vm2799_vm10 = vcmp.lt.s32.totalorder %v19954_v36, 0 }
 0x2e6   : > { %v1722_v59 = vadd.s32 1, %v11516_v4  ;;  %v3228_v55 = vmul.f32 %v3227_v8, %v3225_v17  ;;  %v1696_v24 = vadd.f32 -0.16666654, %v1695_v16  ;;  %v3053_v23 = vshll.u32 %v16948_v56, 30 }
 0x2e7   : > { %v2919_v29 = vxor.u32 2147483648, %v2918_v37  ;;  %v2782_v27 = vmul.f32 %v2781_v26, %v16762_v25  ;;  %v1542_v5 = vmul.f32 %v1541_v63, %v16915_v32  ;;  %vm19602_vm0 = vcmp.lt.s32.totalorder %v19955_v13, 0  ;;  %v19970_v26 = vld [vmem:[#allocation85_spill] sm:$0xff] }
 0x2e8   : > { %vm1723_vm15 = vcmp.gt.s32.totalorder %v1722_v59, 0  ;;  %v3229_v58 = vxor.u32 2147483648, %v3228_v55  ;;  %v1697_v11 = vmul.f32 %v1696_v24, %v16922_v57  ;;  %v16958_v38 = vsub.s32 %v3050_v20, %v3053_v23  ;;  %v19960_v20 = vld [vmem:[#allocation83_spill] sm:$0xff] }
 0x2e9   : > { %v1724_v33 = vsel %vm1723_vm15, %v1722_v59, 0  ;;  %v2920_v47 = vsel %vm2799_vm10, %v2919_v29, %v2918_v37  ;;  %v19599_v51 = vand.u32 2147483647, %v16932_v49  ;;  %v19956_v40 = vand.u32 2147483647, %v19954_v36  ;;  %v1221_v29 = vpop.permute.xlu2 %1220 }
 0x2ea   : > { %v1726_v15 = vand.u32 31, %v1724_v33  ;;  %v2766_v50 = vsub.s32 4, %v19959_v60  ;;  %v2783_v35 = vadd.f32 1.0, %v2782_v27  ;;  %v3230_v39 = vsel %vm19602_vm0, %v3229_v58, %v3228_v55 }
 0x2eb   : > { %vm16963_vm5 = vcmp.le.f32.partialorder %v19956_v40, 0.7853982  ;;  %v1526_v2 = vsub.s32 4, %v19960_v20  ;;  %v1543_v1 = vadd.f32 1.0, %v1542_v5  ;;  %v1681_v14 = vsub.s32 4, %v19961_v44 }
 0x2ec   : > { %v16973_v9 = vsel %vm16963_vm5, %v19954_v36, %v2920_v47  ;;  %v1698_v46 = vadd.f32 1.0, %v1697_v11  ;;  %v19962_v18 = vand.u32 2147483647, %v19955_v13  ;;  %v19963_v41 = vmov 0 }
 0x2ed   : > { %v16983_v62 = vsub.s32 32, %v1726_v15  ;;  %v3056_v21 = vsub.s32 0, %v16958_v38  ;;  %v1719_v17 = vand.u32 8388607, %v19599_v51  ;;  %v16995_v4 = vmul.f32 %v16973_v9, %v16973_v9 }
 0x2ee   : > { %vm16979_vm8 = vcmp.le.f32.partialorder %v19962_v18, 0.7853982  ;;  %vm19966_vm4 = vcmp.lt.s32.totalorder %v19917_v6, 0  ;;  %v17001_v37 = vmul.f32 %v2783_v35, %v16749_v28  ;;  %vm3055_vm7 = vcmp.lt.s32.totalorder %v16958_v38, 0 }
 0x2ef   : > { %v19964_v41 = vsel %vm16979_vm8, 4294967295, %v19963_v41  ;;  %v16988_v53 = vsel %vm16979_vm8, %v19955_v13, %v3230_v39  ;;  %v2767_v54 = vsel %vm19966_vm4, %v2766_v50, %v19959_v60  ;;  %vm19967_vm1 = vcmp.lt.s32.totalorder %v19926_v43, 0 }
 0x2f0   : > { %19965 = vst [vmem:[#allocation54_spill] sm:$0xff] %v19964_v41  ;;  %v17007_v16 = vsel %vm19967_vm1, %v1526_v2, %v19960_v20  ;;  %v17010_v8 = vmul.f32 %v1543_v1, %v16854_v31  ;;  %vm19969_vm11 = vcmp.lt.s32.totalorder %v19930_v52, 0  ;;  %v2921_v55 = vsub.s32 4, %v19970_v26 }
 0x2f1   : > { %v17015_v59 = vsel %vm19969_vm11, %v1681_v14, %v19961_v44  ;;  %v17019_v28 = vmul.f32 %v1698_v46, %v16859_v12  ;;  %v17023_v63 = vmul.f32 %v16988_v53, %v16988_v53  ;;  %v1739_v24 = vshrl.u32 %v19916_v34, %v16983_v62 }
 0x2f2   : > { %19968 = vst [vmem:[#allocation52_spill] sm:$0xff] %v17010_v8  ;;  %v1742_v31 = vshrl.u32 %v19914_v10, %v16983_v62  ;;  %v17030_v23 = vmul.f32 %v16503_v45, %v1221_v29  ;;  %v3057_v27 = vsel %vm3055_vm7, %v3056_v21, %v16958_v38  ;;  %v1720_v58 = vor.u32 8388608, %v1719_v17 }
 0x2f3   : > { %19971 = vst [vmem:[#allocation64_spill] sm:$0xff] %v17019_v28  ;;  %v1738_v12 = vshll.u32 %v19710_v19, %v1726_v15  ;;  %v19972_v5 = vmov 2475754826   ;;  %v19973_v11 = vmov 2131351028   ;;  %v1741_v60 = vshll.u32 %v19916_v34, %v1726_v15 }
 0x2f4   : > { %v1730_v47 = vshrl.u32 %v19972_v5, %v16983_v62  ;;  %v1733_v40 = vshrl.u32 %v19973_v11, %v16983_v62  ;;  %v2926_v50 = vmul.f32 -0.001358992, %v16995_v4  ;;  %v17040_v35 = vshrl.u32 %v1724_v33, 5 }
 0x2f5   : > { %v1736_v45 = vshrl.u32 %v19710_v19, %v16983_v62  ;;  %v2922_v39 = vsel %vm2799_vm10, %v2921_v55, %v19970_v26  ;;  %v2933_v20 = vmul.f32 -0.00019511016, %v16995_v4  ;;  %v1729_v2 = vshll.u32 %v19725_v30, %v1726_v15 }
 0x2f6   : > { %v1732_v1 = vshll.u32 %v19972_v5, %v1726_v15  ;;  %v1740_v44 = vor.u32 %v1739_v24, %v1738_v12  ;;  %v1743_v14 = vor.u32 %v1742_v31, %v1741_v60  ;;  %v3058_v46 = vclz %v3057_v27 }
 0x2f7   : > { %v1735_v18 = vshll.u32 %v19973_v11, %v1726_v15  ;;  %v17051_v33 = vshll.u32 %v1720_v58, 8  ;;  %v2769_v17 = vsel %vm16674_vm2, 0, %v2767_v54  ;;  %v17055_v29 = vor.u32 %v1730_v47, %v1729_v2 }
 0x2f8   : > { %v17057_v51 = vor.u32 %v1733_v40, %v1732_v1  ;;  %v2924_v26 = vsel %vm16963_vm5, 0, %v2922_v39  ;;  %v2927_v55 = vadd.f32 0.041655596, %v2926_v50  ;;  %vm19606_vm12 = vcmp.lt.s32.totalorder %v17040_v35, 4  ;;  %v19975_v1 = vld [vmem:[#allocation101_spill] sm:$0xff] }
 0x2f9   : > { %v17061_v7 = vor.u32 %v1736_v45, %v1735_v18  ;;  %v2771_v24 = vmul.f32 -0.001358992, %v16762_v25  ;;  %v2934_v15 = vadd.f32 0.008332121, %v2933_v20  ;;  %v1753_v31 = vsel %vm19606_vm12, %v1740_v44, 920167782 }
 0x2fa   : > { %v1757_v54 = vsel %vm19606_vm12, %v1743_v14, 1326507024  ;;  %v2928_v27 = vmul.f32 %v2927_v55, %v16995_v4  ;;  %v2786_v58 = vadd.s32 3, %v2769_v17  ;;  %vm19605_vm2 = vcmp.lt.s32.totalorder %v17040_v35, 1 }
 0x2fb   : > { %v17071_v48 = vand.u32 3, %v2769_v17  ;;  %v17073_v12 = vand.u32 3, %v2924_v26  ;;  %v2941_v47 = vadd.s32 3, %v2924_v26  ;;  %vm19604_vm14 = vcmp.lt.s32.totalorder %v17040_v35, 3 }
 0x2fc   : > { %v1752_v40 = vsel %vm19605_vm2, %v17055_v29, %v17057_v51  ;;  %v2772_v60 = vadd.f32 0.041655596, %v2771_v24  ;;  %v2929_v50 = vadd.f32 -0.4999988, %v2928_v27  ;;  %v1754_v45 = vsel %vm19604_vm14, %v17061_v7, %v1753_v31 }
 0x2fd   : > { %v1756_v39 = vsel %vm19605_vm2, %v17057_v51, %v17061_v7  ;;  %v1758_v20 = vsel %vm19604_vm14, %v1740_v44, %v1757_v54  ;;  %v2935_v2 = vmul.f32 %v2934_v15, %v16995_v4  ;;  %v17092_v14 = vmul.f32 %v19975_v1, %v16825_v42 }
 0x2fe   : > { %v2773_v18 = vmul.f32 %v2772_v60, %v16762_v25  ;;  %v2930_v21 = vmul.f32 %v2929_v50, %v16995_v4  ;;  %v2787_v17 = vand.u32 3, %v2786_v58  ;;  %v17096_v26 = vadd.s32 4294967294, %v3058_v46 }
 0x2ff   : > { %vm19603_vm3 = vcmp.lt.s32.totalorder %v17040_v35, 2  ;;  %v17100_v55 = vand.u32 65535, %v17051_v33  ;;  %v2936_v24 = vadd.f32 -0.16666654, %v2935_v2  ;;  %vm5268_vm13 = vcmp.eq.s32.totalorder %v17071_v48, 0 }
 0x300   : > { %v17104_v44 = vsel %vm19603_vm3, %v1752_v40, %v1754_v45  ;;  %v17108_v42 = vsel %vm19603_vm3, %v1756_v39, %v1758_v20  ;;  %v2774_v15 = vadd.f32 -0.4999988, %v2773_v18  ;;  %v2931_v31 = vadd.f32 1.0, %v2930_v21 }
 0x301   : > { %v2937_v46 = vmul.f32 %v2936_v24, %v16995_v4  ;;  %vm5267_vm15 = vcmp.lt.s32.totalorder %v17071_v48, 2  ;;  %vm5271_vm10 = vcmp.eq.s32.totalorder %v17071_v48, 2  ;;  %vm5421_vm5 = vcmp.lt.s32.totalorder %v17073_v12, 2  ;;  %v1319_v48 = vpop.permute.xlu2 %1318 }
 0x302   : > { %v2942_v54 = vand.u32 3, %v2941_v47  ;;  %v2775_v27 = vmul.f32 %v2774_v15, %v16762_v25  ;;  %vm2785_vm4 = vweird.f32 %v19917_v6  ;;  %vm5422_vm1 = vcmp.eq.s32.totalorder %v17073_v12, 0 }
 0x303   : > { %vm5425_vm11 = vcmp.eq.s32.totalorder %v17073_v12, 2  ;;  %vm2788_vm0 = vcmp.lt.s32.totalorder %v2787_v17, 2  ;;  %v19607_v4 = vshrl.u32 %v17108_v42, 16  ;;  %v19608_v58 = vshrl.u32 %v17104_v44, 16 }
 0x304   : > { %v2938_v40 = vadd.f32 1.0, %v2937_v46  ;;  %vm2789_vm3 = vcmp.eq.s32.totalorder %v2787_v17, 0  ;;  %v2776_v60 = vadd.f32 1.0, %v2775_v27  ;;  %v2948_v50 = vxor.u32 2147483648, %v2931_v31 }
 0x305   : > { %vm2792_vm14 = vcmp.eq.s32.totalorder %v2787_v17, 2  ;;  %v1531_v25 = vmul.f32 -0.001358992, %v16915_v32  ;;  %vm2943_vm2 = vcmp.lt.s32.totalorder %v2942_v54, 2  ;;  %vm2944_vm12 = vcmp.eq.s32.totalorder %v2942_v54, 0 }
 0x306   : > { %v2939_v47 = vmul.f32 %v2938_v40, %v16973_v9  ;;  %vm2947_vm7 = vcmp.eq.s32.totalorder %v2942_v54, 2  ;;  %v1763_v45 = vand.u32 65535, %v17108_v42  ;;  %v1785_v39 = vand.u32 65535, %v17104_v44 }
 0x307   : > { %v2793_v20 = vxor.u32 2147483648, %v2776_v60  ;;  %v1532_v2 = vadd.f32 0.041655596, %v1531_v25  ;;  %v17129_v1 = vmul.u32 %v19607_v4, %v17100_v55  ;;  %v17134_v18 = vmul.u32 %v19608_v58, %v17100_v55 }
 0x308   : > { %v2790_v9 = vxor.u32 2147483648, %v17001_v37  ;;  %v2945_v21 = vxor.u32 2147483648, %v2939_v47  ;;  %v5427_v15 = vsel %vm5425_vm11, %v2948_v50, %v2939_v47  ;;  %v1686_v6 = vmul.f32 -0.001358992, %v16922_v57 }
 0x309   : > { %v5273_v24 = vsel %vm5271_vm10, %v2793_v20, %v17001_v37  ;;  %v2794_v46 = vsel %vm2792_vm14, %v2793_v20, %v17001_v37  ;;  %v1533_v27 = vmul.f32 %v1532_v2, %v16915_v32  ;;  %v2949_v20 = vsel %vm2947_vm7, %v2948_v50, %v2939_v47  ;;  %v19980_v47 = vld [vmem:[#allocation56_spill] sm:$0xff] }
 0x30a   : > { %v5270_v40 = vsel %vm5268_vm13, %v2776_v60, %v2790_v9  ;;  %v5424_v25 = vsel %vm5422_vm1, %v2931_v31, %v2945_v21  ;;  %v2791_v4 = vsel %vm2789_vm3, %v2776_v60, %v2790_v9  ;;  %v2946_v58 = vsel %vm2944_vm12, %v2931_v31, %v2945_v21 }
 0x30b   : > { %v5274_v0 = vsel %vm5267_vm15, %v5270_v40, %v5273_v24  ;;  %v5428_v49 = vsel %vm5421_vm5, %v5424_v25, %v5427_v15  ;;  %v2795_v37 = vsel %vm2788_vm0, %v2791_v4, %v2794_v46  ;;  %vm19976_vm14 = vweird.f32 %v19954_v36 }
 0x30c   : > { %v5275_v2 = vsel %vm2785_vm4, nan, %v5274_v0  ;;  %v5429_v41 = vsel %vm19976_vm14, nan, %v5428_v49  ;;  %v2796_v60 = vsel %vm2785_vm4, nan, %v2795_v37  ;;  %v2950_v31 = vsel %vm2943_vm2, %v2946_v58, %v2949_v20  ;;  %vm19978_vm0 = vmmov %vm19976_vm14 }
 0x30d   : > { %v1762_v9 = vshrl.u32 %v17051_v33, 16  ;;  %v1769_v12 = vshll.u32 %v17129_v1, 16  ;;  %v17166_v17 = vpack.c.bf16 %v5429_v41, %v5275_v2  ;;  %v2951_v4 = vsel %vm19978_vm0, nan, %v2950_v31  ;;  %v17219_v31 = vpop.permute.xlu1 %882 }
 0x30e   : > { %v1791_v0 = vshll.u32 %v17134_v18, 16  ;;  %v17171_v50 = vpack.c.bf16 %v2951_v4, %v2796_v60  ;;  %v1534_v49 = vadd.f32 -0.4999988, %v1533_v27  ;;  %v1193_v54 = vadd.f32 %v17092_v14, %v19980_v47 }
 0x30f   : > { %19977 = vst [vmem:[#allocation93_spill] sm:$0xff] %v17166_v17  ;;  %v1765_v58 = vmul.u32 %v1763_v45, %v17100_v55  ;;  %v17177_v21 = vmul.u32 %v1763_v45, %v1762_v9  ;;  %6502 = vmatmul.bf16.gmra.mxu3 %v17166_v17  ;;  %6551 = vmatmul.bf16.gmra.mxu1 %v17166_v17  ;;  %v17184_v36 = vsel %vm16800_vm9, 0, %v17007_v16  ;;  %v1687_v15 = vadd.f32 0.041655596, %v1686_v6  ;;  %v17195_v45 = vld [vmem:[%s19695_s18 + $0x5] ss:$0 sm:$0xff] }
 0x310   : > { %19979 = vst [vmem:[#allocation91_spill] sm:$0xff] %v17171_v50  ;;  %v1787_v41 = vmul.u32 %v1785_v39, %v17100_v55  ;;  %v17187_v24 = vmul.u32 %v1785_v39, %v1762_v9  ;;  %6680 = vmatmul.bf16.gmra.mxu2 %v17171_v50  ;;  %v1535_v14 = vmul.f32 %v1534_v49, %v16915_v32  ;;  %vm11542_vm12 = vcmp.lt.s32.totalorder %v17096_v26, 0 }
 0x311   : > { %19981 = vst [vmem:[#allocation53_spill] sm:$0xff] %v17184_v36  ;;  %v1373_v61 = vmul.f32 %v17195_v45, %v1319_v48  ;;  %vm1773_vm9 = vc.u32 %v1765_v58, %v1769_v12  ;;  %v1775_v16 = vadd.s32 %v1769_v12, %v1765_v58  ;;  %v1688_v32 = vmul.f32 %v1687_v15, %v16922_v57 }
 0x312   : > { %vm17198_vm2 = vc.u32 %v1787_v41, %v1791_v0  ;;  %v17202_v39 = vadd.s32 %v1791_v0, %v1787_v41  ;;  %v17204_v46 = vadd.f32 1.0, %v1535_v14  ;;  %v1291_v27 = vadd.f32 %v17030_v23, %v1193_v54 }
 0x313   : > { %v1771_v40 = vshll.u32 %v17177_v21, 16  ;;  %v17212_v37 = vsel %vm16806_vm6, 0, %v17015_v59  ;;  %v4034_v20 = vand.u32 3, %v17184_v36  ;;  %v17216_v2 = vsel %vm11542_vm12, 0, %v17096_v26 }
 0x314   : > { %19984 = vst [vmem:[#allocation90_spill] sm:$0xff] %v17204_v46  ;;  %v1793_v60 = vshll.u32 %v17187_v24, 16  ;;  %v19617_v48 = vxor.u32 2147483648, %v17010_v8  ;;  %v1689_v12 = vadd.f32 -0.4999988, %v1688_v32  ;;  %v19987_v23 = vmov 0  }
 0x315   : > { %19986 = vst [vmem:[#allocation49_spill] sm:$0xff] %v17212_v37  ;;  %v1774_v4 = vsel %vm1773_vm9, 1, %v19987_v23  ;;  %vm17223_vm3 = vc.u32 %v1775_v16, %v1771_v40  ;;  %v19990_v59 = vshrl.u32 %v17104_v44, 16  ;;  %v1796_v26 = vsel %vm17198_vm2, 1, %v19987_v23  ;;  %v963_v44 = vpop.permute.xlu2 %962 }
 0x316   : > { %vm1799_vm6 = vc.u32 %v17202_v39, %v1793_v60  ;;  %v19614_v6 = vxor.u32 2147483648, %v17204_v46  ;;  %v1690_v47 = vmul.f32 %v1689_v12, %v16922_v57  ;;  %v4188_v54 = vand.u32 3, %v17212_v37 }
 0x317   : > { %v1790_v49 = vmul.u32 %v19990_v59, %v1762_v9  ;;  %v3066_v58 = vsub.s32 4294967266, %v17216_v2  ;;  %v17239_v41 = vadd.f32 %v1373_v61, %v1291_v27  ;;  %v19992_v14 = vshrl.u32 %v17108_v42, 16 }
 0x318   : > { %vm4036_vm13 = vcmp.eq.s32.totalorder %v4034_v20, 0  ;;  %v17243_v55 = vadd.f32 1.0, %v1690_v47  ;;  %v19616_v32 = vxor.u32 2147483648, %v17019_v28  ;;  %v1778_v61 = vsel %vm17223_vm3, 1, %v19987_v23 }
 0x319   : > { %19991 = vst [vmem:[#allocation94_spill] sm:$0xff] %v17239_v41  ;;  %v1768_v15 = vmul.u32 %v19992_v14, %v1762_v9  ;;  %v1798_v16 = vadd.s32 %v1796_v26, %v1790_v49  ;;  %v4038_v57 = vsel %vm4036_vm13, %v17204_v46, %v19617_v48  ;;  %v1800_v27 = vsel %vm1799_vm6, 1, %v19987_v23  ;;  %v967_v49 = vpop.permute.xlu1 %966 }
 0x31a   : > { %19993 = vst [vmem:[#allocation72_spill] sm:$0xff] %v17243_v55  ;;  %vm4039_vm15 = vcmp.eq.s32.totalorder %v4034_v20, 2  ;;  %v19615_v42 = vxor.u32 2147483648, %v17243_v55  ;;  %vm4035_vm10 = vcmp.lt.s32.totalorder %v4034_v20, 2  ;;  %vm4190_vm5 = vcmp.eq.s32.totalorder %v4188_v54, 0 }
 0x31b   : > { %v1776_v40 = vadd.s32 %v1774_v4, %v1768_v15  ;;  %v4041_v9 = vsel %vm4039_vm15, %v19614_v6, %v17010_v8  ;;  %v3243_v25 = vmul.f32 -0.00019511016, %v17023_v63  ;;  %v4192_v4 = vsel %vm4190_vm5, %v17243_v55, %v19616_v32 }
 0x31c   : > { %v4042_v12 = vsel %vm4035_vm10, %v4038_v57, %v4041_v9  ;;  %vm4193_vm4 = vcmp.eq.s32.totalorder %v4188_v54, 2  ;;  %v1870_v0 = vand.u32 2139095040, %v17239_v41  ;;  %v1802_v59 = vadd.s32 %v1800_v27, %v1798_v16 }
 0x31d   : > { %vm4189_vm7 = vcmp.lt.s32.totalorder %v4188_v54, 2  ;;  %v4195_v20 = vsel %vm4193_vm4, %v19615_v42, %v17019_v28  ;;  %v1780_v26 = vadd.s32 %v1778_v61, %v1776_v40  ;;  %vm19655_vm1 = vweird.f32 %v19926_v43  ;;  %v1061_v6 = vpop.permute.xlu2 %1060 }
 0x31e   : > { %vm19665_vm11 = vweird.f32 %v19930_v52  ;;  %v4196_v47 = vsel %vm4189_vm7, %v4192_v4, %v4195_v20  ;;  %v3067_v14 = vadd.s32 127, %v3066_v58  ;;  %v1792_v15 = vshrl.u32 %v17134_v18, 16  ;;  %v19995_v20 = vld [vmem:[#allocation59_spill] sm:$0xff] }
 0x31f   : > { %v4043_v57 = vsel %vm19655_vm1, nan, %v4042_v12  ;;  %v4197_v16 = vsel %vm19665_vm11, nan, %v4196_v47  ;;  %v1770_v54 = vshrl.u32 %v17129_v1, 16  ;;  %v3062_v40 = vsub.s32 32, %v17216_v2 }
 0x320   : > { %v17273_v27 = vpack.c.bf16 %v4197_v16, %v4043_v57  ;;  %v1871_v61 = vshrl.u32 %v1870_v0, 23  ;;  %v1803_v9 = vadd.s32 %v1802_v59, %v1792_v15  ;;  %v3244_v58 = vadd.f32 0.008332121, %v3243_v25  ;;  %v17288_v25 = vld [vmem:[%s19695_s18] ss:$0 sm:$0xff] }
 0x321   : > { %v1781_v42 = vadd.s32 %v1780_v26, %v1770_v54  ;;  %v3046_v18 = vadd.s32 %v16898_v3, %v16880_v22  ;;  %v3068_v12 = vshll.u32 %v3067_v14, 23  ;;  %v1794_v4 = vshrl.u32 %v17187_v24, 16  ;;  %v1159_v26 = vpop.permute.xlu1 %1158  ;;  %v19997_v22 = vld [vmem:[#allocation45_spill] sm:$0xff] }
 0x322   : > { %19994 = vst [vmem:[#allocation62_spill] sm:$0xff] %v17273_v27  ;;  %6482 = vmatmul.bf16.vlgmr.msra.gmra.mxu0 %v17273_v27  ;;  %v1772_v1 = vshrl.u32 %v17177_v21, 16  ;;  %v11519_v57 = vadd.s32 4294967169, %v1871_v61  ;;  %vm19996_vm14 = vcmp.lt.s32.totalorder %v17040_v35, 4  ;;  %v908_v3 = vmul.f32 %v17288_v25, %v19997_v22  ;;  %v17295_v21 = vld [vmem:[%s19695_s18 + $0x1] ss:$0 sm:$0xff] }
 0x323   : > { %6652 = vmatpush.bf16.msra.mxu0 %v19995_v20  ;;  %v3064_v47 = vshrl.u32 %v3046_v18, %v3062_v40  ;;  %v1749_v0 = vsel %vm19996_vm14, %v17061_v7, 2102212464  ;;  %v1804_v59 = vadd.s32 %v1803_v9, %v1794_v4  ;;  %v990_v14 = vmul.f32 %v17295_v21, %v963_v44  ;;  %v19998_v61 = vld [vmem:[#allocation75_spill] sm:$0xff]  ;;  %v17309_v9 = vld [vmem:[%s19695_s18 + $0x2] ss:$0 sm:$0xff]  ;;  %v1355_v20 = vpop.permute.xlu0 %1354 }
 0x324   : > { %v1728_v7 = vshrl.u32 %v19725_v30, %v16983_v62  ;;  %v17300_v15 = vadd.s32 %v1781_v42, %v1772_v1  ;;  %v3245_v16 = vmul.f32 %v3244_v58, %v17023_v63  ;;  %v3063_v54 = vshll.u32 %v16958_v38, %v17216_v2  ;;  %v20002_v1 = vld [vmem:[#allocation76_spill] sm:$0xff] }
 0x325   : > { %v3069_v40 = vor.u32 4788187, %v3068_v12  ;;  %v1088_v44 = vmul.f32 %v17309_v9, %v1061_v6  ;;  %vm19999_vm0 = vcmp.lt.s32.totalorder %v17040_v35, 1  ;;  %vm20000_vm12 = vcmp.lt.s32.totalorder %v17040_v35, 3  ;;  %v1163_v6 = vpop.permute.xlu2 %1162 }
 0x326   : > { %v1748_v62 = vsel %vm19999_vm0, %v1728_v7, %v17055_v29  ;;  %v1750_v42 = vsel %vm20000_vm12, %v17057_v51, %v1749_v0  ;;  %v17321_v38 = vadd.s32 %v17202_v39, %v1793_v60  ;;  %v3065_v2 = vor.u32 %v3064_v47, %v3063_v54  ;;  %v17328_v29 = vld [vmem:[%s19695_s18 + $0x3] ss:$0 sm:$0xff]  ;;  %v20003_v54 = vld [vmem:[#allocation55_spill] sm:$0xff] }
 0x327   : > { %6653 = vmatpush.bf16.msra.mxu0 %v19998_v61  ;;  %v1877_v58 = vadd.s32 1, %v11519_v57  ;;  %v1808_v18 = vadd.s32 1, %v1804_v59  ;;  %v1006_v12 = vadd.f32 %v990_v14, %v908_v3  ;;  %v1186_v51 = vmul.f32 %v17328_v29, %v1159_v26 }
 0x328   : > { %vm1807_vm9 = vc.u32 %v17300_v15, %v17321_v38  ;;  %v3070_v4 = vand.u32 2147483647, %v3069_v40  ;;  %v19618_v24 = vand.u32 2147483647, %v17239_v41  ;;  %vm20001_vm2 = vcmp.lt.s32.totalorder %v17040_v35, 2 }
 0x329   : > { %v1751_v39 = vsel %vm20001_vm2, %v1748_v62, %v1750_v42  ;;  %v991_v60 = vmul.f32 %v17295_v21, %v967_v49  ;;  %v3246_v47 = vadd.f32 -0.16666654, %v3245_v16  ;;  %v1104_v57 = vadd.f32 %v1088_v44, %v1006_v12  ;;  %v1257_v26 = vpop.permute.xlu1 %1256  ;;  %v17342_v35 = vld [vmem:[%s19695_s18 + $0x4] ss:$0 sm:$0xff]  ;;  %v20004_v44 = vld [vmem:[#allocation79_spill] sm:$0xff] }
 0x32a   : > { %v3072_v0 = vcvt.s32.f32 %v3065_v2  ;;  %vm1878_vm3 = vcmp.gt.s32.totalorder %v1877_v58, 0  ;;  %v1809_v22 = vsel %vm1807_vm9, %v1808_v18, %v1804_v59  ;;  %v909_v3 = vmul.f32 %v17288_v25, %v17219_v31 }
 0x32b   : > { %6654 = vmatpush.bf16.msra.mxu0 %v20002_v1  ;;  %v1805_v14 = vmul.u32 %v17051_v33, %v1751_v39  ;;  %v1202_v7 = vadd.f32 %v1186_v51, %v1104_v57  ;;  %v1284_v49 = vmul.f32 %v17342_v35, %v1257_v26  ;;  %v1382_v16 = vmul.f32 %v17195_v45, %v1355_v20 }
 0x32c   : > { %v1089_v40 = vmul.f32 %v17309_v9, %v20003_v54  ;;  %v3073_v59 = vmul.f32 %v3072_v0, %v3070_v4  ;;  %v1874_v31 = vand.u32 8388607, %v19618_v24  ;;  %v1007_v61 = vadd.f32 %v991_v60, %v909_v3  ;;  %v20006_v4 = vld [vmem:[#allocation61_spill] sm:$0xff]  ;;  %v20007_v3 = vld [vmem:[#allocation102_spill] sm:$0xff]  ;;  %v20009_v54 = vld [vmem:[#allocation60_spill] sm:$0xff] }
 0x32d   : > { %v1810_v33 = vadd.s32 %v1809_v22, %v1805_v14  ;;  %v1300_v62 = vadd.f32 %v1284_v49, %v1202_v7  ;;  %v1879_v42 = vsel %vm1878_vm3, %v1877_v58, 0  ;;  %v3247_v2 = vmul.f32 %v3246_v47, %v17023_v63  ;;  %v1261_v60 = vpop.permute.xlu2 %1260  ;;  %v20008_v47 = vld [vmem:[#allocation65_spill] sm:$0xff] }
 0x32e   : > { %v3074_v12 = vxor.u32 2147483648, %v3073_v59  ;;  %v1875_v51 = vor.u32 8388608, %v1874_v31  ;;  %v1187_v39 = vmul.f32 %v17328_v29, %v1163_v6  ;;  %v1105_v20 = vadd.f32 %v1089_v40, %v1007_v61 }
 0x32f   : > { %6655 = vmatpush.bf16.msra.mxu0 %v20004_v44  ;;  %v17353_v18 = vadd.f32 %v1382_v16, %v1300_v62  ;;  %v1881_v1 = vand.u32 31, %v1879_v42  ;;  %v1811_v57 = vadd.s32 536870912, %v1810_v33  ;;  %v3231_v58 = vsub.s32 4, %v20007_v3 }
 0x330   : > { %v3248_v26 = vadd.f32 1.0, %v3247_v2  ;;  %vm2954_vm6 = vcmp.lt.s32.totalorder %v20008_v47, 0  ;;  %v17363_v6 = vshll.u32 %v1875_v51, 8  ;;  %v1203_v49 = vadd.f32 %v1187_v39, %v1105_v20 }
 0x331   : > { %20005 = vst [vmem:[#allocation98_spill] sm:$0xff] %v17353_v18  ;;  %v19619_v0 = vand.u32 2147483647, %v17353_v18  ;;  %v3265_v22 = vand.u32 2139095040, %v17353_v18  ;;  %v3075_v7 = vsel %vm2954_vm6, %v3074_v12, %v3073_v59  ;;  %v1285_v16 = vmul.f32 %v17342_v35, %v1261_v60  ;;  %v1359_v12 = vpop.permute.xlu1 %1358 }
 0x332   : > { %v17367_v40 = vsub.s32 32, %v1881_v1  ;;  %v17369_v31 = vshrl.u32 %v1811_v57, 30  ;;  %vm20011_vm13 = vcmp.lt.s32.totalorder %v19955_v13, 0  ;;  %v20013_v59 = vand.u32 2147483647, %v20008_v47 }
 0x333   : > { %6656 = vmatpush.bf16.msra.mxu0 %v20006_v4  ;;  %v3266_v14 = vshrl.u32 %v3265_v22, 23  ;;  %v3269_v44 = vand.u32 8388607, %v19619_v0  ;;  %v17376_v62 = vsel %vm20011_vm13, %v3231_v58, %v20007_v3  ;;  %v20014_v2 = vmov 0  ;;  %v20019_v58 = vld [vmem:[#allocation84_spill] sm:$0xff] }
 0x334   : > { %20010 = vst [vmem:[#allocation81_spill] sm:$0xff] %v17369_v31  ;;  %vm17380_vm15 = vcmp.le.f32.partialorder %v20013_v59, 0.7853982  ;;  %v17385_v51 = vmul.f32 %v3248_v26, %v16988_v53  ;;  %v1383_v4 = vmul.f32 %v17195_v45, %v1359_v12  ;;  %v17393_v57 = vshrl.u32 %v1879_v42, 5 }
 0x335   : > { %v11546_v61 = vadd.s32 4294967169, %v3266_v14  ;;  %20012 = vst [vmem:[#allocation97_spill] sm:$0xff] %v17376_v62  ;;  %v20015_v2 = vsel %vm17380_vm15, 4294967295, %v20014_v2  ;;  %v17390_v39 = vsel %vm17380_vm15, %v20008_v47, %v3075_v7  ;;  %v17396_v60 = vshll.u32 %v19725_v30, %v1881_v1 }
 0x336   : > { %20016 = vst [vmem:[#allocation50_spill] sm:$0xff] %v20015_v2  ;;  %v17399_v22 = vand.u32 65535, %v17363_v6  ;;  %v1301_v3 = vadd.f32 %v1285_v16, %v1203_v49  ;;  %v17404_v53 = vshrl.u32 %v19914_v10, %v17367_v40  ;;  %v1813_v26 = vshll.u32 %v17369_v31, 30 }
 0x337   : > { %6657 = vmatpush.bf16.msra.mxu0 %v20009_v54  ;;  %20017 = vst [vmem:[#allocation63_spill] sm:$0xff] %v17385_v51  ;;  %v3272_v20 = vadd.s32 1, %v11546_v61  ;;  %v3270_v14 = vor.u32 8388608, %v3269_v44  ;;  %v17409_v42 = vmul.f32 %v17390_v39, %v17390_v39  ;;  %v17413_v7 = vshrl.u32 %v19972_v5, %v17367_v40 }
 0x338   : > { %20018 = vst [vmem:[#allocation51_spill] sm:$0xff] %v17390_v39  ;;  %v17415_v49 = vadd.f32 %v1383_v4, %v1301_v3  ;;  %v1887_v16 = vshll.u32 %v19972_v5, %v1881_v1  ;;  %v1888_v61 = vshrl.u32 %v19973_v11, %v17367_v40  ;;  %v1896_v59 = vshll.u32 %v19916_v34, %v1881_v1  ;;  %v20021_v4 = vld [vmem:[#allocation86_spill] sm:$0xff] }
 0x339   : > { %vm3273_vm10 = vcmp.gt.s32.totalorder %v3272_v20, 0  ;;  %v1890_v12 = vshll.u32 %v19973_v11, %v1881_v1  ;;  %v1893_v32 = vshll.u32 %v19710_v19, %v1881_v1  ;;  %v17429_v48 = vsub.s32 %v1810_v33, %v1813_v26 }
 0x33a   : > { %v3274_v54 = vsel %vm3273_vm10, %v3272_v20, 0  ;;  %20020 = vst [vmem:[#allocation66_spill] sm:$0xff] %v17415_v49  ;;  %v1894_v20 = vshrl.u32 %v19916_v34, %v17367_v40  ;;  %v1898_v3 = vor.u32 %v17404_v53, %v1896_v59  ;;  %v17431_v0 = vshll.u32 %v3270_v14, 8 }
 0x33b   : > { %6658 = vmatpush.bf16.msra.mxu0 %v20019_v58  ;;  %v3276_v44 = vand.u32 31, %v3274_v54  ;;  %v1891_v58 = vshrl.u32 %v19710_v19, %v17367_v40  ;;  %v17433_v17 = vshrl.u32 %v3274_v54, 5  ;;  %v3420_v1 = vand.u32 2139095040, %v17415_v49 }
 0x33c   : > { %vm1815_vm5 = vcmp.lt.s32.totalorder %v17429_v48, 0  ;;  %v1816_v27 = vsub.s32 0, %v17429_v48  ;;  %v17477_v51 = vor.u32 %v1888_v61, %v1887_v16  ;;  %vm1902_vm12 = vcmp.lt.s32.totalorder %v17393_v57, 4 }
 0x33d   : > { %v3277_v24 = vsub.s32 32, %v3276_v44  ;;  %v3279_v50 = vshll.u32 %v19725_v30, %v3276_v44  ;;  %v3282_v43 = vshll.u32 %v19972_v5, %v3276_v44  ;;  %v3288_v53 = vshll.u32 %v19710_v19, %v3276_v44 }
 0x33e   : > { %v3291_v14 = vshll.u32 %v19916_v34, %v3276_v44  ;;  %vm3294_vm4 = vcmp.lt.s32.totalorder %v17433_v17, 1  ;;  %v3421_v36 = vshrl.u32 %v3420_v1, 23  ;;  %vm3297_vm7 = vcmp.lt.s32.totalorder %v17433_v17, 4 }
 0x33f   : > { %6659 = vmatpush.bf16.msra.mxu0 %v20021_v4  ;;  %v3280_v52 = vshrl.u32 %v19972_v5, %v3277_v24  ;;  %v3283_v55 = vshrl.u32 %v19973_v11, %v3277_v24  ;;  %v3285_v4 = vshll.u32 %v19973_v11, %v3276_v44  ;;  %v3286_v33 = vshrl.u32 %v19710_v19, %v3277_v24 }
 0x340   : > { %v3289_v26 = vshrl.u32 %v19916_v34, %v3277_v24  ;;  %v3292_v54 = vshrl.u32 %v19914_v10, %v3277_v24  ;;  %vm3296_vm14 = vcmp.lt.s32.totalorder %v17433_v17, 3  ;;  %v3311_v1 = vand.u32 65535, %v17431_v0 }
 0x341   : > { %v3281_v59 = vor.u32 %v3280_v52, %v3279_v50  ;;  %v17447_v28 = vor.u32 %v3283_v55, %v3282_v43  ;;  %v3287_v46 = vor.u32 %v3286_v33, %v3285_v4  ;;  %v17458_v43 = vpop.permute.xlu2 %887  ;;  %vm3295_vm0 = vcmp.lt.s32.totalorder %v17433_v17, 2 }
 0x342   : > { %v3290_v8 = vor.u32 %v3289_v26, %v3288_v53  ;;  %v3293_v37 = vor.u32 %v3292_v54, %v3291_v14  ;;  %v11549_v53 = vadd.s32 4294967169, %v3421_v36  ;;  %v3312_v54 = vshrl.u32 %v17431_v0, 16 }
 0x343   : > { %v3302_v44 = vsel %vm3294_vm4, %v3281_v59, %v17447_v28  ;;  %v3306_v52 = vsel %vm3294_vm4, %v17447_v28, %v3287_v46  ;;  %v17486_v36 = vsel %vm1902_vm12, %v1898_v3, 1326507024  ;;  %v3278_v16 = vshrl.u32 %v19725_v30, %v3277_v24 }
 0x344   : > { %v3303_v50 = vsel %vm3297_vm7, %v3290_v8, 920167782  ;;  %v3307_v55 = vsel %vm3297_vm7, %v3293_v37, 1326507024  ;;  %v19650_v37 = vand.u32 2147483647, %v17415_v49 }
 0x345   : > { %v3304_v4 = vsel %vm3296_vm14, %v3287_v46, %v3303_v50  ;;  %v3308_v33 = vsel %vm3296_vm14, %v3290_v8, %v3307_v55  ;;  %v17479_v50 = vor.u32 %v1891_v58, %v1890_v12  ;;  %v17481_v8 = vor.u32 %v1894_v20, %v1893_v32 }
 0x346   : > { %v3305_v26 = vsel %vm3295_vm0, %v3302_v44, %v3304_v4  ;;  %v3309_v14 = vsel %vm3295_vm0, %v3306_v52, %v3308_v33  ;;  %v3427_v55 = vadd.s32 1, %v11549_v53  ;;  %v17491_v4 = vsel %vm1815_vm5, %v1816_v27, %v17429_v48 }
 0x347   : > { %v3313_v41 = vand.u32 65535, %v3309_v14  ;;  %v3314_v31 = vshrl.u32 %v3309_v14, 16  ;;  %v3335_v18 = vand.u32 65535, %v3305_v26  ;;  %v3336_v13 = vshrl.u32 %v3305_v26, 16 }
 0x348   : > { %v3424_v33 = vand.u32 8388607, %v19650_v37  ;;  %vm3428_vm2 = vcmp.gt.s32.totalorder %v3427_v55, 0  ;;  %vm1899_vm5 = vcmp.lt.s32.totalorder %v17393_v57, 1 }
 0x349   : > { %v3316_v44 = vmul.u32 %v3314_v31, %v3311_v1  ;;  %v3317_v52 = vmul.u32 %v3313_v41, %v3312_v54  ;;  %v3338_v61 = vmul.u32 %v3336_v13, %v3311_v1  ;;  %v3339_v12 = vmul.u32 %v3335_v18, %v3312_v54  ;;  %v17497_v62 = vpop.permute.xlu2 %970 }
 0x34a   : > { %v3315_v32 = vmul.u32 %v3313_v41, %v3311_v1  ;;  %v3318_v58 = vmul.u32 %v3314_v31, %v3312_v54  ;;  %v3337_v26 = vmul.u32 %v3335_v18, %v3311_v1  ;;  %v3340_v14 = vmul.u32 %v3336_v13, %v3312_v54 }
 0x34b   : > { %v3319_v20 = vshll.u32 %v3316_v44, 16  ;;  %v3321_v3 = vshll.u32 %v3317_v52, 16  ;;  %v3341_v39 = vshll.u32 %v3338_v61, 16  ;;  %v3343_v2 = vshll.u32 %v3339_v12, 16 }
 0x34c   : > { %v3429_v41 = vsel %vm3428_vm2, %v3427_v55, 0  ;;  %v3298_v31 = vsel %vm3294_vm4, %v3278_v16, %v3281_v59  ;;  %v3299_v13 = vsel %vm3297_vm7, %v3287_v46, 2102212464  ;;  %v3322_v55 = vshrl.u32 %v3317_v52, 16  ;;  %v17506_v16 = vpop.permute.xlu1 %892 }
 0x34d   : > { %vm3323_vm9 = vc.u32 %v3315_v32, %v3319_v20  ;;  %v3325_v53 = vadd.s32 %v3319_v20, %v3315_v32  ;;  %vm3345_vm3 = vc.u32 %v3337_v26, %v3341_v39  ;;  %v3347_v24 = vadd.s32 %v3341_v39, %v3337_v26  ;;  %20022 = vst [vmem:[#allocation48_spill] sm:$0xff] %v17506_v16 }
 0x34e   : > { %v3324_v27 = vsel %vm3323_vm9, 1, %v19987_v23  ;;  %v3346_v18 = vsel %vm3345_vm3, 1, %v19987_v23  ;;  %v3320_v32 = vshrl.u32 %v3316_v44, 16  ;;  %v3431_v26 = vand.u32 31, %v3429_v41 }
 0x34f   : > { %v3326_v49 = vadd.s32 %v3324_v27, %v3318_v58  ;;  %vm3327_vm13 = vc.u32 %v3325_v53, %v3321_v3  ;;  %v3348_v54 = vadd.s32 %v3346_v18, %v3340_v14  ;;  %vm3349_vm10 = vc.u32 %v3347_v24, %v3343_v2 }
 0x350   : > { %v3328_v1 = vsel %vm3327_vm13, 1, %v19987_v23  ;;  %v3350_v39 = vsel %vm3349_vm10, 1, %v19987_v23  ;;  %v3342_v37 = vshrl.u32 %v3338_v61, 16  ;;  %v3425_v59 = vor.u32 8388608, %v3424_v33 }
 0x351   : > { %v3330_v20 = vadd.s32 %v3328_v1, %v3326_v49  ;;  %v3352_v47 = vadd.s32 %v3350_v39, %v3348_v54  ;;  %v3344_v3 = vshrl.u32 %v3339_v12, 16  ;;  %v17508_v53 = vshrl.u32 %v3429_v41, 5 }
 0x352   : > { %v17510_v46 = vsub.s32 32, %v3431_v26  ;;  %v3434_v14 = vshll.u32 %v19725_v30, %v3431_v26  ;;  %v3437_v49 = vshll.u32 %v19972_v5, %v3431_v26  ;;  %v3440_v44 = vshll.u32 %v19973_v11, %v3431_v26 }
 0x353   : > { %v3331_v58 = vadd.s32 %v3330_v20, %v3320_v32  ;;  %v3353_v27 = vadd.s32 %v3352_v47, %v3342_v37  ;;  %v3443_v33 = vshll.u32 %v19710_v19, %v3431_v26  ;;  %v3446_v12 = vshll.u32 %v19916_v34, %v3431_v26 }
 0x354   : > { %v3435_v52 = vshrl.u32 %v19972_v5, %v17510_v46  ;;  %v3438_v61 = vshrl.u32 %v19973_v11, %v17510_v46  ;;  %v3441_v47 = vshrl.u32 %v19710_v19, %v17510_v46  ;;  %v3444_v37 = vshrl.u32 %v19916_v34, %v17510_v46 }
 0x355   : > { %v3354_v41 = vadd.s32 %v3353_v27, %v3344_v3  ;;  %v3447_v18 = vshrl.u32 %v19914_v10, %v17510_v46  ;;  %v3300_v1 = vsel %vm3296_vm14, %v17447_v28, %v3299_v13  ;;  %v17531_v54 = vadd.s32 %v3331_v58, %v3322_v55  ;;  %v17540_v27 = vpop.permute.xlu2 %1072 }
 0x356   : > { %v17533_v32 = vor.u32 %v3435_v52, %v3434_v14  ;;  %v17535_v20 = vor.u32 %v3438_v61, %v3437_v49  ;;  %v17537_v39 = vor.u32 %v3441_v47, %v3440_v44  ;;  %v3445_v26 = vor.u32 %v3444_v37, %v3443_v33  ;;  %20024 = vst [vmem:[#allocation69_spill] sm:$0xff] %v17540_v27  ;;  %v1069_v61 = vpop.permute.xlu1 %1068 }
 0x357   : > { %20023 = vst [vmem:[#allocation99_spill] sm:$0xff] %v17531_v54  ;;  %v3448_v3 = vor.u32 %v3447_v18, %v3446_v12  ;;  %vm3449_vm4 = vcmp.lt.s32.totalorder %v17508_v53, 1  ;;  %v17542_v16 = vadd.s32 %v3347_v24, %v3343_v2  ;;  %vm3452_vm7 = vcmp.lt.s32.totalorder %v17508_v53, 4 }
 0x358   : > { %v3457_v28 = vsel %vm3449_vm4, %v17533_v32, %v17535_v20  ;;  %v17549_v13 = vshll.u32 %v3425_v59, 8  ;;  %v3358_v55 = vadd.s32 1, %v3354_v41  ;;  %vm3451_vm14 = vcmp.lt.s32.totalorder %v17508_v53, 3 }
 0x359   : > { %20025 = vst [vmem:[#allocation70_spill] sm:$0xff] %v17542_v16  ;;  %v3458_v58 = vsel %vm3452_vm7, %v3445_v26, 920167782  ;;  %v3461_v2 = vsel %vm3449_vm4, %v17535_v20, %v17537_v39  ;;  %vm3357_vm9 = vc.u32 %v17531_v54, %v17542_v16  ;;  %vm3450_vm2 = vcmp.lt.s32.totalorder %v17508_v53, 2 }
 0x35a   : > { %v3459_v24 = vsel %vm3451_vm14, %v17537_v39, %v3458_v58  ;;  %v3462_v59 = vsel %vm3452_vm7, %v3448_v3, 1326507024  ;;  %v1818_v14 = vclz %v17491_v4  ;;  %v3301_v49 = vsel %vm3295_vm0, %v3298_v31, %v3300_v1 }
 0x35b   : > { %v3460_v44 = vsel %vm3450_vm2, %v3457_v28, %v3459_v24  ;;  %v3463_v52 = vsel %vm3451_vm14, %v3445_v26, %v3462_v59  ;;  %v3466_v12 = vand.u32 65535, %v17549_v13  ;;  %v3359_v18 = vsel %vm3357_vm9, %v3358_v55, %v3354_v41 }
 0x35c   : > { %v3464_v33 = vsel %vm3450_vm2, %v3461_v2, %v3463_v52  ;;  %v3490_v47 = vand.u32 65535, %v3460_v44  ;;  %v3491_v37 = vshrl.u32 %v3460_v44, 16  ;;  %v3467_v4 = vshrl.u32 %v17549_v13, 16 }
 0x35d   : > { %v3468_v3 = vand.u32 65535, %v3464_v33  ;;  %v3469_v17 = vshrl.u32 %v3464_v33, 16  ;;  %v17579_v31 = vor.u32 %v17413_v7, %v17396_v60  ;;  %vm1901_vm0 = vcmp.lt.s32.totalorder %v17393_v57, 3  ;;  %v17594_v60 = vpop.permute.xlu0 %974  ;;  %v17602_v33 = vpop.permute.xlu2 %1170 }
 0x35e   : > { %v3355_v1 = vmul.u32 %v17431_v0, %v3301_v49  ;;  %v3493_v26 = vmul.u32 %v3491_v37, %v3466_v12  ;;  %v17586_v28 = vsel %vm1902_vm12, %v17481_v8, 920167782  ;;  %v17592_v41 = vsel %vm1899_vm5, %v17477_v51, %v17479_v50  ;;  %20026 = vst [vmem:[#allocation87_spill] sm:$0xff] %v17594_v60 }
 0x35f   : > { %v3471_v55 = vmul.u32 %v3469_v17, %v3466_v12  ;;  %v3472_v58 = vmul.u32 %v3468_v3, %v3467_v4  ;;  %v1913_v0 = vsel %vm1901_vm0, %v17481_v8, %v17486_v36  ;;  %v3494_v2 = vmul.u32 %v3490_v47, %v3467_v4 }
 0x360   : > { %v17600_v7 = vadd.s32 %v3359_v18, %v3355_v1  ;;  %v3496_v24 = vshll.u32 %v3493_v26, 16  ;;  %v11517_v59 = vadd.s32 4294967294, %v1818_v14  ;;  %v3470_v49 = vmul.u32 %v3468_v3, %v3466_v12 }
 0x361   : > { %v3474_v44 = vshll.u32 %v3471_v55, 16  ;;  %v3492_v52 = vmul.u32 %v3490_v47, %v3466_v12  ;;  %v910_v27 = vmul.f32 %v17288_v25, %v17458_v43  ;;  %v992_v60 = vmul.f32 %v17295_v21, %v17497_v62  ;;  %v1167_v21 = vpop.permute.xlu1 %1166 }
 0x362   : > { %v3473_v16 = vmul.u32 %v3469_v17, %v3467_v4  ;;  %v3495_v54 = vmul.u32 %v3491_v37, %v3467_v4  ;;  %v3476_v10 = vshll.u32 %v3472_v58, 16  ;;  %vm1900_vm10 = vcmp.lt.s32.totalorder %v17393_v57, 2 }
 0x363   : > { %vm3478_vm3 = vc.u32 %v3470_v49, %v3474_v44  ;;  %v3480_v8 = vadd.s32 %v3474_v44, %v3470_v49  ;;  %vm3500_vm13 = vc.u32 %v3492_v52, %v3496_v24  ;;  %v3361_v36 = vadd.s32 536870912, %v17600_v7 }
 0x364   : > { %v3479_v14 = vsel %vm3478_vm3, 1, %v19987_v23  ;;  %v3498_v12 = vshll.u32 %v3494_v2, 16  ;;  %v3501_v47 = vsel %vm3500_vm13, 1, %v19987_v23  ;;  %v3502_v25 = vadd.s32 %v3496_v24, %v3492_v52 }
 0x365   : > { %v3481_v18 = vadd.s32 %v3479_v14, %v3473_v16  ;;  %vm3482_vm9 = vc.u32 %v3480_v8, %v3476_v10  ;;  %v3503_v43 = vadd.s32 %v3501_v47, %v3495_v54  ;;  %vm11518_vm1 = vcmp.lt.s32.totalorder %v11517_v59, 0  ;;  %v1265_v49 = vpop.permute.xlu0 %1264  ;;  %v1363_v52 = vpop.permute.xlu2 %1362 }
 0x366   : > { %v1008_v62 = vadd.f32 %v992_v60, %v910_v27  ;;  %v3433_v37 = vshrl.u32 %v19725_v30, %v17510_v46  ;;  %v3483_v4 = vsel %vm3482_vm9, 1, %v19987_v23  ;;  %v3454_v3 = vsel %vm3452_vm7, %v17537_v39, 2102212464 }
 0x367   : > { %v3475_v17 = vshrl.u32 %v3471_v55, 16  ;;  %v3485_v1 = vadd.s32 %v3483_v4, %v3481_v18  ;;  %vm3504_vm3 = vc.u32 %v3502_v25, %v3498_v12  ;;  %v17618_v16 = vshrl.u32 %v3361_v36, 30 }
 0x368   : > { %v3505_v10 = vsel %vm3504_vm3, 1, %v19987_v23  ;;  %v1090_v54 = vmul.f32 %v17309_v9, %v1069_v61  ;;  %v1188_v27 = vmul.f32 %v17328_v29, %v1167_v21  ;;  %v3477_v60 = vshrl.u32 %v3472_v58, 16 }
 0x369   : > { %20027 = vst [vmem:[#allocation42_spill] sm:$0xff] %v17618_v16  ;;  %v3486_v46 = vadd.s32 %v3485_v1, %v3475_v17  ;;  %v3497_v24 = vshrl.u32 %v3493_v26, 16  ;;  %v3507_v44 = vadd.s32 %v3505_v10, %v3503_v43  ;;  %v3453_v39 = vsel %vm3449_vm4, %v3433_v37, %v17533_v32 }
 0x36a   : > { %v3455_v55 = vsel %vm3451_vm14, %v17535_v20, %v3454_v3  ;;  %v1106_v8 = vadd.f32 %v1090_v54, %v1008_v62  ;;  %v1286_v36 = vmul.f32 %v17342_v35, %v1265_v49  ;;  %v1821_v9 = vsel %vm11518_vm1, 0, %v11517_v59 }
 0x36b   : > { %v17631_v61 = vadd.s32 %v3486_v46, %v3477_v60  ;;  %v3499_v29 = vshrl.u32 %v3494_v2, 16  ;;  %v3508_v58 = vadd.s32 %v3507_v44, %v3497_v24  ;;  %v3363_v26 = vshll.u32 %v17618_v16, 30 }
 0x36c   : > { %v17634_v14 = vadd.s32 %v3502_v25, %v3498_v12  ;;  %v1204_v47 = vadd.f32 %v1188_v27, %v1106_v8  ;;  %v1384_v32 = vmul.f32 %v17195_v45, %v1363_v52  ;;  %v1883_v18 = vshrl.u32 %v19725_v30, %v17367_v40 }
 0x36d   : > { %v17642_v35 = vsel %vm1900_vm10, %v17592_v41, %v1913_v0  ;;  %v3456_v20 = vsel %vm3450_vm2, %v3453_v39, %v3455_v55  ;;  %v3509_v2 = vadd.s32 %v3508_v58, %v3499_v29  ;;  %v1826_v59 = vsub.s32 4294967266, %v1821_v9 }
 0x36e   : > { %vm3512_vm1 = vc.u32 %v17631_v61, %v17634_v14  ;;  %v1302_v12 = vadd.f32 %v1286_v36, %v1204_v47  ;;  %v3236_v25 = vmul.f32 -0.001358992, %v17023_v63  ;;  %v1904_v45 = vsel %vm1902_vm12, %v17479_v50, 2102212464 }
 0x36f   : > { %v1907_v40 = vsel %vm1899_vm5, %v17579_v31, %v17477_v51  ;;  %v1909_v53 = vsel %vm1901_vm0, %v17479_v50, %v17586_v28  ;;  %v3513_v41 = vadd.s32 1, %v3509_v2  ;;  %v17661_v0 = vsub.s32 %v17600_v7, %v3363_v26 }
 0x370   : > { %v3510_v43 = vmul.u32 %v17549_v13, %v3456_v20  ;;  %v17664_v21 = vadd.f32 %v1384_v32, %v1302_v12  ;;  %v3088_v62 = vmul.f32 -0.00019511016, %v17409_v42  ;;  %v1903_v37 = vsel %vm1899_vm5, %v1883_v18, %v17579_v31 }
 0x371   : > { %v1919_v4 = vshrl.u32 %v17642_v35, 16  ;;  %v1822_v3 = vsub.s32 32, %v1821_v9  ;;  %v3514_v17 = vsel %vm3512_vm1, %v3513_v41, %v3509_v2  ;;  %v1827_v1 = vadd.s32 127, %v1826_v59 }
 0x372   : > { %20028 = vst [vmem:[#allocation44_spill] sm:$0xff] %v17664_v21  ;;  %v3515_v50 = vadd.s32 %v3514_v17, %v3510_v43  ;;  %v3575_v28 = vand.u32 2139095040, %v17664_v21  ;;  %v3237_v7 = vadd.f32 0.041655596, %v3236_v25  ;;  %v1905_v13 = vsel %vm1901_vm0, %v17477_v51, %v1904_v45 }
 0x373   : > { %v17677_v49 = vsel %vm1900_vm10, %v1907_v40, %v1909_v53  ;;  %v1806_v31 = vadd.s32 %v17321_v38, %v17300_v15  ;;  %v3081_v10 = vmul.f32 -0.001358992, %v17409_v42  ;;  %v3366_v54 = vsub.s32 0, %v17661_v0 }
 0x374   : > { %v3516_v27 = vadd.s32 536870912, %v3515_v50  ;;  %v3576_v60 = vshrl.u32 %v3575_v28, 23  ;;  %v3089_v46 = vadd.f32 0.008332121, %v3088_v62  ;;  %v19657_v24 = vand.u32 65535, %v17642_v35 }
 0x375   : > { %v17685_v44 = vmul.u32 %v1919_v4, %v17399_v22  ;;  %v1824_v51 = vshrl.u32 %v1806_v31, %v1822_v3  ;;  %vm3365_vm12 = vcmp.lt.s32.totalorder %v17661_v0, 0  ;;  %v17689_v52 = vshrl.u32 %v17363_v6, 16 }
 0x376   : > { %v1828_v39 = vshll.u32 %v1827_v1, 23  ;;  %v11552_v15 = vadd.s32 4294967169, %v3576_v60  ;;  %v3238_v38 = vmul.f32 %v3237_v7, %v17023_v63  ;;  %v17694_v55 = vsel %vm1900_vm10, %v1903_v37, %v1905_v13  ;;  %v20030_v13 = vld [vmem:[#allocation65_spill] sm:$0xff] }
 0x377   : > { %v1941_v8 = vshrl.u32 %v17677_v49, 16  ;;  %v1823_v36 = vshll.u32 %v17429_v48, %v1821_v9  ;;  %v3082_v29 = vadd.f32 0.041655596, %v3081_v10  ;;  %v3367_v58 = vsel %vm3365_vm12, %v3366_v54, %v17661_v0 }
 0x378   : > { %v17699_v26 = vshrl.u32 %v3516_v27, 30  ;;  %v3582_v47 = vadd.s32 1, %v11552_v15  ;;  %v3090_v32 = vmul.f32 %v3089_v46, %v17409_v42  ;;  %v17705_v18 = vmul.u32 %v19657_v24, %v17399_v22 }
 0x379   : > { %v1924_v57 = vshll.u32 %v17685_v44, 16  ;;  %v1825_v2 = vor.u32 %v1824_v51, %v1823_v36  ;;  %v1829_v59 = vor.u32 4788187, %v1828_v39  ;;  %v3076_v48 = vsub.s32 4, %v16948_v56 }
 0x37a   : > { %20029 = vst [vmem:[#allocation68_spill] sm:$0xff] %v17699_v26  ;;  %vm3583_vm5 = vcmp.gt.s32.totalorder %v3582_v47, 0  ;;  %v3239_v9 = vadd.f32 -0.4999988, %v3238_v38  ;;  %v3368_v12 = vclz %v3367_v58  ;;  %v19656_v25 = vand.u32 2147483647, %v17664_v21 }
 0x37b   : > { %v3584_v45 = vsel %vm3583_vm5, %v3582_v47, 0  ;;  %v3083_v40 = vmul.f32 %v3082_v29, %v17409_v42  ;;  %v17713_v53 = vmul.u32 %v1941_v8, %v17399_v22  ;;  %v3518_v43 = vshll.u32 %v17699_v26, 30 }
 0x37c   : > { %v3091_v62 = vadd.f32 -0.16666654, %v3090_v32  ;;  %v17719_v37 = vmul.u32 %v1919_v4, %v17689_v52  ;;  %v17724_v3 = vadd.s32 %v1924_v57, %v17705_v18  ;;  %v17727_v17 = vmul.u32 %v1941_v8, %v17689_v52 }
 0x37d   : > { %v3586_v1 = vand.u32 31, %v3584_v45  ;;  %v1830_v28 = vand.u32 2147483647, %v1829_v59  ;;  %v1832_v7 = vcvt.s32.f32 %v1825_v2  ;;  %v3077_v31 = vsel %vm2954_vm6, %v3076_v48, %v16948_v56  ;;  %v20032_v48 = vld [vmem:[#allocation97_spill] sm:$0xff] }
 0x37e   : > { %v3240_v10 = vmul.f32 %v3239_v9, %v17023_v63  ;;  %v11547_v54 = vadd.s32 4294967294, %v3368_v12  ;;  %v3579_v4 = vand.u32 8388607, %v19656_v25  ;;  %v3084_v60 = vadd.f32 -0.4999988, %v3083_v40 }
 0x37f   : > { %v17735_v27 = vsub.s32 32, %v3586_v1  ;;  %v17737_v46 = vsub.s32 %v3515_v50, %v3518_v43  ;;  %v17739_v51 = vshrl.u32 %v3584_v45, 5  ;;  %v3589_v39 = vshll.u32 %v19725_v30, %v3586_v1 }
 0x380   : > { %v3092_v15 = vmul.f32 %v3091_v62, %v17409_v42  ;;  %v3592_v63 = vshll.u32 %v19972_v5, %v3586_v1  ;;  %v3595_v38 = vshll.u32 %v19973_v11, %v3586_v1  ;;  %v3598_v8 = vshll.u32 %v19710_v19, %v3586_v1 }
 0x381   : > { %v3590_v56 = vshrl.u32 %v19972_v5, %v17735_v27  ;;  %v3593_v36 = vshrl.u32 %v19973_v11, %v17735_v27  ;;  %v3596_v50 = vshrl.u32 %v19710_v19, %v17735_v27  ;;  %v3599_v29 = vshrl.u32 %v19916_v34, %v17735_v27 }
 0x382   : > { %v20031_v58 = vmov 1326507024   ;;  %v17756_v32 = vmul.f32 %v1832_v7, %v1830_v28  ;;  %v3580_v2 = vor.u32 8388608, %v3579_v4  ;;  %v17763_v12 = vsel %vm16979_vm8, 0, %v20032_v48  ;;  %v20035_v48 = vld [vmem:[#allocation51_spill] sm:$0xff] }
 0x383   : > { %v3602_v47 = vshrl.u32 %v20031_v58, %v17735_v27  ;;  %v17758_v59 = vor.u32 %v3590_v56, %v3589_v39  ;;  %v17765_v45 = vor.u32 %v3593_v36, %v3592_v63  ;;  %v17767_v40 = vor.u32 %v3596_v50, %v3595_v38 }
 0x384   : > { %v3600_v43 = vor.u32 %v3599_v29, %v3598_v8  ;;  %v3601_v62 = vshll.u32 %v19916_v34, %v3586_v1  ;;  %vm11548_vm6 = vcmp.lt.s32.totalorder %v11547_v54, 0  ;;  %v17772_v28 = vsel %vm17380_vm15, 0, %v3077_v31  ;;  %v20039_v34 = vld [vmem:[#allocation78_spill] sm:$0xff] }
 0x385   : > { %v3085_v7 = vmul.f32 %v3084_v60, %v17409_v42  ;;  %v17775_v4 = vadd.f32 1.0, %v3240_v10  ;;  %v3521_v39 = vsub.s32 0, %v17737_v46  ;;  %vm3604_vm8 = vcmp.lt.s32.totalorder %v17739_v51, 1 }
 0x386   : > { %v3603_v56 = vor.u32 %v3602_v47, %v3601_v62  ;;  %v3093_v63 = vadd.f32 1.0, %v3092_v15  ;;  %vm3520_vm4 = vcmp.lt.s32.totalorder %v17737_v46, 0  ;;  %vm3607_vm7 = vcmp.lt.s32.totalorder %v17739_v51, 4 }
 0x387   : > { %v3612_v25 = vsel %vm3604_vm8, %v17758_v59, %v17765_v45  ;;  %v17785_v1 = vshll.u32 %v3580_v2, 8  ;;  %vm3606_vm15 = vcmp.lt.s32.totalorder %v17739_v51, 3  ;;  %v3613_v42 = vsel %vm3607_vm7, %v3600_v43, 920167782 }
 0x388   : > { %v3616_v31 = vsel %vm3604_vm8, %v17765_v45, %v17767_v40  ;;  %v3617_v10 = vsel %vm3607_vm7, %v3603_v56, 1326507024  ;;  %v17797_v60 = vsel %vm11548_vm6, 0, %v11547_v54  ;;  %vm3605_vm14 = vcmp.lt.s32.totalorder %v17739_v51, 2 }
 0x389   : > { %v3614_v15 = vsel %vm3606_vm15, %v17767_v40, %v3613_v42  ;;  %v17803_v38 = vadd.f32 1.0, %v3085_v7  ;;  %v3522_v8 = vsel %vm3520_vm4, %v3521_v39, %v17737_v46  ;;  %v3618_v50 = vsel %vm3606_vm15, %v3600_v43, %v3617_v10  ;;  %v20036_v10 = vld [vmem:[#allocation63_spill] sm:$0xff] }
 0x38a   : > { %v3615_v36 = vsel %vm3605_vm14, %v3612_v25, %v3614_v15  ;;  %v17811_v29 = vand.u32 3, %v17772_v28  ;;  %v3619_v54 = vsel %vm3605_vm14, %v3616_v31, %v3618_v50  ;;  %v3621_v47 = vand.u32 65535, %v17785_v1 }
 0x38b   : > { %v3622_v2 = vshrl.u32 %v17785_v1, 16  ;;  %v17818_v9 = vmul.f32 %v3093_v63, %v20035_v48  ;;  %v3623_v62 = vand.u32 65535, %v3619_v54  ;;  %v3624_v7 = vshrl.u32 %v3619_v54, 16 }
 0x38c   : > { %v3645_v39 = vand.u32 65535, %v3615_v36  ;;  %v3646_v56 = vshrl.u32 %v3615_v36, 16  ;;  %v3523_v42 = vclz %v3522_v8  ;;  %v17825_v20 = vand.u32 3, %v17763_v12 }
 0x38d   : > { %v3626_v41 = vmul.u32 %v3624_v7, %v3621_v47  ;;  %v3627_v31 = vmul.u32 %v3623_v62, %v3622_v2  ;;  %v3625_v24 = vmul.u32 %v3623_v62, %v3621_v47  ;;  %vm5576_vm2 = vcmp.eq.s32.totalorder %v17811_v29, 0 }
 0x38e   : > { %v3648_v63 = vmul.u32 %v3646_v56, %v3621_v47  ;;  %v3649_v48 = vmul.u32 %v3645_v39, %v3622_v2  ;;  %vm5579_vm0 = vcmp.eq.s32.totalorder %v17811_v29, 2  ;;  %vm17834_vm13 = vc.u32 %v17705_v18, %v1924_v57 }
 0x38f   : > { %v3629_v25 = vshll.u32 %v3626_v41, 16  ;;  %v11550_v43 = vadd.s32 4294967294, %v3523_v42  ;;  %v3628_v50 = vmul.u32 %v3624_v7, %v3622_v2  ;;  %v3647_v15 = vmul.u32 %v3645_v39, %v3621_v47  ;;  %v20040_v42 = vld [vmem:[#allocation88_spill] sm:$0xff] }
 0x390   : > { %v3651_v26 = vshll.u32 %v3648_v63, 16  ;;  %v3631_v54 = vshll.u32 %v3627_v31, 16  ;;  %v3650_v62 = vmul.u32 %v3646_v56, %v3622_v2  ;;  %vm5575_vm9 = vcmp.lt.s32.totalorder %v17811_v29, 2 }
 0x391   : > { %vm3633_vm10 = vc.u32 %v3625_v24, %v3629_v25  ;;  %v3635_v36 = vadd.s32 %v3629_v25, %v3625_v24  ;;  %v3653_v21 = vshll.u32 %v3649_v48, 16  ;;  %vm1714_vm1 = vcmp.lt.s32.totalorder %v20039_v34, 0 }
 0x392   : > { %v3634_v16 = vsel %vm3633_vm10, 1, %v19987_v23  ;;  %vm3655_vm3 = vc.u32 %v3647_v15, %v3651_v26  ;;  %v3657_v58 = vadd.s32 %v3651_v26, %v3647_v15  ;;  %v3588_v18 = vshrl.u32 %v19725_v30, %v17735_v27 }
 0x393   : > { %v3636_v57 = vadd.s32 %v3634_v16, %v3628_v50  ;;  %vm3637_vm12 = vc.u32 %v3635_v36, %v3631_v54  ;;  %v3656_v47 = vsel %vm3655_vm3, 1, %v19987_v23  ;;  %v3609_v24 = vsel %vm3607_vm7, %v17767_v40, 2102212464 }
 0x394   : > { %v3638_v2 = vsel %vm3637_vm12, 1, %v19987_v23  ;;  %v3658_v7 = vadd.s32 %v3656_v47, %v3650_v62  ;;  %vm3659_vm5 = vc.u32 %v3657_v58, %v3653_v21  ;;  %v3630_v39 = vshrl.u32 %v3626_v41, 16 }
 0x395   : > { %v3640_v56 = vadd.s32 %v3638_v2, %v3636_v57  ;;  %v3660_v26 = vsel %vm3659_vm5, 1, %v19987_v23  ;;  %vm5729_vm6 = vcmp.lt.s32.totalorder %v17825_v20, 2  ;;  %v3608_v16 = vsel %vm3604_vm8, %v3588_v18, %v17758_v59 }
 0x396   : > { %v3652_v27 = vshrl.u32 %v3648_v63, 16  ;;  %v3662_v25 = vadd.s32 %v3660_v26, %v3658_v7  ;;  %vm3250_vm4 = vweird.f32 %v20040_v42  ;;  %vm5730_vm7 = vcmp.eq.s32.totalorder %v17825_v20, 0 }
 0x397   : > { %v3610_v40 = vsel %vm3606_vm15, %v17765_v45, %v3609_v24  ;;  %v3632_v41 = vshrl.u32 %v3627_v31, 16  ;;  %v3641_v15 = vadd.s32 %v3640_v56, %v3630_v39  ;;  %v20041_v50 = vxor.u32 2147483648, %v17818_v9 }
 0x398   : > { %vm11551_vm10 = vcmp.lt.s32.totalorder %v11550_v43, 0  ;;  %v3654_v59 = vshrl.u32 %v3649_v48, 16  ;;  %v3663_v63 = vadd.s32 %v3662_v25, %v3652_v27  ;;  %v20042_v36 = vxor.u32 2147483648, %v17803_v38 }
 0x399   : > { %v5578_v54 = vsel %vm5576_vm2, %v17803_v38, %v20041_v50  ;;  %v17868_v18 = vadd.s32 %v3641_v15, %v3632_v41  ;;  %v17870_v45 = vadd.s32 %v3657_v58, %v3653_v21  ;;  %v20043_v31 = vxor.u32 2147483648, %v20036_v10 }
 0x39a   : > { %v5581_v62 = vsel %vm5579_vm0, %v20042_v36, %v17818_v9  ;;  %v20044_v47 = vand.u32 65535, %v17642_v35  ;;  %v3611_v48 = vsel %vm3605_vm14, %v3608_v16, %v3610_v40  ;;  %v3664_v2 = vadd.s32 %v3663_v63, %v3654_v59 }
 0x39b   : > { %v5732_v57 = vsel %vm5730_vm7, %v17775_v4, %v20043_v31  ;;  %v5582_v7 = vsel %vm5575_vm9, %v5578_v54, %v5581_v62  ;;  %vm5733_vm8 = vcmp.eq.s32.totalorder %v17825_v20, 2  ;;  %v17885_v21 = vsel %vm11551_vm10, 0, %v11550_v43 }
 0x39c   : > { %v17878_v24 = vmul.u32 %v20044_v47, %v17689_v52  ;;  %vm3667_vm15 = vc.u32 %v17868_v18, %v17870_v45  ;;  %v20045_v58 = vxor.u32 2147483648, %v17775_v4  ;;  %v1929_v51 = vsel %vm17834_vm13, 1, %v19987_v23 }
 0x39d   : > { %v20046_v39 = vxor.u32 2147483648, %v17756_v32  ;;  %v3668_v43 = vadd.s32 1, %v3664_v2  ;;  %vm3095_vm14 = vweird.f32 %v20030_v13  ;;  %v3665_v26 = vmul.u32 %v17785_v1, %v3611_v48  ;;  %v20051_v48 = vld [vmem:[#allocation70_spill] sm:$0xff] }
 0x39e   : > { %v5735_v35 = vsel %vm5733_vm8, %v20045_v58, %v20036_v10  ;;  %v5583_v16 = vsel %vm3095_vm14, nan, %v5582_v7  ;;  %v3096_v8 = vadd.s32 3, %v17772_v28  ;;  %v1926_v27 = vshll.u32 %v17878_v24, 16  ;;  %v20052_v58 = vld [vmem:[#allocation87_spill] sm:$0xff] }
 0x39f   : > { %v17900_v29 = vsel %vm1714_vm1, %v20046_v39, %v17756_v32  ;;  %v5736_v56 = vsel %vm5729_vm6, %v5732_v57, %v5735_v35  ;;  %v20047_v25 = vsub.s32 4294967266, %v17797_v60  ;;  %v3531_v32 = vsub.s32 4294967266, %v17885_v21 }
 0x3a0   : > { %v3669_v41 = vsel %vm3667_vm15, %v3668_v43, %v3664_v2  ;;  %v1931_v15 = vadd.s32 %v1929_v51, %v17719_v37  ;;  %v5737_v1 = vsel %vm3250_vm4, nan, %v5736_v56  ;;  %vm1932_vm2 = vc.u32 %v17724_v3, %v1926_v27  ;;  %v20050_v3 = vld [vmem:[#allocation99_spill] sm:$0xff]  ;;  %v20053_v51 = vld [vmem:[#allocation48_spill] sm:$0xff] }
 0x3a1   : > { %v17912_v40 = vadd.s32 127, %v20047_v25  ;;  %v3670_v20 = vadd.s32 %v3669_v41, %v3665_v26  ;;  %v1946_v50 = vshll.u32 %v17713_v53, 16  ;;  %v17920_v28 = vpack.c.bf16 %v5737_v1, %v5583_v16 }
 0x3a2   : > { %v3251_v54 = vadd.s32 3, %v17763_v12  ;;  %v1933_v59 = vsel %vm1932_vm2, 1, %v19987_v23  ;;  %v20048_v63 = vand.u32 65535, %v17677_v49  ;;  %v3097_v37 = vand.u32 3, %v3096_v8  ;;  %v13725_v12 = vld [vmem:[%s19695_s18 + $0x1] ss:$0 sm:$0xff] }
 0x3a3   : > { %v3671_v62 = vadd.s32 536870912, %v3670_v20  ;;  %v1935_v31 = vadd.s32 %v1933_v59, %v1931_v15  ;;  %v3356_v2 = vadd.s32 %v20051_v48, %v20050_v3  ;;  %v3372_v7 = vsub.s32 32, %v17797_v60  ;;  %6507 = vmatmul.bf16.gmra.mxu3 %v17920_v28  ;;  %6556 = vmatmul.bf16.gmra.mxu1 %v17920_v28 }
 0x3a4   : > { %v1944_v36 = vmul.u32 %v20048_v63, %v17689_v52  ;;  %v20049_v57 = vmov %v20048_v63  ;;  %v993_v35 = vmul.f32 %v13725_v12, %v20052_v58  ;;  %v13726_v52 = vld [vmem:[%s19695_s18] ss:$0 sm:$0xff]  ;;  %v1925_v49 = vshrl.u32 %v17685_v44, 16 }
 0x3a5   : > { %v1942_v47 = vmul.u32 %v20049_v57, %v17399_v22  ;;  %v911_v39 = vmul.f32 %v13726_v52, %v20053_v51  ;;  %v17943_v22 = vshrl.u32 %v3671_v62, 30  ;;  %v20054_v56 = vand.u32 2147483647, %v20039_v34 }
 0x3a6   : > { %v3378_v16 = vshll.u32 %v17912_v40, 23  ;;  %v3252_v8 = vand.u32 3, %v3251_v54  ;;  %v1948_v27 = vshll.u32 %v1944_v36, 16  ;;  %v3532_v41 = vadd.s32 127, %v3531_v32 }
 0x3a7   : > { %vm1950_vm0 = vc.u32 %v1942_v47, %v1946_v50  ;;  %v1952_v43 = vadd.s32 %v1946_v50, %v1942_v47  ;;  %vm17948_vm13 = vcmp.le.f32.partialorder %v20054_v56, 0.7853982  ;;  %v3673_v15 = vshll.u32 %v17943_v22, 30 }
 0x3a8   : > { %v1951_v25 = vsel %vm1950_vm0, 1, %v19987_v23  ;;  %vm3098_vm9 = vcmp.lt.s32.totalorder %v3097_v37, 2  ;;  %v1936_v1 = vadd.s32 %v1935_v31, %v1925_v49  ;;  %vm3099_vm3 = vcmp.eq.s32.totalorder %v3097_v37, 0 }
 0x3a9   : > { %vm3102_vm12 = vcmp.eq.s32.totalorder %v3097_v37, 2  ;;  %v1953_v44 = vadd.s32 %v1951_v25, %v17727_v17  ;;  %vm1954_vm5 = vc.u32 %v1952_v43, %v1948_v27  ;;  %v17956_v50 = vsub.s32 %v3670_v20, %v3673_v15 }
 0x3aa   : > { %v20057_v59 = vxor.u32 2147483648, %v17818_v9  ;;  %v1927_v54 = vshrl.u32 %v17878_v24, 16  ;;  %v1955_v63 = vsel %vm1954_vm5, 1, %v19987_v23  ;;  %v20058_v32 = vxor.u32 2147483648, %v17803_v38 }
 0x3ab   : > { %vm3254_vm6 = vcmp.eq.s32.totalorder %v3252_v8, 0  ;;  %v1947_v31 = vshrl.u32 %v17713_v53, 16  ;;  %v1957_v57 = vadd.s32 %v1955_v63, %v1953_v44  ;;  %vm3675_vm7 = vcmp.lt.s32.totalorder %v17956_v50, 0 }
 0x3ac   : > { %v3101_v40 = vsel %vm3099_vm3, %v17803_v38, %v20057_v59  ;;  %v3104_v62 = vsel %vm3102_vm12, %v20058_v32, %v17818_v9  ;;  %v3676_v17 = vsub.s32 0, %v17956_v50  ;;  %v20059_v20 = vxor.u32 2147483648, %v20036_v10 }
 0x3ad   : > { %v17972_v3 = vadd.s32 %v1936_v1, %v1927_v54  ;;  %v3105_v24 = vsel %vm3098_vm9, %v3101_v40, %v3104_v62  ;;  %vm3257_vm10 = vcmp.eq.s32.totalorder %v3252_v8, 2  ;;  %v1949_v48 = vshrl.u32 %v1944_v36, 16  ;;  %v13728_v40 = vld [vmem:[%s19695_s18 + $0x3] ss:$0 sm:$0xff]  ;;  %v13729_v62 = vld [vmem:[%s19695_s18 + $0x4] ss:$0 sm:$0xff] }
 0x3ae   : > { %v3256_v47 = vsel %vm3254_vm6, %v17775_v4, %v20059_v20  ;;  %v1958_v38 = vadd.s32 %v1957_v57, %v1947_v31  ;;  %v3374_v9 = vshrl.u32 %v3356_v2, %v3372_v7  ;;  %vm3253_vm8 = vcmp.lt.s32.totalorder %v3252_v8, 2  ;;  %v20061_v8 = vld [vmem:[#allocation69_spill] sm:$0xff] }
 0x3af   : > { %v20060_v53 = vxor.u32 2147483648, %v17775_v4  ;;  %v17978_v58 = vadd.s32 %v1952_v43, %v1948_v27  ;;  %v3527_v52 = vsub.s32 32, %v17885_v21  ;;  %v3677_v51 = vsel %vm3675_vm7, %v3676_v17, %v17956_v50 }
 0x3b0   : > { %v1959_v56 = vadd.s32 %v1958_v38, %v1949_v48  ;;  %v17986_v36 = vsel %vm17948_vm13, %v20039_v34, %v17900_v29  ;;  %v3373_v37 = vshll.u32 %v17661_v0, %v17797_v60  ;;  %v3106_v4 = vsel %vm3095_vm14, nan, %v3105_v24  ;;  %v13727_v29 = vld [vmem:[%s19695_s18 + $0x2] ss:$0 sm:$0xff]  ;;  %v13730_v38 = vld [vmem:[%s19695_s18 + $0x5] ss:$0 sm:$0xff] }
 0x3b1   : > { %v3259_v12 = vsel %vm3257_vm10, %v20060_v53, %v20036_v10  ;;  %vm1962_vm15 = vc.u32 %v17972_v3, %v17978_v58  ;;  %v3379_v10 = vor.u32 4788187, %v3378_v16  ;;  %v3511_v2 = vadd.s32 %v17634_v14, %v17631_v61  ;;  %v1269_v16 = vpop.permute.xlu1 %1268 }
 0x3b2   : > { %v3260_v49 = vsel %vm3253_vm8, %v3256_v47, %v3259_v12  ;;  %v3533_v7 = vshll.u32 %v3532_v41, 23  ;;  %v1963_v43 = vadd.s32 1, %v1959_v56  ;;  %v1091_v27 = vmul.f32 %v13727_v29, %v20061_v8 }
 0x3b3   : > { %v1009_v25 = vadd.f32 %v993_v35, %v911_v39  ;;  %v3678_v0 = vclz %v3677_v51  ;;  %v3261_v13 = vsel %vm3250_vm4, nan, %v3260_v49  ;;  %v3375_v60 = vor.u32 %v3374_v9, %v3373_v37 }
 0x3b4   : > { %v3529_v15 = vshrl.u32 %v3511_v2, %v3527_v52  ;;  %v18002_v1 = vpack.c.bf16 %v3261_v13, %v3106_v4  ;;  %v1964_v44 = vsel %vm1962_vm15, %v1963_v43, %v1959_v56  ;;  %v20062_v61 = vmul.u32 %v17363_v6, %v17694_v55  ;;  %v20063_v4 = vld [vmem:[#allocation98_spill] sm:$0xff] }
 0x3b5   : > { %v18009_v41 = vmul.f32 %v17986_v36, %v17986_v36  ;;  %v3380_v59 = vand.u32 2147483647, %v3379_v10  ;;  %v3528_v35 = vshll.u32 %v17737_v46, %v17885_v21  ;;  %v3534_v42 = vor.u32 4788187, %v3533_v7 }
 0x3b6   : > { %v1965_v14 = vadd.s32 %v1964_v44, %v20062_v61  ;;  %6685 = vmatmul.bf16.gmra.mxu2 %v18002_v1  ;;  %v1107_v39 = vadd.f32 %v1091_v27, %v1009_v25  ;;  %v1189_v54 = vmul.f32 %v13728_v40, %v17602_v33  ;;  %v11553_v6 = vadd.s32 4294967294, %v3678_v0  ;;  %v20067_v44 = vld [vmem:[#allocation66_spill] sm:$0xff] }
 0x3b7   : > { %v3382_v63 = vcvt.s32.f32 %v3375_v60  ;;  %v3530_v32 = vor.u32 %v3529_v15, %v3528_v35  ;;  %v1287_v31 = vmul.f32 %v13729_v62, %v1269_v16  ;;  %v3535_v57 = vand.u32 2147483647, %v3534_v42 }
 0x3b8   : > { %v1966_v55 = vadd.s32 536870912, %v1965_v14  ;;  %v1848_v17 = vmul.f32 -0.00019511016, %v18009_v41  ;;  %v1205_v20 = vadd.f32 %v1189_v54, %v1107_v39  ;;  %vm11554_vm4 = vcmp.lt.s32.totalorder %v11553_v6, 0 }
 0x3b9   : > { %v3383_v21 = vmul.f32 %v3382_v63, %v3380_v59  ;;  %v3537_v33 = vcvt.s32.f32 %v3530_v32  ;;  %v1367_v24 = vpop.permute.xlu1 %1366  ;;  %v18030_v51 = vsel %vm11554_vm4, 0, %v11553_v6  ;;  %vm3264_vm2 = vcmp.lt.s32.totalorder %v20063_v4, 0 }
 0x3ba   : > { %v18021_v46 = vshrl.u32 %v1966_v55, 30  ;;  %v1303_v48 = vadd.f32 %v1287_v31, %v1205_v20  ;;  %v1385_v9 = vmul.f32 %v13730_v38, %v1367_v24  ;;  %v1849_v49 = vadd.f32 0.008332121, %v1848_v17 }
 0x3bb   : > { %v3384_v12 = vxor.u32 2147483648, %v3383_v21  ;;  %v3538_v52 = vmul.f32 %v3537_v33, %v3535_v57  ;;  %v3686_v10 = vsub.s32 4294967266, %v18030_v51  ;;  %v20064_v13 = vand.u32 2147483647, %v20063_v4  ;;  %v20071_v57 = vld [vmem:[#allocation81_spill] sm:$0xff] }
 0x3bc   : > { %v1968_v47 = vshll.u32 %v18021_v46, 30  ;;  %v18032_v56 = vadd.f32 %v1385_v9, %v1303_v48  ;;  %v1850_v25 = vmul.f32 %v1849_v49, %v18009_v41  ;;  %vm3419_vm9 = vcmp.lt.s32.totalorder %v20067_v44, 0 }
 0x3bd   : > { %v3385_v43 = vsel %vm3264_vm2, %v3384_v12, %v3383_v21  ;;  %v3539_v29 = vxor.u32 2147483648, %v3538_v52  ;;  %vm18046_vm0 = vcmp.le.f32.partialorder %v20064_v13, 0.7853982  ;;  %v3687_v61 = vadd.s32 127, %v3686_v10 }
 0x3be   : > { %v18028_v53 = vsub.s32 %v1965_v14, %v1968_v47  ;;  %v3730_v2 = vand.u32 2139095040, %v18032_v56  ;;  %v3727_v8 = vand.u32 2147483647, %v18032_v56  ;;  %v18053_v16 = vsel %vm18046_vm0, %v20063_v4, %v3385_v43 }
 0x3bf   : > { %v3540_v59 = vsel %vm3419_vm9, %v3539_v29, %v3538_v52  ;;  %v1851_v42 = vadd.f32 -0.16666654, %v1850_v25  ;;  %v18062_v40 = vmul.f32 %v18053_v16, %v18053_v16  ;;  %v20068_v54 = vand.u32 2147483647, %v20067_v44 }
 0x3c0   : > { %vm1970_vm14 = vcmp.lt.s32.totalorder %v18028_v53, 0  ;;  %v1971_v37 = vsub.s32 0, %v18028_v53  ;;  %v3731_v0 = vshrl.u32 %v3730_v2, 23  ;;  %v3734_v35 = vand.u32 8388607, %v3727_v8 }
 0x3c1   : > { %vm18066_vm12 = vcmp.le.f32.partialorder %v20068_v54, 0.7853982  ;;  %v3682_v63 = vsub.s32 32, %v18030_v51  ;;  %v3688_v32 = vshll.u32 %v3687_v61, 23  ;;  %v1836_v17 = vsub.s32 4, %v20071_v57 }
 0x3c2   : > { %v1972_v7 = vsel %vm1970_vm14, %v1971_v37, %v18028_v53  ;;  %v11555_v14 = vadd.s32 4294967169, %v3731_v0  ;;  %v18073_v55 = vsel %vm18066_vm12, %v20067_v44, %v3540_v59  ;;  %v3735_v62 = vor.u32 8388608, %v3734_v35 }
 0x3c3   : > { %v1973_v27 = vclz %v1972_v7  ;;  %v18080_v20 = vmul.f32 %v1851_v42, %v18009_v41  ;;  %v3666_v47 = vadd.s32 %v17870_v45, %v17868_v18  ;;  %v3398_v24 = vmul.f32 -0.00019511016, %v18062_v40 }
 0x3c4   : > { %v3737_v39 = vadd.s32 1, %v11555_v14  ;;  %v18087_v48 = vmul.f32 %v18073_v55, %v18073_v55  ;;  %v3683_v38 = vshll.u32 %v17956_v50, %v18030_v51  ;;  %v1961_v9 = vadd.s32 %v17978_v58, %v17972_v3 }
 0x3c5   : > { %v11520_v15 = vadd.s32 4294967294, %v1973_v27  ;;  %v3684_v12 = vshrl.u32 %v3666_v47, %v3682_v63  ;;  %v18093_v52 = vor.u32 4788187, %v3688_v32  ;;  %v18100_v2 = vshll.u32 %v3735_v62, 8 }
 0x3c6   : > { %vm3738_vm5 = vcmp.gt.s32.totalorder %v3737_v39, 0  ;;  %v20072_v43 = vmov 920167782   ;;  %v20073_v25 = vmov 1326507024  }
 0x3c7   : > { %vm11521_vm3 = vcmp.lt.s32.totalorder %v11520_v15, 0  ;;  %v3739_v31 = vsel %vm3738_vm5, %v3737_v39, 0  ;;  %v3776_v42 = vand.u32 65535, %v18100_v2  ;;  %v3777_v63 = vshrl.u32 %v18100_v2, 16 }
 0x3c8   : > { %v18076_v21 = vsel %vm11521_vm3, 0, %v11520_v15  ;;  %v3741_v33 = vand.u32 31, %v3739_v31  ;;  %v18096_v18 = vshrl.u32 %v3739_v31, 5 }
 0x3c9   : > { %v1981_v37 = vsub.s32 4294967266, %v18076_v21 }
 0x3ca   : > { %v3742_v49 = vsub.s32 32, %v3741_v33  ;;  %v3744_v45 = vshll.u32 %v19725_v30, %v3741_v33  ;;  %v3747_v10 = vshll.u32 %v19972_v5, %v3741_v33  ;;  %v3750_v3 = vshll.u32 %v19973_v11, %v3741_v33 }
 0x3cb   : > { %v3753_v51 = vshll.u32 %v19710_v19, %v3741_v33  ;;  %v3756_v27 = vshll.u32 %v20072_v43, %v3741_v33  ;;  %vm3759_vm6 = vcmp.lt.s32.totalorder %v18096_v18, 1  ;;  %vm3762_vm7 = vcmp.lt.s32.totalorder %v18096_v18, 4 }
 0x3cc   : > { %v3745_v7 = vshrl.u32 %v19972_v5, %v3742_v49  ;;  %v3748_v50 = vshrl.u32 %v19973_v11, %v3742_v49  ;;  %v3751_v58 = vshrl.u32 %v19710_v19, %v3742_v49  ;;  %v3754_v29 = vshrl.u32 %v20072_v43, %v3742_v49 }
 0x3cd   : > { %v3757_v0 = vshrl.u32 %v20073_v25, %v3742_v49  ;;  %v1982_v5 = vadd.s32 127, %v1981_v37  ;;  %v1977_v11 = vsub.s32 32, %v18076_v21  ;;  %vm3761_vm10 = vcmp.lt.s32.totalorder %v18096_v18, 3 }
 0x3ce   : > { %v18110_v13 = vor.u32 %v3745_v7, %v3744_v45  ;;  %v18112_v15 = vor.u32 %v3748_v50, %v3747_v10  ;;  %v3752_v61 = vor.u32 %v3751_v58, %v3750_v3  ;;  %v3755_v14 = vor.u32 %v3754_v29, %v3753_v51 }
 0x3cf   : > { %v3758_v59 = vor.u32 %v3757_v0, %v3756_v27  ;;  %vm3760_vm8 = vcmp.lt.s32.totalorder %v18096_v18, 2  ;;  %v1983_v31 = vshll.u32 %v1982_v5, 23  ;;  %v1841_v37 = vmul.f32 -0.001358992, %v18009_v41 }
 0x3d0   : > { %v3767_v19 = vsel %vm3759_vm6, %v18110_v13, %v18112_v15  ;;  %v3771_v35 = vsel %vm3759_vm6, %v18112_v15, %v3752_v61  ;;  %v3768_v39 = vsel %vm3762_vm7, %v3755_v14, 920167782  ;;  %v1979_v45 = vshrl.u32 %v1961_v9, %v1977_v11 }
 0x3d1   : > { %v3772_v54 = vsel %vm3762_vm7, %v3758_v59, 1326507024  ;;  %v3769_v32 = vsel %vm3761_vm10, %v3752_v61, %v3768_v39  ;;  %v18141_v58 = vadd.f32 0.008332121, %v3398_v24  ;;  %v3553_v51 = vmul.f32 -0.00019511016, %v18087_v48 }
 0x3d2   : > { %v3773_v62 = vsel %vm3761_vm10, %v3755_v14, %v3772_v54  ;;  %v3770_v47 = vsel %vm3760_vm8, %v3767_v19, %v3769_v32  ;;  %v3685_v43 = vor.u32 %v3684_v12, %v3683_v38  ;;  %v1978_v29 = vshll.u32 %v18028_v53, %v18076_v21  ;;  %v20074_v38 = vld [vmem:[#allocation94_spill] sm:$0xff] }
 0x3d3   : > { %v3774_v33 = vsel %vm3760_vm8, %v3771_v35, %v3773_v62  ;;  %v3800_v50 = vand.u32 65535, %v3770_v47  ;;  %v3801_v3 = vshrl.u32 %v3770_v47, 16  ;;  %v3690_v27 = vand.u32 2147483647, %v18093_v52 }
 0x3d4   : > { %v3778_v10 = vand.u32 65535, %v3774_v33  ;;  %v3779_v7 = vshrl.u32 %v3774_v33, 16  ;;  %v1984_v5 = vor.u32 4788187, %v1983_v31  ;;  %v1842_v9 = vadd.f32 0.041655596, %v1841_v37 }
 0x3d5   : > { %v3803_v14 = vmul.u32 %v3801_v3, %v3776_v42  ;;  %v3804_v59 = vmul.u32 %v3800_v50, %v3777_v63  ;;  %v1980_v11 = vor.u32 %v1979_v45, %v1978_v29  ;;  %v3743_v19 = vshrl.u32 %v19725_v30, %v3742_v49 }
 0x3d6   : > { %v3781_v25 = vmul.u32 %v3779_v7, %v3776_v42  ;;  %v3782_v0 = vmul.u32 %v3778_v10, %v3777_v63  ;;  %v3764_v24 = vsel %vm3762_vm7, %v3752_v61, 2102212464  ;;  %v3780_v35 = vmul.u32 %v3778_v10, %v3776_v42 }
 0x3d7   : > { %vm1869_vm15 = vcmp.lt.s32.totalorder %v20074_v38, 0  ;;  %v3783_v12 = vmul.u32 %v3779_v7, %v3777_v63  ;;  %v3802_v53 = vmul.u32 %v3800_v50, %v3776_v42  ;;  %v3805_v21 = vmul.u32 %v3801_v3, %v3777_v63 }
 0x3d8   : > { %v3784_v39 = vshll.u32 %v3781_v25, 16  ;;  %v3806_v52 = vshll.u32 %v3803_v14, 16  ;;  %v3786_v54 = vshll.u32 %v3782_v0, 16  ;;  %v1985_v62 = vand.u32 2147483647, %v1984_v5 }
 0x3d9   : > { %v3808_v47 = vshll.u32 %v3804_v59, 16  ;;  %v1987_v33 = vcvt.s32.f32 %v1980_v11  ;;  %v1843_v42 = vmul.f32 %v1842_v9, %v18009_v41  ;;  %v3785_v63 = vshrl.u32 %v3781_v25, 16 }
 0x3da   : > { %vm3788_vm4 = vc.u32 %v3780_v35, %v3784_v39  ;;  %v3790_v32 = vadd.s32 %v3784_v39, %v3780_v35  ;;  %vm3810_vm14 = vc.u32 %v3802_v53, %v3806_v52  ;;  %v3812_v30 = vadd.s32 %v3806_v52, %v3802_v53 }
 0x3db   : > { %v3789_v31 = vsel %vm3788_vm4, 1, %v19987_v23  ;;  %v3811_v61 = vsel %vm3810_vm14, 1, %v19987_v23  ;;  %v1988_v50 = vmul.f32 %v1987_v33, %v1985_v62  ;;  %v3692_v3 = vcvt.s32.f32 %v3685_v43 }
 0x3dc   : > { %v3791_v49 = vadd.s32 %v3789_v31, %v3783_v12  ;;  %vm3792_vm3 = vc.u32 %v3790_v32, %v3786_v54  ;;  %v3813_v45 = vadd.s32 %v3811_v61, %v3805_v21  ;;  %vm3814_vm5 = vc.u32 %v3812_v30, %v3808_v47 }
 0x3dd   : > { %v3793_v37 = vsel %vm3792_vm3, 1, %v19987_v23  ;;  %v3815_v7 = vsel %vm3814_vm5, 1, %v19987_v23  ;;  %v3763_v29 = vsel %vm3759_vm6, %v3743_v19, %v18110_v13  ;;  %v3807_v5 = vshrl.u32 %v3803_v14, 16 }
 0x3de   : > { %v3795_v10 = vadd.s32 %v3793_v37, %v3791_v49  ;;  %v3817_v35 = vadd.s32 %v3815_v7, %v3813_v45  ;;  %v3765_v11 = vsel %vm3761_vm10, %v18112_v15, %v3764_v24  ;;  %v3787_v39 = vshrl.u32 %v3782_v0, 16 }
 0x3df   : > { %v1989_v53 = vxor.u32 2147483648, %v1988_v50  ;;  %v3693_v9 = vmul.f32 %v3692_v3, %v3690_v27  ;;  %v3809_v25 = vshrl.u32 %v3804_v59, 16  ;;  %v1844_v52 = vadd.f32 -0.4999988, %v1843_v42 }
 0x3e0   : > { %v3796_v12 = vadd.s32 %v3795_v10, %v3785_v63  ;;  %v3818_v21 = vadd.s32 %v3817_v35, %v3807_v5  ;;  %v18164_v43 = vadd.s32 %v3812_v30, %v3808_v47  ;;  %v20075_v54 = vand.u32 2147483647, %v20074_v38  ;;  %v12987_v5 = vld [vmem:[#allocation2 + $0x4] sm:$0xf] }
 0x3e1   : > { %v1990_v15 = vsel %vm1869_vm15, %v1989_v53, %v1988_v50  ;;  %v3554_v0 = vadd.f32 0.008332121, %v3553_v51  ;;  %v3766_v27 = vsel %vm3760_vm8, %v3763_v29, %v3765_v11  ;;  %v1837_v19 = vsel %vm1714_vm1, %v1836_v17, %v20071_v57  ;;  %v20078_v17 = vld [vmem:[#allocation44_spill] sm:$0xff]  ;;  %v20082_v53 = vld [vmem:[#allocation42_spill] sm:$0xff] }
 0x3e2   : > { %v18162_v23 = vadd.s32 %v3796_v12, %v3787_v39  ;;  %vm18168_vm6 = vcmp.le.f32.partialorder %v20075_v54, 0.7853982  ;;  %v3819_v14 = vadd.s32 %v3818_v21, %v3809_v25  ;;  %v1991_v24 = vsub.s32 4, %v18021_v46 }
 0x3e3   : > { %v1993_v59 = vsel %vm18168_vm6, %v20074_v38, %v1990_v15  ;;  %v1853_v18 = vadd.f32 1.0, %v18080_v20  ;;  %v3694_v32 = vxor.u32 2147483648, %v3693_v9  ;;  %v1845_v31 = vmul.f32 %v1844_v52, %v18009_v41 }
 0x3e4   : > { %vm3822_vm7 = vc.u32 %v18162_v23, %v18164_v43  ;;  %v1995_v51 = vmul.f32 %v1993_v59, %v1993_v59  ;;  %v3823_v62 = vadd.s32 1, %v3819_v14  ;;  %v3400_v47 = vmul.f32 %v18141_v58, %v18062_v40 }
 0x3e5   : > { %v3820_v30 = vmul.u32 %v18100_v2, %v3766_v27  ;;  %v3555_v57 = vmul.f32 %v3554_v0, %v18087_v48  ;;  %vm19666_vm1 = vcmp.lt.s32.totalorder %v20078_v17, 0  ;;  %v18196_v37 = vsel %vm17948_vm13, 0, %v1837_v19 }
 0x3e6   : > { %v1996_v49 = vmul.f32 -0.001358992, %v1995_v51  ;;  %v2003_v61 = vmul.f32 -0.00019511016, %v1995_v51  ;;  %v3824_v33 = vsel %vm3822_vm7, %v3823_v62, %v3819_v14  ;;  %v1992_v41 = vsel %vm1869_vm15, %v1991_v24, %v18021_v46 }
 0x3e7   : > { %v3825_v20 = vadd.s32 %v3824_v33, %v3820_v30  ;;  %v18202_v2 = vmul.f32 %v1853_v18, %v17986_v36  ;;  %v3695_v42 = vsel %vm19666_vm1, %v3694_v32, %v3693_v9  ;;  %v18206_v63 = vadd.f32 1.0, %v1845_v31 }
 0x3e8   : > { %v1997_v45 = vadd.f32 0.041655596, %v1996_v49  ;;  %v2004_v58 = vadd.f32 0.008332121, %v2003_v61  ;;  %v3401_v10 = vadd.f32 -0.16666654, %v3400_v47  ;;  %vm19667_vm14 = vweird.f32 %v20039_v34 }
 0x3e9   : > { %v3826_v7 = vadd.s32 536870912, %v3825_v20  ;;  %v3556_v3 = vadd.f32 -0.16666654, %v3555_v57  ;;  %v20079_v29 = vand.u32 2147483647, %v20078_v17  ;;  %v1994_v36 = vsel %vm18168_vm6, 0, %v1992_v41 }
 0x3ea   : > { %v1998_v26 = vmul.f32 %v1997_v45, %v1995_v51  ;;  %v2005_v50 = vmul.f32 %v2004_v58, %v1995_v51  ;;  %v4342_v46 = vand.u32 3, %v18196_v37  ;;  %v3386_v9 = vsub.s32 4, %v20082_v53  ;;  %v20083_v61 = vld [vmem:[#allocation68_spill] sm:$0xff] }
 0x3eb   : > { %vm18210_vm13 = vcmp.le.f32.partialorder %v20079_v29, 0.7853982  ;;  %v18222_v11 = vshrl.u32 %v3826_v7, 30  ;;  %v1860_v25 = vxor.u32 2147483648, %v18202_v2  ;;  %v1863_v21 = vxor.u32 2147483648, %v18206_v63 }
 0x3ec   : > { %v18220_v35 = vsel %vm18210_vm13, %v20078_v17, %v3695_v42  ;;  %v1999_v39 = vadd.f32 -0.4999988, %v1998_v26  ;;  %v2006_v12 = vadd.f32 -0.16666654, %v2005_v50  ;;  %v3402_v52 = vmul.f32 %v3401_v10, %v18062_v40 }
 0x3ed   : > { %v3828_v54 = vshll.u32 %v18222_v11, 30  ;;  %v3557_v0 = vmul.f32 %v3556_v3, %v18087_v48  ;;  %v18232_v27 = vmul.f32 %v18220_v35, %v18220_v35  ;;  %vm4344_vm10 = vcmp.eq.s32.totalorder %v4342_v46, 0 }
 0x3ee   : > { %v2000_v13 = vmul.f32 %v1999_v39, %v1995_v51  ;;  %v2007_v15 = vmul.f32 %v2006_v12, %v1995_v51  ;;  %v4496_v14 = vand.u32 3, %v1994_v36  ;;  %vm4347_vm8 = vcmp.eq.s32.totalorder %v4342_v46, 2 }
 0x3ef   : > { %v18234_v19 = vsub.s32 %v3825_v20, %v3828_v54  ;;  %vm4343_vm15 = vcmp.lt.s32.totalorder %v4342_v46, 2  ;;  %v4346_v32 = vsel %vm4344_vm10, %v18206_v63, %v1860_v25  ;;  %v4349_v51 = vsel %vm4347_vm8, %v1863_v21, %v18202_v2  ;;  %v11730_v54 = vld [vmem:[#allocation2 + $0x78] sm:$0xf0] }
 0x3f0   : > { %v18236_v24 = vadd.f32 1.0, %v2000_v13  ;;  %v2008_v18 = vadd.f32 1.0, %v2007_v15  ;;  %v2011_v62 = vadd.s32 3, %v1994_v36  ;;  %v3403_v49 = vadd.f32 1.0, %v3402_v52 }
 0x3f1   : > { %vm3830_vm4 = vcmp.lt.s32.totalorder %v18234_v19, 0  ;;  %v3831_v31 = vsub.s32 0, %v18234_v19  ;;  %v3541_v57 = vsub.s32 4, %v20083_v61  ;;  %v4350_v33 = vsel %vm4343_vm15, %v4346_v32, %v4349_v51 }
 0x3f2   : > { %v18246_v47 = vmul.f32 %v2008_v18, %v1993_v59  ;;  %v2018_v30 = vxor.u32 2147483648, %v18236_v24  ;;  %v3558_v20 = vadd.f32 1.0, %v3557_v0  ;;  %v3708_v41 = vmul.f32 -0.00019511016, %v18232_v27  ;;  %v11722_v18 = vld [vmem:[#allocation2 + $0x68] sm:$0xf0] }
 0x3f3   : > { %v3832_v45 = vsel %vm3830_vm4, %v3831_v31, %v18234_v19  ;;  %vm4497_vm3 = vcmp.lt.s32.totalorder %v4496_v14, 2  ;;  %vm4498_vm5 = vcmp.eq.s32.totalorder %v4496_v14, 0  ;;  %vm4501_vm6 = vcmp.eq.s32.totalorder %v4496_v14, 2  ;;  %v12999_v14 = vld [vmem:[#allocation2 + $0x64] sm:$0xf] }
 0x3f4   : > { %v2015_v58 = vxor.u32 2147483648, %v18246_v47  ;;  %v3833_v42 = vclz %v3832_v45  ;;  %v4351_v59 = vsel %vm19667_vm14, nan, %v4350_v33  ;;  %v4503_v7 = vsel %vm4501_vm6, %v2018_v30, %v18246_v47  ;;  %v12997_v31 = vld [vmem:[#allocation2 + $0x54] sm:$0xf] }
 0x3f5   : > { %v2012_v26 = vand.u32 3, %v2011_v62  ;;  %v3387_v50 = vsel %vm3264_vm2, %v3386_v9, %v20082_v53  ;;  %vm2010_vm7 = vweird.f32 %v20074_v38  ;;  %v18263_v36 = vmul.f32 %v3403_v49, %v18053_v16  ;;  %v13001_v9 = vld [vmem:[#allocation2 + $0x74] sm:$0xf] }
 0x3f6   : > { %v4500_v10 = vsel %vm4498_vm5, %v18236_v24, %v2015_v58  ;;  %v11556_v3 = vadd.s32 4294967294, %v3833_v42  ;;  %v3542_v46 = vsel %vm3419_vm9, %v3541_v57, %v20083_v61  ;;  %v18268_v39 = vadd.f32 0.008332121, %v3708_v41  ;;  %v11714_v57 = vld [vmem:[#allocation2 + $0x58] sm:$0xf0] }
 0x3f7   : > { %v4504_v29 = vsel %vm4497_vm3, %v4500_v10, %v4503_v7  ;;  %v18273_v52 = vmul.f32 %v3558_v20, %v18073_v55  ;;  %v1856_v16 = vadd.s32 3, %v18196_v37  ;;  %v3821_v13 = vadd.s32 %v18164_v43, %v18162_v23 }
 0x3f8   : > { %v4505_v12 = vsel %vm2010_vm7, nan, %v4504_v29  ;;  %vm11557_vm2 = vcmp.lt.s32.totalorder %v11556_v3, 0  ;;  %v11733_v0 = vor.u32 %v13001_v9, %v11730_v54  ;;  %vm2013_vm9 = vcmp.lt.s32.totalorder %v2012_v26, 2 }
 0x3f9   : > { %v18275_v53 = vpack.c.bf16 %v4505_v12, %v4351_v59  ;;  %v3836_v15 = vsel %vm11557_vm2, 0, %v11556_v3  ;;  %v3389_v55 = vsel %vm18046_vm0, 0, %v3387_v50  ;;  %vm2014_vm10 = vcmp.eq.s32.totalorder %v2012_v26, 0  ;;  %v12995_v3 = vld [vmem:[#allocation2 + $0x44] sm:$0xf] }
 0x3fa   : > { %v3837_v32 = vsub.s32 32, %v3836_v15  ;;  %v3841_v51 = vsub.s32 4294967266, %v3836_v15  ;;  %6701 = vmatpush.bf16.msrb.mxu3 %v11733_v0  ;;  %v11725_v62 = vor.u32 %v12999_v14, %v11722_v18  ;;  %v3391_v37 = vmul.f32 -0.001358992, %v18062_v40 }
 0x3fb   : > { %6487 = vmatmul.bf16.gmra.mxu0 %v18275_v53  ;;  %v3544_v23 = vsel %vm18066_vm12, 0, %v3542_v46  ;;  %vm2017_vm8 = vcmp.eq.s32.totalorder %v2012_v26, 2  ;;  %v3838_v43 = vshll.u32 %v18234_v19, %v3836_v15  ;;  %v3546_v33 = vmul.f32 -0.001358992, %v18087_v48 }
 0x3fc   : > { %v3839_v49 = vshrl.u32 %v3821_v13, %v3837_v32  ;;  %v3842_v61 = vadd.s32 127, %v3841_v51  ;;  %v3392_v20 = vadd.f32 0.041655596, %v3391_v37  ;;  %v18288_v60 = vand.u32 3, %v3389_v55 }
 0x3fd   : > { %v3406_v41 = vadd.s32 3, %v3389_v55  ;;  %v2019_v45 = vsel %vm2017_vm8, %v2018_v30, %v18246_v47  ;;  %v3547_v10 = vadd.f32 0.041655596, %v3546_v33  ;;  %v2016_v6 = vsel %vm2014_vm10, %v18236_v24, %v2015_v58  ;;  %v11706_v24 = vld [vmem:[#allocation2 + $0x48] sm:$0xf0] }
 0x3fe   : > { %v3840_v42 = vor.u32 %v3839_v49, %v3838_v43  ;;  %v3843_v59 = vshll.u32 %v3842_v61, 23  ;;  %vm3729_vm0 = vcmp.lt.s32.totalorder %v18032_v56, 0  ;;  %6702 = vmatpush.bf16.msrb.mxu3 %v11725_v62  ;;  %v11717_v19 = vor.u32 %v12997_v31, %v11714_v57 }
 0x3ff   : > { %v3393_v7 = vmul.f32 %v3392_v20, %v18062_v40  ;;  %v3561_v50 = vadd.s32 3, %v3544_v23  ;;  %v2020_v29 = vsel %vm2013_vm9, %v2016_v6, %v2019_v45  ;;  %vm18298_vm12 = vcmp.le.f32.partialorder %v3727_v8, 0.7853982  ;;  %v11698_v6 = vld [vmem:[#allocation2 + $0x38] sm:$0xf0] }
 0x400   : > { %v3844_v30 = vor.u32 4788187, %v3843_v59  ;;  %v3548_v46 = vmul.f32 %v3547_v10, %v18087_v48  ;;  %v18303_v58 = vand.u32 3, %v1856_v16  ;;  %v18307_v12 = vsel %vm2010_vm7, nan, %v2020_v29  ;;  %v12993_v10 = vld [vmem:[#allocation2 + $0x34] sm:$0xf] }
 0x401   : > { %v3394_v9 = vadd.f32 -0.4999988, %v3393_v7  ;;  %vm5883_vm15 = vcmp.lt.s32.totalorder %v18288_v60, 2  ;;  %vm5884_vm4 = vcmp.eq.s32.totalorder %v18288_v60, 0  ;;  %v3407_v26 = vand.u32 3, %v3406_v41  ;;  %v20086_v41 = vld [vmem:[#allocation62_spill] sm:$0xff] }
 0x402   : > { %v3845_v8 = vand.u32 2147483647, %v3844_v30  ;;  %v3847_v54 = vcvt.s32.f32 %v3840_v42  ;;  %vm3405_vm3 = vweird.f32 %v20063_v4  ;;  %v3549_v13 = vadd.f32 -0.4999988, %v3548_v46  ;;  %6703 = vmatpush.bf16.msrb.mxu3 %v11717_v19 }
 0x403   : > { %v6036_v15 = vand.u32 3, %v3544_v23  ;;  %v3395_v16 = vmul.f32 %v3394_v9, %v18062_v40  ;;  %v3410_v0 = vxor.u32 2147483648, %v18263_v36  ;;  %v3562_v38 = vand.u32 3, %v3561_v50 }
 0x404   : > { %v11709_v14 = vor.u32 %v12995_v3, %v11706_v24  ;;  %v3848_v18 = vmul.f32 %v3847_v54, %v3845_v8  ;;  %v3550_v32 = vmul.f32 %v3549_v13, %v18087_v48  ;;  %v3565_v51 = vxor.u32 2147483648, %v18273_v52  ;;  %v20090_v13 = vld [vmem:[#allocation53_spill] sm:$0xff] }
 0x405   : > { %vm5887_vm6 = vcmp.eq.s32.totalorder %v18288_v60, 2  ;;  %vm1859_vm7 = vcmp.eq.s32.totalorder %v18303_v58, 0  ;;  %v3396_v55 = vadd.f32 1.0, %v3395_v16  ;;  %vm3408_vm2 = vcmp.lt.s32.totalorder %v3407_v26, 2 }
 0x406   : > { %vm3409_vm9 = vcmp.eq.s32.totalorder %v3407_v26, 0  ;;  %vm3412_vm10 = vcmp.eq.s32.totalorder %v3407_v26, 2  ;;  %v3849_v40 = vxor.u32 2147483648, %v3848_v18  ;;  %v3551_v62 = vadd.f32 1.0, %v3550_v32  ;;  %6704 = vmatpush.bf16.msrb.mxu3 %v11709_v14 }
 0x407   : > { %vm6037_vm8 = vcmp.lt.s32.totalorder %v6036_v15, 2  ;;  %vm6038_vm11 = vcmp.eq.s32.totalorder %v6036_v15, 0  ;;  %v3413_v31 = vxor.u32 2147483648, %v3396_v55  ;;  %v5886_v48 = vsel %vm5884_vm4, %v3396_v55, %v3410_v0 }
 0x408   : > { %vm6041_vm14 = vcmp.eq.s32.totalorder %v6036_v15, 2  ;;  %vm3564_vm5 = vcmp.eq.s32.totalorder %v3562_v38, 0  ;;  %v3850_v37 = vsel %vm3729_vm0, %v3849_v40, %v3848_v18  ;;  %v3568_v23 = vxor.u32 2147483648, %v3551_v62 }
 0x409   : > { %v6040_v43 = vsel %vm6038_vm11, %v3551_v62, %v3565_v51  ;;  %v3411_v49 = vsel %vm3409_vm9, %v3396_v55, %v3410_v0  ;;  %v18327_v61 = vsel %vm18298_vm12, %v18032_v56, %v3850_v37  ;;  %v5889_v57 = vsel %vm5887_vm6, %v3413_v31, %v18263_v36  ;;  %v20094_v55 = vld [vmem:[#allocation52_spill] sm:$0xff] }
 0x40a   : > { %vm3563_vm1 = vcmp.lt.s32.totalorder %v3562_v38, 2  ;;  %v3566_v33 = vsel %vm3564_vm5, %v3551_v62, %v3565_v51  ;;  %v18334_v20 = vmul.f32 %v18327_v61, %v18327_v61  ;;  %v5890_v45 = vsel %vm5883_vm15, %v5886_v48, %v5889_v57  ;;  %v20096_v62 = vld [vmem:[#allocation90_spill] sm:$0xff]  ;;  %v20097_v48 = vld [vmem:[#allocation64_spill] sm:$0xff] }
 0x40b   : > { %6531 = vmatmul.bf16.vlgmr.msrb.gmra.mxu0 %v20086_v41  ;;  %v6043_v42 = vsel %vm6041_vm14, %v3568_v23, %v18273_v52  ;;  %v3414_v59 = vsel %vm3412_vm10, %v3413_v31, %v18263_v36  ;;  %v5891_v19 = vsel %vm3405_vm3, nan, %v5890_v45  ;;  %vm3567_vm11 = vcmp.eq.s32.totalorder %v3562_v38, 2  ;;  %v12989_v57 = vld [vmem:[#allocation2 + $0x14] sm:$0xf] }
 0x40c   : > { %v6044_v7 = vsel %vm6037_vm8, %v6040_v43, %v6043_v42  ;;  %v3415_v50 = vsel %vm3408_vm2, %v3411_v49, %v3414_v59  ;;  %v3863_v3 = vmul.f32 -0.00019511016, %v18334_v20  ;;  %vm20087_vm4 = vweird.f32 %v20067_v44  ;;  %v12991_v43 = vld [vmem:[#allocation2 + $0x24] sm:$0xf]  ;;  %v11690_v49 = vld [vmem:[#allocation2 + $0x28] sm:$0xf0] }
 0x40d   : > { %v6045_v60 = vsel %vm20087_vm4, nan, %v6044_v7  ;;  %v3569_v29 = vsel %vm3567_vm11, %v3568_v23, %v18273_v52  ;;  %v11701_v30 = vor.u32 %v12993_v10, %v11698_v6  ;;  %v1861_v24 = vsel %vm1859_vm7, %v18206_v63, %v1860_v25  ;;  %vm20088_vm15 = vmmov %vm20087_vm4  ;;  %v20099_v23 = vld [vmem:[#allocation72_spill] sm:$0xff]  ;;  %v11682_v42 = vld [vmem:[#allocation2 + $0x18] sm:$0xf0] }
 0x40e   : > { %v18350_v46 = vpack.c.bf16 %v6045_v60, %v5891_v19  ;;  %v3570_v36 = vsel %vm3563_vm1, %v3566_v33, %v3569_v29  ;;  %vm1862_vm14 = vcmp.eq.s32.totalorder %v18303_v58, 2  ;;  %v3864_v9 = vadd.f32 0.008332121, %v3863_v3 }
 0x40f   : > { %v3416_v26 = vsel %vm3405_vm3, nan, %v3415_v50  ;;  %v3571_v52 = vsel %vm20088_vm15, nan, %v3570_v36  ;;  %6705 = vmatpush.bf16.msrb.mxu3 %v11701_v30  ;;  %v1864_v8 = vsel %vm1862_vm14, %v1863_v21, %v18202_v2  ;;  %v3710_v54 = vmul.f32 %v18268_v39, %v18232_v27  ;;  %v20092_v2 = vld [vmem:[#allocation49_spill] sm:$0xff] }
 0x410   : > { %6512 = vmatmul.bf16.gmra.mxu3 %v18350_v46  ;;  %6561 = vmatmul.bf16.gmra.mxu1 %v18350_v46  ;;  %v18370_v25 = vpack.c.bf16 %v3571_v52, %v3416_v26  ;;  %vm20089_vm1 = vcmp.lt.s32.totalorder %v18303_v58, 2  ;;  %v3865_v44 = vmul.f32 %v3864_v9, %v18334_v20  ;;  %v1546_v15 = vadd.s32 3, %v20090_v13  ;;  %v11674_v26 = vld [vmem:[#allocation2 + $0x8] sm:$0xf0] }
 0x411   : > { %v1865_v4 = vsel %vm20089_vm1, %v1861_v24, %v1864_v8  ;;  %vm20091_vm3 = vweird.f32 %v20039_v34  ;;  %v1701_v21 = vadd.s32 3, %v20092_v2  ;;  %v3711_v16 = vadd.f32 -0.16666654, %v3710_v54 }
 0x412   : > { %v1866_v63 = vsel %vm20091_vm3, nan, %v1865_v4  ;;  %6690 = vmatmul.bf16.gmra.mxu2 %v18370_v25  ;;  %v3696_v0 = vsub.s32 4, %v17943_v22  ;;  %v3866_v38 = vadd.f32 -0.16666654, %v3865_v44  ;;  %v1547_v58 = vand.u32 3, %v1546_v15  ;;  %v20102_v44 = vld [vmem:[#allocation67_spill] sm:$0xff] }
 0x413   : > { %v18381_v39 = vpack.c.bf16 %v18307_v12, %v1866_v63  ;;  %v3851_v14 = vsub.s32 4, %v18222_v11  ;;  %v1702_v18 = vand.u32 3, %v1701_v21  ;;  %v3712_v32 = vmul.f32 %v3711_v16, %v18232_v27 }
 0x414   : > { %vm20093_vm5 = vcmp.lt.s32.totalorder %v20078_v17, 0  ;;  %v3867_v51 = vmul.f32 %v3866_v38, %v18334_v20  ;;  %vm1549_vm6 = vcmp.eq.s32.totalorder %v1547_v58, 0  ;;  %v20095_v40 = vxor.u32 2147483648, %v20094_v55 }
 0x415   : > { %v3697_v34 = vsel %vm20093_vm5, %v3696_v0, %v17943_v22  ;;  %v3852_v12 = vsel %vm3729_vm0, %v3851_v14, %v18222_v11  ;;  %vm1703_vm7 = vcmp.lt.s32.totalorder %v1702_v18, 2  ;;  %vm1704_vm2 = vcmp.eq.s32.totalorder %v1702_v18, 0  ;;  %v20104_v0 = vld [vmem:[#allocation57_spill] sm:$0xff] }
 0x416   : > { %vm1707_vm9 = vcmp.eq.s32.totalorder %v1702_v18, 2  ;;  %v1551_v31 = vsel %vm1549_vm6, %v20096_v62, %v20095_v40  ;;  %v20098_v37 = vxor.u32 2147483648, %v20097_v48  ;;  %v3713_v33 = vadd.f32 1.0, %v3712_v32 }
 0x417   : > { %v11693_v45 = vor.u32 %v12991_v43, %v11690_v49  ;;  %v3699_v11 = vsel %vm18210_vm13, 0, %v3697_v34  ;;  %v3701_v59 = vmul.f32 -0.001358992, %v18232_v27  ;;  %v3868_v10 = vadd.f32 1.0, %v3867_v51 }
 0x418   : > { %v1706_v22 = vsel %vm1704_vm2, %v20099_v23, %v20098_v37  ;;  %v20100_v6 = vxor.u32 2147483648, %v20099_v23  ;;  %v3854_v7 = vsel %vm18298_vm12, 0, %v3852_v12  ;;  %v3856_v50 = vmul.f32 -0.001358992, %v18334_v20 }
 0x419   : > { %vm1552_vm0 = vcmp.eq.s32.totalorder %v1547_v58, 2  ;;  %6706 = vmatpush.bf16.msrb.mxu3 %v11693_v45  ;;  %v11685_v60 = vor.u32 %v12989_v57, %v11682_v42  ;;  %v3702_v29 = vadd.f32 0.041655596, %v3701_v59  ;;  %vm1548_vm13 = vcmp.lt.s32.totalorder %v1547_v58, 2 }
 0x41a   : > { %v1709_v19 = vsel %vm1707_vm9, %v20100_v6, %v20097_v48  ;;  %v20101_v30 = vxor.u32 2147483648, %v20096_v62  ;;  %v3857_v24 = vadd.f32 0.041655596, %v3856_v50  ;;  %v3716_v9 = vadd.s32 3, %v3699_v11 }
 0x41b   : > { %6536 = vmatmul.bf16.gmra.mxu0 %v18275_v53  ;;  %v1710_v3 = vsel %vm1703_vm7, %v1706_v22, %v1709_v19  ;;  %v3714_v47 = vmul.f32 %v3713_v33, %v18220_v35  ;;  %v3703_v8 = vmul.f32 %v3702_v29, %v18232_v27  ;;  %v3871_v54 = vadd.s32 3, %v3854_v7  ;;  %v18454_v29 = vpop.f32.mrf.mxu0 }
 0x41c   : > { %v1554_v36 = vsel %vm1552_vm0, %v20101_v30, %v20094_v55  ;;  %v3869_v4 = vmul.f32 %v3868_v10, %v18327_v61  ;;  %vm20103_vm12 = vweird.f32 %v20102_v44  ;;  %v3858_v15 = vmul.f32 %v3857_v24, %v18334_v20  ;;  %v11850_v30 = vld [vmem:[%s19435_s4 + $0xe8] sm:$0xf0]  ;;  %v13045_v44 = vld [vmem:[%s19435_s4 + $0xd4] sm:$0xf] }
 0x41d   : > { %v1555_v52 = vsel %vm1548_vm13, %v1551_v31, %v1554_v36  ;;  %v1711_v13 = vsel %vm20103_vm12, nan, %v1710_v3  ;;  %v6190_v63 = vand.u32 3, %v3699_v11  ;;  %6707 = vmatpush.bf16.msrb.mxu3 %v11685_v60  ;;  %v3704_v2 = vadd.f32 -0.4999988, %v3703_v8  ;;  %v20106_v3 = vld [vmem:[#allocation100_spill] sm:$0xff] }
 0x41e   : > { %v6344_v21 = vand.u32 3, %v3854_v7  ;;  %v11677_v16 = vor.u32 %v12987_v5, %v11674_v26  ;;  %vm20105_vm10 = vweird.f32 %v20104_v0  ;;  %v3859_v35 = vadd.f32 -0.4999988, %v3858_v15  ;;  %v18449_v7 = vpop.f32.mrf.mxu3  ;;  %v13047_v5 = vld [vmem:[%s19435_s4 + $0xe4] sm:$0xf]  ;;  %v20107_v26 = vld [vmem:[#allocation95_spill] sm:$0xff] }
 0x41f   : > { %v1556_v38 = vsel %vm20105_vm10, nan, %v1555_v52  ;;  %v3717_v58 = vand.u32 3, %v3716_v9  ;;  %v3705_v18 = vmul.f32 %v3704_v2, %v18232_v27  ;;  %v3720_v61 = vxor.u32 2147483648, %v3714_v47  ;;  %v11794_v52 = vld [vmem:[%s19435_s4 + $0x78] sm:$0xf0] }
 0x420   : > { %v18421_v14 = vpack.c.bf16 %v1711_v13, %v1556_v38  ;;  %v3872_v32 = vand.u32 3, %v3871_v54  ;;  %v3860_v34 = vmul.f32 %v3859_v35, %v18334_v20  ;;  %v3875_v51 = vxor.u32 2147483648, %v3869_v4  ;;  %v11842_v13 = vld [vmem:[%s19435_s4 + $0xd8] sm:$0xf0]  ;;  %v11792_v15 = vld [vmem:[%s19435_s4 + $0x70] sm:$0xf] }
 0x421   : > { %vm6191_vm8 = vcmp.lt.s32.totalorder %v6190_v63, 2  ;;  %vm6192_vm11 = vcmp.eq.s32.totalorder %v6190_v63, 0  ;;  %v3706_v12 = vadd.f32 1.0, %v3705_v18  ;;  %vm6195_vm4 = vcmp.eq.s32.totalorder %v6190_v63, 2  ;;  %6708 = vmatpush.bf16.msrb.mxu3 %v11677_v16  ;;  %v13034_v2 = vld [vmem:[%s19435_s4 + $0x74] sm:$0xf0] }
 0x422   : > { %vm6345_vm14 = vcmp.lt.s32.totalorder %v6344_v21, 2  ;;  %vm6346_vm15 = vcmp.eq.s32.totalorder %v6344_v21, 0  ;;  %v3861_v55 = vadd.f32 1.0, %v3860_v34  ;;  %vm6349_vm1 = vcmp.eq.s32.totalorder %v6344_v21, 2  ;;  %v11856_v21 = vld [vmem:[%s19435_s4 + $0xf0] sm:$0xf] }
 0x423   : > { %vm3718_vm3 = vcmp.lt.s32.totalorder %v3717_v58, 2  ;;  %vm3719_vm5 = vcmp.eq.s32.totalorder %v3717_v58, 0  ;;  %v3723_v40 = vxor.u32 2147483648, %v3706_v12  ;;  %v6194_v62 = vsel %vm6192_vm11, %v3706_v12, %v3720_v61  ;;  %v18464_v9 = vpop.f32.mrf.mxu0  ;;  %v13050_v16 = vld [vmem:[%s19435_s4 + $0xf4] sm:$0xf0] }
 0x424   : > { %v3721_v31 = vsel %vm3719_vm5, %v3706_v12, %v3720_v61  ;;  %vm3874_vm6 = vcmp.eq.s32.totalorder %v3872_v32, 0  ;;  %v3878_v27 = vxor.u32 2147483648, %v3861_v55  ;;  %v6348_v48 = vsel %vm6346_vm15, %v3861_v55, %v3875_v51  ;;  %v11784_v35 = vld [vmem:[%s19435_s4 + $0x60] sm:$0xf]  ;;  %v13031_v18 = vld [vmem:[%s19435_s4 + $0x64] sm:$0xf] }
 0x425   : > { %vm3722_vm7 = vcmp.eq.s32.totalorder %v3717_v58, 2  ;;  %v3876_v20 = vsel %vm3874_vm6, %v3861_v55, %v3875_v51  ;;  %v6197_v37 = vsel %vm6195_vm4, %v3723_v40, %v3714_v47  ;;  %vm3873_vm2 = vcmp.lt.s32.totalorder %v3872_v32, 2  ;;  %v13032_v58 = vld [vmem:[%s19435_s4 + $0x64] sm:$0xf0]  ;;  %v11786_v61 = vld [vmem:[%s19435_s4 + $0x68] sm:$0xf0] }
 0x426   : > { %v3724_v23 = vsel %vm3722_vm7, %v3723_v40, %v3714_v47  ;;  %vm3877_vm9 = vcmp.eq.s32.totalorder %v3872_v32, 2  ;;  %v6198_v22 = vsel %vm6191_vm8, %v6194_v62, %v6197_v37  ;;  %v6351_v43 = vsel %vm6349_vm1, %v3878_v27, %v3869_v4  ;;  %v18452_v60 = vpop.f32.mrf.mxu3  ;;  %v13033_v47 = vld [vmem:[%s19435_s4 + $0x74] sm:$0xf]  ;;  %v11776_v55 = vld [vmem:[%s19435_s4 + $0x50] sm:$0xf] }
 0x427   : > { %v3725_v49 = vsel %vm3718_vm3, %v3721_v31, %v3724_v23  ;;  %v3879_v57 = vsel %vm3877_vm9, %v3878_v27, %v3869_v4  ;;  %vm3715_vm0 = vweird.f32 %v20078_v17  ;;  %vm3870_vm13 = vweird.f32 %v18032_v56  ;;  %v13049_v56 = vld [vmem:[%s19435_s4 + $0xf4] sm:$0xf]  ;;  %v11858_v17 = vld [vmem:[%s19435_s4 + $0xf8] sm:$0xf0]  ;;  %v13030_v40 = vld [vmem:[%s19435_s4 + $0x54] sm:$0xf0] }
 0x428   : > { %v6352_v33 = vsel %vm6345_vm14, %v6348_v48, %v6351_v43  ;;  %v3880_v45 = vsel %vm3873_vm2, %v3876_v20, %v3879_v57  ;;  %v6199_v42 = vsel %vm3715_vm0, nan, %v6198_v22  ;;  %v3726_v59 = vsel %vm3715_vm0, nan, %v3725_v49  ;;  %v13029_v62 = vld [vmem:[%s19435_s4 + $0x54] sm:$0xf]  ;;  %v20108_v31 = vld [vmem:[#allocation91_spill] sm:$0xff] }
 0x429   : > { %v6353_v11 = vsel %vm3870_vm13, nan, %v6352_v33  ;;  %v3881_v10 = vsel %vm3870_vm13, nan, %v3880_v45  ;;  %v11861_v50 = vor.u32 %v13049_v56, %v11858_v17  ;;  %v11853_v36 = vor.u32 %v13047_v5, %v11850_v30  ;;  %v11778_v48 = vld [vmem:[%s19435_s4 + $0x58] sm:$0xf0]  ;;  %v11768_v20 = vld [vmem:[%s19435_s4 + $0x40] sm:$0xf] }
 0x42a   : > { %v18433_v6 = vpack.c.bf16 %v6353_v11, %v6199_v42  ;;  %v18435_v19 = vpack.c.bf16 %v3881_v10, %v3726_v59  ;;  %v11797_v8 = vor.u32 %v13033_v47, %v11794_v52  ;;  %v11845_v63 = vor.u32 %v13045_v44, %v11842_v13  ;;  %v13028_v37 = vld [vmem:[%s19435_s4 + $0x44] sm:$0xf0]  ;;  %v13027_v22 = vld [vmem:[%s19435_s4 + $0x44] sm:$0xf]  ;;  %v11770_v43 = vld [vmem:[%s19435_s4 + $0x48] sm:$0xf0] }
 0x42b   : > { %6660 = vmatmul.bf16.vlgmr.msra.gmra.mxu0 %v18421_v14  ;;  %7182 = vmatpush.bf16.msra.mxu3 %v11861_v50  ;;  %v11793_v0 = vor.u32 %v13034_v2, %v11792_v15  ;;  %v11857_v38 = vor.u32 %v13050_v16, %v11856_v21  ;;  %v11785_v32 = vor.u32 %v13032_v58, %v11784_v35  ;;  %v11848_v42 = vld [vmem:[%s19435_s4 + $0xe0] sm:$0xf]  ;;  %v13048_v11 = vld [vmem:[%s19435_s4 + $0xe4] sm:$0xf0]  ;;  %v13043_v59 = vld [vmem:[%s19435_s4 + $0xc4] sm:$0xf] }
 0x42c   : > { %6517 = vmatmul.bf16.gmra.mxu3 %v18433_v6  ;;  %6566 = vmatmul.bf16.gmra.mxu1 %v18433_v6  ;;  %v11789_v34 = vor.u32 %v13031_v18, %v11786_v61  ;;  %v11777_v27 = vor.u32 %v13030_v40, %v11776_v55  ;;  %v11781_v23 = vor.u32 %v13029_v62, %v11778_v48  ;;  %v11834_v56 = vld [vmem:[%s19435_s4 + $0xc8] sm:$0xf0]  ;;  %v11760_v17 = vld [vmem:[%s19435_s4 + $0x30] sm:$0xf]  ;;  %v13026_v50 = vld [vmem:[%s19435_s4 + $0x34] sm:$0xf0] }
 0x42d   : > { %6695 = vmatmul.bf16.gmra.mxu2 %v18435_v19  ;;  %7035 = vmatpush.bf16.msrb.mxu0 %v11793_v0  ;;  %v11769_v49 = vor.u32 %v13028_v37, %v11768_v20  ;;  %v11773_v57 = vor.u32 %v13027_v22, %v11770_v43  ;;  %v11849_v10 = vor.u32 %v13048_v11, %v11848_v42  ;;  %v13025_v47 = vld [vmem:[%s19435_s4 + $0x34] sm:$0xf]  ;;  %v11762_v52 = vld [vmem:[%s19435_s4 + $0x38] sm:$0xf0]  ;;  %v13024_v15 = vld [vmem:[%s19435_s4 + $0x24] sm:$0xf0] }
 0x42e   : > { %v18462_v24 = vpop.f32.mrf.mxu3  ;;  %7133 = vmatpush.bf16.msrb.mxu2 %v11797_v8  ;;  %7084 = vmatpush.bf16.msrb.mxu1 %v11857_v38  ;;  %v11837_v30 = vor.u32 %v13043_v59, %v11834_v56  ;;  %v11752_v8 = vld [vmem:[%s19435_s4 + $0x20] sm:$0xf]  ;;  %v11765_v13 = vor.u32 %v13025_v47, %v11762_v52  ;;  %v11754_v2 = vld [vmem:[%s19435_s4 + $0x28] sm:$0xf0]  ;;  %v11744_v0 = vld [vmem:[%s19435_s4 + $0x10] sm:$0xf] }
 0x42f   : > { %7183 = vmatpush.bf16.msra.mxu3 %v11853_v36  ;;  %v11761_v36 = vor.u32 %v13026_v50, %v11760_v17  ;;  %v11753_v21 = vor.u32 %v13024_v15, %v11752_v8  ;;  %v13022_v38 = vld [vmem:[%s19435_s4 + $0x14] sm:$0xf0]  ;;  %v13021_v35 = vld [vmem:[%s19435_s4 + $0x14] sm:$0xf]  ;;  %v11746_v61 = vld [vmem:[%s19435_s4 + $0x18] sm:$0xf0] }
 0x430   : > { %v11745_v18 = vor.u32 %v13022_v38, %v11744_v0  ;;  %v11749_v40 = vor.u32 %v13021_v35, %v11746_v61  ;;  %v13020_v48 = vld [vmem:[%s19435_s4 + $0x4] sm:$0xf0]  ;;  %v13019_v20 = vld [vmem:[%s19435_s4 + $0x4] sm:$0xf]  ;;  %v13041_v43 = vld [vmem:[%s19435_s4 + $0xb4] sm:$0xf] }
 0x431   : > { %7036 = vmatpush.bf16.msrb.mxu0 %v11785_v32  ;;  %v11840_v32 = vld [vmem:[%s19435_s4 + $0xd0] sm:$0xf]  ;;  %v11832_v59 = vld [vmem:[%s19435_s4 + $0xc0] sm:$0xf]  ;;  %v13039_v50 = vld [vmem:[%s19435_s4 + $0xa4] sm:$0xf] }
 0x432   : > { %7134 = vmatpush.bf16.msrb.mxu2 %v11789_v34  ;;  %7085 = vmatpush.bf16.msrb.mxu1 %v11849_v10  ;;  %v13046_v34 = vld [vmem:[%s19435_s4 + $0xd4] sm:$0xf0]  ;;  %v13044_v10 = vld [vmem:[%s19435_s4 + $0xc4] sm:$0xf0] }
 0x433   : > { %7184 = vmatpush.bf16.msra.mxu3 %v11845_v63  ;;  %v13023_v63 = vld [vmem:[%s19435_s4 + $0x24] sm:$0xf]  ;;  %v11841_v62 = vor.u32 %v13046_v34, %v11840_v32  ;;  %v11833_v56 = vor.u32 %v13044_v10, %v11832_v59  ;;  %v13042_v52 = vld [vmem:[%s19435_s4 + $0xb4] sm:$0xf0] }
 0x434   : > { %v11757_v16 = vor.u32 %v13023_v63, %v11754_v2  ;;  %v6750_v15 = vld [vmem:[#allocation23] ss:$8 sm:$0x3] }
 0x435   : > { %7037 = vmatpush.bf16.msrb.mxu0 %v11777_v27  ;;  %v11736_v27 = vld [vmem:[%s19435_s4] sm:$0xf]  ;;  %v18647_v2 = vperm.slane %v6750_v15, 0 }
 0x436   : > { %v18473_v54 = vpop.f32.mrf.mxu3  ;;  %7135 = vmatpush.bf16.msrb.mxu2 %v11781_v23  ;;  %v11737_v37 = vor.u32 %v13020_v48, %v11736_v27  ;;  %v11738_v23 = vld [vmem:[%s19435_s4 + $0x8] sm:$0xf0]  ;;  %7086 = vmatpush.bf16.msrb.mxu1 %v11841_v62  ;;  %v13037_v27 = vld [vmem:[%s19435_s4 + $0x94] sm:$0xf]  ;;  %v11810_v48 = vld [vmem:[%s19435_s4 + $0x98] sm:$0xf0] }
 0x437   : > { %7185 = vmatpush.bf16.msra.mxu3 %v11837_v30  ;;  %v11741_v22 = vor.u32 %v13019_v20, %v11738_v23  ;;  %v11818_v30 = vld [vmem:[%s19435_s4 + $0xa8] sm:$0xf0]  ;;  %v11808_v20 = vld [vmem:[%s19435_s4 + $0x90] sm:$0xf] }
 0x438   : > { %v11821_v47 = vor.u32 %v13039_v50, %v11818_v30 }
 0x439   : > { %7038 = vmatpush.bf16.msrb.mxu0 %v11769_v49  ;;  %v11826_v49 = vld [vmem:[%s19435_s4 + $0xb8] sm:$0xf0] }
 0x43a   : > { %7136 = vmatpush.bf16.msrb.mxu2 %v11773_v57  ;;  %v11829_v57 = vor.u32 %v13041_v43, %v11826_v49  ;;  %7087 = vmatpush.bf16.msrb.mxu1 %v11833_v56 }
 0x43b   : > { %6665 = vmatmul.bf16.gmra.mxu0 %v18381_v39 }
 0x43c   : > { %6709 = vmatmul.bf16.vlgmr.msrb.gmra.mxu3 %v18421_v14 }
 0x43d   : > { %7039 = vmatpush.bf16.msrb.mxu0 %v11761_v36  ;;  %7186 = vmatpush.bf16.msra.mxu3 %v11829_v57  ;;  %v11824_v36 = vld [vmem:[%s19435_s4 + $0xb0] sm:$0xf] }
 0x43e   : > { %v18507_v51 = vpop.f32.mrf.mxu3  ;;  %7137 = vmatpush.bf16.msrb.mxu2 %v11765_v13  ;;  %v11825_v13 = vor.u32 %v13042_v52, %v11824_v36 }
 0x440   : > { %7088 = vmatpush.bf16.msrb.mxu1 %v11825_v13  ;;  %v11802_v13 = vld [vmem:[%s19435_s4 + $0x88] sm:$0xf0] }
 0x441   : > { %7040 = vmatpush.bf16.msrb.mxu0 %v11753_v21  ;;  %7187 = vmatpush.bf16.msra.mxu3 %v11821_v47 }
 0x442   : > { %7138 = vmatpush.bf16.msrb.mxu2 %v11757_v16 }
 0x445   : > { %7041 = vmatpush.bf16.msrb.mxu0 %v11745_v18  ;;  %v6671_v18 = vpop.f32.mrf.mxu2 }
 0x446   : > { %v18536_v33 = vpop.f32.mrf.mxu3  ;;  %7139 = vmatpush.bf16.msrb.mxu2 %v11749_v40 }
 0x449   : > { %7042 = vmatpush.bf16.msrb.mxu0 %v11737_v37  ;;  %v11813_v37 = vor.u32 %v13037_v27, %v11810_v48 }
 0x44a   : > { %7140 = vmatpush.bf16.msrb.mxu2 %v11741_v22  ;;  %v13038_v22 = vld [vmem:[%s19435_s4 + $0x94] sm:$0xf0] }
 0x44b   : > { %v11809_v43 = vor.u32 %v13038_v22, %v11808_v20  ;;  %7188 = vmatpush.bf16.msra.mxu3 %v11813_v37 }
 0x44c   : > { %6714 = vmatmul.bf16.gmra.mxu3 %v18381_v39 }
 0x44d   : > { %v6673_v57 = vpop.f32.mrf.mxu2 }
 0x44e   : > { %v18558_v5 = vpop.f32.mrf.mxu3 }
 0x455   : > { %v6676_v47 = vpop.f32.mrf.mxu2 }
 0x456   : > { %v18601_v55 = vpop.f32.mrf.mxu3 }
 0x45c   : > { %6719 = vmatmul.bf16.gmra.mxu3 %v20106_v3 }
 0x46c   : > { %6724 = vmatmul.bf16.gmra.mxu3 %v20107_v26 }
 0x478   : > { %v18475_v4 = vpop.f32.mrf.mxu0 }
 0x47c   : > { %6729 = vmatmul.bf16.gmra.mxu3 %v20108_v31 }
 0x480   : > { %v18509_v12 = vpop.f32.mrf.mxu0 }
 0x488   : > { %v18538_v45 = vpop.f32.mrf.mxu0 }
 0x48c   : > { %6734 = vmatmul.bf16.gmra.mxu3 %v18002_v1 }
 0x490   : > { %v18569_v44 = vpop.f32.mrf.mxu0 }
 0x493   : > { %v18623_v11 = vpop.f32.mrf.mxu3 }
 0x498   : > { %v18590_v58 = vpop.f32.mrf.mxu0 }
 0x49b   : > { %v18644_v8 = vpop.f32.mrf.mxu3 }
 0x49c   : > { %6739 = vmatmul.bf16.gmra.mxu3 %v18370_v25 }
 0x4a0   : > { %v18621_v42 = vpop.f32.mrf.mxu0 }
 0x4a8   : > { %v6661_v17 = vpop.f32.mrf.mxu0 }
 0x4a9   : > { %v6662_v63 = vadd.f32 %v6661_v17, %v18454_v29  ;;  %v11816_v29 = vld [vmem:[%s19435_s4 + $0xa0] sm:$0xf] }
 0x4ab   : > { %v6756_v16 = vadd.f32 %v18647_v2, %v6662_v63 }
 0x4ac   : > { %6744 = vmatmul.bf16.gmra.mxu3 %v18435_v19 }
 0x4ad   : > { %v6788_v61 = vmax.f32 %v6756_v16, 0.0  ;;  %v6674_v16 = vadd.f32 %v6673_v57, %v18452_v60  ;;  %v6677_v57 = vadd.f32 %v6676_v47, %v18462_v24 }
 0x4af   : > { %v18653_v35 = vpop.f32.mrf.mxu3 }
 0x4b0   : > { %v6663_v21 = vpop.f32.mrf.mxu0 }
 0x4b1   : > { %v6664_v0 = vadd.f32 %v6663_v21, %v18464_v9  ;;  %v13040_v9 = vld [vmem:[%s19435_s4 + $0xa4] sm:$0xf0] }
 0x4b2   : > { %v11817_v62 = vor.u32 %v13040_v9, %v11816_v29  ;;  %v13036_v21 = vld [vmem:[%s19435_s4 + $0x84] sm:$0xf0]  ;;  %v18696_v29 = vperm.slane %v6750_v15, 1  ;;  %v6678_v9 = vpop.f32.mrf.mxu2 }
 0x4b3   : > { %v6758_v38 = vadd.f32 %v18647_v2, %v6664_v0  ;;  %v6679_v15 = vadd.f32 %v6678_v9, %v18473_v54  ;;  %v11984_v9 = vld [vmem:[#allocation7 + $0xf0] sm:$0xf] }
 0x4b4   : > { %7089 = vmatpush.bf16.msrb.mxu1 %v11817_v62 }
 0x4b5   : > { %v6790_v32 = vmax.f32 %v6758_v38, 0.0 }
 0x4b7   : > { %v6820_v34 = vpack.c.bf16 %v6790_v32, %v6788_v61  ;;  %v18670_v23 = vpop.f32.mrf.mxu3  ;;  %v6672_v61 = vadd.f32 %v6671_v18, %v18449_v7 }
 0x4b8   : > { %v6666_v40 = vpop.f32.mrf.mxu0  ;;  %7090 = vmatpush.bf16.msrb.mxu1 %v11809_v43 }
 0x4b9   : > { %7043 = vmatmul.bf16.vlgmr.msrb.gmra.mxu0 %v6820_v34  ;;  %7141 = vmatmul.bf16.vlgmr.msrb.gmra.mxu2 %v6820_v34  ;;  %v6667_v49 = vadd.f32 %v6666_v40, %v18475_v4  ;;  %v13035_v4 = vld [vmem:[%s19435_s4 + $0x84] sm:$0xf]  ;;  %v6766_v34 = vadd.f32 %v18647_v2, %v6674_v16  ;;  %v6764_v62 = vadd.f32 %v18647_v2, %v6672_v61 }
 0x4ba   : > { %v11805_v63 = vor.u32 %v13035_v4, %v11802_v13  ;;  %v6681_v22 = vpop.f32.mrf.mxu2 }
 0x4bb   : > { %v6760_v10 = vadd.f32 %v18647_v2, %v6667_v49  ;;  %v6798_v60 = vmax.f32 %v6766_v34, 0.0  ;;  %v6796_v37 = vmax.f32 %v6764_v62, 0.0  ;;  %v13082_v62 = vld [vmem:[#allocation7 + $0xf4] sm:$0xf0] }
 0x4bc   : > { %7189 = vmatpush.bf16.msra.mxu3 %v11805_v63  ;;  %v13065_v63 = vld [vmem:[#allocation7 + $0x74] sm:$0xf] }
 0x4bd   : > { %v6792_v30 = vmax.f32 %v6760_v10, 0.0  ;;  %v6824_v18 = vpack.c.bf16 %v6798_v60, %v6796_v37  ;;  %v6768_v10 = vadd.f32 %v18647_v2, %v6677_v57  ;;  %v6682_v37 = vadd.f32 %v6681_v22, %v18507_v51 }
 0x4bf   : > { %v6710_v50 = vpop.f32.mrf.mxu3  ;;  %v6800_v4 = vmax.f32 %v6768_v10, 0.0 }
 0x4c0   : > { %v6668_v59 = vpop.f32.mrf.mxu0  ;;  %v6711_v40 = vadd.f32 %v6710_v50, %v18538_v45  ;;  %v6542_v45 = vpop.f32.mrf.mxu1 }
 0x4c1   : > { %v6669_v56 = vadd.f32 %v6668_v59, %v18509_v12  ;;  %v11800_v12 = vld [vmem:[%s19435_s4 + $0x80] sm:$0xf]  ;;  %v6770_v59 = vadd.f32 %v18647_v2, %v6679_v15 }
 0x4c2   : > { %v11801_v38 = vor.u32 %v13036_v21, %v11800_v12  ;;  %v6757_v48 = vadd.f32 %v18696_v29, %v6711_v40  ;;  %v6683_v50 = vpop.f32.mrf.mxu2  ;;  %v11922_v21 = vld [vmem:[#allocation7 + $0x78] sm:$0xf0]  ;;  %v13066_v40 = vld [vmem:[#allocation7 + $0x74] sm:$0xf0] }
 0x4c3   : > { %v6762_v17 = vadd.f32 %v18647_v2, %v6669_v56  ;;  %v6684_v61 = vadd.f32 %v6683_v50, %v18536_v33  ;;  %v6772_v33 = vadd.f32 %v18647_v2, %v6682_v37  ;;  %v13063_v50 = vld [vmem:[#allocation7 + $0x64] sm:$0xf] }
 0x4c4   : > { %7091 = vmatpush.bf16.msrb.mxu1 %v11801_v38  ;;  %v11920_v38 = vld [vmem:[#allocation7 + $0x70] sm:$0xf] }
 0x4c5   : > { %v6794_v36 = vmax.f32 %v6762_v17, 0.0  ;;  %v11921_v60 = vor.u32 %v13066_v40, %v11920_v38  ;;  %v6804_v57 = vmax.f32 %v6772_v33, 0.0 }
 0x4c7   : > { %v6822_v52 = vpack.c.bf16 %v6794_v36, %v6792_v30  ;;  %v6712_v0 = vpop.f32.mrf.mxu3  ;;  %v6802_v30 = vmax.f32 %v6770_v59, 0.0  ;;  %7478 = vmatpush.bf16.msra.mxu0 %v11921_v60 }
 0x4c8   : > { %v6713_v32 = vadd.f32 %v6712_v0, %v18569_v44  ;;  %v6789_v44 = vmax.f32 %v6757_v48, 0.0  ;;  %v13081_v0 = vld [vmem:[#allocation7 + $0xf4] sm:$0xf]  ;;  %v11985_v48 = vor.u32 %v13082_v62, %v11984_v9 }
 0x4c9   : > { %7048 = vmatmul.bf16.gmra.mxu0 %v6822_v52  ;;  %7146 = vmatmul.bf16.gmra.mxu2 %v6822_v52  ;;  %v6544_v52 = vpop.f32.mrf.mxu1  ;;  %v6826_v12 = vpack.c.bf16 %v6802_v30, %v6800_v4  ;;  %v11914_v30 = vld [vmem:[#allocation7 + $0x68] sm:$0xf0] }
 0x4ca   : > { %v6759_v27 = vadd.f32 %v18696_v29, %v6713_v32  ;;  %v6686_v16 = vpop.f32.mrf.mxu2  ;;  %7527 = vmatpush.bf16.msra.mxu1 %v11985_v48  ;;  %v11917_v4 = vor.u32 %v13063_v50, %v11914_v30 }
 0x4cb   : > { %v6687_v38 = vadd.f32 %v6686_v16, %v18558_v5 }
 0x4cc   : > { %v6791_v7 = vmax.f32 %v6759_v27, 0.0 }
 0x4ce   : > { %v6821_v43 = vpack.c.bf16 %v6791_v7, %v6789_v44  ;;  %v6774_v7 = vadd.f32 %v18647_v2, %v6684_v61 }
 0x4cf   : > { %v6715_v20 = vpop.f32.mrf.mxu3 }
 0x4d0   : > { %7092 = vmatmul.bf16.vlgmr.msrb.gmra.mxu1 %v6821_v43  ;;  %7190 = vmatmul.bf16.vlgmr.msra.gmra.mxu3 %v6821_v43  ;;  %v6716_v56 = vadd.f32 %v6715_v20, %v18590_v58  ;;  %v11925_v58 = vor.u32 %v13065_v63, %v11922_v21  ;;  %v6806_v43 = vmax.f32 %v6774_v7, 0.0  ;;  %v13080_v63 = vld [vmem:[#allocation7 + $0xe4] sm:$0xf0] }
 0x4d1   : > { %v6547_v20 = vpop.f32.mrf.mxu1 }
 0x4d2   : > { %v6761_v54 = vadd.f32 %v18696_v29, %v6716_v56  ;;  %7576 = vmatpush.bf16.msra.mxu2 %v11925_v58  ;;  %v6828_v22 = vpack.c.bf16 %v6806_v43, %v6804_v57 }
 0x4d4   : > { %v6793_v24 = vmax.f32 %v6761_v54, 0.0  ;;  %v13079_v54 = vld [vmem:[#allocation7 + $0xe4] sm:$0xf] }
 0x4d6   : > { %7577 = vmatpush.bf16.msra.mxu2 %v11917_v4 }
 0x4d7   : > { %v6717_v49 = vpop.f32.mrf.mxu3 }
 0x4d8   : > { %v6718_v17 = vadd.f32 %v6717_v49, %v18621_v42  ;;  %v11986_v42 = vld [vmem:[#allocation7 + $0xf8] sm:$0xf0]  ;;  %v6688_v49 = vpop.f32.mrf.mxu2 }
 0x4d9   : > { %7053 = vmatmul.bf16.gmra.mxu0 %v6824_v18  ;;  %7151 = vmatmul.bf16.gmra.mxu2 %v6824_v18  ;;  %v11989_v34 = vor.u32 %v13081_v0, %v11986_v42  ;;  %v6549_v51 = vpop.f32.mrf.mxu1 }
 0x4da   : > { %v6763_v13 = vadd.f32 %v18696_v29, %v6718_v17 }
 0x4db   : > { %7625 = vmatpush.bf16.msrb.mxu3 %v11989_v34 }
 0x4dc   : > { %v6795_v47 = vmax.f32 %v6763_v13, 0.0 }
 0x4de   : > { %v6823_v32 = vpack.c.bf16 %v6795_v47, %v6793_v24  ;;  %v13064_v24 = vld [vmem:[#allocation7 + $0x64] sm:$0xf0]  ;;  %v11976_v47 = vld [vmem:[#allocation7 + $0xe0] sm:$0xf] }
 0x4df   : > { %v6720_v36 = vpop.f32.mrf.mxu3  ;;  %v11977_v42 = vor.u32 %v13080_v63, %v11976_v47 }
 0x4e0   : > { %7097 = vmatmul.bf16.gmra.mxu1 %v6823_v32  ;;  %7195 = vmatmul.bf16.gmra.mxu3 %v6823_v32  ;;  %v6721_v18 = vadd.f32 %v6720_v36, %v6542_v45  ;;  %v11978_v45 = vld [vmem:[#allocation7 + $0xe8] sm:$0xf0]  ;;  %v11912_v36 = vld [vmem:[#allocation7 + $0x60] sm:$0xf]  ;;  %v6691_v58 = vpop.f32.mrf.mxu2 }
 0x4e1   : > { %v11913_v0 = vor.u32 %v13064_v24, %v11912_v36  ;;  %v6552_v61 = vpop.f32.mrf.mxu1  ;;  %7528 = vmatpush.bf16.msra.mxu1 %v11977_v42  ;;  %v6692_v4 = vadd.f32 %v6691_v58, %v18623_v11  ;;  %v13059_v42 = vld [vmem:[#allocation7 + $0x44] sm:$0xf] }
 0x4e2   : > { %v6765_v59 = vadd.f32 %v18696_v29, %v6721_v18  ;;  %v13061_v18 = vld [vmem:[#allocation7 + $0x54] sm:$0xf] }
 0x4e3   : > { %7479 = vmatpush.bf16.msra.mxu0 %v11913_v0 }
 0x4e4   : > { %v6797_v56 = vmax.f32 %v6765_v59, 0.0 }
 0x4e7   : > { %v6722_v27 = vpop.f32.mrf.mxu3 }
 0x4e8   : > { %v6723_v44 = vadd.f32 %v6722_v27, %v6544_v52  ;;  %v6689_v52 = vadd.f32 %v6688_v49, %v18601_v55  ;;  %v6776_v55 = vadd.f32 %v18647_v2, %v6687_v38  ;;  %v6693_v5 = vpop.f32.mrf.mxu2  ;;  %v13077_v49 = vld [vmem:[#allocation7 + $0xd4] sm:$0xf]  ;;  %v11898_v38 = vld [vmem:[#allocation7 + $0x48] sm:$0xf0] }
 0x4e9   : > { %7058 = vmatmul.bf16.gmra.mxu0 %v6826_v12  ;;  %7156 = vmatmul.bf16.gmra.mxu2 %v6826_v12  ;;  %v11981_v12 = vor.u32 %v13079_v54, %v11978_v45  ;;  %v6554_v37 = vpop.f32.mrf.mxu1  ;;  %v6694_v57 = vadd.f32 %v6693_v5, %v18644_v8  ;;  %v13060_v5 = vld [vmem:[#allocation7 + $0x44] sm:$0xf0] }
 0x4ea   : > { %v6767_v10 = vadd.f32 %v18696_v29, %v6723_v44  ;;  %v6778_v32 = vadd.f32 %v18647_v2, %v6689_v52  ;;  %v6808_v27 = vmax.f32 %v6776_v55, 0.0  ;;  %v11906_v44 = vld [vmem:[#allocation7 + $0x58] sm:$0xf0]  ;;  %v11901_v55 = vor.u32 %v13059_v42, %v11898_v38 }
 0x4eb   : > { %7626 = vmatpush.bf16.msrb.mxu3 %v11981_v12  ;;  %v11909_v43 = vor.u32 %v13061_v18, %v11906_v44  ;;  %v6782_v45 = vadd.f32 %v18647_v2, %v6694_v57  ;;  %v13076_v18 = vld [vmem:[#allocation7 + $0xc4] sm:$0xf0] }
 0x4ec   : > { %v6799_v17 = vmax.f32 %v6767_v10, 0.0  ;;  %v6810_v9 = vmax.f32 %v6778_v32, 0.0 }
 0x4ed   : > { %7578 = vmatpush.bf16.msra.mxu2 %v11909_v43  ;;  %v6814_v12 = vmax.f32 %v6782_v45, 0.0 }
 0x4ee   : > { %v6825_v13 = vpack.c.bf16 %v6799_v17, %v6797_v56  ;;  %v6830_v16 = vpack.c.bf16 %v6810_v9, %v6808_v27  ;;  %v13078_v56 = vld [vmem:[#allocation7 + $0xd4] sm:$0xf0] }
 0x4ef   : > { %v6725_v15 = vpop.f32.mrf.mxu3 }
 0x4f0   : > { %7102 = vmatmul.bf16.gmra.mxu1 %v6825_v13  ;;  %7200 = vmatmul.bf16.gmra.mxu3 %v6825_v13  ;;  %v6726_v34 = vadd.f32 %v6725_v15, %v6547_v20  ;;  %v11970_v20 = vld [vmem:[#allocation7 + $0xd8] sm:$0xf0]  ;;  %v11904_v15 = vld [vmem:[#allocation7 + $0x50] sm:$0xf]  ;;  %v6696_v54 = vpop.f32.mrf.mxu2  ;;  %v6780_v13 = vadd.f32 %v18647_v2, %v6692_v4  ;;  %v13073_v4 = vld [vmem:[#allocation7 + $0xb4] sm:$0xf] }
 0x4f1   : > { %v11973_v10 = vor.u32 %v13077_v49, %v11970_v20  ;;  %v6557_v52 = vpop.f32.mrf.mxu1  ;;  %7579 = vmatpush.bf16.msra.mxu2 %v11901_v55 }
 0x4f2   : > { %v6769_v60 = vadd.f32 %v18696_v29, %v6726_v34  ;;  %v6812_v63 = vmax.f32 %v6780_v13, 0.0  ;;  %v11962_v34 = vld [vmem:[#allocation7 + $0xc8] sm:$0xf0] }
 0x4f3   : > { %7627 = vmatpush.bf16.msrb.mxu3 %v11973_v10 }
 0x4f4   : > { %v6801_v7 = vmax.f32 %v6769_v60, 0.0  ;;  %v6832_v11 = vpack.c.bf16 %v6814_v12, %v6812_v63  ;;  %v6697_v60 = vadd.f32 %v6696_v54, %v18653_v35  ;;  %v11954_v54 = vld [vmem:[#allocation7 + $0xb8] sm:$0xf0] }
 0x4f5   : > { %v11957_v45 = vor.u32 %v13073_v4, %v11954_v54 }
 0x4f6   : > { %v6784_v20 = vadd.f32 %v18647_v2, %v6697_v60 }
 0x4f7   : > { %v6727_v21 = vpop.f32.mrf.mxu3 }
 0x4f8   : > { %v6728_v40 = vadd.f32 %v6727_v21, %v6549_v51  ;;  %v13062_v51 = vld [vmem:[#allocation7 + $0x54] sm:$0xf0]  ;;  %v6698_v32 = vpop.f32.mrf.mxu2 }
 0x4f9   : > { %7063 = vmatmul.bf16.gmra.mxu0 %v6828_v22  ;;  %7161 = vmatmul.bf16.gmra.mxu2 %v6828_v22  ;;  %v11968_v22 = vld [vmem:[#allocation7 + $0xd0] sm:$0xf]  ;;  %v11905_v17 = vor.u32 %v13062_v51, %v11904_v15  ;;  %v6699_v27 = vadd.f32 %v6698_v32, %v18670_v23 }
 0x4fa   : > { %v6771_v48 = vadd.f32 %v18696_v29, %v6728_v40  ;;  %v11969_v50 = vor.u32 %v13078_v56, %v11968_v22 }
 0x4fb   : > { %7480 = vmatpush.bf16.msra.mxu0 %v11905_v17  ;;  %v13057_v17 = vld [vmem:[#allocation7 + $0x34] sm:$0xf] }
 0x4fc   : > { %v6803_v33 = vmax.f32 %v6771_v48, 0.0  ;;  %7529 = vmatpush.bf16.msra.mxu1 %v11969_v50  ;;  %v11896_v48 = vld [vmem:[#allocation7 + $0x40] sm:$0xf]  ;;  %v11890_v50 = vld [vmem:[#allocation7 + $0x38] sm:$0xf0] }
 0x4fe   : > { %v6827_v59 = vpack.c.bf16 %v6803_v33, %v6801_v7  ;;  %v11960_v33 = vld [vmem:[#allocation7 + $0xc0] sm:$0xf] }
 0x4ff   : > { %v6730_v62 = vpop.f32.mrf.mxu3  ;;  %v11961_v43 = vor.u32 %v13076_v18, %v11960_v33 }
 0x500   : > { %7107 = vmatmul.bf16.gmra.mxu1 %v6827_v59  ;;  %7205 = vmatmul.bf16.gmra.mxu3 %v6827_v59  ;;  %v6731_v36 = vadd.f32 %v6730_v62, %v6552_v61  ;;  %v13075_v61 = vld [vmem:[#allocation7 + $0xc4] sm:$0xf]  ;;  %v6559_v62 = vpop.f32.mrf.mxu1  ;;  %v6816_v59 = vmax.f32 %v6784_v20, 0.0 }
 0x501   : > { %v11965_v9 = vor.u32 %v13075_v61, %v11962_v34  ;;  %7530 = vmatpush.bf16.msra.mxu1 %v11961_v43  ;;  %v13055_v61 = vld [vmem:[#allocation7 + $0x24] sm:$0xf]  ;;  %v11882_v34 = vld [vmem:[#allocation7 + $0x28] sm:$0xf0]  ;;  %v13072_v43 = vld [vmem:[#allocation7 + $0xa4] sm:$0xf0] }
 0x502   : > { %v6773_v24 = vadd.f32 %v18696_v29, %v6731_v36 }
 0x503   : > { %7628 = vmatpush.bf16.msrb.mxu3 %v11965_v9 }
 0x504   : > { %v6805_v21 = vmax.f32 %v6773_v24, 0.0  ;;  %v11952_v24 = vld [vmem:[#allocation7 + $0xb0] sm:$0xf] }
 0x507   : > { %v6732_v30 = vpop.f32.mrf.mxu3  ;;  %7629 = vmatpush.bf16.msrb.mxu3 %v11957_v45  ;;  %v11872_v45 = vld [vmem:[#allocation7 + $0x10] sm:$0xf] }
 0x508   : > { %v6733_v8 = vadd.f32 %v6732_v30, %v6554_v37  ;;  %v6786_v37 = vadd.f32 %v18647_v2, %v6699_v27  ;;  %v6562_v23 = vpop.f32.mrf.mxu1  ;;  %v11893_v30 = vor.u32 %v13057_v17, %v11890_v50  ;;  %v11946_v27 = vld [vmem:[#allocation7 + $0xa8] sm:$0xf0] }
 0x509   : > { %7068 = vmatmul.bf16.gmra.mxu0 %v6830_v16  ;;  %7166 = vmatmul.bf16.gmra.mxu2 %v6830_v16  ;;  %v11897_v16 = vor.u32 %v13060_v5, %v11896_v48  ;;  %v11880_v5 = vld [vmem:[#allocation7 + $0x20] sm:$0xf] }
 0x50a   : > { %v6775_v47 = vadd.f32 %v18696_v29, %v6733_v8  ;;  %v6818_v15 = vmax.f32 %v6786_v37, 0.0  ;;  %7580 = vmatpush.bf16.msra.mxu2 %v11893_v30  ;;  %v11888_v8 = vld [vmem:[#allocation7 + $0x30] sm:$0xf]  ;;  %v11938_v30 = vld [vmem:[#allocation7 + $0x98] sm:$0xf0] }
 0x50b   : > { %7481 = vmatpush.bf16.msra.mxu0 %v11897_v16  ;;  %v13056_v16 = vld [vmem:[#allocation7 + $0x24] sm:$0xf0] }
 0x50c   : > { %v6807_v0 = vmax.f32 %v6775_v47, 0.0  ;;  %v6834_v10 = vpack.c.bf16 %v6818_v15, %v6816_v59  ;;  %v13074_v47 = vld [vmem:[#allocation7 + $0xb4] sm:$0xf0]  ;;  %v11881_v33 = vor.u32 %v13056_v16, %v11880_v5  ;;  %v11928_v16 = vld [vmem:[#allocation7 + $0x80] sm:$0xf] }
 0x50e   : > { %v6829_v40 = vpack.c.bf16 %v6807_v0, %v6805_v21 }
 0x50f   : > { %v6735_v58 = vpop.f32.mrf.mxu3 }
 0x510   : > { %7112 = vmatmul.bf16.gmra.mxu1 %v6829_v40  ;;  %7210 = vmatmul.bf16.gmra.mxu3 %v6829_v40  ;;  %v6736_v7 = vadd.f32 %v6735_v58, %v6557_v52  ;;  %v6564_v36 = vpop.f32.mrf.mxu1  ;;  %v13058_v52 = vld [vmem:[#allocation7 + $0x34] sm:$0xf0]  ;;  %v13071_v40 = vld [vmem:[#allocation7 + $0xa4] sm:$0xf] }
 0x511   : > { %v11889_v12 = vor.u32 %v13058_v52, %v11888_v8  ;;  %v11949_v48 = vor.u32 %v13071_v40, %v11946_v27  ;;  %v11936_v52 = vld [vmem:[#allocation7 + $0x90] sm:$0xf]  ;;  %v13052_v40 = vld [vmem:[#allocation7 + $0x4] sm:$0xf0] }
 0x512   : > { %v6777_v35 = vadd.f32 %v18696_v29, %v6736_v7 }
 0x513   : > { %7482 = vmatpush.bf16.msra.mxu0 %v11889_v12  ;;  %7630 = vmatpush.bf16.msrb.mxu3 %v11949_v48 }
 0x514   : > { %v6809_v51 = vmax.f32 %v6777_v35, 0.0 }
 0x517   : > { %v6737_v44 = vpop.f32.mrf.mxu3  ;;  %7483 = vmatpush.bf16.msra.mxu0 %v11881_v33 }
 0x518   : > { %v6738_v49 = vadd.f32 %v6737_v44, %v6559_v62  ;;  %v6567_v42 = vpop.f32.mrf.mxu1  ;;  %v11885_v62 = vor.u32 %v13055_v61, %v11882_v34  ;;  %v11944_v44 = vld [vmem:[#allocation7 + $0xa0] sm:$0xf] }
 0x519   : > { %7073 = vmatmul.bf16.gmra.mxu0 %v6832_v11  ;;  %7171 = vmatmul.bf16.gmra.mxu2 %v6832_v11  ;;  %v11953_v11 = vor.u32 %v13074_v47, %v11952_v24  ;;  %v11945_v20 = vor.u32 %v13072_v43, %v11944_v44  ;;  %v6869_v24 = vld [vmem:[#allocation23 + $0x1] ss:$8 sm:$0x3] }
 0x51a   : > { %v6779_v57 = vadd.f32 %v18696_v29, %v6738_v49  ;;  %7581 = vmatpush.bf16.msra.mxu2 %v11885_v62  ;;  %v11864_v34 = vld [vmem:[#allocation7] sm:$0xf] }
 0x51b   : > { %7531 = vmatpush.bf16.msra.mxu1 %v11953_v11  ;;  %v11866_v11 = vld [vmem:[#allocation7 + $0x8] sm:$0xf0]  ;;  %v11865_v27 = vor.u32 %v13052_v40, %v11864_v34 }
 0x51c   : > { %v6811_v56 = vmax.f32 %v6779_v57, 0.0 }
 0x51e   : > { %v6831_v2 = vpack.c.bf16 %v6811_v56, %v6809_v51  ;;  %v13053_v51 = vld [vmem:[#allocation7 + $0x14] sm:$0xf] }
 0x51f   : > { %v6740_v22 = vpop.f32.mrf.mxu3  ;;  %7532 = vmatpush.bf16.msra.mxu1 %v11945_v20  ;;  %v13069_v56 = vld [vmem:[#allocation7 + $0x94] sm:$0xf] }
 0x520   : > { %7117 = vmatmul.bf16.gmra.mxu1 %v6831_v2  ;;  %7215 = vmatmul.bf16.gmra.mxu3 %v6831_v2  ;;  %v6741_v13 = vadd.f32 %v6740_v22, %v6562_v23  ;;  %v6569_v18 = vpop.f32.mrf.mxu1  ;;  %v11874_v22 = vld [vmem:[#allocation7 + $0x18] sm:$0xf0]  ;;  %v11941_v54 = vor.u32 %v13069_v56, %v11938_v30 }
 0x521   : > { %v11877_v50 = vor.u32 %v13053_v51, %v11874_v22 }
 0x522   : > { %v6781_v58 = vadd.f32 %v18696_v29, %v6741_v13  ;;  %7631 = vmatpush.bf16.msrb.mxu3 %v11941_v54 }
 0x523   : > { %7582 = vmatpush.bf16.msra.mxu2 %v11877_v50 }
 0x524   : > { %v6813_v32 = vmax.f32 %v6781_v58, 0.0 }
 0x527   : > { %v6742_v63 = vpop.f32.mrf.mxu3 }
 0x528   : > { %v6743_v21 = vadd.f32 %v6742_v63, %v6564_v36  ;;  %v13054_v36 = vld [vmem:[#allocation7 + $0x14] sm:$0xf0]  ;;  %v13051_v63 = vld [vmem:[#allocation7 + $0x4] sm:$0xf] }
 0x529   : > { %7078 = vmatmul.bf16.gmra.mxu0 %v6834_v10  ;;  %7176 = vmatmul.bf16.gmra.mxu2 %v6834_v10  ;;  %v11873_v8 = vor.u32 %v13054_v36, %v11872_v45 }
 0x52a   : > { %v6783_v0 = vadd.f32 %v18696_v29, %v6743_v21  ;;  %v13067_v21 = vld [vmem:[#allocation7 + $0x84] sm:$0xf] }
 0x52b   : > { %7484 = vmatpush.bf16.msra.mxu0 %v11873_v8 }
 0x52c   : > { %v6815_v38 = vmax.f32 %v6783_v0, 0.0  ;;  %v11869_v0 = vor.u32 %v13051_v63, %v11866_v11 }
 0x52e   : > { %v6833_v60 = vpack.c.bf16 %v6815_v38, %v6813_v32  ;;  %v18739_v38 = vperm.slane %v6869_v24, 0  ;;  %7583 = vmatpush.bf16.msra.mxu2 %v11869_v0  ;;  %v12050_v0 = vld [vmem:[#allocation8 + $0x78] sm:$0xf0] }
 0x52f   : > { %v6745_v55 = vpop.f32.mrf.mxu3  ;;  %7485 = vmatpush.bf16.msra.mxu0 %v11865_v27  ;;  %v12114_v27 = vld [vmem:[#allocation8 + $0xf8] sm:$0xf0] }
 0x530   : > { %7122 = vmatmul.bf16.gmra.mxu1 %v6833_v60  ;;  %7220 = vmatmul.bf16.gmra.mxu3 %v6833_v60  ;;  %v6746_v7 = vadd.f32 %v6745_v55, %v6567_v42  ;;  %v11930_v42 = vld [vmem:[#allocation7 + $0x88] sm:$0xf0]  ;;  %v18742_v60 = vperm.slane %v6869_v24, 1 }
 0x531   : > { %v11933_v32 = vor.u32 %v13067_v21, %v11930_v42 }
 0x532   : > { %v6785_v35 = vadd.f32 %v18696_v29, %v6746_v7  ;;  %v13068_v7 = vld [vmem:[#allocation7 + $0x84] sm:$0xf0] }
 0x533   : > { %7632 = vmatpush.bf16.msrb.mxu3 %v11933_v32  ;;  %v11929_v44 = vor.u32 %v13068_v7, %v11928_v16  ;;  %v12048_v16 = vld [vmem:[#allocation8 + $0x70] sm:$0xf]  ;;  %v13098_v7 = vld [vmem:[#allocation8 + $0x74] sm:$0xf0] }
 0x534   : > { %v6817_v10 = vmax.f32 %v6785_v35, 0.0 }
 0x536   : > { %v7044_v9 = vpop.f32.mrf.mxu0 }
 0x537   : > { %v6747_v49 = vpop.f32.mrf.mxu3  ;;  %v7045_v61 = vadd.f32 %v7044_v9, %v18739_v38 }
 0x538   : > { %v6748_v23 = vadd.f32 %v6747_v49, %v6569_v18 }
 0x53a   : > { %v6787_v57 = vadd.f32 %v18696_v29, %v6748_v23  ;;  %v13070_v29 = vld [vmem:[#allocation7 + $0x94] sm:$0xf0] }
 0x53b   : > { %v11937_v13 = vor.u32 %v13070_v29, %v11936_v52 }
 0x53c   : > { %v18735_v37 = vpop.f32.mrf.mxu2  ;;  %v6819_v59 = vmax.f32 %v6787_v57, 0.0 }
 0x53d   : > { %7533 = vmatpush.bf16.msra.mxu1 %v11937_v13  ;;  %v7143_v9 = vadd.f32 %v18735_v37, %v18742_v60 }
 0x53e   : > { %v7046_v15 = vpop.f32.mrf.mxu0  ;;  %v6835_v4 = vpack.c.bf16 %v6819_v59, %v6817_v10 }
 0x53f   : > { %v7047_v48 = vadd.f32 %v7046_v15, %v18739_v38 }
 0x540   : > { %7127 = vmatmul.bf16.gmra.mxu1 %v6835_v4  ;;  %7225 = vmatmul.bf16.gmra.mxu3 %v6835_v4 }
 0x541   : > { %7534 = vmatpush.bf16.msra.mxu1 %v11929_v44 }
 0x544   : > { %v7144_v17 = vpop.f32.mrf.mxu2 }
 0x545   : > { %v7145_v23 = vadd.f32 %v7144_v17, %v18742_v60 }
 0x546   : > { %v7049_v2 = vpop.f32.mrf.mxu0 }
 0x547   : > { %v7050_v37 = vadd.f32 %v7049_v2, %v18739_v38 }
 0x54c   : > { %v7147_v12 = vpop.f32.mrf.mxu2 }
 0x54d   : > { %v7093_v58 = vpop.f32.mrf.mxu1  ;;  %v7148_v29 = vadd.f32 %v7147_v12, %v18742_v60 }
 0x54e   : > { %v7051_v47 = vpop.f32.mrf.mxu0  ;;  %v7094_v5 = vadd.f32 %v7093_v58, %v7045_v61  ;;  %v13097_v58 = vld [vmem:[#allocation8 + $0x74] sm:$0xf] }
 0x54f   : > { %v7052_v17 = vadd.f32 %v7051_v47, %v18739_v38  ;;  %v12053_v42 = vor.u32 %v13097_v58, %v12050_v0  ;;  %v12040_v58 = vld [vmem:[#allocation8 + $0x60] sm:$0xf]  ;;  %v13096_v0 = vld [vmem:[#allocation8 + $0x64] sm:$0xf0] }
 0x550   : > { %v7231_v49 = vmax.f32 %v7094_v5, 0.0 }
 0x551   : > { %8019 = vmatpush.bf16.msrb.mxu2 %v12053_v42 }
 0x553   : > { %v7191_v62 = vpop.f32.mrf.mxu3 }
 0x554   : > { %v7149_v55 = vpop.f32.mrf.mxu2  ;;  %v7192_v35 = vadd.f32 %v7191_v62, %v7143_v9  ;;  %v13113_v62 = vld [vmem:[#allocation8 + $0xf4] sm:$0xf]  ;;  %v13114_v9 = vld [vmem:[#allocation8 + $0xf4] sm:$0xf0] }
 0x555   : > { %v7095_v18 = vpop.f32.mrf.mxu1  ;;  %v7150_v63 = vadd.f32 %v7149_v55, %v18742_v60  ;;  %v12117_v55 = vor.u32 %v13113_v62, %v12114_v27 }
 0x556   : > { %v7054_v33 = vpop.f32.mrf.mxu0  ;;  %v7096_v43 = vadd.f32 %v7095_v18, %v7047_v48  ;;  %v7232_v51 = vmax.f32 %v7192_v35, 0.0  ;;  %v12112_v18 = vld [vmem:[#allocation8 + $0xf0] sm:$0xf] }
 0x557   : > { %v7055_v5 = vadd.f32 %v7054_v33, %v18739_v38  ;;  %8068 = vmatpush.bf16.msra.mxu3 %v12117_v55 }
 0x558   : > { %v7233_v20 = vmax.f32 %v7096_v43, 0.0  ;;  %v12049_v43 = vor.u32 %v13098_v7, %v12048_v16  ;;  %v13093_v7 = vld [vmem:[#allocation8 + $0x54] sm:$0xf] }
 0x55a   : > { %v7263_v57 = vpack.c.bf16 %v7233_v20, %v7231_v49  ;;  %7921 = vmatpush.bf16.msrb.mxu0 %v12049_v43  ;;  %v13109_v43 = vld [vmem:[#allocation8 + $0xd4] sm:$0xf] }
 0x55b   : > { %v7193_v15 = vpop.f32.mrf.mxu3 }
 0x55c   : > { %v7152_v59 = vpop.f32.mrf.mxu2  ;;  %v7194_v10 = vadd.f32 %v7193_v15, %v7145_v23  ;;  %7486 = vmatmul.bf16.vlgmr.msra.gmra.mxu0 %v7263_v57  ;;  %7584 = vmatmul.bf16.vlgmr.msra.gmra.mxu2 %v7263_v57  ;;  %v12113_v23 = vor.u32 %v13114_v9, %v12112_v18  ;;  %v12034_v18 = vld [vmem:[#allocation8 + $0x58] sm:$0xf0] }
 0x55d   : > { %v7098_v50 = vpop.f32.mrf.mxu1  ;;  %v7153_v33 = vadd.f32 %v7152_v59, %v18742_v60  ;;  %v12098_v9 = vld [vmem:[#allocation8 + $0xd8] sm:$0xf0] }
 0x55e   : > { %v7234_v22 = vmax.f32 %v7194_v10, 0.0  ;;  %v7056_v56 = vpop.f32.mrf.mxu0  ;;  %v7099_v45 = vadd.f32 %v7098_v50, %v7050_v37  ;;  %7970 = vmatpush.bf16.msrb.mxu1 %v12113_v23  ;;  %v13095_v37 = vld [vmem:[#allocation8 + $0x64] sm:$0xf] }
 0x55f   : > { %v7057_v49 = vadd.f32 %v7056_v56, %v18739_v38 }
 0x560   : > { %v7264_v30 = vpack.c.bf16 %v7234_v22, %v7232_v51  ;;  %v7235_v13 = vmax.f32 %v7099_v45, 0.0 }
 0x562   : > { %7535 = vmatmul.bf16.vlgmr.msra.gmra.mxu1 %v7264_v30  ;;  %7633 = vmatmul.bf16.vlgmr.msrb.gmra.mxu3 %v7264_v30 }
 0x563   : > { %v7196_v54 = vpop.f32.mrf.mxu3 }
 0x564   : > { %v7154_v4 = vpop.f32.mrf.mxu2  ;;  %v7197_v11 = vadd.f32 %v7196_v54, %v7148_v29  ;;  %v12042_v54 = vld [vmem:[#allocation8 + $0x68] sm:$0xf0] }
 0x565   : > { %v7100_v36 = vpop.f32.mrf.mxu1  ;;  %v7155_v22 = vadd.f32 %v7154_v4, %v18742_v60  ;;  %v12045_v45 = vor.u32 %v13095_v37, %v12042_v54  ;;  %v12026_v37 = vld [vmem:[#allocation8 + $0x48] sm:$0xf0]  ;;  %v13107_v54 = vld [vmem:[#allocation8 + $0xc4] sm:$0xf] }
 0x566   : > { %v7101_v8 = vadd.f32 %v7100_v36, %v7052_v17  ;;  %v18750_v52 = vpop.f32.mrf.mxu0  ;;  %v7236_v34 = vmax.f32 %v7197_v11, 0.0 }
 0x567   : > { %8020 = vmatpush.bf16.msrb.mxu2 %v12045_v45 }
 0x568   : > { %v7237_v24 = vmax.f32 %v7101_v8, 0.0 }
 0x56a   : > { %v7265_v21 = vpack.c.bf16 %v7237_v24, %v7235_v13  ;;  %v13111_v24 = vld [vmem:[#allocation8 + $0xe4] sm:$0xf] }
 0x56b   : > { %v7198_v2 = vpop.f32.mrf.mxu3 }
 0x56c   : > { %v7199_v32 = vadd.f32 %v7198_v2, %v7150_v63  ;;  %7491 = vmatmul.bf16.gmra.mxu0 %v7265_v21  ;;  %7589 = vmatmul.bf16.gmra.mxu2 %v7265_v21  ;;  %v18754_v47 = vpop.f32.mrf.mxu2  ;;  %v12106_v63 = vld [vmem:[#allocation8 + $0xe8] sm:$0xf0]  ;;  %v7060_v21 = vadd.f32 %v18750_v52, %v18739_v38  ;;  %v12104_v2 = vld [vmem:[#allocation8 + $0xe0] sm:$0xf] }
 0x56d   : > { %v7103_v61 = vpop.f32.mrf.mxu1  ;;  %v12109_v4 = vor.u32 %v13111_v24, %v12106_v63  ;;  %v7158_v52 = vadd.f32 %v18754_v47, %v18742_v60  ;;  %v12088_v24 = vld [vmem:[#allocation8 + $0xc0] sm:$0xf]  ;;  %v13108_v63 = vld [vmem:[#allocation8 + $0xc4] sm:$0xf0] }
 0x56e   : > { %v7238_v40 = vmax.f32 %v7199_v32, 0.0  ;;  %v7061_v48 = vpop.f32.mrf.mxu0  ;;  %v7104_v20 = vadd.f32 %v7103_v61, %v7055_v5  ;;  %v12041_v32 = vor.u32 %v13096_v0, %v12040_v58  ;;  %v13112_v61 = vld [vmem:[#allocation8 + $0xe4] sm:$0xf0]  ;;  %v12089_v0 = vor.u32 %v13108_v63, %v12088_v24  ;;  %v13103_v63 = vld [vmem:[#allocation8 + $0xa4] sm:$0xf] }
 0x56f   : > { %8069 = vmatpush.bf16.msra.mxu3 %v12109_v4 }
 0x570   : > { %v7266_v12 = vpack.c.bf16 %v7238_v40, %v7236_v34  ;;  %v7239_v10 = vmax.f32 %v7104_v20, 0.0  ;;  %v7062_v34 = vadd.f32 %v7061_v48, %v18739_v38  ;;  %7922 = vmatpush.bf16.msrb.mxu0 %v12041_v32  ;;  %v13089_v32 = vld [vmem:[#allocation8 + $0x34] sm:$0xf] }
 0x572   : > { %7540 = vmatmul.bf16.gmra.mxu1 %v7266_v12  ;;  %7638 = vmatmul.bf16.gmra.mxu3 %v7266_v12  ;;  %v12105_v12 = vor.u32 %v13112_v61, %v12104_v2  ;;  %v12018_v61 = vld [vmem:[#allocation8 + $0x38] sm:$0xf0] }
 0x573   : > { %v7201_v44 = vpop.f32.mrf.mxu3 }
 0x574   : > { %v7159_v15 = vpop.f32.mrf.mxu2  ;;  %v7202_v50 = vadd.f32 %v7201_v44, %v7153_v33  ;;  %7971 = vmatpush.bf16.msrb.mxu1 %v12105_v12  ;;  %v12037_v44 = vor.u32 %v13093_v7, %v12034_v18  ;;  %v12096_v33 = vld [vmem:[#allocation8 + $0xd0] sm:$0xf]  ;;  %v12082_v7 = vld [vmem:[#allocation8 + $0xb8] sm:$0xf0] }
 0x575   : > { %v7105_v35 = vpop.f32.mrf.mxu1  ;;  %v7160_v48 = vadd.f32 %v7159_v15, %v18742_v60  ;;  %v12024_v15 = vld [vmem:[#allocation8 + $0x40] sm:$0xf] }
 0x576   : > { %v7106_v57 = vadd.f32 %v7105_v35, %v7057_v49  ;;  %v18760_v17 = vpop.f32.mrf.mxu0  ;;  %v7240_v29 = vmax.f32 %v7202_v50, 0.0  ;;  %v12032_v49 = vld [vmem:[#allocation8 + $0x50] sm:$0xf]  ;;  %v12101_v35 = vor.u32 %v13109_v43, %v12098_v9  ;;  %8021 = vmatpush.bf16.msrb.mxu2 %v12037_v44 }
 0x577   : > { %v12016_v9 = vld [vmem:[#allocation8 + $0x30] sm:$0xf] }
 0x578   : > { %v7241_v51 = vmax.f32 %v7106_v57, 0.0  ;;  %v13094_v57 = vld [vmem:[#allocation8 + $0x54] sm:$0xf0]  ;;  %8070 = vmatpush.bf16.msra.mxu3 %v12101_v35 }
 0x579   : > { %v12033_v47 = vor.u32 %v13094_v57, %v12032_v49  ;;  %v13090_v49 = vld [vmem:[#allocation8 + $0x34] sm:$0xf0] }
 0x57a   : > { %v7267_v30 = vpack.c.bf16 %v7241_v51, %v7239_v10  ;;  %v13110_v10 = vld [vmem:[#allocation8 + $0xd4] sm:$0xf0] }
 0x57b   : > { %v7203_v56 = vpop.f32.mrf.mxu3  ;;  %v12097_v50 = vor.u32 %v13110_v10, %v12096_v33  ;;  %7923 = vmatpush.bf16.msrb.mxu0 %v12033_v47 }
 0x57c   : > { %v7204_v36 = vadd.f32 %v7203_v56, %v7155_v22  ;;  %7496 = vmatmul.bf16.gmra.mxu0 %v7267_v30  ;;  %7594 = vmatmul.bf16.gmra.mxu2 %v7267_v30  ;;  %v18762_v11 = vpop.f32.mrf.mxu2  ;;  %v13091_v30 = vld [vmem:[#allocation8 + $0x44] sm:$0xf] }
 0x57d   : > { %v7108_v8 = vpop.f32.mrf.mxu1  ;;  %v12029_v45 = vor.u32 %v13091_v30, %v12026_v37  ;;  %7972 = vmatpush.bf16.msrb.mxu1 %v12097_v50 }
 0x57e   : > { %v7242_v13 = vmax.f32 %v7204_v36, 0.0  ;;  %v7109_v40 = vadd.f32 %v7108_v8, %v7060_v21  ;;  %v7066_v62 = vpop.f32.mrf.mxu0  ;;  %v12090_v36 = vld [vmem:[#allocation8 + $0xc8] sm:$0xf0]  ;;  %v13092_v8 = vld [vmem:[#allocation8 + $0x44] sm:$0xf0] }
 0x57f   : > { %8022 = vmatpush.bf16.msrb.mxu2 %v12029_v45  ;;  %v7067_v12 = vadd.f32 %v7066_v62, %v18739_v38  ;;  %v13106_v62 = vld [vmem:[#allocation8 + $0xb4] sm:$0xf0]  ;;  %v13087_v45 = vld [vmem:[#allocation8 + $0x24] sm:$0xf] }
 0x580   : > { %v7268_v59 = vpack.c.bf16 %v7242_v13, %v7240_v29  ;;  %v7243_v5 = vmax.f32 %v7109_v40, 0.0  ;;  %v12093_v13 = vor.u32 %v13107_v54, %v12090_v36  ;;  %v12021_v40 = vor.u32 %v13089_v32, %v12018_v61  ;;  %v13088_v32 = vld [vmem:[#allocation8 + $0x24] sm:$0xf0] }
 0x581   : > { %7973 = vmatpush.bf16.msrb.mxu1 %v12089_v0 }
 0x582   : > { %7545 = vmatmul.bf16.gmra.mxu1 %v7268_v59  ;;  %7643 = vmatmul.bf16.gmra.mxu3 %v7268_v59  ;;  %v12025_v59 = vor.u32 %v13092_v8, %v12024_v15 }
 0x583   : > { %v7206_v42 = vpop.f32.mrf.mxu3  ;;  %8071 = vmatpush.bf16.msra.mxu3 %v12093_v13  ;;  %8023 = vmatpush.bf16.msrb.mxu2 %v12021_v40  ;;  %v12072_v40 = vld [vmem:[#allocation8 + $0xa0] sm:$0xf] }
 0x584   : > { %v7207_v20 = vadd.f32 %v7206_v42, %v7158_v52  ;;  %v7164_v51 = vpop.f32.mrf.mxu2  ;;  %7924 = vmatpush.bf16.msrb.mxu0 %v12025_v59  ;;  %v7065_v42 = vadd.f32 %v18760_v17, %v18739_v38  ;;  %v7163_v17 = vadd.f32 %v18762_v11, %v18742_v60 }
 0x585   : > { %v7110_v27 = vpop.f32.mrf.mxu1  ;;  %v7165_v35 = vadd.f32 %v7164_v51, %v18742_v60  ;;  %v12010_v51 = vld [vmem:[#allocation8 + $0x28] sm:$0xf0] }
 0x586   : > { %v7111_v55 = vadd.f32 %v7110_v27, %v7062_v34  ;;  %v7244_v4 = vmax.f32 %v7207_v20, 0.0  ;;  %v7069_v58 = vpop.f32.mrf.mxu0  ;;  %v12017_v20 = vor.u32 %v13090_v49, %v12016_v9  ;;  %v12013_v8 = vor.u32 %v13087_v45, %v12010_v51 }
 0x588   : > { %v7245_v16 = vmax.f32 %v7111_v55, 0.0  ;;  %7925 = vmatpush.bf16.msrb.mxu0 %v12017_v20  ;;  %8024 = vmatpush.bf16.msrb.mxu2 %v12013_v8  ;;  %v12002_v20 = vld [vmem:[#allocation8 + $0x18] sm:$0xf0]  ;;  %v13102_v8 = vld [vmem:[#allocation8 + $0x94] sm:$0xf0] }
 0x58a   : > { %v7269_v23 = vpack.c.bf16 %v7245_v16, %v7243_v5  ;;  %v13105_v16 = vld [vmem:[#allocation8 + $0xb4] sm:$0xf] }
 0x58b   : > { %v7208_v22 = vpop.f32.mrf.mxu3  ;;  %v12085_v18 = vor.u32 %v13105_v16, %v12082_v7 }
 0x58c   : > { %v7209_v56 = vadd.f32 %v7208_v22, %v7160_v48  ;;  %7501 = vmatmul.bf16.gmra.mxu0 %v7269_v23  ;;  %7599 = vmatmul.bf16.gmra.mxu2 %v7269_v23  ;;  %v7167_v55 = vpop.f32.mrf.mxu2  ;;  %v12080_v23 = vld [vmem:[#allocation8 + $0xb0] sm:$0xf] }
 0x58d   : > { %v7113_v29 = vpop.f32.mrf.mxu1  ;;  %8072 = vmatpush.bf16.msra.mxu3 %v12085_v18  ;;  %v12081_v10 = vor.u32 %v13106_v62, %v12080_v23  ;;  %v7168_v0 = vadd.f32 %v7167_v55, %v18742_v60  ;;  %v13101_v23 = vld [vmem:[#allocation8 + $0x94] sm:$0xf] }
 0x58e   : > { %v7246_v21 = vmax.f32 %v7209_v56, 0.0  ;;  %v7114_v27 = vadd.f32 %v7113_v29, %v7065_v42  ;;  %v7071_v48 = vpop.f32.mrf.mxu0  ;;  %v7070_v56 = vadd.f32 %v7069_v58, %v18739_v38  ;;  %v12008_v42 = vld [vmem:[#allocation8 + $0x20] sm:$0xf] }
 0x58f   : > { %7974 = vmatpush.bf16.msrb.mxu1 %v12081_v10  ;;  %v7072_v29 = vadd.f32 %v7071_v48, %v18739_v38  ;;  %v13085_v48 = vld [vmem:[#allocation8 + $0x14] sm:$0xf]  ;;  %v12000_v10 = vld [vmem:[#allocation8 + $0x10] sm:$0xf] }
 0x590   : > { %v7270_v2 = vpack.c.bf16 %v7246_v21, %v7244_v4  ;;  %v7247_v44 = vmax.f32 %v7114_v27, 0.0  ;;  %v12074_v4 = vld [vmem:[#allocation8 + $0xa8] sm:$0xf0] }
 0x591   : > { %v12077_v21 = vor.u32 %v13103_v63, %v12074_v4 }
 0x592   : > { %7550 = vmatmul.bf16.gmra.mxu1 %v7270_v2  ;;  %7648 = vmatmul.bf16.gmra.mxu3 %v7270_v2 }
 0x593   : > { %v7211_v34 = vpop.f32.mrf.mxu3  ;;  %8073 = vmatpush.bf16.msra.mxu3 %v12077_v21 }
 0x594   : > { %v7212_v57 = vadd.f32 %v7211_v34, %v7163_v17  ;;  %v7169_v37 = vpop.f32.mrf.mxu2  ;;  %v12009_v34 = vor.u32 %v13088_v32, %v12008_v42  ;;  %v13083_v32 = vld [vmem:[#allocation8 + $0x4] sm:$0xf] }
 0x595   : > { %v7115_v52 = vpop.f32.mrf.mxu1  ;;  %v7170_v27 = vadd.f32 %v7169_v37, %v18742_v60 }
 0x596   : > { %v7116_v5 = vadd.f32 %v7115_v52, %v7067_v12  ;;  %v7248_v50 = vmax.f32 %v7212_v57, 0.0  ;;  %v7074_v36 = vpop.f32.mrf.mxu0  ;;  %v13104_v12 = vld [vmem:[#allocation8 + $0xa4] sm:$0xf0]  ;;  %7926 = vmatpush.bf16.msrb.mxu0 %v12009_v34  ;;  %v12005_v57 = vor.u32 %v13085_v48, %v12002_v20 }
 0x597   : > { %v12073_v16 = vor.u32 %v13104_v12, %v12072_v40  ;;  %v7075_v49 = vadd.f32 %v7074_v36, %v18739_v38  ;;  %v13099_v12 = vld [vmem:[#allocation8 + $0x84] sm:$0xf] }
 0x598   : > { %v7249_v43 = vmax.f32 %v7116_v5, 0.0  ;;  %8025 = vmatpush.bf16.msrb.mxu2 %v12005_v57  ;;  %v12056_v57 = vld [vmem:[#allocation8 + $0x80] sm:$0xf] }
 0x599   : > { %7975 = vmatpush.bf16.msrb.mxu1 %v12073_v16 }
 0x59a   : > { %v7271_v33 = vpack.c.bf16 %v7249_v43, %v7247_v44 }
 0x59b   : > { %v7213_v22 = vpop.f32.mrf.mxu3 }
 0x59c   : > { %v7214_v47 = vadd.f32 %v7213_v22, %v7165_v35  ;;  %7506 = vmatmul.bf16.gmra.mxu0 %v7271_v33  ;;  %7604 = vmatmul.bf16.gmra.mxu2 %v7271_v33  ;;  %v7172_v61 = vpop.f32.mrf.mxu2  ;;  %v12066_v33 = vld [vmem:[#allocation8 + $0x98] sm:$0xf0]  ;;  %v13086_v22 = vld [vmem:[#allocation8 + $0x14] sm:$0xf0] }
 0x59d   : > { %v7118_v11 = vpop.f32.mrf.mxu1  ;;  %v7173_v45 = vadd.f32 %v7172_v61, %v18742_v60  ;;  %v11994_v61 = vld [vmem:[#allocation8 + $0x8] sm:$0xf0] }
 0x59e   : > { %v7250_v30 = vmax.f32 %v7214_v47, 0.0  ;;  %v7119_v13 = vadd.f32 %v7118_v11, %v7070_v56  ;;  %v7076_v55 = vpop.f32.mrf.mxu0  ;;  %v11997_v40 = vor.u32 %v13083_v32, %v11994_v61  ;;  %v13145_v61 = vld [vmem:[#allocation10 + $0xf4] sm:$0xf] }
 0x59f   : > { %v7077_v47 = vadd.f32 %v7076_v55, %v18739_v38 }
 0x5a0   : > { %v7272_v54 = vpack.c.bf16 %v7250_v30, %v7248_v50  ;;  %v7251_v2 = vmax.f32 %v7119_v13, 0.0  ;;  %v12069_v50 = vor.u32 %v13101_v23, %v12066_v33  ;;  %v12001_v30 = vor.u32 %v13086_v22, %v12000_v10  ;;  %8026 = vmatpush.bf16.msrb.mxu2 %v11997_v40  ;;  %v13100_v22 = vld [vmem:[#allocation8 + $0x84] sm:$0xf0] }
 0x5a2   : > { %7555 = vmatmul.bf16.gmra.mxu1 %v7272_v54  ;;  %7653 = vmatmul.bf16.gmra.mxu3 %v7272_v54 }
 0x5a3   : > { %v7216_v15 = vpop.f32.mrf.mxu3  ;;  %8074 = vmatpush.bf16.msra.mxu3 %v12069_v50  ;;  %7927 = vmatpush.bf16.msrb.mxu0 %v12001_v30 }
 0x5a4   : > { %v7217_v52 = vadd.f32 %v7216_v15, %v7168_v0  ;;  %v7174_v62 = vpop.f32.mrf.mxu2  ;;  %v12064_v15 = vld [vmem:[#allocation8 + $0x90] sm:$0xf] }
 0x5a5   : > { %v7120_v59 = vpop.f32.mrf.mxu1  ;;  %v7175_v13 = vadd.f32 %v7174_v62, %v18742_v60  ;;  %v11992_v62 = vld [vmem:[#allocation8] sm:$0xf] }
 0x5a6   : > { %v7121_v24 = vadd.f32 %v7120_v59, %v7072_v29  ;;  %v7252_v44 = vmax.f32 %v7217_v52, 0.0  ;;  %v7079_v56 = vpop.f32.mrf.mxu0  ;;  %v12065_v29 = vor.u32 %v13102_v8, %v12064_v15 }
 0x5a7   : > { %v7080_v52 = vadd.f32 %v7079_v56, %v18739_v38 }
 0x5a8   : > { %v7253_v58 = vmax.f32 %v7121_v24, 0.0  ;;  %7976 = vmatpush.bf16.msrb.mxu1 %v12065_v29 }
 0x5aa   : > { %v7273_v5 = vpack.c.bf16 %v7253_v58, %v7251_v2 }
 0x5ab   : > { %v7218_v7 = vpop.f32.mrf.mxu3 }
 0x5ac   : > { %v7219_v18 = vadd.f32 %v7218_v7, %v7170_v27  ;;  %7511 = vmatmul.bf16.gmra.mxu0 %v7273_v5  ;;  %7609 = vmatmul.bf16.gmra.mxu2 %v7273_v5  ;;  %v7177_v21 = vpop.f32.mrf.mxu2  ;;  %v12058_v27 = vld [vmem:[#allocation8 + $0x88] sm:$0xf0] }
 0x5ad   : > { %v7123_v17 = vpop.f32.mrf.mxu1  ;;  %v12061_v5 = vor.u32 %v13099_v12, %v12058_v27 }
 0x5ae   : > { %v7254_v43 = vmax.f32 %v7219_v18, 0.0  ;;  %v7124_v11 = vadd.f32 %v7123_v17, %v7075_v49  ;;  %v7081_v34 = vpop.f32.mrf.mxu0 }
 0x5af   : > { %v7082_v7 = vadd.f32 %v7081_v34, %v18739_v38  ;;  %8075 = vmatpush.bf16.msra.mxu3 %v12061_v5  ;;  %v12242_v34 = vld [vmem:[#allocation10 + $0xf8] sm:$0xf0]  ;;  %v12176_v5 = vld [vmem:[#allocation10 + $0x70] sm:$0xf] }
 0x5b0   : > { %v7274_v9 = vpack.c.bf16 %v7254_v43, %v7252_v44  ;;  %v7255_v51 = vmax.f32 %v7124_v11, 0.0  ;;  %v7178_v43 = vadd.f32 %v7177_v21, %v18742_v60 }
 0x5b2   : > { %7560 = vmatmul.bf16.gmra.mxu1 %v7274_v9  ;;  %7658 = vmatmul.bf16.gmra.mxu3 %v7274_v9 }
 0x5b3   : > { %v7221_v35 = vpop.f32.mrf.mxu3 }
 0x5b4   : > { %v7222_v59 = vadd.f32 %v7221_v35, %v7173_v45  ;;  %v7179_v44 = vpop.f32.mrf.mxu2  ;;  %v13084_v35 = vld [vmem:[#allocation8 + $0x4] sm:$0xf0] }
 0x5b5   : > { %v7125_v37 = vpop.f32.mrf.mxu1  ;;  %v7180_v48 = vadd.f32 %v7179_v44, %v18742_v60  ;;  %v11993_v10 = vor.u32 %v13084_v35, %v11992_v62 }
 0x5b6   : > { %v7126_v54 = vadd.f32 %v7125_v37, %v7077_v47  ;;  %v7256_v2 = vmax.f32 %v7222_v59, 0.0  ;;  %v12057_v47 = vor.u32 %v13100_v22, %v12056_v57  ;;  %v7312_v37 = vld [vmem:[#allocation23 + $0x2] ss:$8 sm:$0x3] }
 0x5b7   : > { %7928 = vmatpush.bf16.msrb.mxu0 %v11993_v10  ;;  %v18788_v45 = vperm.slane %v7312_v37, 0  ;;  %v18791_v29 = vperm.slane %v7312_v37, 1  ;;  %v13143_v37 = vld [vmem:[#allocation10 + $0xe4] sm:$0xf] }
 0x5b8   : > { %v7257_v36 = vmax.f32 %v7126_v54, 0.0  ;;  %7977 = vmatpush.bf16.msrb.mxu1 %v12057_v47 }
 0x5ba   : > { %v7275_v24 = vpack.c.bf16 %v7257_v36, %v7255_v51 }
 0x5bb   : > { %v7223_v63 = vpop.f32.mrf.mxu3 }
 0x5bc   : > { %v7224_v4 = vadd.f32 %v7223_v63, %v7175_v13  ;;  %7516 = vmatmul.bf16.gmra.mxu0 %v7275_v24  ;;  %7614 = vmatmul.bf16.gmra.mxu2 %v7275_v24 }
 0x5bd   : > { %v7128_v0 = vpop.f32.mrf.mxu1 }
 0x5be   : > { %v7258_v58 = vmax.f32 %v7224_v4, 0.0  ;;  %v7129_v18 = vadd.f32 %v7128_v0, %v7080_v52  ;;  %v12245_v52 = vor.u32 %v13145_v61, %v12242_v34 }
 0x5c0   : > { %v7276_v42 = vpack.c.bf16 %v7258_v58, %v7256_v2  ;;  %v7259_v9 = vmax.f32 %v7129_v18, 0.0  ;;  %v13129_v2 = vld [vmem:[#allocation10 + $0x74] sm:$0xf]  ;;  %v12178_v58 = vld [vmem:[#allocation10 + $0x78] sm:$0xf0]  ;;  %8511 = vmatpush.bf16.msrb.mxu3 %v12245_v52 }
 0x5c1   : > { %v12181_v32 = vor.u32 %v13129_v2, %v12178_v58 }
 0x5c2   : > { %7565 = vmatmul.bf16.gmra.mxu1 %v7276_v42  ;;  %7663 = vmatmul.bf16.gmra.mxu3 %v7276_v42 }
 0x5c3   : > { %v7226_v16 = vpop.f32.mrf.mxu3  ;;  %8462 = vmatpush.bf16.msra.mxu2 %v12181_v32 }
 0x5c4   : > { %v7227_v20 = vadd.f32 %v7226_v16, %v7178_v43  ;;  %v13130_v16 = vld [vmem:[#allocation10 + $0x74] sm:$0xf0] }
 0x5c5   : > { %v7130_v55 = vpop.f32.mrf.mxu1 }
 0x5c6   : > { %v7131_v17 = vadd.f32 %v7130_v55, %v7082_v7  ;;  %v7260_v11 = vmax.f32 %v7227_v20, 0.0  ;;  %v12240_v7 = vld [vmem:[#allocation10 + $0xf0] sm:$0xf]  ;;  %v12177_v55 = vor.u32 %v13130_v16, %v12176_v5 }
 0x5c8   : > { %v7261_v49 = vmax.f32 %v7131_v17, 0.0  ;;  %v13146_v17 = vld [vmem:[#allocation10 + $0xf4] sm:$0xf0]  ;;  %8364 = vmatpush.bf16.msra.mxu0 %v12177_v55 }
 0x5c9   : > { %v12241_v43 = vor.u32 %v13146_v17, %v12240_v7 }
 0x5ca   : > { %v7277_v23 = vpack.c.bf16 %v7261_v49, %v7259_v9 }
 0x5cb   : > { %v7228_v33 = vpop.f32.mrf.mxu3  ;;  %8413 = vmatpush.bf16.msra.mxu1 %v12241_v43  ;;  %v12162_v43 = vld [vmem:[#allocation10 + $0x58] sm:$0xf0] }
 0x5cc   : > { %v7229_v38 = vadd.f32 %v7228_v33, %v7180_v48  ;;  %7521 = vmatmul.bf16.gmra.mxu0 %v7277_v23  ;;  %7619 = vmatmul.bf16.gmra.mxu2 %v7277_v23 }
 0x5ce   : > { %v7262_v50 = vmax.f32 %v7229_v38, 0.0 }
 0x5d0   : > { %v7278_v30 = vpack.c.bf16 %v7262_v50, %v7260_v11  ;;  %v13127_v11 = vld [vmem:[#allocation10 + $0x64] sm:$0xf]  ;;  %v12170_v50 = vld [vmem:[#allocation10 + $0x68] sm:$0xf0] }
 0x5d2   : > { %7570 = vmatmul.bf16.gmra.mxu1 %v7278_v30  ;;  %7668 = vmatmul.bf16.gmra.mxu3 %v7278_v30 }
 0x5d9   : > { %v7487_v60 = vpop.f32.mrf.mxu0 }
 0x5da   : > { %v7488_v36 = vadd.f32 %v7487_v60, %v18788_v45  ;;  %v12173_v60 = vor.u32 %v13127_v11, %v12170_v50 }
 0x5dc   : > { %8463 = vmatpush.bf16.msra.mxu2 %v12173_v60 }
 0x5df   : > { %v7536_v54 = vpop.f32.mrf.mxu1  ;;  %v7585_v56 = vpop.f32.mrf.mxu2 }
 0x5e0   : > { %v7537_v8 = vadd.f32 %v7536_v54, %v7488_v36  ;;  %v7586_v21 = vadd.f32 %v7585_v56, %v18791_v29  ;;  %v12234_v54 = vld [vmem:[#allocation10 + $0xe8] sm:$0xf0] }
 0x5e1   : > { %v7489_v51 = vpop.f32.mrf.mxu0 }
 0x5e2   : > { %v7490_v13 = vadd.f32 %v7489_v51, %v18788_v45  ;;  %v7674_v4 = vmax.f32 %v7537_v8, 0.0  ;;  %v12168_v8 = vld [vmem:[#allocation10 + $0x60] sm:$0xf] }
 0x5e5   : > { %v7634_v15 = vpop.f32.mrf.mxu3 }
 0x5e6   : > { %v7635_v40 = vadd.f32 %v7634_v15, %v7586_v21  ;;  %v12237_v15 = vor.u32 %v13143_v37, %v12234_v54 }
 0x5e7   : > { %v7538_v59 = vpop.f32.mrf.mxu1  ;;  %v7587_v24 = vpop.f32.mrf.mxu2 }
 0x5e8   : > { %v7539_v63 = vadd.f32 %v7538_v59, %v7490_v13  ;;  %v7588_v27 = vadd.f32 %v7587_v24, %v18791_v29  ;;  %v7675_v9 = vmax.f32 %v7635_v40, 0.0  ;;  %v13128_v13 = vld [vmem:[#allocation10 + $0x64] sm:$0xf0]  ;;  %v12232_v24 = vld [vmem:[#allocation10 + $0xe0] sm:$0xf]  ;;  %8512 = vmatpush.bf16.msrb.mxu3 %v12237_v15 }
 0x5e9   : > { %v7492_v42 = vpop.f32.mrf.mxu0  ;;  %v12169_v59 = vor.u32 %v13128_v13, %v12168_v8 }
 0x5ea   : > { %v7676_v0 = vmax.f32 %v7539_v63, 0.0  ;;  %v7493_v35 = vadd.f32 %v7492_v42, %v18788_v45  ;;  %v13144_v63 = vld [vmem:[#allocation10 + $0xe4] sm:$0xf0] }
 0x5eb   : > { %v12233_v2 = vor.u32 %v13144_v63, %v12232_v24  ;;  %8365 = vmatpush.bf16.msra.mxu0 %v12169_v59 }
 0x5ec   : > { %v7706_v12 = vpack.c.bf16 %v7676_v0, %v7674_v4 }
 0x5ed   : > { %v7636_v18 = vpop.f32.mrf.mxu3  ;;  %8414 = vmatpush.bf16.msra.mxu1 %v12233_v2 }
 0x5ee   : > { %v7637_v44 = vadd.f32 %v7636_v18, %v7588_v27  ;;  %7929 = vmatmul.bf16.vlgmr.msrb.gmra.mxu0 %v7706_v12  ;;  %8027 = vmatmul.bf16.vlgmr.msrb.gmra.mxu2 %v7706_v12 }
 0x5ef   : > { %v7541_v48 = vpop.f32.mrf.mxu1  ;;  %v7590_v20 = vpop.f32.mrf.mxu2 }
 0x5f0   : > { %v7677_v49 = vmax.f32 %v7637_v44, 0.0  ;;  %v7542_v33 = vadd.f32 %v7541_v48, %v7493_v35  ;;  %v7591_v51 = vadd.f32 %v7590_v20, %v18791_v29  ;;  %v13125_v44 = vld [vmem:[#allocation10 + $0x54] sm:$0xf]  ;;  %v12226_v20 = vld [vmem:[#allocation10 + $0xd8] sm:$0xf0] }
 0x5f1   : > { %v7494_v62 = vpop.f32.mrf.mxu0  ;;  %v13141_v48 = vld [vmem:[#allocation10 + $0xd4] sm:$0xf] }
 0x5f2   : > { %v7707_v23 = vpack.c.bf16 %v7677_v49, %v7675_v9  ;;  %v7495_v10 = vadd.f32 %v7494_v62, %v18788_v45  ;;  %v7678_v56 = vmax.f32 %v7542_v33, 0.0  ;;  %v12165_v49 = vor.u32 %v13125_v44, %v12162_v43  ;;  %v12160_v33 = vld [vmem:[#allocation10 + $0x50] sm:$0xf] }
 0x5f4   : > { %7978 = vmatmul.bf16.vlgmr.msrb.gmra.mxu1 %v7707_v23  ;;  %8076 = vmatmul.bf16.vlgmr.msra.gmra.mxu3 %v7707_v23 }
 0x5f5   : > { %v7639_v57 = vpop.f32.mrf.mxu3  ;;  %8464 = vmatpush.bf16.msra.mxu2 %v12165_v49 }
 0x5f6   : > { %v7640_v4 = vadd.f32 %v7639_v57, %v7591_v51  ;;  %v12229_v57 = vor.u32 %v13141_v48, %v12226_v20 }
 0x5f7   : > { %v7543_v22 = vpop.f32.mrf.mxu1  ;;  %v7592_v38 = vpop.f32.mrf.mxu2 }
 0x5f8   : > { %v7544_v47 = vadd.f32 %v7543_v22, %v7495_v10  ;;  %v7593_v21 = vadd.f32 %v7592_v38, %v18791_v29  ;;  %v7679_v34 = vmax.f32 %v7640_v4, 0.0  ;;  %v13126_v10 = vld [vmem:[#allocation10 + $0x54] sm:$0xf0]  ;;  %v12224_v38 = vld [vmem:[#allocation10 + $0xd0] sm:$0xf]  ;;  %8513 = vmatpush.bf16.msrb.mxu3 %v12229_v57 }
 0x5f9   : > { %v7497_v30 = vpop.f32.mrf.mxu0  ;;  %v12161_v22 = vor.u32 %v13126_v10, %v12160_v33 }
 0x5fa   : > { %v7680_v36 = vmax.f32 %v7544_v47, 0.0  ;;  %v7498_v52 = vadd.f32 %v7497_v30, %v18788_v45  ;;  %v13142_v47 = vld [vmem:[#allocation10 + $0xd4] sm:$0xf0] }
 0x5fb   : > { %v12225_v60 = vor.u32 %v13142_v47, %v12224_v38  ;;  %8366 = vmatpush.bf16.msra.mxu0 %v12161_v22 }
 0x5fc   : > { %v7708_v0 = vpack.c.bf16 %v7680_v36, %v7678_v56 }
 0x5fd   : > { %v7641_v58 = vpop.f32.mrf.mxu3  ;;  %8415 = vmatpush.bf16.msra.mxu1 %v12225_v60 }
 0x5fe   : > { %v7642_v42 = vadd.f32 %v7641_v58, %v7593_v21  ;;  %7934 = vmatmul.bf16.gmra.mxu0 %v7708_v0  ;;  %8032 = vmatmul.bf16.gmra.mxu2 %v7708_v0  ;;  %v13123_v58 = vld [vmem:[#allocation10 + $0x44] sm:$0xf] }
 0x5ff   : > { %v7546_v32 = vpop.f32.mrf.mxu1  ;;  %v7595_v61 = vpop.f32.mrf.mxu2 }
 0x600   : > { %v7681_v40 = vmax.f32 %v7642_v42, 0.0  ;;  %v7547_v16 = vadd.f32 %v7546_v32, %v7498_v52  ;;  %v7596_v62 = vadd.f32 %v7595_v61, %v18791_v29  ;;  %v12154_v42 = vld [vmem:[#allocation10 + $0x48] sm:$0xf0] }
 0x601   : > { %v7499_v12 = vpop.f32.mrf.mxu0  ;;  %v12157_v61 = vor.u32 %v13123_v58, %v12154_v42 }
 0x602   : > { %v7709_v27 = vpack.c.bf16 %v7681_v40, %v7679_v34  ;;  %v7500_v7 = vadd.f32 %v7499_v12, %v18788_v45  ;;  %v7682_v23 = vmax.f32 %v7547_v16, 0.0  ;;  %v13139_v34 = vld [vmem:[#allocation10 + $0xc4] sm:$0xf]  ;;  %v12218_v40 = vld [vmem:[#allocation10 + $0xc8] sm:$0xf0] }
 0x603   : > { %v12152_v16 = vld [vmem:[#allocation10 + $0x40] sm:$0xf]  ;;  %8465 = vmatpush.bf16.msra.mxu2 %v12157_v61 }
 0x604   : > { %7983 = vmatmul.bf16.gmra.mxu1 %v7709_v27  ;;  %8081 = vmatmul.bf16.gmra.mxu3 %v7709_v27 }
 0x605   : > { %v7644_v5 = vpop.f32.mrf.mxu3 }
 0x606   : > { %v7645_v11 = vadd.f32 %v7644_v5, %v7596_v62  ;;  %v12221_v5 = vor.u32 %v13139_v34, %v12218_v40 }
 0x607   : > { %v7548_v18 = vpop.f32.mrf.mxu1  ;;  %v7597_v55 = vpop.f32.mrf.mxu2 }
 0x608   : > { %v7549_v17 = vadd.f32 %v7548_v18, %v7500_v7  ;;  %v7598_v50 = vadd.f32 %v7597_v55, %v18791_v29  ;;  %v7683_v36 = vmax.f32 %v7645_v11, 0.0  ;;  %v13124_v7 = vld [vmem:[#allocation10 + $0x44] sm:$0xf0]  ;;  %v12216_v55 = vld [vmem:[#allocation10 + $0xc0] sm:$0xf]  ;;  %8514 = vmatpush.bf16.msrb.mxu3 %v12221_v5 }
 0x609   : > { %v7502_v9 = vpop.f32.mrf.mxu0  ;;  %v12153_v18 = vor.u32 %v13124_v7, %v12152_v16 }
 0x60a   : > { %v7684_v35 = vmax.f32 %v7549_v17, 0.0  ;;  %v7503_v59 = vadd.f32 %v7502_v9, %v18788_v45  ;;  %v13140_v17 = vld [vmem:[#allocation10 + $0xc4] sm:$0xf0] }
 0x60b   : > { %v12217_v49 = vor.u32 %v13140_v17, %v12216_v55  ;;  %8367 = vmatpush.bf16.msra.mxu0 %v12153_v18 }
 0x60c   : > { %v7710_v30 = vpack.c.bf16 %v7684_v35, %v7682_v23 }
 0x60d   : > { %v7646_v37 = vpop.f32.mrf.mxu3  ;;  %8416 = vmatpush.bf16.msra.mxu1 %v12217_v49 }
 0x60e   : > { %v7647_v54 = vadd.f32 %v7646_v37, %v7598_v50  ;;  %7939 = vmatmul.bf16.gmra.mxu0 %v7710_v30  ;;  %8037 = vmatmul.bf16.gmra.mxu2 %v7710_v30  ;;  %v13121_v37 = vld [vmem:[#allocation10 + $0x34] sm:$0xf] }
 0x60f   : > { %v7551_v56 = vpop.f32.mrf.mxu1  ;;  %v7600_v51 = vpop.f32.mrf.mxu2 }
 0x610   : > { %v7685_v15 = vmax.f32 %v7647_v54, 0.0  ;;  %v7552_v63 = vadd.f32 %v7551_v56, %v7503_v59  ;;  %v7601_v27 = vadd.f32 %v7600_v51, %v18791_v29  ;;  %v12146_v54 = vld [vmem:[#allocation10 + $0x38] sm:$0xf0] }
 0x611   : > { %v7504_v8 = vpop.f32.mrf.mxu0  ;;  %v12149_v51 = vor.u32 %v13121_v37, %v12146_v54 }
 0x612   : > { %v7711_v13 = vpack.c.bf16 %v7685_v15, %v7683_v36  ;;  %v7505_v4 = vadd.f32 %v7504_v8, %v18788_v45  ;;  %v7686_v12 = vmax.f32 %v7552_v63, 0.0  ;;  %v13137_v36 = vld [vmem:[#allocation10 + $0xb4] sm:$0xf]  ;;  %v12210_v15 = vld [vmem:[#allocation10 + $0xb8] sm:$0xf0] }
 0x613   : > { %v12144_v63 = vld [vmem:[#allocation10 + $0x30] sm:$0xf]  ;;  %8466 = vmatpush.bf16.msra.mxu2 %v12149_v51 }
 0x614   : > { %7988 = vmatmul.bf16.gmra.mxu1 %v7711_v13  ;;  %8086 = vmatmul.bf16.gmra.mxu3 %v7711_v13 }
 0x615   : > { %v7649_v24 = vpop.f32.mrf.mxu3 }
 0x616   : > { %v7650_v44 = vadd.f32 %v7649_v24, %v7601_v27  ;;  %v12213_v24 = vor.u32 %v13137_v36, %v12210_v15 }
 0x617   : > { %v7553_v21 = vpop.f32.mrf.mxu1  ;;  %v7602_v0 = vpop.f32.mrf.mxu2 }
 0x618   : > { %v7554_v2 = vadd.f32 %v7553_v21, %v7505_v4  ;;  %v7603_v43 = vadd.f32 %v7602_v0, %v18791_v29  ;;  %v7687_v35 = vmax.f32 %v7650_v44, 0.0  ;;  %v13122_v4 = vld [vmem:[#allocation10 + $0x34] sm:$0xf0]  ;;  %v12208_v0 = vld [vmem:[#allocation10 + $0xb0] sm:$0xf]  ;;  %8515 = vmatpush.bf16.msrb.mxu3 %v12213_v24 }
 0x619   : > { %v7507_v32 = vpop.f32.mrf.mxu0  ;;  %v12145_v21 = vor.u32 %v13122_v4, %v12144_v63 }
 0x61a   : > { %v7688_v52 = vmax.f32 %v7554_v2, 0.0  ;;  %v7508_v22 = vadd.f32 %v7507_v32, %v18788_v45  ;;  %v13138_v2 = vld [vmem:[#allocation10 + $0xb4] sm:$0xf0] }
 0x61b   : > { %v12209_v61 = vor.u32 %v13138_v2, %v12208_v0  ;;  %8368 = vmatpush.bf16.msra.mxu0 %v12145_v21  ;;  %v13117_v0 = vld [vmem:[#allocation10 + $0x14] sm:$0xf]  ;;  %v12130_v2 = vld [vmem:[#allocation10 + $0x18] sm:$0xf0] }
 0x61c   : > { %v7712_v9 = vpack.c.bf16 %v7688_v52, %v7686_v12 }
 0x61d   : > { %v7651_v48 = vpop.f32.mrf.mxu3  ;;  %8417 = vmatpush.bf16.msra.mxu1 %v12209_v61  ;;  %v12194_v61 = vld [vmem:[#allocation10 + $0x98] sm:$0xf0] }
 0x61e   : > { %v7652_v20 = vadd.f32 %v7651_v48, %v7603_v43  ;;  %7944 = vmatmul.bf16.gmra.mxu0 %v7712_v9  ;;  %8042 = vmatmul.bf16.gmra.mxu2 %v7712_v9  ;;  %v13119_v48 = vld [vmem:[#allocation10 + $0x24] sm:$0xf] }
 0x61f   : > { %v7556_v23 = vpop.f32.mrf.mxu1  ;;  %v7605_v62 = vpop.f32.mrf.mxu2 }
 0x620   : > { %v7689_v57 = vmax.f32 %v7652_v20, 0.0  ;;  %v7557_v47 = vadd.f32 %v7556_v23, %v7508_v22  ;;  %v7606_v13 = vadd.f32 %v7605_v62, %v18791_v29  ;;  %v12138_v20 = vld [vmem:[#allocation10 + $0x28] sm:$0xf0] }
 0x621   : > { %v7509_v33 = vpop.f32.mrf.mxu0  ;;  %v12141_v62 = vor.u32 %v13119_v48, %v12138_v20 }
 0x622   : > { %v7713_v10 = vpack.c.bf16 %v7689_v57, %v7687_v35  ;;  %v7510_v11 = vadd.f32 %v7509_v33, %v18788_v45  ;;  %v7690_v8 = vmax.f32 %v7557_v47, 0.0  ;;  %v13135_v35 = vld [vmem:[#allocation10 + $0xa4] sm:$0xf]  ;;  %v12202_v57 = vld [vmem:[#allocation10 + $0xa8] sm:$0xf0] }
 0x623   : > { %v12136_v47 = vld [vmem:[#allocation10 + $0x20] sm:$0xf]  ;;  %8467 = vmatpush.bf16.msra.mxu2 %v12141_v62 }
 0x624   : > { %7993 = vmatmul.bf16.gmra.mxu1 %v7713_v10  ;;  %8091 = vmatmul.bf16.gmra.mxu3 %v7713_v10 }
 0x625   : > { %v7654_v38 = vpop.f32.mrf.mxu3 }
 0x626   : > { %v7655_v58 = vadd.f32 %v7654_v38, %v7606_v13  ;;  %v12205_v38 = vor.u32 %v13135_v35, %v12202_v57 }
 0x627   : > { %v7558_v50 = vpop.f32.mrf.mxu1  ;;  %v7607_v30 = vpop.f32.mrf.mxu2 }
 0x628   : > { %v7559_v60 = vadd.f32 %v7558_v50, %v7510_v11  ;;  %v7608_v42 = vadd.f32 %v7607_v30, %v18791_v29  ;;  %v7691_v52 = vmax.f32 %v7655_v58, 0.0  ;;  %v13120_v11 = vld [vmem:[#allocation10 + $0x24] sm:$0xf0]  ;;  %v12200_v30 = vld [vmem:[#allocation10 + $0xa0] sm:$0xf]  ;;  %8516 = vmatpush.bf16.msrb.mxu3 %v12205_v38 }
 0x629   : > { %v7512_v56 = vpop.f32.mrf.mxu0  ;;  %v12137_v50 = vor.u32 %v13120_v11, %v12136_v47  ;;  %v13133_v58 = vld [vmem:[#allocation10 + $0x94] sm:$0xf]  ;;  %v13115_v11 = vld [vmem:[#allocation10 + $0x4] sm:$0xf] }
 0x62a   : > { %v7692_v59 = vmax.f32 %v7559_v60, 0.0  ;;  %v7513_v18 = vadd.f32 %v7512_v56, %v18788_v45  ;;  %v13136_v60 = vld [vmem:[#allocation10 + $0xa4] sm:$0xf0] }
 0x62b   : > { %v12201_v51 = vor.u32 %v13136_v60, %v12200_v30  ;;  %8369 = vmatpush.bf16.msra.mxu0 %v12137_v50  ;;  %v12122_v50 = vld [vmem:[#allocation10 + $0x8] sm:$0xf0] }
 0x62c   : > { %v7714_v32 = vpack.c.bf16 %v7692_v59, %v7690_v8  ;;  %v12125_v60 = vor.u32 %v13115_v11, %v12122_v50 }
 0x62d   : > { %v7656_v34 = vpop.f32.mrf.mxu3  ;;  %8418 = vmatpush.bf16.msra.mxu1 %v12201_v51 }
 0x62e   : > { %v7657_v40 = vadd.f32 %v7656_v34, %v7608_v42  ;;  %7949 = vmatmul.bf16.gmra.mxu0 %v7714_v32  ;;  %8047 = vmatmul.bf16.gmra.mxu2 %v7714_v32  ;;  %v12133_v32 = vor.u32 %v13117_v0, %v12130_v2  ;;  %v12128_v34 = vld [vmem:[#allocation10 + $0x10] sm:$0xf] }
 0x62f   : > { %v7561_v12 = vpop.f32.mrf.mxu1  ;;  %v7610_v27 = vpop.f32.mrf.mxu2 }
 0x630   : > { %v7693_v5 = vmax.f32 %v7657_v40, 0.0  ;;  %v7562_v17 = vadd.f32 %v7561_v12, %v7513_v18  ;;  %v7611_v10 = vadd.f32 %v7610_v27, %v18791_v29  ;;  %v13118_v40 = vld [vmem:[#allocation10 + $0x14] sm:$0xf0]  ;;  %8468 = vmatpush.bf16.msra.mxu2 %v12133_v32  ;;  %v13116_v32 = vld [vmem:[#allocation10 + $0x4] sm:$0xf0] }
 0x631   : > { %v7514_v16 = vpop.f32.mrf.mxu0 }
 0x632   : > { %v7715_v7 = vpack.c.bf16 %v7693_v5, %v7691_v52  ;;  %v7515_v44 = vadd.f32 %v7514_v16, %v18788_v45  ;;  %v7694_v33 = vmax.f32 %v7562_v17, 0.0  ;;  %v12197_v52 = vor.u32 %v13133_v58, %v12194_v61  ;;  %v12192_v16 = vld [vmem:[#allocation10 + $0x90] sm:$0xf]  ;;  %v12184_v61 = vld [vmem:[#allocation10 + $0x80] sm:$0xf] }
 0x633   : > { %v12129_v5 = vor.u32 %v13118_v40, %v12128_v34 }
 0x634   : > { %7998 = vmatmul.bf16.gmra.mxu1 %v7715_v7  ;;  %8096 = vmatmul.bf16.gmra.mxu3 %v7715_v7  ;;  %v13134_v7 = vld [vmem:[#allocation10 + $0x94] sm:$0xf0] }
 0x635   : > { %v7659_v55 = vpop.f32.mrf.mxu3  ;;  %v12193_v17 = vor.u32 %v13134_v7, %v12192_v16  ;;  %8517 = vmatpush.bf16.msrb.mxu3 %v12197_v52  ;;  %8370 = vmatpush.bf16.msra.mxu0 %v12129_v5  ;;  %v12368_v7 = vld [vmem:[#allocation11 + $0x70] sm:$0xf] }
 0x636   : > { %v7660_v37 = vadd.f32 %v7659_v55, %v7611_v10  ;;  %8469 = vmatpush.bf16.msra.mxu2 %v12125_v60  ;;  %v12360_v60 = vld [vmem:[#allocation11 + $0x60] sm:$0xf] }
 0x637   : > { %v7563_v43 = vpop.f32.mrf.mxu1  ;;  %v7612_v9 = vpop.f32.mrf.mxu2  ;;  %8419 = vmatpush.bf16.msra.mxu1 %v12193_v17  ;;  %v12370_v17 = vld [vmem:[#allocation11 + $0x78] sm:$0xf0] }
 0x638   : > { %v7564_v49 = vadd.f32 %v7563_v43, %v7515_v44  ;;  %v7613_v54 = vadd.f32 %v7612_v9, %v18791_v29  ;;  %v7695_v59 = vmax.f32 %v7660_v37, 0.0  ;;  %v13131_v37 = vld [vmem:[#allocation10 + $0x84] sm:$0xf] }
 0x639   : > { %v7517_v23 = vpop.f32.mrf.mxu0 }
 0x63a   : > { %v7696_v22 = vmax.f32 %v7564_v49, 0.0  ;;  %v7518_v21 = vadd.f32 %v7517_v23, %v18788_v45 }
 0x63c   : > { %v7716_v56 = vpack.c.bf16 %v7696_v22, %v7694_v33 }
 0x63d   : > { %v7661_v36 = vpop.f32.mrf.mxu3 }
 0x63e   : > { %v7662_v15 = vadd.f32 %v7661_v36, %v7613_v54  ;;  %7954 = vmatmul.bf16.gmra.mxu0 %v7716_v56  ;;  %8052 = vmatmul.bf16.gmra.mxu2 %v7716_v56  ;;  %v12186_v54 = vld [vmem:[#allocation10 + $0x88] sm:$0xf0] }
 0x63f   : > { %v7566_v8 = vpop.f32.mrf.mxu1  ;;  %v7615_v13 = vpop.f32.mrf.mxu2  ;;  %v12189_v51 = vor.u32 %v13131_v37, %v12186_v54  ;;  %v13160_v37 = vld [vmem:[#allocation11 + $0x64] sm:$0xf0]  ;;  %v13159_v54 = vld [vmem:[#allocation11 + $0x64] sm:$0xf] }
 0x640   : > { %v7697_v24 = vmax.f32 %v7662_v15, 0.0  ;;  %v7567_v12 = vadd.f32 %v7566_v8, %v7518_v21  ;;  %v7616_v49 = vadd.f32 %v7615_v13, %v18791_v29 }
 0x641   : > { %v7519_v63 = vpop.f32.mrf.mxu0  ;;  %8518 = vmatpush.bf16.msrb.mxu3 %v12189_v51 }
 0x642   : > { %v7717_v4 = vpack.c.bf16 %v7697_v24, %v7695_v59  ;;  %v7520_v27 = vadd.f32 %v7519_v63, %v18788_v45  ;;  %v7698_v9 = vmax.f32 %v7567_v12, 0.0  ;;  %v13132_v12 = vld [vmem:[#allocation10 + $0x84] sm:$0xf0] }
 0x644   : > { %8003 = vmatmul.bf16.gmra.mxu1 %v7717_v4  ;;  %8101 = vmatmul.bf16.gmra.mxu3 %v7717_v4 }
 0x645   : > { %v7664_v42 = vpop.f32.mrf.mxu3 }
 0x646   : > { %v7665_v20 = vadd.f32 %v7664_v42, %v7616_v49  ;;  %v12120_v42 = vld [vmem:[#allocation10] sm:$0xf]  ;;  %v13178_v49 = vld [vmem:[#allocation13 + $0x74] sm:$0xf0] }
 0x647   : > { %v7568_v18 = vpop.f32.mrf.mxu1  ;;  %v7617_v55 = vpop.f32.mrf.mxu2  ;;  %v12121_v40 = vor.u32 %v13116_v32, %v12120_v42  ;;  %v13176_v42 = vld [vmem:[#allocation13 + $0x64] sm:$0xf0]  ;;  %v13175_v32 = vld [vmem:[#allocation13 + $0x64] sm:$0xf] }
 0x648   : > { %v7569_v44 = vadd.f32 %v7568_v18, %v7520_v27  ;;  %v7618_v23 = vadd.f32 %v7617_v55, %v18791_v29  ;;  %v7699_v22 = vmax.f32 %v7665_v20, 0.0  ;;  %v13161_v18 = vld [vmem:[#allocation11 + $0x74] sm:$0xf]  ;;  %v7755_v20 = vld [vmem:[#allocation23 + $0x3] ss:$8 sm:$0x3] }
 0x649   : > { %v7522_v43 = vpop.f32.mrf.mxu0  ;;  %8371 = vmatpush.bf16.msra.mxu0 %v12121_v40  ;;  %v12298_v40 = vld [vmem:[#allocation13 + $0x68] sm:$0xf0] }
 0x64a   : > { %v7700_v48 = vmax.f32 %v7569_v44, 0.0  ;;  %v7523_v56 = vadd.f32 %v7522_v43, %v18788_v45  ;;  %v12373_v44 = vor.u32 %v13161_v18, %v12370_v17  ;;  %v13158_v17 = vld [vmem:[#allocation11 + $0x54] sm:$0xf0] }
 0x64c   : > { %v7718_v62 = vpack.c.bf16 %v7700_v48, %v7698_v9  ;;  %8947 = vmatpush.bf16.msra.mxu3 %v12373_v44  ;;  %v12304_v9 = vld [vmem:[#allocation13 + $0x70] sm:$0xf]  ;;  %v13177_v48 = vld [vmem:[#allocation13 + $0x74] sm:$0xf] }
 0x64d   : > { %v7666_v35 = vpop.f32.mrf.mxu3  ;;  %v13157_v44 = vld [vmem:[#allocation11 + $0x54] sm:$0xf] }
 0x64e   : > { %v7667_v57 = vadd.f32 %v7666_v35, %v7618_v23  ;;  %7959 = vmatmul.bf16.gmra.mxu0 %v7718_v62  ;;  %8057 = vmatmul.bf16.gmra.mxu2 %v7718_v62  ;;  %v12305_v23 = vor.u32 %v13178_v49, %v12304_v9  ;;  %v12306_v62 = vld [vmem:[#allocation13 + $0x78] sm:$0xf0] }
 0x64f   : > { %v7571_v33 = vpop.f32.mrf.mxu1  ;;  %v7620_v10 = vpop.f32.mrf.mxu2  ;;  %v12309_v35 = vor.u32 %v13177_v48, %v12306_v62  ;;  %v12354_v49 = vld [vmem:[#allocation11 + $0x58] sm:$0xf0] }
 0x650   : > { %v7701_v38 = vmax.f32 %v7667_v57, 0.0  ;;  %v7572_v15 = vadd.f32 %v7571_v33, %v7523_v56  ;;  %v7621_v4 = vadd.f32 %v7620_v10, %v18791_v29  ;;  %8720 = vmatpush.bf16.msrb.mxu0 %v12305_v23  ;;  %v18824_v10 = vperm.slane %v7755_v20, 0 }
 0x651   : > { %v7524_v30 = vpop.f32.mrf.mxu0  ;;  %v12357_v23 = vor.u32 %v13157_v44, %v12354_v49  ;;  %v13172_v44 = vld [vmem:[#allocation13 + $0x44] sm:$0xf0]  ;;  %v12282_v49 = vld [vmem:[#allocation13 + $0x48] sm:$0xf0] }
 0x652   : > { %v7719_v47 = vpack.c.bf16 %v7701_v38, %v7699_v22  ;;  %v7525_v8 = vadd.f32 %v7524_v30, %v18788_v45  ;;  %v7702_v63 = vmax.f32 %v7572_v15, 0.0  ;;  %v12185_v45 = vor.u32 %v13132_v12, %v12184_v61  ;;  %v12362_v15 = vld [vmem:[#allocation11 + $0x68] sm:$0xf0] }
 0x654   : > { %8008 = vmatmul.bf16.gmra.mxu1 %v7719_v47  ;;  %8106 = vmatmul.bf16.gmra.mxu3 %v7719_v47  ;;  %v18827_v47 = vperm.slane %v7755_v20, 1 }
 0x655   : > { %v7669_v36 = vpop.f32.mrf.mxu3  ;;  %8420 = vmatpush.bf16.msra.mxu1 %v12185_v45 }
 0x656   : > { %v7670_v0 = vadd.f32 %v7669_v36, %v7621_v4  ;;  %v12361_v36 = vor.u32 %v13160_v37, %v12360_v60  ;;  %v13173_v37 = vld [vmem:[#allocation13 + $0x54] sm:$0xf] }
 0x657   : > { %v7573_v13 = vpop.f32.mrf.mxu1  ;;  %v7622_v24 = vpop.f32.mrf.mxu2 }
 0x658   : > { %v7574_v59 = vadd.f32 %v7573_v13, %v7525_v8  ;;  %v7623_v2 = vadd.f32 %v7622_v24, %v18791_v29  ;;  %v7703_v52 = vmax.f32 %v7670_v0, 0.0  ;;  %v13162_v29 = vld [vmem:[#allocation11 + $0x74] sm:$0xf0]  ;;  %v12365_v13 = vor.u32 %v13159_v54, %v12362_v15  ;;  %v12290_v54 = vld [vmem:[#allocation13 + $0x58] sm:$0xf0] }
 0x659   : > { %v12369_v55 = vor.u32 %v13162_v29, %v12368_v7  ;;  %8769 = vmatpush.bf16.msrb.mxu1 %v12309_v35  ;;  %v12293_v15 = vor.u32 %v13173_v37, %v12290_v54  ;;  %v12336_v37 = vld [vmem:[#allocation11 + $0x30] sm:$0xf]  ;;  %v13154_v54 = vld [vmem:[#allocation11 + $0x34] sm:$0xf0] }
 0x65a   : > { %v7704_v21 = vmax.f32 %v7574_v59, 0.0  ;;  %8948 = vmatpush.bf16.msra.mxu3 %v12365_v13 }
 0x65b   : > { %8898 = vmatpush.bf16.msrb.mxu2 %v12369_v55  ;;  %v12352_v55 = vld [vmem:[#allocation11 + $0x50] sm:$0xf] }
 0x65c   : > { %v7720_v58 = vpack.c.bf16 %v7704_v21, %v7702_v63  ;;  %v12353_v9 = vor.u32 %v13158_v17, %v12352_v55  ;;  %v12280_v17 = vld [vmem:[#allocation13 + $0x40] sm:$0xf] }
 0x65d   : > { %v7671_v34 = vpop.f32.mrf.mxu3 }
 0x65e   : > { %v7672_v27 = vadd.f32 %v7671_v34, %v7623_v2  ;;  %7964 = vmatmul.bf16.gmra.mxu0 %v7720_v58  ;;  %8062 = vmatmul.bf16.gmra.mxu2 %v7720_v58  ;;  %v12296_v58 = vld [vmem:[#allocation13 + $0x60] sm:$0xf] }
 0x65f   : > { %8899 = vmatpush.bf16.msrb.mxu2 %v12361_v36  ;;  %v12297_v34 = vor.u32 %v13176_v42, %v12296_v58  ;;  %8949 = vmatpush.bf16.msra.mxu3 %v12357_v23  ;;  %v12344_v58 = vld [vmem:[#allocation11 + $0x40] sm:$0xf]  ;;  %v13156_v42 = vld [vmem:[#allocation11 + $0x44] sm:$0xf0] }
 0x660   : > { %v7705_v5 = vmax.f32 %v7672_v27, 0.0  ;;  %v12301_v27 = vor.u32 %v13175_v32, %v12298_v40  ;;  %v13155_v32 = vld [vmem:[#allocation11 + $0x44] sm:$0xf]  ;;  %v12346_v40 = vld [vmem:[#allocation11 + $0x48] sm:$0xf0] }
 0x661   : > { %8721 = vmatpush.bf16.msrb.mxu0 %v12297_v34  ;;  %v12345_v34 = vor.u32 %v13156_v42, %v12344_v58  ;;  %v12272_v42 = vld [vmem:[#allocation13 + $0x30] sm:$0xf] }
 0x662   : > { %v7721_v16 = vpack.c.bf16 %v7705_v5, %v7703_v52  ;;  %8770 = vmatpush.bf16.msrb.mxu1 %v12301_v27 }
 0x663   : > { %8900 = vmatpush.bf16.msrb.mxu2 %v12353_v9  ;;  %v13171_v9 = vld [vmem:[#allocation13 + $0x44] sm:$0xf] }
 0x664   : > { %8013 = vmatmul.bf16.gmra.mxu1 %v7721_v16  ;;  %8111 = vmatmul.bf16.gmra.mxu3 %v7721_v16 }
 0x666   : > { %8771 = vmatpush.bf16.msrb.mxu1 %v12293_v15  ;;  %v12338_v15 = vld [vmem:[#allocation11 + $0x38] sm:$0xf0] }
 0x667   : > { %8901 = vmatpush.bf16.msrb.mxu2 %v12345_v34  ;;  %v13169_v34 = vld [vmem:[#allocation13 + $0x34] sm:$0xf] }
 0x66b   : > { %v7930_v43 = vpop.f32.mrf.mxu0 }
 0x66c   : > { %v7931_v38 = vadd.f32 %v7930_v43, %v18824_v10 }
 0x671   : > { %v7979_v57 = vpop.f32.mrf.mxu1  ;;  %v8028_v33 = vpop.f32.mrf.mxu2 }
 0x672   : > { %v7980_v50 = vadd.f32 %v7979_v57, %v7931_v38  ;;  %v8029_v24 = vadd.f32 %v8028_v33, %v18827_v47 }
 0x673   : > { %v7932_v22 = vpop.f32.mrf.mxu0 }
 0x674   : > { %v7933_v30 = vadd.f32 %v7932_v22, %v18824_v10  ;;  %v8117_v59 = vmax.f32 %v7980_v50, 0.0  ;;  %v12288_v50 = vld [vmem:[#allocation13 + $0x50] sm:$0xf] }
 0x677   : > { %v8077_v11 = vpop.f32.mrf.mxu3 }
 0x678   : > { %v8078_v21 = vadd.f32 %v8077_v11, %v8029_v24 }
 0x679   : > { %v7981_v56 = vpop.f32.mrf.mxu1  ;;  %v8030_v51 = vpop.f32.mrf.mxu2 }
 0x67a   : > { %v7982_v8 = vadd.f32 %v7981_v56, %v7933_v30  ;;  %v8031_v2 = vadd.f32 %v8030_v51, %v18827_v47  ;;  %v8118_v45 = vmax.f32 %v8078_v21, 0.0  ;;  %v13174_v30 = vld [vmem:[#allocation13 + $0x54] sm:$0xf0] }
 0x67b   : > { %v7935_v4 = vpop.f32.mrf.mxu0  ;;  %v12289_v60 = vor.u32 %v13174_v30, %v12288_v50 }
 0x67c   : > { %v8119_v63 = vmax.f32 %v7982_v8, 0.0  ;;  %v7936_v18 = vadd.f32 %v7935_v4, %v18824_v10 }
 0x67d   : > { %8722 = vmatpush.bf16.msrb.mxu0 %v12289_v60 }
 0x67e   : > { %v8149_v0 = vpack.c.bf16 %v8119_v63, %v8117_v59 }
 0x67f   : > { %v8079_v61 = vpop.f32.mrf.mxu3 }
 0x680   : > { %v8080_v12 = vadd.f32 %v8079_v61, %v8031_v2  ;;  %8372 = vmatmul.bf16.vlgmr.msra.gmra.mxu0 %v8149_v0  ;;  %8470 = vmatmul.bf16.vlgmr.msra.gmra.mxu2 %v8149_v0 }
 0x681   : > { %v7984_v5 = vpop.f32.mrf.mxu1  ;;  %v8033_v16 = vpop.f32.mrf.mxu2 }
 0x682   : > { %v8120_v52 = vmax.f32 %v8080_v12, 0.0  ;;  %v7985_v48 = vadd.f32 %v7984_v5, %v7936_v18  ;;  %v8034_v38 = vadd.f32 %v8033_v16, %v18827_v47 }
 0x683   : > { %v7937_v29 = vpop.f32.mrf.mxu0 }
 0x684   : > { %v8150_v7 = vpack.c.bf16 %v8120_v52, %v8118_v45  ;;  %v7938_v20 = vadd.f32 %v7937_v29, %v18824_v10  ;;  %v8121_v22 = vmax.f32 %v7985_v48, 0.0  ;;  %v12349_v45 = vor.u32 %v13155_v32, %v12346_v40  ;;  %v13170_v32 = vld [vmem:[#allocation13 + $0x34] sm:$0xf0]  ;;  %v12274_v40 = vld [vmem:[#allocation13 + $0x38] sm:$0xf0] }
 0x686   : > { %8421 = vmatmul.bf16.vlgmr.msra.gmra.mxu1 %v8150_v7  ;;  %8519 = vmatmul.bf16.vlgmr.msrb.gmra.mxu3 %v8150_v7 }
 0x687   : > { %v8082_v43 = vpop.f32.mrf.mxu3  ;;  %8950 = vmatpush.bf16.msra.mxu3 %v12349_v45 }
 0x688   : > { %v8083_v56 = vadd.f32 %v8082_v43, %v8034_v38  ;;  %v12281_v43 = vor.u32 %v13172_v44, %v12280_v17 }
 0x689   : > { %v7986_v62 = vpop.f32.mrf.mxu1  ;;  %v8035_v35 = vpop.f32.mrf.mxu2 }
 0x68a   : > { %v7987_v57 = vadd.f32 %v7986_v62, %v7938_v20  ;;  %v8036_v51 = vadd.f32 %v8035_v35, %v18827_v47  ;;  %v8122_v63 = vmax.f32 %v8083_v56, 0.0  ;;  %v12285_v62 = vor.u32 %v13171_v9, %v12282_v49  ;;  %8723 = vmatpush.bf16.msrb.mxu0 %v12281_v43  ;;  %v13153_v56 = vld [vmem:[#allocation11 + $0x34] sm:$0xf]  ;;  %v12328_v9 = vld [vmem:[#allocation11 + $0x20] sm:$0xf] }
 0x68b   : > { %v7940_v33 = vpop.f32.mrf.mxu0  ;;  %v13152_v49 = vld [vmem:[#allocation11 + $0x24] sm:$0xf0] }
 0x68c   : > { %v8123_v11 = vmax.f32 %v7987_v57, 0.0  ;;  %v7941_v2 = vadd.f32 %v7940_v33, %v18824_v10  ;;  %8772 = vmatpush.bf16.msrb.mxu1 %v12285_v62  ;;  %v12330_v62 = vld [vmem:[#allocation11 + $0x28] sm:$0xf0] }
 0x68e   : > { %v8151_v36 = vpack.c.bf16 %v8123_v11, %v8121_v22 }
 0x68f   : > { %v8084_v8 = vpop.f32.mrf.mxu3 }
 0x690   : > { %v8085_v13 = vadd.f32 %v8084_v8, %v8036_v51  ;;  %8377 = vmatmul.bf16.gmra.mxu0 %v8151_v36  ;;  %8475 = vmatmul.bf16.gmra.mxu2 %v8151_v36  ;;  %v12337_v36 = vor.u32 %v13154_v54, %v12336_v37  ;;  %v12264_v54 = vld [vmem:[#allocation13 + $0x20] sm:$0xf] }
 0x691   : > { %v7989_v59 = vpop.f32.mrf.mxu1  ;;  %v8038_v24 = vpop.f32.mrf.mxu2 }
 0x692   : > { %v8124_v4 = vmax.f32 %v8085_v13, 0.0  ;;  %v7990_v12 = vadd.f32 %v7989_v59, %v7941_v2  ;;  %v8039_v18 = vadd.f32 %v8038_v24, %v18827_v47  ;;  %v12341_v59 = vor.u32 %v13153_v56, %v12338_v15  ;;  %8902 = vmatpush.bf16.msrb.mxu2 %v12337_v36  ;;  %v13168_v56 = vld [vmem:[#allocation13 + $0x24] sm:$0xf0]  ;;  %v13167_v36 = vld [vmem:[#allocation13 + $0x24] sm:$0xf] }
 0x693   : > { %v7942_v21 = vpop.f32.mrf.mxu0  ;;  %v12266_v15 = vld [vmem:[#allocation13 + $0x28] sm:$0xf0] }
 0x694   : > { %v8152_v0 = vpack.c.bf16 %v8124_v4, %v8122_v63  ;;  %v7943_v27 = vadd.f32 %v7942_v21, %v18824_v10  ;;  %v8125_v29 = vmax.f32 %v7990_v12, 0.0  ;;  %8951 = vmatpush.bf16.msra.mxu3 %v12341_v59 }
 0x696   : > { %8426 = vmatmul.bf16.gmra.mxu1 %v8152_v0  ;;  %8524 = vmatmul.bf16.gmra.mxu3 %v8152_v0 }
 0x697   : > { %v8087_v61 = vpop.f32.mrf.mxu3 }
 0x698   : > { %v8088_v48 = vadd.f32 %v8087_v61, %v8039_v18  ;;  %v12273_v61 = vor.u32 %v13170_v32, %v12272_v42 }
 0x699   : > { %v7991_v52 = vpop.f32.mrf.mxu1  ;;  %v8040_v5 = vpop.f32.mrf.mxu2 }
 0x69a   : > { %v7992_v16 = vadd.f32 %v7991_v52, %v7943_v27  ;;  %v8041_v20 = vadd.f32 %v8040_v5, %v18827_v47  ;;  %v8126_v38 = vmax.f32 %v8088_v48, 0.0  ;;  %v12277_v52 = vor.u32 %v13169_v34, %v12274_v40  ;;  %8724 = vmatpush.bf16.msrb.mxu0 %v12273_v61  ;;  %v13151_v48 = vld [vmem:[#allocation11 + $0x24] sm:$0xf]  ;;  %v12320_v34 = vld [vmem:[#allocation11 + $0x10] sm:$0xf] }
 0x69b   : > { %v7945_v7 = vpop.f32.mrf.mxu0  ;;  %v13150_v40 = vld [vmem:[#allocation11 + $0x14] sm:$0xf0] }
 0x69c   : > { %v8127_v55 = vmax.f32 %v7992_v16, 0.0  ;;  %v7946_v60 = vadd.f32 %v7945_v7, %v18824_v10  ;;  %8773 = vmatpush.bf16.msrb.mxu1 %v12277_v52  ;;  %v12322_v52 = vld [vmem:[#allocation11 + $0x18] sm:$0xf0] }
 0x69e   : > { %v8153_v23 = vpack.c.bf16 %v8127_v55, %v8125_v29 }
 0x69f   : > { %v8089_v35 = vpop.f32.mrf.mxu3 }
 0x6a0   : > { %v8090_v57 = vadd.f32 %v8089_v35, %v8041_v20  ;;  %8382 = vmatmul.bf16.gmra.mxu0 %v8153_v23  ;;  %8480 = vmatmul.bf16.gmra.mxu2 %v8153_v23  ;;  %v12329_v23 = vor.u32 %v13152_v49, %v12328_v9  ;;  %v12256_v49 = vld [vmem:[#allocation13 + $0x10] sm:$0xf] }
 0x6a1   : > { %v7994_v33 = vpop.f32.mrf.mxu1  ;;  %v8043_v22 = vpop.f32.mrf.mxu2 }
 0x6a2   : > { %v8128_v11 = vmax.f32 %v8090_v57, 0.0  ;;  %v7995_v8 = vadd.f32 %v7994_v33, %v7946_v60  ;;  %v8044_v2 = vadd.f32 %v8043_v22, %v18827_v47  ;;  %v12333_v33 = vor.u32 %v13151_v48, %v12330_v62  ;;  %8903 = vmatpush.bf16.msrb.mxu2 %v12329_v23  ;;  %v13166_v48 = vld [vmem:[#allocation13 + $0x14] sm:$0xf0]  ;;  %v13165_v23 = vld [vmem:[#allocation13 + $0x14] sm:$0xf] }
 0x6a3   : > { %v7947_v50 = vpop.f32.mrf.mxu0  ;;  %v12258_v62 = vld [vmem:[#allocation13 + $0x18] sm:$0xf0] }
 0x6a4   : > { %v8154_v30 = vpack.c.bf16 %v8128_v11, %v8126_v38  ;;  %v7948_v13 = vadd.f32 %v7947_v50, %v18824_v10  ;;  %v8129_v0 = vmax.f32 %v7995_v8, 0.0  ;;  %8952 = vmatpush.bf16.msra.mxu3 %v12333_v33 }
 0x6a6   : > { %8431 = vmatmul.bf16.gmra.mxu1 %v8154_v30  ;;  %8529 = vmatmul.bf16.gmra.mxu3 %v8154_v30 }
 0x6a7   : > { %v8092_v51 = vpop.f32.mrf.mxu3 }
 0x6a8   : > { %v8093_v12 = vadd.f32 %v8092_v51, %v8044_v2  ;;  %v12265_v51 = vor.u32 %v13168_v56, %v12264_v54 }
 0x6a9   : > { %v7996_v24 = vpop.f32.mrf.mxu1  ;;  %v8045_v63 = vpop.f32.mrf.mxu2 }
 0x6aa   : > { %v7997_v4 = vadd.f32 %v7996_v24, %v7948_v13  ;;  %v8046_v27 = vadd.f32 %v8045_v63, %v18827_v47  ;;  %v8130_v18 = vmax.f32 %v8093_v12, 0.0  ;;  %v12269_v24 = vor.u32 %v13167_v36, %v12266_v15  ;;  %8725 = vmatpush.bf16.msrb.mxu0 %v12265_v51  ;;  %v13149_v12 = vld [vmem:[#allocation11 + $0x14] sm:$0xf]  ;;  %v12312_v36 = vld [vmem:[#allocation11] sm:$0xf] }
 0x6ab   : > { %v7950_v21 = vpop.f32.mrf.mxu0  ;;  %v13148_v15 = vld [vmem:[#allocation11 + $0x4] sm:$0xf0] }
 0x6ac   : > { %v8131_v58 = vmax.f32 %v7997_v4, 0.0  ;;  %v7951_v43 = vadd.f32 %v7950_v21, %v18824_v10  ;;  %8774 = vmatpush.bf16.msrb.mxu1 %v12269_v24  ;;  %v12314_v24 = vld [vmem:[#allocation11 + $0x8] sm:$0xf0] }
 0x6ae   : > { %v8155_v45 = vpack.c.bf16 %v8131_v58, %v8129_v0 }
 0x6af   : > { %v8094_v5 = vpop.f32.mrf.mxu3 }
 0x6b0   : > { %v8095_v16 = vadd.f32 %v8094_v5, %v8046_v27  ;;  %8387 = vmatmul.bf16.gmra.mxu0 %v8155_v45  ;;  %8485 = vmatmul.bf16.gmra.mxu2 %v8155_v45  ;;  %v12321_v45 = vor.u32 %v13150_v40, %v12320_v34 }
 0x6b1   : > { %v7999_v7 = vpop.f32.mrf.mxu1  ;;  %v8048_v29 = vpop.f32.mrf.mxu2 }
 0x6b2   : > { %v8132_v55 = vmax.f32 %v8095_v16, 0.0  ;;  %v8000_v35 = vadd.f32 %v7999_v7, %v7951_v43  ;;  %v8049_v60 = vadd.f32 %v8048_v29, %v18827_v47  ;;  %v12325_v7 = vor.u32 %v13149_v12, %v12322_v52  ;;  %8904 = vmatpush.bf16.msrb.mxu2 %v12321_v45 }
 0x6b3   : > { %v7952_v17 = vpop.f32.mrf.mxu0 }
 0x6b4   : > { %v8156_v44 = vpack.c.bf16 %v8132_v55, %v8130_v18  ;;  %v7953_v57 = vadd.f32 %v7952_v17, %v18824_v10  ;;  %v8133_v30 = vmax.f32 %v8000_v35, 0.0  ;;  %8953 = vmatpush.bf16.msra.mxu3 %v12325_v7 }
 0x6b6   : > { %8436 = vmatmul.bf16.gmra.mxu1 %v8156_v44  ;;  %8534 = vmatmul.bf16.gmra.mxu3 %v8156_v44 }
 0x6b7   : > { %v8097_v20 = vpop.f32.mrf.mxu3 }
 0x6b8   : > { %v8098_v8 = vadd.f32 %v8097_v20, %v8049_v60  ;;  %v12257_v20 = vor.u32 %v13166_v48, %v12256_v49 }
 0x6b9   : > { %v8001_v22 = vpop.f32.mrf.mxu1  ;;  %v8050_v38 = vpop.f32.mrf.mxu2 }
 0x6ba   : > { %v8002_v11 = vadd.f32 %v8001_v22, %v7953_v57  ;;  %v8051_v13 = vadd.f32 %v8050_v38, %v18827_v47  ;;  %v8134_v2 = vmax.f32 %v8098_v8, 0.0  ;;  %v12261_v22 = vor.u32 %v13165_v23, %v12258_v62  ;;  %8726 = vmatpush.bf16.msrb.mxu0 %v12257_v20  ;;  %v13147_v8 = vld [vmem:[#allocation11 + $0x4] sm:$0xf]  ;;  %v13193_v23 = vld [vmem:[#allocation14 + $0x74] sm:$0xf] }
 0x6bb   : > { %v7955_v50 = vpop.f32.mrf.mxu0  ;;  %v12434_v62 = vld [vmem:[#allocation14 + $0x78] sm:$0xf0] }
 0x6bc   : > { %v8135_v37 = vmax.f32 %v8002_v11, 0.0  ;;  %v7956_v61 = vadd.f32 %v7955_v50, %v18824_v10  ;;  %8775 = vmatpush.bf16.msrb.mxu1 %v12261_v22  ;;  %v12498_v22 = vld [vmem:[#allocation14 + $0xf8] sm:$0xf0] }
 0x6be   : > { %v8157_v59 = vpack.c.bf16 %v8135_v37, %v8133_v30 }
 0x6bf   : > { %v8099_v63 = vpop.f32.mrf.mxu3 }
 0x6c0   : > { %v8100_v4 = vadd.f32 %v8099_v63, %v8051_v13  ;;  %8392 = vmatmul.bf16.gmra.mxu0 %v8157_v59  ;;  %8490 = vmatmul.bf16.gmra.mxu2 %v8157_v59  ;;  %v12313_v59 = vor.u32 %v13148_v15, %v12312_v36  ;;  %v12248_v63 = vld [vmem:[#allocation13] sm:$0xf]  ;;  %v12496_v36 = vld [vmem:[#allocation14 + $0xf0] sm:$0xf]  ;;  %v13210_v15 = vld [vmem:[#allocation14 + $0xf4] sm:$0xf0] }
 0x6c1   : > { %v8004_v21 = vpop.f32.mrf.mxu1  ;;  %v8053_v0 = vpop.f32.mrf.mxu2 }
 0x6c2   : > { %v8136_v58 = vmax.f32 %v8100_v4, 0.0  ;;  %v8005_v5 = vadd.f32 %v8004_v21, %v7956_v61  ;;  %v8054_v43 = vadd.f32 %v8053_v0, %v18827_v47  ;;  %v13164_v4 = vld [vmem:[#allocation13 + $0x4] sm:$0xf0]  ;;  %8905 = vmatpush.bf16.msrb.mxu2 %v12313_v59 }
 0x6c3   : > { %v7957_v42 = vpop.f32.mrf.mxu0 }
 0x6c4   : > { %v8158_v32 = vpack.c.bf16 %v8136_v58, %v8134_v2  ;;  %v7958_v16 = vadd.f32 %v7957_v42, %v18824_v10  ;;  %v8137_v44 = vmax.f32 %v8005_v5, 0.0  ;;  %v12317_v2 = vor.u32 %v13147_v8, %v12314_v24  ;;  %v13163_v42 = vld [vmem:[#allocation13 + $0x4] sm:$0xf] }
 0x6c5   : > { %v12249_v58 = vor.u32 %v13164_v4, %v12248_v63  ;;  %v12497_v24 = vor.u32 %v13210_v15, %v12496_v36  ;;  %v12480_v15 = vld [vmem:[#allocation14 + $0xd0] sm:$0xf] }
 0x6c6   : > { %8441 = vmatmul.bf16.gmra.mxu1 %v8158_v32  ;;  %8539 = vmatmul.bf16.gmra.mxu3 %v8158_v32  ;;  %v12250_v32 = vld [vmem:[#allocation13 + $0x8] sm:$0xf0] }
 0x6c7   : > { %v8102_v27 = vpop.f32.mrf.mxu3  ;;  %v12253_v40 = vor.u32 %v13163_v42, %v12250_v32  ;;  %8954 = vmatpush.bf16.msra.mxu3 %v12317_v2  ;;  %8727 = vmatpush.bf16.msrb.mxu0 %v12249_v58  ;;  %v13191_v32 = vld [vmem:[#allocation14 + $0x64] sm:$0xf] }
 0x6c8   : > { %v8103_v35 = vadd.f32 %v8102_v27, %v8054_v43 }
 0x6c9   : > { %v8006_v29 = vpop.f32.mrf.mxu1  ;;  %v8055_v18 = vpop.f32.mrf.mxu2  ;;  %8776 = vmatpush.bf16.msrb.mxu1 %v12253_v40 }
 0x6ca   : > { %v8007_v55 = vadd.f32 %v8006_v29, %v7958_v16  ;;  %v8056_v57 = vadd.f32 %v8055_v18, %v18827_v47  ;;  %v8138_v60 = vmax.f32 %v8103_v35, 0.0  ;;  %v13209_v35 = vld [vmem:[#allocation14 + $0xf4] sm:$0xf] }
 0x6cb   : > { %v7960_v17 = vpop.f32.mrf.mxu0 }
 0x6cc   : > { %v8139_v9 = vmax.f32 %v8007_v55, 0.0  ;;  %v7961_v51 = vadd.f32 %v7960_v17, %v18824_v10 }
 0x6cd   : > { %9237 = vmatpush.bf16.msra.mxu1 %v12497_v24 }
 0x6ce   : > { %v8159_v33 = vpack.c.bf16 %v8139_v9, %v8137_v44 }
 0x6cf   : > { %v8104_v38 = vpop.f32.mrf.mxu3 }
 0x6d0   : > { %v8105_v11 = vadd.f32 %v8104_v38, %v8056_v57  ;;  %8397 = vmatmul.bf16.gmra.mxu0 %v8159_v33  ;;  %8495 = vmatmul.bf16.gmra.mxu2 %v8159_v33  ;;  %v12437_v33 = vor.u32 %v13193_v23, %v12434_v62  ;;  %v13189_v23 = vld [vmem:[#allocation14 + $0x54] sm:$0xf]  ;;  %v12418_v62 = vld [vmem:[#allocation14 + $0x58] sm:$0xf0] }
 0x6d1   : > { %v8009_v50 = vpop.f32.mrf.mxu1  ;;  %v8058_v30 = vpop.f32.mrf.mxu2 }
 0x6d2   : > { %v8140_v37 = vmax.f32 %v8105_v11, 0.0  ;;  %v8010_v21 = vadd.f32 %v8009_v50, %v7961_v51  ;;  %v8059_v52 = vadd.f32 %v8058_v30, %v18827_v47  ;;  %v12501_v50 = vor.u32 %v13209_v35, %v12498_v22  ;;  %9286 = vmatpush.bf16.msra.mxu2 %v12437_v33  ;;  %v13205_v35 = vld [vmem:[#allocation14 + $0xd4] sm:$0xf]  ;;  %v12482_v22 = vld [vmem:[#allocation14 + $0xd8] sm:$0xf0] }
 0x6d3   : > { %v7962_v54 = vpop.f32.mrf.mxu0  ;;  %v12421_v33 = vor.u32 %v13189_v23, %v12418_v62  ;;  %v20109_v62 = vld [vmem:[#allocation58_spill] sm:$0xff] }
 0x6d4   : > { %v8160_v56 = vpack.c.bf16 %v8140_v37, %v8138_v60  ;;  %v7963_v0 = vadd.f32 %v7962_v54, %v18824_v10  ;;  %v8141_v45 = vmax.f32 %v8010_v21, 0.0  ;;  %9335 = vmatpush.bf16.msrb.mxu3 %v12501_v50  ;;  %v12432_v37 = vld [vmem:[#allocation14 + $0x70] sm:$0xf]  ;;  %v13194_v54 = vld [vmem:[#allocation14 + $0x74] sm:$0xf0]  ;;  %v12485_v50 = vor.u32 %v13205_v35, %v12482_v22 }
 0x6d5   : > { %v12433_v51 = vor.u32 %v13194_v54, %v12432_v37 }
 0x6d6   : > { %8446 = vmatmul.bf16.gmra.mxu1 %v8160_v56  ;;  %8544 = vmatmul.bf16.gmra.mxu3 %v8160_v56 }
 0x6d7   : > { %v8107_v13 = vpop.f32.mrf.mxu3  ;;  %9188 = vmatpush.bf16.msra.mxu0 %v12433_v51  ;;  %v13190_v51 = vld [vmem:[#allocation14 + $0x54] sm:$0xf0] }
 0x6d8   : > { %v8108_v16 = vadd.f32 %v8107_v13, %v8059_v52 }
 0x6d9   : > { %v8011_v61 = vpop.f32.mrf.mxu1  ;;  %v8060_v34 = vpop.f32.mrf.mxu2 }
 0x6da   : > { %v8012_v12 = vadd.f32 %v8011_v61, %v7963_v0  ;;  %v8061_v7 = vadd.f32 %v8060_v34, %v18827_v47  ;;  %v8142_v43 = vmax.f32 %v8108_v16, 0.0  ;;  %v12426_v61 = vld [vmem:[#allocation14 + $0x68] sm:$0xf0]  ;;  %v13207_v34 = vld [vmem:[#allocation14 + $0xe4] sm:$0xf] }
 0x6db   : > { %v7965_v27 = vpop.f32.mrf.mxu0  ;;  %v12429_v40 = vor.u32 %v13191_v32, %v12426_v61  ;;  %v13192_v16 = vld [vmem:[#allocation14 + $0x64] sm:$0xf0] }
 0x6dc   : > { %v8143_v5 = vmax.f32 %v8012_v12, 0.0  ;;  %v7966_v20 = vadd.f32 %v7965_v27, %v18824_v10  ;;  %v12490_v12 = vld [vmem:[#allocation14 + $0xe8] sm:$0xf0] }
 0x6dd   : > { %v8198_v27 = vld [vmem:[#allocation23 + $0x4] ss:$8 sm:$0x3]  ;;  %9287 = vmatpush.bf16.msra.mxu2 %v12429_v40 }
 0x6de   : > { %v8161_v29 = vpack.c.bf16 %v8143_v5, %v8141_v45  ;;  %v12493_v45 = vor.u32 %v13207_v34, %v12490_v12  ;;  %v12424_v5 = vld [vmem:[#allocation14 + $0x60] sm:$0xf]  ;;  %v13187_v34 = vld [vmem:[#allocation14 + $0x44] sm:$0xf]  ;;  %v12410_v40 = vld [vmem:[#allocation14 + $0x48] sm:$0xf0] }
 0x6df   : > { %v8109_v18 = vpop.f32.mrf.mxu3  ;;  %v12413_v12 = vor.u32 %v13187_v34, %v12410_v40 }
 0x6e0   : > { %v8110_v55 = vadd.f32 %v8109_v18, %v8061_v7  ;;  %8402 = vmatmul.bf16.gmra.mxu0 %v8161_v29  ;;  %8500 = vmatmul.bf16.gmra.mxu2 %v8161_v29  ;;  %v12488_v7 = vld [vmem:[#allocation14 + $0xe0] sm:$0xf]  ;;  %v12425_v29 = vor.u32 %v13192_v16, %v12424_v5  ;;  %v13208_v18 = vld [vmem:[#allocation14 + $0xe4] sm:$0xf0] }
 0x6e1   : > { %v8014_v17 = vpop.f32.mrf.mxu1  ;;  %v8063_v44 = vpop.f32.mrf.mxu2  ;;  %9336 = vmatpush.bf16.msrb.mxu3 %v12493_v45  ;;  %9288 = vmatpush.bf16.msra.mxu2 %v12421_v33  ;;  %v12474_v45 = vld [vmem:[#allocation14 + $0xc8] sm:$0xf0] }
 0x6e2   : > { %v8144_v9 = vmax.f32 %v8110_v55, 0.0  ;;  %v8015_v38 = vadd.f32 %v8014_v17, %v7966_v20  ;;  %v8064_v13 = vadd.f32 %v8063_v44, %v18827_v47  ;;  %v12489_v55 = vor.u32 %v13208_v18, %v12488_v7  ;;  %9189 = vmatpush.bf16.msra.mxu0 %v12425_v29 }
 0x6e3   : > { %v7967_v48 = vpop.f32.mrf.mxu0 }
 0x6e4   : > { %v8162_v49 = vpack.c.bf16 %v8144_v9, %v8142_v43  ;;  %v7968_v11 = vadd.f32 %v7967_v48, %v18824_v10  ;;  %v8145_v8 = vmax.f32 %v8015_v38, 0.0  ;;  %9238 = vmatpush.bf16.msra.mxu1 %v12489_v55 }
 0x6e5   : > { %9337 = vmatpush.bf16.msrb.mxu3 %v12485_v50  ;;  %9289 = vmatpush.bf16.msra.mxu2 %v12413_v12 }
 0x6e6   : > { %8451 = vmatmul.bf16.gmra.mxu1 %v8162_v49  ;;  %8549 = vmatmul.bf16.gmra.mxu3 %v8162_v49  ;;  %v18865_v49 = vperm.slane %v8198_v27, 1 }
 0x6e7   : > { %v8112_v57 = vpop.f32.mrf.mxu3 }
 0x6e8   : > { %v8113_v63 = vadd.f32 %v8112_v57, %v8064_v13 }
 0x6e9   : > { %v8016_v30 = vpop.f32.mrf.mxu1  ;;  %v8065_v56 = vpop.f32.mrf.mxu2 }
 0x6ea   : > { %v8017_v60 = vadd.f32 %v8016_v30, %v7968_v11  ;;  %v8066_v10 = vadd.f32 %v8065_v56, %v18827_v47  ;;  %v8146_v2 = vmax.f32 %v8113_v63, 0.0  ;;  %v18860_v47 = vperm.slane %v8198_v27, 0  ;;  %v13203_v27 = vld [vmem:[#allocation14 + $0xc4] sm:$0xf] }
 0x6eb   : > { %v12477_v5 = vor.u32 %v13203_v27, %v12474_v45 }
 0x6ec   : > { %v8147_v59 = vmax.f32 %v8017_v60, 0.0 }
 0x6ed   : > { %9338 = vmatpush.bf16.msrb.mxu3 %v12477_v5 }
 0x6ee   : > { %v8163_v4 = vpack.c.bf16 %v8147_v59, %v8145_v8  ;;  %v13206_v8 = vld [vmem:[#allocation14 + $0xd4] sm:$0xf0] }
 0x6ef   : > { %v8114_v21 = vpop.f32.mrf.mxu3  ;;  %v12481_v24 = vor.u32 %v13206_v8, %v12480_v15 }
 0x6f0   : > { %v8115_v0 = vadd.f32 %v8114_v21, %v8066_v10  ;;  %8407 = vmatmul.bf16.gmra.mxu0 %v8163_v4  ;;  %8505 = vmatmul.bf16.gmra.mxu2 %v8163_v4 }
 0x6f1   : > { %9239 = vmatpush.bf16.msra.mxu1 %v12481_v24 }
 0x6f2   : > { %v8148_v58 = vmax.f32 %v8115_v0, 0.0 }
 0x6f4   : > { %v8164_v42 = vpack.c.bf16 %v8148_v58, %v8146_v2 }
 0x6f6   : > { %8456 = vmatmul.bf16.gmra.mxu1 %v8164_v42  ;;  %8554 = vmatmul.bf16.gmra.mxu3 %v8164_v42 }
 0x6fd   : > { %v8373_v52 = vpop.f32.mrf.mxu0 }
 0x6fe   : > { %v8374_v17 = vadd.f32 %v8373_v52, %v18860_v47 }
 0x700   : > { %8728 = vmatmul.bf16.vlgmr.msrb.gmra.mxu0 %v20086_v41  ;;  %8906 = vmatmul.bf16.vlgmr.msrb.gmra.mxu2 %v18421_v14 }
 0x703   : > { %v8422_v44 = vpop.f32.mrf.mxu1  ;;  %v8471_v43 = vpop.f32.mrf.mxu2 }
 0x704   : > { %v8423_v9 = vadd.f32 %v8422_v44, %v8374_v17  ;;  %v8472_v20 = vadd.f32 %v8471_v43, %v18865_v49  ;;  %v13188_v17 = vld [vmem:[#allocation14 + $0x44] sm:$0xf0] }
 0x705   : > { %v8375_v48 = vpop.f32.mrf.mxu0 }
 0x706   : > { %8777 = vmatmul.bf16.vlgmr.msrb.gmra.mxu1 %v20086_v41  ;;  %8955 = vmatmul.bf16.vlgmr.msra.gmra.mxu3 %v18421_v14  ;;  %v8376_v38 = vadd.f32 %v8375_v48, %v18860_v47  ;;  %v8560_v54 = vmax.f32 %v8423_v9, 0.0  ;;  %v12416_v41 = vld [vmem:[#allocation14 + $0x50] sm:$0xf]  ;;  %v12472_v9 = vld [vmem:[#allocation14 + $0xc0] sm:$0xf] }
 0x707   : > { %v12417_v36 = vor.u32 %v13190_v51, %v12416_v41  ;;  %v13204_v48 = vld [vmem:[#allocation14 + $0xc4] sm:$0xf0] }
 0x709   : > { %v8520_v57 = vpop.f32.mrf.mxu3  ;;  %9190 = vmatpush.bf16.msra.mxu0 %v12417_v36 }
 0x70a   : > { %v8521_v11 = vadd.f32 %v8520_v57, %v8472_v20  ;;  %v12473_v20 = vor.u32 %v13204_v48, %v12472_v9 }
 0x70b   : > { %v8424_v30 = vpop.f32.mrf.mxu1  ;;  %v8473_v60 = vpop.f32.mrf.mxu2 }
 0x70c   : > { %v8425_v37 = vadd.f32 %v8424_v30, %v8376_v38  ;;  %v8474_v59 = vadd.f32 %v8473_v60, %v18865_v49  ;;  %v8561_v4 = vmax.f32 %v8521_v11, 0.0  ;;  %9240 = vmatpush.bf16.msra.mxu1 %v12473_v20  ;;  %v13185_v30 = vld [vmem:[#allocation14 + $0x34] sm:$0xf]  ;;  %v12402_v60 = vld [vmem:[#allocation14 + $0x38] sm:$0xf0] }
 0x70d   : > { %v8378_v14 = vpop.f32.mrf.mxu0 }
 0x70e   : > { %v8562_v56 = vmax.f32 %v8425_v37, 0.0  ;;  %v8379_v21 = vadd.f32 %v8378_v14, %v18860_v47  ;;  %v12405_v37 = vor.u32 %v13185_v30, %v12402_v60 }
 0x710   : > { %v18871_v13 = vpack.c.bf16 %v8562_v56, %v8560_v54  ;;  %8733 = vmatmul.bf16.gmra.mxu0 %v18275_v53  ;;  %8911 = vmatmul.bf16.gmra.mxu2 %v18381_v39  ;;  %v13201_v54 = vld [vmem:[#allocation14 + $0xb4] sm:$0xf]  ;;  %v12466_v56 = vld [vmem:[#allocation14 + $0xb8] sm:$0xf0] }
 0x711   : > { %v8522_v63 = vpop.f32.mrf.mxu3  ;;  %v12469_v51 = vor.u32 %v13201_v54, %v12466_v56  ;;  %9290 = vmatpush.bf16.msra.mxu2 %v12405_v37  ;;  %v20111_v37 = vld [vmem:[#allocation93_spill] sm:$0xff] }
 0x712   : > { %v8523_v10 = vadd.f32 %v8522_v63, %v8474_v59  ;;  %v13186_v63 = vld [vmem:[#allocation14 + $0x34] sm:$0xf0] }
 0x713   : > { %v8427_v2 = vpop.f32.mrf.mxu1  ;;  %v8476_v58 = vpop.f32.mrf.mxu2  ;;  %9339 = vmatpush.bf16.msrb.mxu3 %v12469_v51 }
 0x714   : > { %v8563_v0 = vmax.f32 %v8523_v10, 0.0  ;;  %v18879_v32 = vadd.f32 %v8427_v2, %v8379_v21  ;;  %v8477_v52 = vadd.f32 %v8476_v58, %v18865_v49  ;;  %v12464_v21 = vld [vmem:[#allocation14 + $0xb0] sm:$0xf] }
 0x715   : > { %v8380_v61 = vpop.f32.mrf.mxu0 }
 0x716   : > { %v18877_v42 = vpack.c.bf16 %v8563_v0, %v8561_v4  ;;  %8782 = vmatmul.bf16.gmra.mxu1 %v18275_v53  ;;  %8960 = vmatmul.bf16.gmra.mxu3 %v18381_v39  ;;  %v8381_v7 = vadd.f32 %v8380_v61, %v18860_v47  ;;  %v12408_v39 = vld [vmem:[#allocation14 + $0x40] sm:$0xf]  ;;  %v13202_v0 = vld [vmem:[#allocation14 + $0xb4] sm:$0xf0] }
 0x717   : > { %v12409_v43 = vor.u32 %v13188_v17, %v12408_v39  ;;  %v12465_v2 = vor.u32 %v13202_v0, %v12464_v21  ;;  %v20110_v61 = vld [vmem:[#allocation89_spill] sm:$0xff]  ;;  %v12458_v39 = vld [vmem:[#allocation14 + $0xa8] sm:$0xf0] }
 0x719   : > { %v8525_v16 = vpop.f32.mrf.mxu3  ;;  %9191 = vmatpush.bf16.msra.mxu0 %v12409_v43  ;;  %9241 = vmatpush.bf16.msra.mxu1 %v12465_v2 }
 0x71a   : > { %v18885_v29 = vadd.f32 %v8525_v16, %v8477_v52  ;;  %v13183_v16 = vld [vmem:[#allocation14 + $0x24] sm:$0xf] }
 0x71b   : > { %v8429_v18 = vpop.f32.mrf.mxu1  ;;  %v8478_v55 = vpop.f32.mrf.mxu2 }
 0x71c   : > { %v18887_v53 = vadd.f32 %v8429_v18, %v8381_v7  ;;  %v8479_v23 = vadd.f32 %v8478_v55, %v18865_v49  ;;  %v12394_v7 = vld [vmem:[#allocation14 + $0x28] sm:$0xf0]  ;;  %v13199_v55 = vld [vmem:[#allocation14 + $0xa4] sm:$0xf] }
 0x71d   : > { %v8383_v44 = vpop.f32.mrf.mxu0  ;;  %v12397_v18 = vor.u32 %v13183_v16, %v12394_v7  ;;  %v12448_v7 = vld [vmem:[#allocation14 + $0x90] sm:$0xf] }
 0x71e   : > { %v8384_v57 = vadd.f32 %v8383_v44, %v18860_v47  ;;  %v12461_v44 = vor.u32 %v13199_v55, %v12458_v39  ;;  %v8566_v39 = vmax.f32 %v18887_v53, 0.0 }
 0x71f   : > { %9291 = vmatpush.bf16.msra.mxu2 %v12397_v18  ;;  %v13198_v18 = vld [vmem:[#allocation14 + $0x94] sm:$0xf0] }
 0x720   : > { %8738 = vmatmul.bf16.gmra.mxu0 %v20109_v62  ;;  %8916 = vmatmul.bf16.gmra.mxu2 %v20106_v3  ;;  %v12449_v55 = vor.u32 %v13198_v18, %v12448_v7 }
 0x721   : > { %v8527_v35 = vpop.f32.mrf.mxu3  ;;  %9340 = vmatpush.bf16.msrb.mxu3 %v12461_v44  ;;  %v8564_v44 = vmax.f32 %v18879_v32, 0.0  ;;  %v13179_v32 = vld [vmem:[#allocation14 + $0x4] sm:$0xf] }
 0x722   : > { %v18893_v33 = vadd.f32 %v8527_v35, %v8479_v23  ;;  %v13184_v35 = vld [vmem:[#allocation14 + $0x24] sm:$0xf0] }
 0x723   : > { %v8432_v22 = vpop.f32.mrf.mxu1  ;;  %v8481_v38 = vpop.f32.mrf.mxu2 }
 0x724   : > { %v18895_v11 = vadd.f32 %v8432_v22, %v8384_v57  ;;  %v8482_v41 = vadd.f32 %v8481_v38, %v18865_v49  ;;  %v12456_v38 = vld [vmem:[#allocation14 + $0xa0] sm:$0xf] }
 0x725   : > { %v8385_v50 = vpop.f32.mrf.mxu0 }
 0x726   : > { %8787 = vmatmul.bf16.gmra.mxu1 %v20109_v62  ;;  %8965 = vmatmul.bf16.gmra.mxu3 %v20106_v3  ;;  %v8386_v36 = vadd.f32 %v8385_v50, %v18860_v47  ;;  %v12400_v3 = vld [vmem:[#allocation14 + $0x30] sm:$0xf]  ;;  %v13200_v50 = vld [vmem:[#allocation14 + $0xa4] sm:$0xf0] }
 0x727   : > { %v12401_v4 = vor.u32 %v13186_v63, %v12400_v3  ;;  %v12457_v30 = vor.u32 %v13200_v50, %v12456_v38  ;;  %v12386_v3 = vld [vmem:[#allocation14 + $0x18] sm:$0xf0]  ;;  %v12378_v38 = vld [vmem:[#allocation14 + $0x8] sm:$0xf0]  ;;  %v8565_v50 = vmax.f32 %v18885_v29, 0.0 }
 0x728   : > { %v12376_v29 = vld [vmem:[#allocation14] sm:$0xf] }
 0x729   : > { %v8530_v14 = vpop.f32.mrf.mxu3  ;;  %9192 = vmatpush.bf16.msra.mxu0 %v12401_v4  ;;  %9242 = vmatpush.bf16.msra.mxu1 %v12457_v30  ;;  %v12450_v4 = vld [vmem:[#allocation14 + $0x98] sm:$0xf0]  ;;  %v12381_v30 = vor.u32 %v13179_v32, %v12378_v38 }
 0x72a   : > { %v18901_v15 = vadd.f32 %v8530_v14, %v8482_v41 }
 0x72b   : > { %v8434_v8 = vpop.f32.mrf.mxu1  ;;  %v8483_v59 = vpop.f32.mrf.mxu2 }
 0x72c   : > { %v18903_v24 = vadd.f32 %v8434_v8, %v8386_v36  ;;  %v8484_v58 = vadd.f32 %v8483_v59, %v18865_v49  ;;  %v13181_v59 = vld [vmem:[#allocation14 + $0x14] sm:$0xf] }
 0x72d   : > { %v8388_v10 = vpop.f32.mrf.mxu0  ;;  %v12389_v63 = vor.u32 %v13181_v59, %v12386_v3  ;;  %9243 = vmatpush.bf16.msra.mxu1 %v12449_v55  ;;  %v13180_v3 = vld [vmem:[#allocation14 + $0x4] sm:$0xf0] }
 0x72e   : > { %v8389_v40 = vadd.f32 %v8388_v10, %v18860_v47  ;;  %v13197_v10 = vld [vmem:[#allocation14 + $0x94] sm:$0xf] }
 0x72f   : > { %v12453_v0 = vor.u32 %v13197_v10, %v12450_v4  ;;  %9292 = vmatpush.bf16.msra.mxu2 %v12389_v63  ;;  %v12377_v10 = vor.u32 %v13180_v3, %v12376_v29  ;;  %v12440_v4 = vld [vmem:[#allocation14 + $0x80] sm:$0xf]  ;;  %v13225_v29 = vld [vmem:[#allocation16 + $0x74] sm:$0xf]  ;;  %v12562_v3 = vld [vmem:[#allocation16 + $0x78] sm:$0xf0] }
 0x730   : > { %8743 = vmatmul.bf16.gmra.mxu0 %v20110_v61  ;;  %8921 = vmatmul.bf16.gmra.mxu2 %v20107_v26 }
 0x731   : > { %v8532_v34 = vpop.f32.mrf.mxu3  ;;  %9341 = vmatpush.bf16.msrb.mxu3 %v12453_v0 }
 0x732   : > { %v18909_v12 = vadd.f32 %v8532_v34, %v8484_v58 }
 0x733   : > { %v8437_v27 = vpop.f32.mrf.mxu1  ;;  %v8486_v45 = vpop.f32.mrf.mxu2  ;;  %9293 = vmatpush.bf16.msra.mxu2 %v12381_v30 }
 0x734   : > { %v18911_v52 = vadd.f32 %v8437_v27, %v8389_v40  ;;  %v8487_v17 = vadd.f32 %v8486_v45, %v18865_v49  ;;  %v13182_v45 = vld [vmem:[#allocation14 + $0x14] sm:$0xf0]  ;;  %v8571_v18 = vmax.f32 %v18909_v12, 0.0 }
 0x735   : > { %v8390_v5 = vpop.f32.mrf.mxu0 }
 0x736   : > { %8792 = vmatmul.bf16.gmra.mxu1 %v20110_v61  ;;  %8970 = vmatmul.bf16.gmra.mxu3 %v20107_v26  ;;  %v8391_v9 = vadd.f32 %v8390_v5, %v18860_v47  ;;  %v12392_v26 = vld [vmem:[#allocation14 + $0x20] sm:$0xf] }
 0x737   : > { %v12393_v22 = vor.u32 %v13184_v35, %v12392_v26  ;;  %v18945_v35 = vpack.c.bf16 %v8566_v39, %v8564_v44 }
 0x739   : > { %v8535_v43 = vpop.f32.mrf.mxu3  ;;  %9193 = vmatpush.bf16.msra.mxu0 %v12393_v22 }
 0x73a   : > { %v18917_v48 = vadd.f32 %v8535_v43, %v8487_v17 }
 0x73b   : > { %v8439_v20 = vpop.f32.mrf.mxu1  ;;  %v8488_v23 = vpop.f32.mrf.mxu2 }
 0x73c   : > { %v18919_v62 = vadd.f32 %v8439_v20, %v8391_v9  ;;  %v8489_v60 = vadd.f32 %v8488_v23, %v18865_v49 }
 0x73d   : > { %v8393_v57 = vpop.f32.mrf.mxu0 }
 0x73e   : > { %v8394_v56 = vadd.f32 %v8393_v57, %v18860_v47  ;;  %v8567_v57 = vmax.f32 %v18893_v33, 0.0 }
 0x740   : > { %8748 = vmatmul.bf16.gmra.mxu0 %v20111_v37  ;;  %8926 = vmatmul.bf16.gmra.mxu2 %v20108_v31 }
 0x741   : > { %v8537_v54 = vpop.f32.mrf.mxu3 }
 0x742   : > { %v18925_v41 = vadd.f32 %v8537_v54, %v8489_v60  ;;  %v13195_v60 = vld [vmem:[#allocation14 + $0x84] sm:$0xf] }
 0x743   : > { %v8442_v51 = vpop.f32.mrf.mxu1  ;;  %v8491_v14 = vpop.f32.mrf.mxu2 }
 0x744   : > { %v18927_v36 = vadd.f32 %v8442_v51, %v8394_v56  ;;  %v8492_v21 = vadd.f32 %v8491_v14, %v18865_v49  ;;  %v18954_v14 = vpack.c.bf16 %v8567_v57, %v8565_v50 }
 0x745   : > { %v8395_v8 = vpop.f32.mrf.mxu0 }
 0x746   : > { %8797 = vmatmul.bf16.gmra.mxu1 %v20111_v37  ;;  %8975 = vmatmul.bf16.gmra.mxu3 %v20108_v31  ;;  %v8396_v58 = vadd.f32 %v8395_v8, %v18860_v47  ;;  %v12384_v31 = vld [vmem:[#allocation14 + $0x10] sm:$0xf]  ;;  %v12442_v37 = vld [vmem:[#allocation14 + $0x88] sm:$0xf0] }
 0x747   : > { %v12385_v16 = vor.u32 %v13182_v45, %v12384_v31  ;;  %v12445_v56 = vor.u32 %v13195_v60, %v12442_v37 }
 0x749   : > { %v8540_v2 = vpop.f32.mrf.mxu3  ;;  %9194 = vmatpush.bf16.msra.mxu0 %v12385_v16  ;;  %9342 = vmatpush.bf16.msrb.mxu3 %v12445_v56 }
 0x74a   : > { %v18933_v61 = vadd.f32 %v8540_v2, %v8492_v21  ;;  %v13196_v21 = vld [vmem:[#allocation14 + $0x84] sm:$0xf0]  ;;  %v8570_v2 = vmax.f32 %v18903_v24, 0.0 }
 0x74b   : > { %v8444_v34 = vpop.f32.mrf.mxu1  ;;  %v8493_v40 = vpop.f32.mrf.mxu2  ;;  %v12441_v0 = vor.u32 %v13196_v21, %v12440_v4 }
 0x74c   : > { %v18935_v27 = vadd.f32 %v8444_v34, %v8396_v58  ;;  %v8494_v17 = vadd.f32 %v8493_v40, %v18865_v49  ;;  %v8568_v34 = vmax.f32 %v18895_v11, 0.0  ;;  %v8569_v11 = vmax.f32 %v18901_v15, 0.0 }
 0x74d   : > { %v8398_v5 = vpop.f32.mrf.mxu0  ;;  %9195 = vmatpush.bf16.msra.mxu0 %v12377_v10  ;;  %9244 = vmatpush.bf16.msra.mxu1 %v12441_v0  ;;  %v8572_v15 = vmax.f32 %v18911_v52, 0.0  ;;  %v8573_v52 = vmax.f32 %v18917_v48, 0.0  ;;  %v12565_v10 = vor.u32 %v13225_v29, %v12562_v3  ;;  %v12560_v0 = vld [vmem:[#allocation16 + $0x70] sm:$0xf] }
 0x74e   : > { %v8399_v9 = vadd.f32 %v8398_v5, %v18860_v47  ;;  %v18969_v7 = vpack.c.bf16 %v8570_v2, %v8568_v34  ;;  %v18978_v44 = vpack.c.bf16 %v8571_v18, %v8569_v11  ;;  %v13226_v2 = vld [vmem:[#allocation16 + $0x74] sm:$0xf0]  ;;  %v8578_v34 = vmax.f32 %v18935_v27, 0.0 }
 0x74f   : > { %9800 = vmatpush.bf16.msrb.mxu2 %v12565_v10 }
 0x750   : > { %8753 = vmatmul.bf16.gmra.mxu0 %v17920_v28  ;;  %8931 = vmatmul.bf16.gmra.mxu2 %v18002_v1 }
 0x751   : > { %v8542_v43 = vpop.f32.mrf.mxu3 }
 0x752   : > { %v18943_v20 = vadd.f32 %v8542_v43, %v8494_v17 }
 0x753   : > { %v8447_v23 = vpop.f32.mrf.mxu1  ;;  %v8496_v26 = vpop.f32.mrf.mxu2 }
 0x754   : > { %v18947_v53 = vadd.f32 %v8447_v23, %v8399_v9  ;;  %v8497_v54 = vadd.f32 %v8496_v26, %v18865_v49 }
 0x755   : > { %v8400_v22 = vpop.f32.mrf.mxu0 }
 0x756   : > { %8802 = vmatmul.bf16.gmra.mxu1 %v17920_v28  ;;  %8980 = vmatmul.bf16.gmra.mxu3 %v18002_v1  ;;  %v8401_v33 = vadd.f32 %v8400_v22, %v18860_v47 }
 0x759   : > { %v8545_v51 = vpop.f32.mrf.mxu3 }
 0x75a   : > { %v18957_v8 = vadd.f32 %v8545_v51, %v8497_v54 }
 0x75b   : > { %v8449_v28 = vpop.f32.mrf.mxu1  ;;  %v8498_v1 = vpop.f32.mrf.mxu2 }
 0x75c   : > { %v18959_v59 = vadd.f32 %v8449_v28, %v8401_v33  ;;  %v8499_v58 = vadd.f32 %v8498_v1, %v18865_v49 }
 0x75d   : > { %v8403_v63 = vpop.f32.mrf.mxu0 }
 0x75e   : > { %v8404_v31 = vadd.f32 %v8403_v63, %v18860_v47 }
 0x760   : > { %8758 = vmatmul.bf16.gmra.mxu0 %v18350_v46  ;;  %8936 = vmatmul.bf16.gmra.mxu2 %v18370_v25 }
 0x761   : > { %v8547_v40 = vpop.f32.mrf.mxu3 }
 0x762   : > { %v18967_v45 = vadd.f32 %v8547_v40, %v8499_v58  ;;  %v12561_v58 = vor.u32 %v13226_v2, %v12560_v0  ;;  %v12624_v40 = vld [vmem:[#allocation16 + $0xf0] sm:$0xf]  ;;  %v13221_v2 = vld [vmem:[#allocation16 + $0x54] sm:$0xf] }
 0x763   : > { %v8452_v5 = vpop.f32.mrf.mxu1  ;;  %v8501_v16 = vpop.f32.mrf.mxu2 }
 0x764   : > { %v18971_v24 = vadd.f32 %v8452_v5, %v8404_v31  ;;  %v8502_v39 = vadd.f32 %v8501_v16, %v18865_v49  ;;  %v13242_v31 = vld [vmem:[#allocation16 + $0xf4] sm:$0xf0]  ;;  %v8576_v5 = vmax.f32 %v18927_v36, 0.0  ;;  %9702 = vmatpush.bf16.msrb.mxu0 %v12561_v58  ;;  %v12546_v58 = vld [vmem:[#allocation16 + $0x58] sm:$0xf0] }
 0x765   : > { %v8405_v55 = vpop.f32.mrf.mxu0  ;;  %v12625_v18 = vor.u32 %v13242_v31, %v12624_v40  ;;  %v12549_v40 = vor.u32 %v13221_v2, %v12546_v58 }
 0x766   : > { %8807 = vmatmul.bf16.gmra.mxu1 %v18350_v46  ;;  %8985 = vmatmul.bf16.gmra.mxu3 %v18370_v25  ;;  %v8406_v43 = vadd.f32 %v8405_v55, %v18860_v47  ;;  %v8574_v46 = vmax.f32 %v18919_v62, 0.0  ;;  %v8575_v62 = vmax.f32 %v18925_v41, 0.0  ;;  %v19016_v27 = vpack.c.bf16 %v8578_v34, %v8576_v5  ;;  %v12610_v5 = vld [vmem:[#allocation16 + $0xd8] sm:$0xf0] }
 0x767   : > { %9751 = vmatpush.bf16.msrb.mxu1 %v12625_v18 }
 0x768   : > { %v18993_v60 = vpack.c.bf16 %v8574_v46, %v8572_v15  ;;  %v19002_v33 = vpack.c.bf16 %v8575_v62, %v8573_v52  ;;  %v12554_v46 = vld [vmem:[#allocation16 + $0x68] sm:$0xf0]  ;;  %v8582_v52 = vmax.f32 %v18959_v59, 0.0 }
 0x769   : > { %v8550_v17 = vpop.f32.mrf.mxu3 }
 0x76a   : > { %v18981_v9 = vadd.f32 %v8550_v17, %v8502_v39 }
 0x76b   : > { %v8454_v23 = vpop.f32.mrf.mxu1  ;;  %v8503_v26 = vpop.f32.mrf.mxu2 }
 0x76c   : > { %v18983_v57 = vadd.f32 %v8454_v23, %v8406_v43  ;;  %v8504_v25 = vadd.f32 %v8503_v26, %v18865_v49 }
 0x76d   : > { %v8408_v12 = vpop.f32.mrf.mxu0 }
 0x76e   : > { %v8409_v32 = vadd.f32 %v8408_v12, %v18860_v47  ;;  %v13223_v12 = vld [vmem:[#allocation16 + $0x64] sm:$0xf] }
 0x770   : > { %8763 = vmatmul.bf16.gmra.mxu0 %v18433_v6  ;;  %8941 = vmatmul.bf16.gmra.mxu2 %v18435_v19 }
 0x771   : > { %v8552_v22 = vpop.f32.mrf.mxu3 }
 0x772   : > { %v18991_v38 = vadd.f32 %v8552_v22, %v8504_v25  ;;  %v12557_v22 = vor.u32 %v13223_v12, %v12554_v46 }
 0x773   : > { %v8457_v50 = vpop.f32.mrf.mxu1  ;;  %v8506_v30 = vpop.f32.mrf.mxu2 }
 0x774   : > { %v18995_v37 = vadd.f32 %v8457_v50, %v8409_v32  ;;  %v8507_v56 = vadd.f32 %v8506_v30, %v18865_v49  ;;  %v12618_v50 = vld [vmem:[#allocation16 + $0xe8] sm:$0xf0]  ;;  %9801 = vmatpush.bf16.msrb.mxu2 %v12557_v22 }
 0x775   : > { %v8410_v54 = vpop.f32.mrf.mxu0 }
 0x776   : > { %8812 = vmatmul.bf16.gmra.mxu1 %v18433_v6  ;;  %8990 = vmatmul.bf16.gmra.mxu3 %v18435_v19  ;;  %v8411_v28 = vadd.f32 %v8410_v54, %v18860_v47  ;;  %v13241_v6 = vld [vmem:[#allocation16 + $0xf4] sm:$0xf]  ;;  %v12626_v19 = vld [vmem:[#allocation16 + $0xf8] sm:$0xf0]  ;;  %v13224_v54 = vld [vmem:[#allocation16 + $0x64] sm:$0xf0] }
 0x777   : > { %v12629_v48 = vor.u32 %v13241_v6, %v12626_v19  ;;  %v8583_v19 = vmax.f32 %v18967_v45, 0.0  ;;  %v13237_v45 = vld [vmem:[#allocation16 + $0xd4] sm:$0xf] }
 0x778   : > { %9802 = vmatpush.bf16.msrb.mxu2 %v12549_v40  ;;  %v12613_v18 = vor.u32 %v13237_v45, %v12610_v5 }
 0x779   : > { %v8555_v51 = vpop.f32.mrf.mxu3  ;;  %9849 = vmatpush.bf16.msra.mxu3 %v12629_v48 }
 0x77a   : > { %v19005_v1 = vadd.f32 %v8555_v51, %v8507_v56  ;;  %v12616_v56 = vld [vmem:[#allocation16 + $0xe0] sm:$0xf]  ;;  %v13240_v51 = vld [vmem:[#allocation16 + $0xe4] sm:$0xf0] }
 0x77b   : > { %v8459_v63 = vpop.f32.mrf.mxu1  ;;  %v8508_v41 = vpop.f32.mrf.mxu2  ;;  %v12617_v3 = vor.u32 %v13240_v51, %v12616_v56 }
 0x77c   : > { %v19007_v4 = vadd.f32 %v8459_v63, %v8411_v28  ;;  %v8509_v47 = vadd.f32 %v8508_v41, %v18865_v49  ;;  %v8579_v49 = vmax.f32 %v18943_v20, 0.0  ;;  %v13239_v20 = vld [vmem:[#allocation16 + $0xe4] sm:$0xf]  ;;  %v8580_v28 = vmax.f32 %v18947_v53, 0.0 }
 0x77d   : > { %v8729_v21 = vpop.f32.mrf.mxu0  ;;  %v12621_v62 = vor.u32 %v13239_v20, %v12618_v50  ;;  %9752 = vmatpush.bf16.msrb.mxu1 %v12617_v3  ;;  %v8587_v20 = vmax.f32 %v18991_v38, 0.0  ;;  %v13235_v38 = vld [vmem:[#allocation16 + $0xc4] sm:$0xf] }
 0x77e   : > { %v19036_v6 = vpack.c.bf16 %v8582_v52, %v8580_v28  ;;  %v12602_v28 = vld [vmem:[#allocation16 + $0xc8] sm:$0xf0] }
 0x77f   : > { %9850 = vmatpush.bf16.msra.mxu3 %v12621_v62  ;;  %v12605_v3 = vor.u32 %v13235_v38, %v12602_v28  ;;  %v13215_v38 = vld [vmem:[#allocation16 + $0x24] sm:$0xf]  ;;  %v12522_v28 = vld [vmem:[#allocation16 + $0x28] sm:$0xf0] }
 0x780   : > { %9196 = vmatmul.bf16.vlgmr.msra.gmra.mxu0 %v18871_v13  ;;  %9294 = vmatmul.bf16.vlgmr.msra.gmra.mxu2 %v18871_v13  ;;  %v8577_v13 = vmax.f32 %v18933_v61, 0.0 }
 0x781   : > { %v8557_v16 = vpop.f32.mrf.mxu3 }
 0x782   : > { %v19014_v55 = vadd.f32 %v8557_v16, %v8509_v47  ;;  %v19024_v23 = vpack.c.bf16 %v8579_v49, %v8577_v13  ;;  %v12608_v49 = vld [vmem:[#allocation16 + $0xd0] sm:$0xf]  ;;  %v8584_v13 = vmax.f32 %v18971_v24, 0.0 }
 0x783   : > { %v8778_v11 = vpop.f32.mrf.mxu1  ;;  %v8907_v39 = vpop.f32.mrf.mxu2  ;;  %9851 = vmatpush.bf16.msra.mxu3 %v12613_v18 }
 0x784   : > { %v19018_v17 = vadd.f32 %v8907_v39, %v8729_v21  ;;  %v8586_v39 = vmax.f32 %v18983_v57, 0.0  ;;  %v8591_v45 = vmax.f32 %v19014_v55, 0.0  ;;  %v13233_v55 = vld [vmem:[#allocation16 + $0xb4] sm:$0xf] }
 0x785   : > { %v8731_v43 = vpop.f32.mrf.mxu0 }
 0x786   : > { %9245 = vmatmul.bf16.vlgmr.msra.gmra.mxu1 %v18877_v42  ;;  %9343 = vmatmul.bf16.vlgmr.msrb.gmra.mxu3 %v18877_v42  ;;  %v12552_v42 = vld [vmem:[#allocation16 + $0x60] sm:$0xf]  ;;  %v19056_v22 = vpack.c.bf16 %v8586_v39, %v8584_v13  ;;  %v12594_v13 = vld [vmem:[#allocation16 + $0xb8] sm:$0xf0] }
 0x787   : > { %v12553_v61 = vor.u32 %v13224_v54, %v12552_v42  ;;  %v13219_v42 = vld [vmem:[#allocation16 + $0x44] sm:$0xf]  ;;  %v12538_v54 = vld [vmem:[#allocation16 + $0x48] sm:$0xf0]  ;;  %9852 = vmatpush.bf16.msra.mxu3 %v12605_v3 }
 0x788   : > { %v12541_v56 = vor.u32 %v13219_v42, %v12538_v54 }
 0x789   : > { %v8956_v36 = vpop.f32.mrf.mxu3  ;;  %9703 = vmatpush.bf16.msrb.mxu0 %v12553_v61 }
 0x78a   : > { %v19026_v26 = vadd.f32 %v8956_v36, %v8778_v11  ;;  %v13222_v11 = vld [vmem:[#allocation16 + $0x54] sm:$0xf0]  ;;  %9803 = vmatpush.bf16.msrb.mxu2 %v12541_v56 }
 0x78b   : > { %v8780_v25 = vpop.f32.mrf.mxu1  ;;  %v8909_v15 = vpop.f32.mrf.mxu2 }
 0x78c   : > { %v19028_v32 = vadd.f32 %v8909_v15, %v8731_v43  ;;  %v13238_v43 = vld [vmem:[#allocation16 + $0xd4] sm:$0xf0] }
 0x78d   : > { %v8734_v30 = vpop.f32.mrf.mxu0  ;;  %v12609_v12 = vor.u32 %v13238_v43, %v12608_v49 }
 0x78f   : > { %9753 = vmatpush.bf16.msrb.mxu1 %v12609_v12  ;;  %v12597_v12 = vor.u32 %v13233_v55, %v12594_v13  ;;  %v13229_v13 = vld [vmem:[#allocation16 + $0x94] sm:$0xf] }
 0x790   : > { %9201 = vmatmul.bf16.gmra.mxu0 %v18945_v35  ;;  %9299 = vmatmul.bf16.gmra.mxu2 %v18945_v35  ;;  %v8581_v35 = vmax.f32 %v18957_v8, 0.0 }
 0x791   : > { %v8958_v29 = vpop.f32.mrf.mxu3  ;;  %9853 = vmatpush.bf16.msra.mxu3 %v12597_v12 }
 0x792   : > { %v19034_v63 = vadd.f32 %v8958_v29, %v8780_v25  ;;  %v19044_v48 = vpack.c.bf16 %v8583_v19, %v8581_v35  ;;  %v12600_v19 = vld [vmem:[#allocation16 + $0xc0] sm:$0xf]  ;;  %v8588_v35 = vmax.f32 %v18995_v37, 0.0 }
 0x793   : > { %v8783_v41 = vpop.f32.mrf.mxu1  ;;  %v8912_v10 = vpop.f32.mrf.mxu2 }
 0x794   : > { %v19038_v59 = vadd.f32 %v8912_v10, %v8734_v30  ;;  %v8590_v10 = vmax.f32 %v19007_v4, 0.0 }
 0x795   : > { %v8736_v21 = vpop.f32.mrf.mxu0 }
 0x796   : > { %9250 = vmatmul.bf16.gmra.mxu1 %v18954_v14  ;;  %9348 = vmatmul.bf16.gmra.mxu3 %v18954_v14  ;;  %v12544_v14 = vld [vmem:[#allocation16 + $0x50] sm:$0xf]  ;;  %v19076_v40 = vpack.c.bf16 %v8590_v10, %v8588_v35  ;;  %v13216_v35 = vld [vmem:[#allocation16 + $0x24] sm:$0xf0] }
 0x797   : > { %v12545_v8 = vor.u32 %v13222_v11, %v12544_v14  ;;  %v13217_v14 = vld [vmem:[#allocation16 + $0x34] sm:$0xf]  ;;  %v12530_v11 = vld [vmem:[#allocation16 + $0x38] sm:$0xf0] }
 0x798   : > { %v12533_v49 = vor.u32 %v13217_v14, %v12530_v11 }
 0x799   : > { %v8961_v53 = vpop.f32.mrf.mxu3  ;;  %9704 = vmatpush.bf16.msrb.mxu0 %v12545_v8 }
 0x79a   : > { %v19046_v0 = vadd.f32 %v8961_v53, %v8783_v41  ;;  %v13220_v41 = vld [vmem:[#allocation16 + $0x44] sm:$0xf0]  ;;  %9804 = vmatpush.bf16.msrb.mxu2 %v12533_v49 }
 0x79b   : > { %v8785_v34 = vpop.f32.mrf.mxu1  ;;  %v8914_v47 = vpop.f32.mrf.mxu2 }
 0x79c   : > { %v19048_v31 = vadd.f32 %v8914_v47, %v8736_v21  ;;  %v13236_v21 = vld [vmem:[#allocation16 + $0xc4] sm:$0xf0] }
 0x79d   : > { %v8739_v16 = vpop.f32.mrf.mxu0  ;;  %v12601_v2 = vor.u32 %v13236_v21, %v12600_v19  ;;  %v12520_v21 = vld [vmem:[#allocation16 + $0x20] sm:$0xf] }
 0x79f   : > { %9754 = vmatpush.bf16.msrb.mxu1 %v12601_v2  ;;  %v13232_v2 = vld [vmem:[#allocation16 + $0xa4] sm:$0xf0] }
 0x7a0   : > { %9206 = vmatmul.bf16.gmra.mxu0 %v18969_v7  ;;  %9304 = vmatmul.bf16.gmra.mxu2 %v18969_v7  ;;  %v8585_v7 = vmax.f32 %v18981_v9, 0.0 }
 0x7a1   : > { %v8963_v36 = vpop.f32.mrf.mxu3 }
 0x7a2   : > { %v19054_v46 = vadd.f32 %v8963_v36, %v8785_v34  ;;  %v19064_v30 = vpack.c.bf16 %v8587_v20, %v8585_v7  ;;  %v13234_v20 = vld [vmem:[#allocation16 + $0xb4] sm:$0xf0] }
 0x7a3   : > { %v8788_v25 = vpop.f32.mrf.mxu1  ;;  %v8917_v15 = vpop.f32.mrf.mxu2 }
 0x7a4   : > { %v19058_v57 = vadd.f32 %v8917_v15, %v8739_v16  ;;  %v12592_v15 = vld [vmem:[#allocation16 + $0xb0] sm:$0xf] }
 0x7a5   : > { %v8741_v50 = vpop.f32.mrf.mxu0  ;;  %v12593_v7 = vor.u32 %v13234_v20, %v12592_v15  ;;  %v12576_v15 = vld [vmem:[#allocation16 + $0x90] sm:$0xf] }
 0x7a6   : > { %9255 = vmatmul.bf16.gmra.mxu1 %v18978_v44  ;;  %9353 = vmatmul.bf16.gmra.mxu3 %v18978_v44  ;;  %v12536_v44 = vld [vmem:[#allocation16 + $0x40] sm:$0xf] }
 0x7a7   : > { %v12537_v9 = vor.u32 %v13220_v41, %v12536_v44  ;;  %9755 = vmatpush.bf16.msrb.mxu1 %v12593_v7  ;;  %v12525_v44 = vor.u32 %v13215_v38, %v12522_v28  ;;  %v13231_v41 = vld [vmem:[#allocation16 + $0xa4] sm:$0xf] }
 0x7a9   : > { %v8966_v24 = vpop.f32.mrf.mxu3  ;;  %9705 = vmatpush.bf16.msrb.mxu0 %v12537_v9  ;;  %v12586_v9 = vld [vmem:[#allocation16 + $0xa8] sm:$0xf0]  ;;  %9805 = vmatpush.bf16.msrb.mxu2 %v12525_v44 }
 0x7aa   : > { %v19066_v62 = vadd.f32 %v8966_v24, %v8788_v25  ;;  %v13218_v25 = vld [vmem:[#allocation16 + $0x34] sm:$0xf0]  ;;  %v12589_v19 = vor.u32 %v13231_v41, %v12586_v9 }
 0x7ab   : > { %v8790_v61 = vpop.f32.mrf.mxu1  ;;  %v8919_v52 = vpop.f32.mrf.mxu2 }
 0x7ac   : > { %v19068_v51 = vadd.f32 %v8919_v52, %v8741_v50  ;;  %9854 = vmatpush.bf16.msra.mxu3 %v12589_v19  ;;  %v12506_v19 = vld [vmem:[#allocation16 + $0x8] sm:$0xf0] }
 0x7ad   : > { %v8744_v29 = vpop.f32.mrf.mxu0 }
 0x7b0   : > { %9211 = vmatmul.bf16.gmra.mxu0 %v18993_v60  ;;  %9309 = vmatmul.bf16.gmra.mxu2 %v18993_v60  ;;  %v8589_v60 = vmax.f32 %v19005_v1, 0.0 }
 0x7b1   : > { %v8968_v53 = vpop.f32.mrf.mxu3 }
 0x7b2   : > { %v19074_v58 = vadd.f32 %v8968_v53, %v8790_v61  ;;  %v19084_v16 = vpack.c.bf16 %v8591_v45, %v8589_v60  ;;  %v12521_v53 = vor.u32 %v13216_v35, %v12520_v21 }
 0x7b3   : > { %v8793_v34 = vpop.f32.mrf.mxu1  ;;  %v8922_v47 = vpop.f32.mrf.mxu2 }
 0x7b4   : > { %v19078_v4 = vadd.f32 %v8922_v47, %v8744_v29 }
 0x7b5   : > { %v8746_v5 = vpop.f32.mrf.mxu0 }
 0x7b6   : > { %9260 = vmatmul.bf16.gmra.mxu1 %v19002_v33  ;;  %9358 = vmatmul.bf16.gmra.mxu3 %v19002_v33  ;;  %v12528_v33 = vld [vmem:[#allocation16 + $0x30] sm:$0xf] }
 0x7b7   : > { %v12529_v1 = vor.u32 %v13218_v25, %v12528_v33  ;;  %v12512_v25 = vld [vmem:[#allocation16 + $0x10] sm:$0xf] }
 0x7b9   : > { %v8971_v37 = vpop.f32.mrf.mxu3  ;;  %9706 = vmatpush.bf16.msrb.mxu0 %v12529_v1  ;;  %v13214_v1 = vld [vmem:[#allocation16 + $0x14] sm:$0xf0] }
 0x7ba   : > { %v19086_v18 = vadd.f32 %v8971_v37, %v8793_v34  ;;  %v12513_v20 = vor.u32 %v13214_v1, %v12512_v25 }
 0x7bb   : > { %v8795_v8 = vpop.f32.mrf.mxu1  ;;  %v8924_v39 = vpop.f32.mrf.mxu2 }
 0x7bc   : > { %v19088_v43 = vadd.f32 %v8924_v39, %v8746_v5 }
 0x7bd   : > { %v8749_v36 = vpop.f32.mrf.mxu0  ;;  %9707 = vmatpush.bf16.msrb.mxu0 %v12521_v53 }
 0x7c0   : > { %9216 = vmatmul.bf16.gmra.mxu0 %v19016_v27  ;;  %9314 = vmatmul.bf16.gmra.mxu2 %v19016_v27 }
 0x7c1   : > { %v8973_v50 = vpop.f32.mrf.mxu3  ;;  %9708 = vmatpush.bf16.msrb.mxu0 %v12513_v20 }
 0x7c2   : > { %v19092_v24 = vadd.f32 %v8973_v50, %v8795_v8  ;;  %v12514_v8 = vld [vmem:[#allocation16 + $0x18] sm:$0xf0] }
 0x7c3   : > { %v8798_v42 = vpop.f32.mrf.mxu1  ;;  %v8927_v54 = vpop.f32.mrf.mxu2 }
 0x7c4   : > { %v19094_v61 = vadd.f32 %v8927_v54, %v8749_v36  ;;  %v12578_v36 = vld [vmem:[#allocation16 + $0x98] sm:$0xf0] }
 0x7c5   : > { %v19096_v52 = vpop.f32.mrf.mxu0  ;;  %v12581_v33 = vor.u32 %v13229_v13, %v12578_v36 }
 0x7c6   : > { %9265 = vmatmul.bf16.gmra.mxu1 %v19024_v23  ;;  %9363 = vmatmul.bf16.gmra.mxu3 %v19024_v23  ;;  %v12584_v23 = vld [vmem:[#allocation16 + $0xa0] sm:$0xf] }
 0x7c7   : > { %v12585_v47 = vor.u32 %v13232_v2, %v12584_v23  ;;  %9855 = vmatpush.bf16.msra.mxu3 %v12581_v33  ;;  %v13227_v2 = vld [vmem:[#allocation16 + $0x84] sm:$0xf] }
 0x7c9   : > { %v8976_v56 = vpop.f32.mrf.mxu3  ;;  %9756 = vmatpush.bf16.msrb.mxu1 %v12585_v47  ;;  %v12570_v47 = vld [vmem:[#allocation16 + $0x88] sm:$0xf0] }
 0x7ca   : > { %v19100_v27 = vadd.f32 %v8976_v56, %v8798_v42 }
 0x7cb   : > { %v19102_v29 = vpop.f32.mrf.mxu1  ;;  %v19104_v3 = vpop.f32.mrf.mxu2 }
 0x7cd   : > { %v8754_v10 = vpop.f32.mrf.mxu0 }
 0x7d0   : > { %9221 = vmatmul.bf16.gmra.mxu0 %v19036_v6  ;;  %9319 = vmatmul.bf16.gmra.mxu2 %v19036_v6  ;;  %v13213_v6 = vld [vmem:[#allocation16 + $0x14] sm:$0xf] }
 0x7d1   : > { %v19108_v34 = vpop.f32.mrf.mxu3  ;;  %v12517_v55 = vor.u32 %v13213_v6, %v12514_v8  ;;  %v13212_v6 = vld [vmem:[#allocation16 + $0x4] sm:$0xf0]  ;;  %v12568_v8 = vld [vmem:[#allocation16 + $0x80] sm:$0xf] }
 0x7d3   : > { %v8803_v45 = vpop.f32.mrf.mxu1  ;;  %v8932_v5 = vpop.f32.mrf.mxu2  ;;  %9806 = vmatpush.bf16.msrb.mxu2 %v12517_v55  ;;  %v13228_v55 = vld [vmem:[#allocation16 + $0x84] sm:$0xf0] }
 0x7d4   : > { %v19110_v60 = vadd.f32 %v8932_v5, %v8754_v10  ;;  %v13211_v10 = vld [vmem:[#allocation16 + $0x4] sm:$0xf]  ;;  %v12569_v13 = vor.u32 %v13228_v55, %v12568_v8  ;;  %v13257_v8 = vld [vmem:[#allocation17 + $0x74] sm:$0xf]  ;;  %v12690_v55 = vld [vmem:[#allocation17 + $0x78] sm:$0xf0] }
 0x7d5   : > { %v19112_v37 = vpop.f32.mrf.mxu0  ;;  %v12509_v35 = vor.u32 %v13211_v10, %v12506_v19 }
 0x7d6   : > { %9270 = vmatmul.bf16.gmra.mxu1 %v19044_v48  ;;  %9368 = vmatmul.bf16.gmra.mxu3 %v19044_v48  ;;  %v13230_v48 = vld [vmem:[#allocation16 + $0x94] sm:$0xf0] }
 0x7d7   : > { %v12577_v50 = vor.u32 %v13230_v48, %v12576_v15  ;;  %9807 = vmatpush.bf16.msrb.mxu2 %v12509_v35 }
 0x7d9   : > { %v8981_v14 = vpop.f32.mrf.mxu3  ;;  %9757 = vmatpush.bf16.msrb.mxu1 %v12577_v50 }
 0x7da   : > { %v19116_v11 = vadd.f32 %v8981_v14, %v8803_v45  ;;  %v12504_v45 = vld [vmem:[#allocation16] sm:$0xf]  ;;  %v12573_v14 = vor.u32 %v13227_v2, %v12570_v47 }
 0x7db   : > { %v19118_v39 = vpop.f32.mrf.mxu1  ;;  %v19120_v49 = vpop.f32.mrf.mxu2 }
 0x7dc   : > { %9856 = vmatpush.bf16.msra.mxu3 %v12573_v14 }
 0x7dd   : > { %v8759_v12 = vpop.f32.mrf.mxu0  ;;  %9758 = vmatpush.bf16.msrb.mxu1 %v12569_v13  ;;  %v13273_v13 = vld [vmem:[#allocation17 + $0xf4] sm:$0xf] }
 0x7e0   : > { %9226 = vmatmul.bf16.gmra.mxu0 %v19056_v22  ;;  %9324 = vmatmul.bf16.gmra.mxu2 %v19056_v22 }
 0x7e1   : > { %v19124_v7 = vpop.f32.mrf.mxu3 }
 0x7e3   : > { %v8808_v42 = vpop.f32.mrf.mxu1  ;;  %v8937_v54 = vpop.f32.mrf.mxu2 }
 0x7e4   : > { %v19126_v56 = vadd.f32 %v8937_v54, %v8759_v12 }
 0x7e5   : > { %v19128_v38 = vpop.f32.mrf.mxu0 }
 0x7e6   : > { %9275 = vmatmul.bf16.gmra.mxu1 %v19064_v30  ;;  %9373 = vmatmul.bf16.gmra.mxu3 %v19064_v30 }
 0x7e9   : > { %v8986_v28 = vpop.f32.mrf.mxu3 }
 0x7ea   : > { %v19132_v44 = vadd.f32 %v8986_v28, %v8808_v42 }
 0x7eb   : > { %v19134_v41 = vpop.f32.mrf.mxu1  ;;  %v19136_v22 = vpop.f32.mrf.mxu2 }
 0x7ed   : > { %v8764_v9 = vpop.f32.mrf.mxu0 }
 0x7f0   : > { %9231 = vmatmul.bf16.gmra.mxu0 %v19076_v40  ;;  %9329 = vmatmul.bf16.gmra.mxu2 %v19076_v40  ;;  %v12505_v40 = vor.u32 %v13212_v6, %v12504_v45 }
 0x7f1   : > { %v19140_v21 = vpop.f32.mrf.mxu3 }
 0x7f2   : > { %9709 = vmatpush.bf16.msrb.mxu0 %v12505_v40  ;;  %v12693_v40 = vor.u32 %v13257_v8, %v12690_v55 }
 0x7f3   : > { %v8813_v53 = vpop.f32.mrf.mxu1  ;;  %v8942_v23 = vpop.f32.mrf.mxu2 }
 0x7f4   : > { %v19142_v30 = vadd.f32 %v8942_v23, %v8764_v9  ;;  %10243 = vmatpush.bf16.msra.mxu2 %v12693_v40 }
 0x7f5   : > { %v19144_v5 = vpop.f32.mrf.mxu0 }
 0x7f6   : > { %9280 = vmatmul.bf16.gmra.mxu1 %v19084_v16  ;;  %9378 = vmatmul.bf16.gmra.mxu3 %v19084_v16  ;;  %v9417_v16 = vld [vmem:[#allocation23 + $0x5] ss:$8 sm:$0x3] }
 0x7f7   : > { %v19157_v9 = vperm.slane %v9417_v16, 0  ;;  %v19162_v14 = vperm.slane %v9417_v16, 1 }
 0x7f9   : > { %v8991_v36 = vpop.f32.mrf.mxu3 }
 0x7fa   : > { %v19148_v12 = vadd.f32 %v8991_v36, %v8813_v53  ;;  %v12754_v36 = vld [vmem:[#allocation17 + $0xf8] sm:$0xf0] }
 0x7fb   : > { %v19150_v33 = vpop.f32.mrf.mxu1  ;;  %v19152_v25 = vpop.f32.mrf.mxu2 }
 0x7fd   : > { %v9197_v1 = vpop.f32.mrf.mxu0 }
 0x801   : > { %v19154_v15 = vpop.f32.mrf.mxu3 }
 0x803   : > { %v9246_v20 = vpop.f32.mrf.mxu1  ;;  %v9295_v48 = vpop.f32.mrf.mxu2 }
 0x804   : > { %v9247_v42 = vadd.f32 %v9246_v20, %v9197_v1  ;;  %v12688_v1 = vld [vmem:[#allocation17 + $0x70] sm:$0xf] }
 0x805   : > { %v9199_v50 = vpop.f32.mrf.mxu0 }
 0x806   : > { %v9384_v28 = vadd.f32 %v9247_v42, %v19018_v17  ;;  %v12757_v42 = vor.u32 %v13273_v13, %v12754_v36 }
 0x808   : > { %v9423_v2 = vadd.f32 %v19157_v9, %v9384_v28  ;;  %10292 = vmatpush.bf16.msrb.mxu3 %v12757_v42 }
 0x809   : > { %v9344_v54 = vpop.f32.mrf.mxu3 }
 0x80a   : > { %v9345_v35 = vadd.f32 %v9344_v54, %v9295_v48  ;;  %v9455_v20 = vmax.f32 %v9423_v2, 0.0  ;;  %v13258_v54 = vld [vmem:[#allocation17 + $0x74] sm:$0xf0] }
 0x80b   : > { %v9248_v10 = vpop.f32.mrf.mxu1  ;;  %v9297_v19 = vpop.f32.mrf.mxu2  ;;  %v13274_v2 = vld [vmem:[#allocation17 + $0xf4] sm:$0xf0] }
 0x80c   : > { %v9249_v53 = vadd.f32 %v9248_v10, %v9199_v50  ;;  %v9385_v45 = vadd.f32 %v9345_v35, %v19026_v26  ;;  %v12689_v26 = vor.u32 %v13258_v54, %v12688_v1 }
 0x80d   : > { %v9202_v23 = vpop.f32.mrf.mxu0 }
 0x80e   : > { %v9386_v47 = vadd.f32 %v9249_v53, %v19028_v32  ;;  %v9424_v16 = vadd.f32 %v19162_v14, %v9385_v45  ;;  %10145 = vmatpush.bf16.msra.mxu0 %v12689_v26  ;;  %v12682_v26 = vld [vmem:[#allocation17 + $0x68] sm:$0xf0] }
 0x810   : > { %v9425_v6 = vadd.f32 %v19157_v9, %v9386_v47  ;;  %v9456_v55 = vmax.f32 %v9424_v16, 0.0 }
 0x811   : > { %v9346_v17 = vpop.f32.mrf.mxu3 }
 0x812   : > { %v9457_v48 = vmax.f32 %v9425_v6, 0.0  ;;  %v9347_v50 = vadd.f32 %v9346_v17, %v9297_v19  ;;  %v12752_v19 = vld [vmem:[#allocation17 + $0xf0] sm:$0xf] }
 0x813   : > { %v9251_v28 = vpop.f32.mrf.mxu1  ;;  %v9300_v32 = vpop.f32.mrf.mxu2  ;;  %v12753_v6 = vor.u32 %v13274_v2, %v12752_v19  ;;  %v13256_v2 = vld [vmem:[#allocation17 + $0x64] sm:$0xf0] }
 0x814   : > { %v9487_v10 = vpack.c.bf16 %v9457_v48, %v9455_v20  ;;  %v9387_v35 = vadd.f32 %v9347_v50, %v19034_v63  ;;  %v9252_v8 = vadd.f32 %v9251_v28, %v9202_v23  ;;  %v13255_v28 = vld [vmem:[#allocation17 + $0x64] sm:$0xf] }
 0x815   : > { %v9204_v53 = vpop.f32.mrf.mxu0  ;;  %10194 = vmatpush.bf16.msra.mxu1 %v12753_v6 }
 0x816   : > { %v9426_v47 = vadd.f32 %v19162_v14, %v9387_v35  ;;  %9710 = vmatmul.bf16.vlgmr.msrb.gmra.mxu0 %v9487_v10  ;;  %9808 = vmatmul.bf16.vlgmr.msrb.gmra.mxu2 %v9487_v10  ;;  %v9388_v45 = vadd.f32 %v9252_v8, %v19038_v59  ;;  %v12685_v10 = vor.u32 %v13255_v28, %v12682_v26  ;;  %v13271_v59 = vld [vmem:[#allocation17 + $0xe4] sm:$0xf]  ;;  %v12746_v35 = vld [vmem:[#allocation17 + $0xe8] sm:$0xf0] }
 0x817   : > { %v12749_v19 = vor.u32 %v13271_v59, %v12746_v35 }
 0x818   : > { %v9458_v17 = vmax.f32 %v9426_v47, 0.0  ;;  %v9427_v23 = vadd.f32 %v19157_v9, %v9388_v45  ;;  %v12680_v47 = vld [vmem:[#allocation17 + $0x60] sm:$0xf]  ;;  %10244 = vmatpush.bf16.msra.mxu2 %v12685_v10 }
 0x819   : > { %v9349_v40 = vpop.f32.mrf.mxu3  ;;  %10293 = vmatpush.bf16.msrb.mxu3 %v12749_v19 }
 0x81a   : > { %v9488_v13 = vpack.c.bf16 %v9458_v17, %v9456_v55  ;;  %v9350_v1 = vadd.f32 %v9349_v40, %v9300_v32  ;;  %v9459_v32 = vmax.f32 %v9427_v23, 0.0 }
 0x81b   : > { %v9253_v36 = vpop.f32.mrf.mxu1  ;;  %v9302_v63 = vpop.f32.mrf.mxu2 }
 0x81c   : > { %v9254_v20 = vadd.f32 %v9253_v36, %v9204_v53  ;;  %9759 = vmatmul.bf16.vlgmr.msrb.gmra.mxu1 %v9488_v13  ;;  %9857 = vmatmul.bf16.vlgmr.msra.gmra.mxu3 %v9488_v13  ;;  %v9389_v42 = vadd.f32 %v9350_v1, %v19046_v0  ;;  %v13272_v1 = vld [vmem:[#allocation17 + $0xe4] sm:$0xf0] }
 0x81d   : > { %v9207_v48 = vpop.f32.mrf.mxu0 }
 0x81e   : > { %v9390_v50 = vadd.f32 %v9254_v20, %v19048_v31  ;;  %v12681_v31 = vor.u32 %v13256_v2, %v12680_v47  ;;  %v9428_v0 = vadd.f32 %v19162_v14, %v9389_v42  ;;  %v13269_v2 = vld [vmem:[#allocation17 + $0xd4] sm:$0xf] }
 0x820   : > { %v9429_v54 = vadd.f32 %v19157_v9, %v9390_v50  ;;  %10146 = vmatpush.bf16.msra.mxu0 %v12681_v31  ;;  %v9460_v23 = vmax.f32 %v9428_v0, 0.0  ;;  %v12672_v31 = vld [vmem:[#allocation17 + $0x50] sm:$0xf] }
 0x821   : > { %v9351_v16 = vpop.f32.mrf.mxu3 }
 0x822   : > { %v9352_v53 = vadd.f32 %v9351_v16, %v9302_v63  ;;  %v9461_v8 = vmax.f32 %v9429_v54, 0.0  ;;  %v12744_v63 = vld [vmem:[#allocation17 + $0xe0] sm:$0xf] }
 0x823   : > { %v9256_v6 = vpop.f32.mrf.mxu1  ;;  %v9305_v55 = vpop.f32.mrf.mxu2  ;;  %v12745_v20 = vor.u32 %v13272_v1, %v12744_v63 }
 0x824   : > { %v9391_v17 = vadd.f32 %v9352_v53, %v19054_v46  ;;  %v9489_v40 = vpack.c.bf16 %v9461_v8, %v9459_v32  ;;  %v9257_v36 = vadd.f32 %v9256_v6, %v9207_v48  ;;  %v13253_v53 = vld [vmem:[#allocation17 + $0x54] sm:$0xf]  ;;  %v12674_v8 = vld [vmem:[#allocation17 + $0x58] sm:$0xf0] }
 0x825   : > { %v9209_v13 = vpop.f32.mrf.mxu0  ;;  %10195 = vmatpush.bf16.msra.mxu1 %v12745_v20  ;;  %v12738_v6 = vld [vmem:[#allocation17 + $0xd8] sm:$0xf0] }
 0x826   : > { %v9430_v45 = vadd.f32 %v19162_v14, %v9391_v17  ;;  %9715 = vmatmul.bf16.gmra.mxu0 %v9489_v40  ;;  %9813 = vmatmul.bf16.gmra.mxu2 %v9489_v40  ;;  %v9392_v42 = vadd.f32 %v9257_v36, %v19058_v57  ;;  %v12677_v57 = vor.u32 %v13253_v53, %v12674_v8 }
 0x827   : > { %v12741_v40 = vor.u32 %v13269_v2, %v12738_v6  ;;  %v13251_v2 = vld [vmem:[#allocation17 + $0x44] sm:$0xf]  ;;  %v12666_v6 = vld [vmem:[#allocation17 + $0x48] sm:$0xf0] }
 0x828   : > { %v9462_v50 = vmax.f32 %v9430_v45, 0.0  ;;  %v9431_v48 = vadd.f32 %v19157_v9, %v9392_v42  ;;  %10245 = vmatpush.bf16.msra.mxu2 %v12677_v57  ;;  %v13270_v42 = vld [vmem:[#allocation17 + $0xd4] sm:$0xf0] }
 0x829   : > { %v9354_v54 = vpop.f32.mrf.mxu3  ;;  %10294 = vmatpush.bf16.msrb.mxu3 %v12741_v40 }
 0x82a   : > { %v9490_v28 = vpack.c.bf16 %v9462_v50, %v9460_v23  ;;  %v9355_v16 = vadd.f32 %v9354_v54, %v9305_v55  ;;  %v9463_v55 = vmax.f32 %v9431_v48, 0.0  ;;  %v12736_v54 = vld [vmem:[#allocation17 + $0xd0] sm:$0xf] }
 0x82b   : > { %v9258_v46 = vpop.f32.mrf.mxu1  ;;  %v9307_v26 = vpop.f32.mrf.mxu2 }
 0x82c   : > { %v9259_v10 = vadd.f32 %v9258_v46, %v9209_v13  ;;  %9764 = vmatmul.bf16.gmra.mxu1 %v9490_v28  ;;  %9862 = vmatmul.bf16.gmra.mxu3 %v9490_v28  ;;  %v9393_v47 = vadd.f32 %v9355_v16, %v19066_v62  ;;  %v13254_v13 = vld [vmem:[#allocation17 + $0x54] sm:$0xf0]  ;;  %v12737_v28 = vor.u32 %v13270_v42, %v12736_v54  ;;  %v12728_v42 = vld [vmem:[#allocation17 + $0xc0] sm:$0xf] }
 0x82d   : > { %v9212_v59 = vpop.f32.mrf.mxu0 }
 0x82e   : > { %v9394_v35 = vadd.f32 %v9259_v10, %v19068_v51  ;;  %v12673_v51 = vor.u32 %v13254_v13, %v12672_v31  ;;  %v9432_v62 = vadd.f32 %v19162_v14, %v9393_v47  ;;  %10196 = vmatpush.bf16.msra.mxu1 %v12737_v28  ;;  %v13268_v28 = vld [vmem:[#allocation17 + $0xc4] sm:$0xf0] }
 0x830   : > { %v9433_v32 = vadd.f32 %v19157_v9, %v9394_v35  ;;  %10147 = vmatpush.bf16.msra.mxu0 %v12673_v51  ;;  %v9464_v46 = vmax.f32 %v9432_v62, 0.0  ;;  %v13252_v51 = vld [vmem:[#allocation17 + $0x44] sm:$0xf0] }
 0x831   : > { %v9356_v19 = vpop.f32.mrf.mxu3 }
 0x832   : > { %v9357_v0 = vadd.f32 %v9356_v19, %v9307_v26  ;;  %v9465_v17 = vmax.f32 %v9433_v32, 0.0 }
 0x833   : > { %v9261_v45 = vpop.f32.mrf.mxu1  ;;  %v9310_v36 = vpop.f32.mrf.mxu2 }
 0x834   : > { %v9395_v63 = vadd.f32 %v9357_v0, %v19074_v58  ;;  %v9491_v1 = vpack.c.bf16 %v9465_v17, %v9463_v55  ;;  %v9262_v50 = vadd.f32 %v9261_v45, %v9212_v59  ;;  %v13267_v55 = vld [vmem:[#allocation17 + $0xc4] sm:$0xf]  ;;  %v12730_v0 = vld [vmem:[#allocation17 + $0xc8] sm:$0xf0]  ;;  %v12664_v17 = vld [vmem:[#allocation17 + $0x40] sm:$0xf] }
 0x835   : > { %v9214_v20 = vpop.f32.mrf.mxu0 }
 0x836   : > { %v9434_v23 = vadd.f32 %v19162_v14, %v9395_v63  ;;  %9720 = vmatmul.bf16.gmra.mxu0 %v9491_v1  ;;  %9818 = vmatmul.bf16.gmra.mxu2 %v9491_v1  ;;  %v9396_v10 = vadd.f32 %v9262_v50, %v19078_v4  ;;  %v12669_v4 = vor.u32 %v13251_v2, %v12666_v6  ;;  %v13249_v6 = vld [vmem:[#allocation17 + $0x34] sm:$0xf] }
 0x838   : > { %v9466_v26 = vmax.f32 %v9434_v23, 0.0  ;;  %v9435_v59 = vadd.f32 %v19157_v9, %v9396_v10  ;;  %10246 = vmatpush.bf16.msra.mxu2 %v12669_v4 }
 0x839   : > { %v9359_v16 = vpop.f32.mrf.mxu3 }
 0x83a   : > { %v9492_v48 = vpack.c.bf16 %v9466_v26, %v9464_v46  ;;  %v9360_v47 = vadd.f32 %v9359_v16, %v9310_v36  ;;  %v9467_v40 = vmax.f32 %v9435_v59, 0.0  ;;  %v12733_v36 = vor.u32 %v13267_v55, %v12730_v0  ;;  %v12656_v0 = vld [vmem:[#allocation17 + $0x30] sm:$0xf] }
 0x83b   : > { %v9263_v58 = vpop.f32.mrf.mxu1  ;;  %v9312_v35 = vpop.f32.mrf.mxu2  ;;  %v12729_v46 = vor.u32 %v13268_v28, %v12728_v42 }
 0x83c   : > { %v9264_v32 = vadd.f32 %v9263_v58, %v9214_v20  ;;  %9769 = vmatmul.bf16.gmra.mxu1 %v9492_v48  ;;  %9867 = vmatmul.bf16.gmra.mxu3 %v9492_v48  ;;  %v9397_v19 = vadd.f32 %v9360_v47, %v19086_v18  ;;  %v8930_v47 = vadd.f32 %v19104_v3, %v19096_v52  ;;  %v13265_v52 = vld [vmem:[#allocation17 + $0xb4] sm:$0xf]  ;;  %v12722_v3 = vld [vmem:[#allocation17 + $0xb8] sm:$0xf0] }
 0x83d   : > { %v9217_v53 = vpop.f32.mrf.mxu0  ;;  %10295 = vmatpush.bf16.msrb.mxu3 %v12733_v36  ;;  %10197 = vmatpush.bf16.msra.mxu1 %v12729_v46  ;;  %v13250_v36 = vld [vmem:[#allocation17 + $0x34] sm:$0xf0] }
 0x83e   : > { %v9398_v8 = vadd.f32 %v9264_v32, %v19088_v43  ;;  %v12665_v43 = vor.u32 %v13252_v51, %v12664_v17  ;;  %v9436_v18 = vadd.f32 %v19162_v14, %v9397_v19 }
 0x840   : > { %v9437_v57 = vadd.f32 %v19157_v9, %v9398_v8  ;;  %10148 = vmatpush.bf16.msra.mxu0 %v12665_v43  ;;  %v9468_v26 = vmax.f32 %v9436_v18, 0.0 }
 0x841   : > { %v9361_v31 = vpop.f32.mrf.mxu3 }
 0x842   : > { %v9362_v13 = vadd.f32 %v9361_v31, %v9312_v35  ;;  %v9469_v45 = vmax.f32 %v9437_v57, 0.0  ;;  %v8979_v31 = vadd.f32 %v19108_v34, %v19102_v29 }
 0x843   : > { %v9266_v62 = vpop.f32.mrf.mxu1  ;;  %v9315_v63 = vpop.f32.mrf.mxu2 }
 0x844   : > { %v9399_v1 = vadd.f32 %v9362_v13, %v19092_v24  ;;  %v9493_v20 = vpack.c.bf16 %v9469_v45, %v9467_v40  ;;  %v9267_v54 = vadd.f32 %v9266_v62, %v9217_v53  ;;  %v12725_v45 = vor.u32 %v13265_v52, %v12722_v3  ;;  %v13248_v52 = vld [vmem:[#allocation17 + $0x24] sm:$0xf0] }
 0x845   : > { %v9219_v23 = vpop.f32.mrf.mxu0 }
 0x846   : > { %v9438_v50 = vadd.f32 %v19162_v14, %v9399_v1  ;;  %9725 = vmatmul.bf16.gmra.mxu0 %v9493_v20  ;;  %9823 = vmatmul.bf16.gmra.mxu2 %v9493_v20  ;;  %v9400_v48 = vadd.f32 %v9267_v54, %v19094_v61  ;;  %v12658_v61 = vld [vmem:[#allocation17 + $0x38] sm:$0xf0]  ;;  %v12720_v20 = vld [vmem:[#allocation17 + $0xb0] sm:$0xf] }
 0x847   : > { %v12661_v55 = vor.u32 %v13249_v6, %v12658_v61  ;;  %10296 = vmatpush.bf16.msrb.mxu3 %v12725_v45  ;;  %v12648_v6 = vld [vmem:[#allocation17 + $0x20] sm:$0xf] }
 0x848   : > { %v9470_v16 = vmax.f32 %v9438_v50, 0.0  ;;  %v9439_v8 = vadd.f32 %v19157_v9, %v9400_v48  ;;  %v8935_v48 = vadd.f32 %v19120_v49, %v19112_v37  ;;  %v13263_v37 = vld [vmem:[#allocation17 + $0xa4] sm:$0xf]  ;;  %v12714_v49 = vld [vmem:[#allocation17 + $0xa8] sm:$0xf0] }
 0x849   : > { %v9364_v10 = vpop.f32.mrf.mxu3  ;;  %10247 = vmatpush.bf16.msra.mxu2 %v12661_v55  ;;  %v12717_v55 = vor.u32 %v13263_v37, %v12714_v49  ;;  %v12712_v45 = vld [vmem:[#allocation17 + $0xa0] sm:$0xf] }
 0x84a   : > { %v9494_v58 = vpack.c.bf16 %v9470_v16, %v9468_v26  ;;  %v9365_v32 = vadd.f32 %v9364_v10, %v9315_v63  ;;  %v9471_v17 = vmax.f32 %v9439_v8, 0.0  ;;  %v13247_v8 = vld [vmem:[#allocation17 + $0x24] sm:$0xf] }
 0x84b   : > { %v9268_v24 = vpop.f32.mrf.mxu1  ;;  %v9317_v35 = vpop.f32.mrf.mxu2  ;;  %10297 = vmatpush.bf16.msrb.mxu3 %v12717_v55 }
 0x84c   : > { %v9269_v59 = vadd.f32 %v9268_v24, %v9219_v23  ;;  %9774 = vmatmul.bf16.gmra.mxu1 %v9494_v58  ;;  %9872 = vmatmul.bf16.gmra.mxu3 %v9494_v58  ;;  %v9401_v57 = vadd.f32 %v9365_v32, %v19100_v27  ;;  %v12657_v27 = vor.u32 %v13250_v36, %v12656_v0  ;;  %v13266_v23 = vld [vmem:[#allocation17 + $0xb4] sm:$0xf0]  ;;  %v13264_v36 = vld [vmem:[#allocation17 + $0xa4] sm:$0xf0] }
 0x84d   : > { %v9222_v53 = vpop.f32.mrf.mxu0  ;;  %v12721_v50 = vor.u32 %v13266_v23, %v12720_v20 }
 0x84e   : > { %v9402_v19 = vadd.f32 %v9269_v59, %v8930_v47  ;;  %v9440_v63 = vadd.f32 %v19162_v14, %v9401_v57  ;;  %10149 = vmatpush.bf16.msra.mxu0 %v12657_v27 }
 0x84f   : > { %10198 = vmatpush.bf16.msra.mxu1 %v12721_v50  ;;  %v13245_v50 = vld [vmem:[#allocation17 + $0x14] sm:$0xf] }
 0x850   : > { %v9441_v2 = vadd.f32 %v19157_v9, %v9402_v19  ;;  %v9472_v54 = vmax.f32 %v9440_v63, 0.0  ;;  %v8984_v19 = vadd.f32 %v19124_v7, %v19118_v39 }
 0x851   : > { %v9366_v4 = vpop.f32.mrf.mxu3 }
 0x852   : > { %v9367_v40 = vadd.f32 %v9366_v4, %v9317_v35  ;;  %v9473_v13 = vmax.f32 %v9441_v2, 0.0 }
 0x853   : > { %v9271_v51 = vpop.f32.mrf.mxu1  ;;  %v9320_v62 = vpop.f32.mrf.mxu2 }
 0x854   : > { %v9403_v43 = vadd.f32 %v9367_v40, %v8979_v31  ;;  %v9495_v18 = vpack.c.bf16 %v9473_v13, %v9471_v17  ;;  %v9272_v1 = vadd.f32 %v9271_v51, %v9222_v53 }
 0x855   : > { %v9224_v29 = vpop.f32.mrf.mxu0 }
 0x856   : > { %v9442_v34 = vadd.f32 %v19162_v14, %v9403_v43  ;;  %9730 = vmatmul.bf16.gmra.mxu0 %v9495_v18  ;;  %9828 = vmatmul.bf16.gmra.mxu2 %v9495_v18  ;;  %v9404_v46 = vadd.f32 %v9272_v1, %v19110_v60  ;;  %v12650_v60 = vld [vmem:[#allocation17 + $0x28] sm:$0xf0]  ;;  %v8940_v1 = vadd.f32 %v19136_v22, %v19128_v38 }
 0x857   : > { %v12653_v2 = vor.u32 %v13247_v8, %v12650_v60  ;;  %v8989_v8 = vadd.f32 %v19140_v21, %v19134_v41 }
 0x858   : > { %v9474_v42 = vmax.f32 %v9442_v34, 0.0  ;;  %v9443_v47 = vadd.f32 %v19157_v9, %v9404_v46 }
 0x859   : > { %v9369_v28 = vpop.f32.mrf.mxu3  ;;  %10248 = vmatpush.bf16.msra.mxu2 %v12653_v2 }
 0x85a   : > { %v9496_v26 = vpack.c.bf16 %v9474_v42, %v9472_v54  ;;  %v9370_v58 = vadd.f32 %v9369_v28, %v9320_v62  ;;  %v9475_v61 = vmax.f32 %v9443_v47, 0.0  ;;  %v12713_v62 = vor.u32 %v13264_v36, %v12712_v45  ;;  %v12642_v54 = vld [vmem:[#allocation17 + $0x18] sm:$0xf0]  ;;  %v13261_v42 = vld [vmem:[#allocation17 + $0x94] sm:$0xf] }
 0x85b   : > { %v9273_v16 = vpop.f32.mrf.mxu1  ;;  %v9322_v10 = vpop.f32.mrf.mxu2  ;;  %v12645_v46 = vor.u32 %v13245_v50, %v12642_v54  ;;  %v13262_v47 = vld [vmem:[#allocation17 + $0x94] sm:$0xf0]  ;;  %v13259_v45 = vld [vmem:[#allocation17 + $0x84] sm:$0xf]  ;;  %v12698_v36 = vld [vmem:[#allocation17 + $0x88] sm:$0xf0] }
 0x85c   : > { %v9274_v24 = vadd.f32 %v9273_v16, %v9224_v29  ;;  %9779 = vmatmul.bf16.gmra.mxu1 %v9496_v26  ;;  %9877 = vmatmul.bf16.gmra.mxu3 %v9496_v26  ;;  %v9405_v59 = vadd.f32 %v9370_v58, %v19116_v11  ;;  %v12649_v11 = vor.u32 %v13248_v52, %v12648_v6  ;;  %v12706_v26 = vld [vmem:[#allocation17 + $0x98] sm:$0xf0]  ;;  %v12640_v16 = vld [vmem:[#allocation17 + $0x10] sm:$0xf] }
 0x85d   : > { %v9227_v35 = vpop.f32.mrf.mxu0  ;;  %10199 = vmatpush.bf16.msra.mxu1 %v12713_v62  ;;  %v12709_v58 = vor.u32 %v13261_v42, %v12706_v26  ;;  %10249 = vmatpush.bf16.msra.mxu2 %v12645_v46 }
 0x85e   : > { %v9406_v32 = vadd.f32 %v9274_v24, %v8935_v48  ;;  %v9444_v17 = vadd.f32 %v19162_v14, %v9405_v59  ;;  %10150 = vmatpush.bf16.msra.mxu0 %v12649_v11  ;;  %v8945_v11 = vadd.f32 %v19152_v25, %v19144_v5 }
 0x85f   : > { %10298 = vmatpush.bf16.msrb.mxu3 %v12709_v58 }
 0x860   : > { %v9445_v53 = vadd.f32 %v19157_v9, %v9406_v32  ;;  %v9476_v27 = vmax.f32 %v9444_v17, 0.0 }
 0x861   : > { %v9371_v57 = vpop.f32.mrf.mxu3 }
 0x862   : > { %v9372_v31 = vadd.f32 %v9371_v57, %v9322_v10  ;;  %v9477_v4 = vmax.f32 %v9445_v53, 0.0  ;;  %v13246_v10 = vld [vmem:[#allocation17 + $0x14] sm:$0xf0] }
 0x863   : > { %v9276_v3 = vpop.f32.mrf.mxu1  ;;  %v9325_v0 = vpop.f32.mrf.mxu2  ;;  %v12641_v24 = vor.u32 %v13246_v10, %v12640_v16  ;;  %v9536_v10 = vld [vmem:[#allocation23 + $0x6] ss:$8 sm:$0x3] }
 0x864   : > { %v9407_v40 = vadd.f32 %v9372_v31, %v8984_v19  ;;  %v9497_v13 = vpack.c.bf16 %v9477_v4, %v9475_v61  ;;  %v9277_v7 = vadd.f32 %v9276_v3, %v9227_v35  ;;  %v12704_v35 = vld [vmem:[#allocation17 + $0x90] sm:$0xf]  ;;  %v19232_v58 = vperm.slane %v9536_v10, 0 }
 0x865   : > { %v9229_v51 = vpop.f32.mrf.mxu0  ;;  %v12705_v38 = vor.u32 %v13262_v47, %v12704_v35  ;;  %10151 = vmatpush.bf16.msra.mxu0 %v12641_v24  ;;  %v13289_v35 = vld [vmem:[#allocation19 + $0x74] sm:$0xf]  ;;  %v12818_v47 = vld [vmem:[#allocation19 + $0x78] sm:$0xf0] }
 0x866   : > { %v9446_v39 = vadd.f32 %v19162_v14, %v9407_v40  ;;  %9735 = vmatmul.bf16.gmra.mxu0 %v9497_v13  ;;  %9833 = vmatmul.bf16.gmra.mxu2 %v9497_v13  ;;  %v9408_v18 = vadd.f32 %v9277_v7, %v19126_v56  ;;  %v13243_v13 = vld [vmem:[#allocation17 + $0x4] sm:$0xf] }
 0x867   : > { %10200 = vmatpush.bf16.msra.mxu1 %v12705_v38 }
 0x868   : > { %v9478_v63 = vmax.f32 %v9446_v39, 0.0  ;;  %v9447_v48 = vadd.f32 %v19157_v9, %v9408_v18  ;;  %v12634_v39 = vld [vmem:[#allocation17 + $0x8] sm:$0xf0] }
 0x869   : > { %v9374_v43 = vpop.f32.mrf.mxu3  ;;  %v12637_v7 = vor.u32 %v13243_v13, %v12634_v39 }
 0x86a   : > { %v9498_v29 = vpack.c.bf16 %v9478_v63, %v9476_v27  ;;  %v9375_v20 = vadd.f32 %v9374_v43, %v9325_v0  ;;  %v9479_v60 = vmax.f32 %v9447_v48, 0.0  ;;  %v12701_v27 = vor.u32 %v13259_v45, %v12698_v36 }
 0x86b   : > { %v9278_v34 = vpop.f32.mrf.mxu1  ;;  %v9327_v28 = vpop.f32.mrf.mxu2  ;;  %10250 = vmatpush.bf16.msra.mxu2 %v12637_v7  ;;  %v8994_v43 = vadd.f32 %v19154_v15, %v19150_v33 }
 0x86c   : > { %v9279_v23 = vadd.f32 %v9278_v34, %v9229_v51  ;;  %9784 = vmatmul.bf16.gmra.mxu1 %v9498_v29  ;;  %9882 = vmatmul.bf16.gmra.mxu3 %v9498_v29  ;;  %v9409_v22 = vadd.f32 %v9375_v20, %v19132_v44  ;;  %v13244_v20 = vld [vmem:[#allocation17 + $0x4] sm:$0xf0] }
 0x86d   : > { %v9232_v59 = vpop.f32.mrf.mxu0  ;;  %10299 = vmatpush.bf16.msrb.mxu3 %v12701_v27  ;;  %v13287_v27 = vld [vmem:[#allocation19 + $0x64] sm:$0xf] }
 0x86e   : > { %v9410_v56 = vadd.f32 %v9279_v23, %v8940_v1  ;;  %v9448_v37 = vadd.f32 %v19162_v14, %v9409_v22  ;;  %v12632_v1 = vld [vmem:[#allocation17] sm:$0xf]  ;;  %v12821_v22 = vor.u32 %v13289_v35, %v12818_v47 }
 0x86f   : > { %v12633_v23 = vor.u32 %v13244_v20, %v12632_v1  ;;  %v13303_v1 = vld [vmem:[#allocation19 + $0xe4] sm:$0xf]  ;;  %v12874_v20 = vld [vmem:[#allocation19 + $0xe8] sm:$0xf0] }
 0x870   : > { %v9449_v32 = vadd.f32 %v19157_v9, %v9410_v56  ;;  %v9480_v4 = vmax.f32 %v9448_v37, 0.0  ;;  %10686 = vmatpush.bf16.msrb.mxu2 %v12821_v22 }
 0x871   : > { %v9376_v53 = vpop.f32.mrf.mxu3  ;;  %10152 = vmatpush.bf16.msra.mxu0 %v12633_v23 }
 0x872   : > { %v9377_v19 = vadd.f32 %v9376_v53, %v9327_v28  ;;  %v9481_v57 = vmax.f32 %v9449_v32, 0.0  ;;  %v13260_v28 = vld [vmem:[#allocation17 + $0x84] sm:$0xf0] }
 0x873   : > { %v9281_v2 = vpop.f32.mrf.mxu1  ;;  %v9330_v31 = vpop.f32.mrf.mxu2 }
 0x874   : > { %v9411_v49 = vadd.f32 %v9377_v19, %v8989_v8  ;;  %v9499_v6 = vpack.c.bf16 %v9481_v57, %v9479_v60  ;;  %v9282_v61 = vadd.f32 %v9281_v2, %v9232_v59  ;;  %v19235_v59 = vperm.slane %v9536_v10, 1  ;;  %v13305_v57 = vld [vmem:[#allocation19 + $0xf4] sm:$0xf]  ;;  %v12882_v2 = vld [vmem:[#allocation19 + $0xf8] sm:$0xf0] }
 0x875   : > { %v9234_v21 = vpop.f32.mrf.mxu0 }
 0x876   : > { %v9450_v44 = vadd.f32 %v19162_v14, %v9411_v49  ;;  %9740 = vmatmul.bf16.gmra.mxu0 %v9499_v6  ;;  %9838 = vmatmul.bf16.gmra.mxu2 %v9499_v6  ;;  %v9412_v3 = vadd.f32 %v9282_v61, %v19142_v30  ;;  %v12885_v49 = vor.u32 %v13305_v57, %v12882_v2 }
 0x878   : > { %v9482_v55 = vmax.f32 %v9450_v44, 0.0  ;;  %v9451_v51 = vadd.f32 %v19157_v9, %v9412_v3  ;;  %10735 = vmatpush.bf16.msra.mxu3 %v12885_v49  ;;  %v13306_v3 = vld [vmem:[#allocation19 + $0xf4] sm:$0xf0] }
 0x879   : > { %v9379_v52 = vpop.f32.mrf.mxu3 }
 0x87a   : > { %v9500_v41 = vpack.c.bf16 %v9482_v55, %v9480_v4  ;;  %v9380_v17 = vadd.f32 %v9379_v52, %v9330_v31  ;;  %v9483_v18 = vmax.f32 %v9451_v51, 0.0  ;;  %v12816_v31 = vld [vmem:[#allocation19 + $0x70] sm:$0xf]  ;;  %v13290_v4 = vld [vmem:[#allocation19 + $0x74] sm:$0xf0] }
 0x87b   : > { %v9283_v0 = vpop.f32.mrf.mxu1  ;;  %v9332_v5 = vpop.f32.mrf.mxu2  ;;  %v12817_v55 = vor.u32 %v13290_v4, %v12816_v31  ;;  %v12880_v52 = vld [vmem:[#allocation19 + $0xf0] sm:$0xf]  ;;  %v12866_v31 = vld [vmem:[#allocation19 + $0xd8] sm:$0xf0] }
 0x87c   : > { %v9284_v40 = vadd.f32 %v9283_v0, %v9234_v21  ;;  %9789 = vmatmul.bf16.gmra.mxu1 %v9500_v41  ;;  %9887 = vmatmul.bf16.gmra.mxu3 %v9500_v41  ;;  %v9413_v30 = vadd.f32 %v9380_v17, %v19148_v12 }
 0x87d   : > { %10588 = vmatpush.bf16.msrb.mxu0 %v12817_v55 }
 0x87e   : > { %v9414_v62 = vadd.f32 %v9284_v40, %v8945_v11  ;;  %v9452_v50 = vadd.f32 %v19162_v14, %v9413_v30  ;;  %v12881_v11 = vor.u32 %v13306_v3, %v12880_v52  ;;  %v12810_v30 = vld [vmem:[#allocation19 + $0x68] sm:$0xf0] }
 0x880   : > { %v9453_v63 = vadd.f32 %v19157_v9, %v9414_v62  ;;  %v12696_v9 = vld [vmem:[#allocation17 + $0x80] sm:$0xf]  ;;  %v9484_v26 = vmax.f32 %v9452_v50, 0.0  ;;  %v12877_v50 = vor.u32 %v13303_v1, %v12874_v20 }
 0x881   : > { %v9381_v25 = vpop.f32.mrf.mxu3  ;;  %v12697_v46 = vor.u32 %v13260_v28, %v12696_v9  ;;  %v12808_v9 = vld [vmem:[#allocation19 + $0x60] sm:$0xf]  ;;  %v13288_v28 = vld [vmem:[#allocation19 + $0x64] sm:$0xf0] }
 0x882   : > { %v9382_v29 = vadd.f32 %v9381_v25, %v9332_v5  ;;  %v9485_v34 = vmax.f32 %v9453_v63, 0.0  ;;  %v12813_v5 = vor.u32 %v13287_v27, %v12810_v30  ;;  %10736 = vmatpush.bf16.msra.mxu3 %v12877_v50 }
 0x883   : > { %10201 = vmatpush.bf16.msra.mxu1 %v12697_v46  ;;  %v12809_v46 = vor.u32 %v13288_v28, %v12808_v9  ;;  %v12858_v9 = vld [vmem:[#allocation19 + $0xc8] sm:$0xf0] }
 0x884   : > { %v9415_v54 = vadd.f32 %v9382_v29, %v8994_v43  ;;  %v9501_v42 = vpack.c.bf16 %v9485_v34, %v9483_v18  ;;  %10687 = vmatpush.bf16.msrb.mxu2 %v12813_v5 }
 0x885   : > { %10589 = vmatpush.bf16.msrb.mxu0 %v12809_v46 }
 0x886   : > { %v9454_v12 = vadd.f32 %v19162_v14, %v9415_v54  ;;  %9745 = vmatmul.bf16.gmra.mxu0 %v9501_v42  ;;  %9843 = vmatmul.bf16.gmra.mxu2 %v9501_v42 }
 0x887   : > { %10637 = vmatpush.bf16.msrb.mxu1 %v12881_v11 }
 0x888   : > { %v9486_v33 = vmax.f32 %v9454_v12, 0.0 }
 0x88a   : > { %v9502_v15 = vpack.c.bf16 %v9486_v33, %v9484_v26  ;;  %v12872_v26 = vld [vmem:[#allocation19 + $0xe0] sm:$0xf]  ;;  %v13304_v33 = vld [vmem:[#allocation19 + $0xe4] sm:$0xf0] }
 0x88c   : > { %9794 = vmatmul.bf16.gmra.mxu1 %v9502_v15  ;;  %9892 = vmatmul.bf16.gmra.mxu3 %v9502_v15 }
 0x893   : > { %v9711_v16 = vpop.f32.mrf.mxu0 }
 0x894   : > { %v9712_v14 = vadd.f32 %v9711_v16, %v19232_v58 }
 0x899   : > { %v9760_v48 = vpop.f32.mrf.mxu1  ;;  %v9809_v56 = vpop.f32.mrf.mxu2 }
 0x89a   : > { %v9761_v32 = vadd.f32 %v9760_v48, %v9712_v14  ;;  %v9810_v44 = vadd.f32 %v9809_v56, %v19235_v59  ;;  %v12873_v48 = vor.u32 %v13304_v33, %v12872_v26 }
 0x89b   : > { %v9713_v24 = vpop.f32.mrf.mxu0 }
 0x89c   : > { %v9714_v53 = vadd.f32 %v9713_v24, %v19232_v58  ;;  %v9898_v6 = vmax.f32 %v9761_v32, 0.0  ;;  %10638 = vmatpush.bf16.msrb.mxu1 %v12873_v48 }
 0x89f   : > { %v9858_v38 = vpop.f32.mrf.mxu3 }
 0x8a0   : > { %v9859_v41 = vadd.f32 %v9858_v38, %v9810_v44 }
 0x8a1   : > { %v9762_v8 = vpop.f32.mrf.mxu1  ;;  %v9811_v60 = vpop.f32.mrf.mxu2 }
 0x8a2   : > { %v9763_v19 = vadd.f32 %v9762_v8, %v9714_v53  ;;  %v9812_v0 = vadd.f32 %v9811_v60, %v19235_v59  ;;  %v9899_v7 = vmax.f32 %v9859_v41, 0.0  ;;  %v13285_v8 = vld [vmem:[#allocation19 + $0x54] sm:$0xf]  ;;  %v12802_v60 = vld [vmem:[#allocation19 + $0x58] sm:$0xf0] }
 0x8a3   : > { %v9716_v37 = vpop.f32.mrf.mxu0  ;;  %v12805_v57 = vor.u32 %v13285_v8, %v12802_v60 }
 0x8a4   : > { %v9900_v61 = vmax.f32 %v9763_v19, 0.0  ;;  %v9717_v62 = vadd.f32 %v9716_v37, %v19232_v58 }
 0x8a5   : > { %10688 = vmatpush.bf16.msrb.mxu2 %v12805_v57 }
 0x8a6   : > { %v9930_v21 = vpack.c.bf16 %v9900_v61, %v9898_v6  ;;  %v13301_v61 = vld [vmem:[#allocation19 + $0xd4] sm:$0xf] }
 0x8a7   : > { %v9860_v17 = vpop.f32.mrf.mxu3  ;;  %v12869_v55 = vor.u32 %v13301_v61, %v12866_v31 }
 0x8a8   : > { %v9861_v40 = vadd.f32 %v9860_v17, %v9812_v0  ;;  %10153 = vmatmul.bf16.vlgmr.msra.gmra.mxu0 %v9930_v21  ;;  %10251 = vmatmul.bf16.vlgmr.msra.gmra.mxu2 %v9930_v21  ;;  %v12800_v21 = vld [vmem:[#allocation19 + $0x50] sm:$0xf]  ;;  %v13286_v0 = vld [vmem:[#allocation19 + $0x54] sm:$0xf0] }
 0x8a9   : > { %v9765_v13 = vpop.f32.mrf.mxu1  ;;  %v9814_v39 = vpop.f32.mrf.mxu2  ;;  %10737 = vmatpush.bf16.msra.mxu3 %v12869_v55  ;;  %v12801_v11 = vor.u32 %v13286_v0, %v12800_v21  ;;  %v12864_v17 = vld [vmem:[#allocation19 + $0xd0] sm:$0xf]  ;;  %v12850_v21 = vld [vmem:[#allocation19 + $0xb8] sm:$0xf0] }
 0x8aa   : > { %v9901_v45 = vmax.f32 %v9861_v40, 0.0  ;;  %v9766_v25 = vadd.f32 %v9765_v13, %v9717_v62  ;;  %v9815_v42 = vadd.f32 %v9814_v39, %v19235_v59  ;;  %v13302_v40 = vld [vmem:[#allocation19 + $0xd4] sm:$0xf0] }
 0x8ab   : > { %v9718_v36 = vpop.f32.mrf.mxu0  ;;  %10590 = vmatpush.bf16.msrb.mxu0 %v12801_v11 }
 0x8ac   : > { %v9931_v51 = vpack.c.bf16 %v9901_v45, %v9899_v7  ;;  %v9719_v43 = vadd.f32 %v9718_v36, %v19232_v58  ;;  %v9902_v54 = vmax.f32 %v9766_v25, 0.0  ;;  %v12865_v45 = vor.u32 %v13302_v40, %v12864_v17 }
 0x8ae   : > { %10202 = vmatmul.bf16.vlgmr.msra.gmra.mxu1 %v9931_v51  ;;  %10300 = vmatmul.bf16.vlgmr.msrb.gmra.mxu3 %v9931_v51 }
 0x8af   : > { %v9863_v63 = vpop.f32.mrf.mxu3  ;;  %10639 = vmatpush.bf16.msrb.mxu1 %v12865_v45 }
 0x8b0   : > { %v9864_v15 = vadd.f32 %v9863_v63, %v9815_v42 }
 0x8b1   : > { %v9767_v18 = vpop.f32.mrf.mxu1  ;;  %v9816_v29 = vpop.f32.mrf.mxu2 }
 0x8b2   : > { %v9768_v34 = vadd.f32 %v9767_v18, %v9719_v43  ;;  %v9817_v16 = vadd.f32 %v9816_v29, %v19235_v59  ;;  %v9903_v47 = vmax.f32 %v9864_v15, 0.0  ;;  %v13283_v18 = vld [vmem:[#allocation19 + $0x44] sm:$0xf]  ;;  %v12794_v29 = vld [vmem:[#allocation19 + $0x48] sm:$0xf0] }
 0x8b3   : > { %v9721_v23 = vpop.f32.mrf.mxu0  ;;  %v12797_v1 = vor.u32 %v13283_v18, %v12794_v29 }
 0x8b4   : > { %v9904_v12 = vmax.f32 %v9768_v34, 0.0  ;;  %v9722_v53 = vadd.f32 %v9721_v23, %v19232_v58 }
 0x8b5   : > { %10689 = vmatpush.bf16.msrb.mxu2 %v12797_v1 }
 0x8b6   : > { %v9932_v10 = vpack.c.bf16 %v9904_v12, %v9902_v54  ;;  %v13299_v12 = vld [vmem:[#allocation19 + $0xc4] sm:$0xf] }
 0x8b7   : > { %v9865_v56 = vpop.f32.mrf.mxu3  ;;  %v12861_v46 = vor.u32 %v13299_v12, %v12858_v9 }
 0x8b8   : > { %v9866_v24 = vadd.f32 %v9865_v56, %v9817_v16  ;;  %10158 = vmatmul.bf16.gmra.mxu0 %v9932_v10  ;;  %10256 = vmatmul.bf16.gmra.mxu2 %v9932_v10  ;;  %v12792_v16 = vld [vmem:[#allocation19 + $0x40] sm:$0xf]  ;;  %v13284_v10 = vld [vmem:[#allocation19 + $0x44] sm:$0xf0] }
 0x8b9   : > { %v9770_v14 = vpop.f32.mrf.mxu1  ;;  %v9819_v35 = vpop.f32.mrf.mxu2  ;;  %10738 = vmatpush.bf16.msra.mxu3 %v12861_v46  ;;  %v12793_v48 = vor.u32 %v13284_v10, %v12792_v16  ;;  %v12856_v56 = vld [vmem:[#allocation19 + $0xc0] sm:$0xf]  ;;  %v12842_v16 = vld [vmem:[#allocation19 + $0xa8] sm:$0xf0] }
 0x8ba   : > { %v9905_v38 = vmax.f32 %v9866_v24, 0.0  ;;  %v9771_v2 = vadd.f32 %v9770_v14, %v9722_v53  ;;  %v9820_v3 = vadd.f32 %v9819_v35, %v19235_v59  ;;  %v13300_v24 = vld [vmem:[#allocation19 + $0xc4] sm:$0xf0] }
 0x8bb   : > { %v9723_v22 = vpop.f32.mrf.mxu0  ;;  %10591 = vmatpush.bf16.msrb.mxu0 %v12793_v48 }
 0x8bc   : > { %v9933_v32 = vpack.c.bf16 %v9905_v38, %v9903_v47  ;;  %v9724_v37 = vadd.f32 %v9723_v22, %v19232_v58  ;;  %v9906_v52 = vmax.f32 %v9771_v2, 0.0  ;;  %v12857_v38 = vor.u32 %v13300_v24, %v12856_v56 }
 0x8be   : > { %10207 = vmatmul.bf16.gmra.mxu1 %v9933_v32  ;;  %10305 = vmatmul.bf16.gmra.mxu3 %v9933_v32 }
 0x8bf   : > { %v9868_v19 = vpop.f32.mrf.mxu3  ;;  %10640 = vmatpush.bf16.msrb.mxu1 %v12857_v38 }
 0x8c0   : > { %v9869_v13 = vadd.f32 %v9868_v19, %v9820_v3 }
 0x8c1   : > { %v9772_v49 = vpop.f32.mrf.mxu1  ;;  %v9821_v6 = vpop.f32.mrf.mxu2 }
 0x8c2   : > { %v9773_v44 = vadd.f32 %v9772_v49, %v9724_v37  ;;  %v9822_v39 = vadd.f32 %v9821_v6, %v19235_v59  ;;  %v9907_v30 = vmax.f32 %v9869_v13, 0.0  ;;  %v13281_v49 = vld [vmem:[#allocation19 + $0x34] sm:$0xf]  ;;  %v12786_v6 = vld [vmem:[#allocation19 + $0x38] sm:$0xf0] }
 0x8c3   : > { %v9726_v4 = vpop.f32.mrf.mxu0  ;;  %v12789_v61 = vor.u32 %v13281_v49, %v12786_v6 }
 0x8c4   : > { %v9908_v41 = vmax.f32 %v9773_v44, 0.0  ;;  %v9727_v43 = vadd.f32 %v9726_v4, %v19232_v58 }
 0x8c5   : > { %10690 = vmatpush.bf16.msrb.mxu2 %v12789_v61 }
 0x8c6   : > { %v9934_v7 = vpack.c.bf16 %v9908_v41, %v9906_v52  ;;  %v13297_v41 = vld [vmem:[#allocation19 + $0xb4] sm:$0xf] }
 0x8c7   : > { %v9870_v36 = vpop.f32.mrf.mxu3  ;;  %v12853_v11 = vor.u32 %v13297_v41, %v12850_v21 }
 0x8c8   : > { %v9871_v51 = vadd.f32 %v9870_v36, %v9822_v39  ;;  %10163 = vmatmul.bf16.gmra.mxu0 %v9934_v7  ;;  %10261 = vmatmul.bf16.gmra.mxu2 %v9934_v7  ;;  %v12784_v39 = vld [vmem:[#allocation19 + $0x30] sm:$0xf]  ;;  %v13282_v7 = vld [vmem:[#allocation19 + $0x34] sm:$0xf0] }
 0x8c9   : > { %v9775_v62 = vpop.f32.mrf.mxu1  ;;  %v9824_v27 = vpop.f32.mrf.mxu2  ;;  %10739 = vmatpush.bf16.msra.mxu3 %v12853_v11  ;;  %v12785_v45 = vor.u32 %v13282_v7, %v12784_v39  ;;  %v12848_v36 = vld [vmem:[#allocation19 + $0xb0] sm:$0xf] }
 0x8ca   : > { %v9909_v63 = vmax.f32 %v9871_v51, 0.0  ;;  %v9776_v20 = vadd.f32 %v9775_v62, %v9727_v43  ;;  %v9825_v33 = vadd.f32 %v9824_v27, %v19235_v59  ;;  %v13298_v51 = vld [vmem:[#allocation19 + $0xb4] sm:$0xf0]  ;;  %v12768_v11 = vld [vmem:[#allocation19 + $0x10] sm:$0xf] }
 0x8cb   : > { %v9728_v5 = vpop.f32.mrf.mxu0  ;;  %10592 = vmatpush.bf16.msrb.mxu0 %v12785_v45  ;;  %v12832_v45 = vld [vmem:[#allocation19 + $0x90] sm:$0xf] }
 0x8cc   : > { %v9935_v25 = vpack.c.bf16 %v9909_v63, %v9907_v30  ;;  %v9729_v23 = vadd.f32 %v9728_v5, %v19232_v58  ;;  %v9910_v26 = vmax.f32 %v9776_v20, 0.0  ;;  %v12849_v63 = vor.u32 %v13298_v51, %v12848_v36  ;;  %v13294_v36 = vld [vmem:[#allocation19 + $0x94] sm:$0xf0] }
 0x8ce   : > { %10212 = vmatmul.bf16.gmra.mxu1 %v9935_v25  ;;  %10310 = vmatmul.bf16.gmra.mxu3 %v9935_v25 }
 0x8cf   : > { %v9873_v34 = vpop.f32.mrf.mxu3  ;;  %10641 = vmatpush.bf16.msrb.mxu1 %v12849_v63 }
 0x8d0   : > { %v9874_v14 = vadd.f32 %v9873_v34, %v9825_v33 }
 0x8d1   : > { %v9777_v50 = vpop.f32.mrf.mxu1  ;;  %v9826_v54 = vpop.f32.mrf.mxu2 }
 0x8d2   : > { %v9778_v42 = vadd.f32 %v9777_v50, %v9729_v23  ;;  %v9827_v35 = vadd.f32 %v9826_v54, %v19235_v59  ;;  %v9911_v60 = vmax.f32 %v9874_v14, 0.0  ;;  %v13279_v50 = vld [vmem:[#allocation19 + $0x24] sm:$0xf]  ;;  %v12778_v54 = vld [vmem:[#allocation19 + $0x28] sm:$0xf0] }
 0x8d3   : > { %v9731_v28 = vpop.f32.mrf.mxu0  ;;  %v12781_v12 = vor.u32 %v13279_v50, %v12778_v54 }
 0x8d4   : > { %v9912_v15 = vmax.f32 %v9778_v42, 0.0  ;;  %v9732_v37 = vadd.f32 %v9731_v28, %v19232_v58 }
 0x8d5   : > { %10691 = vmatpush.bf16.msrb.mxu2 %v12781_v12 }
 0x8d6   : > { %v9936_v47 = vpack.c.bf16 %v9912_v15, %v9910_v26  ;;  %v13295_v15 = vld [vmem:[#allocation19 + $0xa4] sm:$0xf] }
 0x8d7   : > { %v9875_v22 = vpop.f32.mrf.mxu3  ;;  %v12845_v48 = vor.u32 %v13295_v15, %v12842_v16  ;;  %v13291_v16 = vld [vmem:[#allocation19 + $0x84] sm:$0xf] }
 0x8d8   : > { %v9876_v32 = vadd.f32 %v9875_v22, %v9827_v35  ;;  %10168 = vmatmul.bf16.gmra.mxu0 %v9936_v47  ;;  %10266 = vmatmul.bf16.gmra.mxu2 %v9936_v47  ;;  %v12776_v35 = vld [vmem:[#allocation19 + $0x20] sm:$0xf]  ;;  %v13280_v47 = vld [vmem:[#allocation19 + $0x24] sm:$0xf0] }
 0x8d9   : > { %v9780_v53 = vpop.f32.mrf.mxu1  ;;  %v9829_v8 = vpop.f32.mrf.mxu2  ;;  %10740 = vmatpush.bf16.msra.mxu3 %v12845_v48  ;;  %v12777_v38 = vor.u32 %v13280_v47, %v12776_v35  ;;  %v12840_v22 = vld [vmem:[#allocation19 + $0xa0] sm:$0xf] }
 0x8da   : > { %v9913_v19 = vmax.f32 %v9876_v32, 0.0  ;;  %v9781_v31 = vadd.f32 %v9780_v53, %v9732_v37  ;;  %v9830_v40 = vadd.f32 %v9829_v8, %v19235_v59  ;;  %v13296_v32 = vld [vmem:[#allocation19 + $0xa4] sm:$0xf0] }
 0x8db   : > { %v9733_v57 = vpop.f32.mrf.mxu0  ;;  %10593 = vmatpush.bf16.msrb.mxu0 %v12777_v38 }
 0x8dc   : > { %v9937_v2 = vpack.c.bf16 %v9913_v19, %v9911_v60  ;;  %v9734_v4 = vadd.f32 %v9733_v57, %v19232_v58  ;;  %v9914_v17 = vmax.f32 %v9781_v31, 0.0  ;;  %v12841_v19 = vor.u32 %v13296_v32, %v12840_v22 }
 0x8de   : > { %10217 = vmatmul.bf16.gmra.mxu1 %v9937_v2  ;;  %10315 = vmatmul.bf16.gmra.mxu3 %v9937_v2 }
 0x8df   : > { %v9878_v44 = vpop.f32.mrf.mxu3  ;;  %10642 = vmatpush.bf16.msrb.mxu1 %v12841_v19 }
 0x8e0   : > { %v9879_v62 = vadd.f32 %v9878_v44, %v9830_v40 }
 0x8e1   : > { %v9782_v55 = vpop.f32.mrf.mxu1  ;;  %v9831_v52 = vpop.f32.mrf.mxu2 }
 0x8e2   : > { %v9783_v3 = vadd.f32 %v9782_v55, %v9734_v4  ;;  %v9832_v27 = vadd.f32 %v9831_v52, %v19235_v59  ;;  %v9915_v29 = vmax.f32 %v9879_v62, 0.0  ;;  %v13277_v55 = vld [vmem:[#allocation19 + $0x14] sm:$0xf]  ;;  %v12770_v52 = vld [vmem:[#allocation19 + $0x18] sm:$0xf0] }
 0x8e3   : > { %v9736_v0 = vpop.f32.mrf.mxu0  ;;  %v12773_v21 = vor.u32 %v13277_v55, %v12770_v52  ;;  %v9979_v52 = vld [vmem:[#allocation23 + $0x7] ss:$8 sm:$0x3] }
 0x8e4   : > { %v9916_v13 = vmax.f32 %v9783_v3, 0.0  ;;  %v9737_v23 = vadd.f32 %v9736_v0, %v19232_v58  ;;  %v13293_v3 = vld [vmem:[#allocation19 + $0x94] sm:$0xf]  ;;  %v12834_v0 = vld [vmem:[#allocation19 + $0x98] sm:$0xf0] }
 0x8e5   : > { %v12837_v39 = vor.u32 %v13293_v3, %v12834_v0  ;;  %10692 = vmatpush.bf16.msrb.mxu2 %v12773_v21  ;;  %v13314_v0 = vld [vmem:[#allocation20 + $0x38] sm:$0xff] }
 0x8e6   : > { %v9938_v30 = vpack.c.bf16 %v9916_v13, %v9914_v17  ;;  %v13278_v17 = vld [vmem:[#allocation19 + $0x14] sm:$0xf0] }
 0x8e7   : > { %v9880_v5 = vpop.f32.mrf.mxu3  ;;  %v12769_v7 = vor.u32 %v13278_v17, %v12768_v11  ;;  %10741 = vmatpush.bf16.msra.mxu3 %v12837_v39  ;;  %v13322_v17 = vld [vmem:[#allocation20 + $0x78] sm:$0xff]  ;;  %v19271_v39 = vperm.slane %v9979_v52, 1 }
 0x8e8   : > { %v9881_v25 = vadd.f32 %v9880_v5, %v9832_v27  ;;  %10173 = vmatmul.bf16.gmra.mxu0 %v9938_v30  ;;  %10271 = vmatmul.bf16.gmra.mxu2 %v9938_v30  ;;  %v12833_v27 = vor.u32 %v13294_v36, %v12832_v45 }
 0x8e9   : > { %v9785_v43 = vpop.f32.mrf.mxu1  ;;  %v9834_v18 = vpop.f32.mrf.mxu2  ;;  %10594 = vmatpush.bf16.msrb.mxu0 %v12769_v7 }
 0x8ea   : > { %v9917_v34 = vmax.f32 %v9881_v25, 0.0  ;;  %v9786_v9 = vadd.f32 %v9785_v43, %v9737_v23  ;;  %v9835_v24 = vadd.f32 %v9834_v18, %v19235_v59  ;;  %10643 = vmatpush.bf16.msrb.mxu1 %v12833_v27 }
 0x8eb   : > { %v9738_v1 = vpop.f32.mrf.mxu0 }
 0x8ec   : > { %v9939_v20 = vpack.c.bf16 %v9917_v34, %v9915_v29  ;;  %v9739_v28 = vadd.f32 %v9738_v1, %v19232_v58  ;;  %v9918_v56 = vmax.f32 %v9786_v9, 0.0 }
 0x8ee   : > { %10222 = vmatmul.bf16.gmra.mxu1 %v9939_v20  ;;  %10320 = vmatmul.bf16.gmra.mxu3 %v9939_v20 }
 0x8ef   : > { %v9883_v42 = vpop.f32.mrf.mxu3 }
 0x8f0   : > { %v9884_v53 = vadd.f32 %v9883_v42, %v9835_v24 }
 0x8f1   : > { %v9787_v46 = vpop.f32.mrf.mxu1  ;;  %v9836_v26 = vpop.f32.mrf.mxu2 }
 0x8f2   : > { %v9788_v33 = vadd.f32 %v9787_v46, %v9739_v28  ;;  %v9837_v8 = vadd.f32 %v9836_v26, %v19235_v59  ;;  %v9919_v6 = vmax.f32 %v9884_v53, 0.0  ;;  %v13275_v46 = vld [vmem:[#allocation19 + $0x4] sm:$0xf]  ;;  %v12762_v26 = vld [vmem:[#allocation19 + $0x8] sm:$0xf0] }
 0x8f3   : > { %v9741_v10 = vpop.f32.mrf.mxu0  ;;  %v12765_v15 = vor.u32 %v13275_v46, %v12762_v26  ;;  %v12760_v53 = vld [vmem:[#allocation19] sm:$0xf] }
 0x8f4   : > { %v9920_v14 = vmax.f32 %v9788_v33, 0.0  ;;  %v9742_v4 = vadd.f32 %v9741_v10, %v19232_v58  ;;  %v12826_v10 = vld [vmem:[#allocation19 + $0x88] sm:$0xf0] }
 0x8f5   : > { %v12829_v24 = vor.u32 %v13291_v16, %v12826_v10  ;;  %10693 = vmatpush.bf16.msrb.mxu2 %v12765_v15 }
 0x8f6   : > { %v9940_v60 = vpack.c.bf16 %v9920_v14, %v9918_v56 }
 0x8f7   : > { %v9885_v57 = vpop.f32.mrf.mxu3  ;;  %10742 = vmatpush.bf16.msra.mxu3 %v12829_v24 }
 0x8f8   : > { %v9886_v2 = vadd.f32 %v9885_v57, %v9837_v8  ;;  %10178 = vmatmul.bf16.gmra.mxu0 %v9940_v60  ;;  %10276 = vmatmul.bf16.gmra.mxu2 %v9940_v60  ;;  %v13276_v8 = vld [vmem:[#allocation19 + $0x4] sm:$0xf0] }
 0x8f9   : > { %v9790_v37 = vpop.f32.mrf.mxu1  ;;  %v9839_v49 = vpop.f32.mrf.mxu2  ;;  %v12761_v60 = vor.u32 %v13276_v8, %v12760_v53 }
 0x8fa   : > { %v9921_v44 = vmax.f32 %v9886_v2, 0.0  ;;  %v9791_v40 = vadd.f32 %v9790_v37, %v9742_v4  ;;  %v9840_v25 = vadd.f32 %v9839_v49, %v19235_v59  ;;  %v12824_v49 = vld [vmem:[#allocation19 + $0x80] sm:$0xf] }
 0x8fb   : > { %v9743_v61 = vpop.f32.mrf.mxu0  ;;  %10595 = vmatpush.bf16.msrb.mxu0 %v12761_v60 }
 0x8fc   : > { %v9941_v31 = vpack.c.bf16 %v9921_v44, %v9919_v6  ;;  %v9744_v13 = vadd.f32 %v9743_v61, %v19232_v58  ;;  %v9922_v5 = vmax.f32 %v9791_v40, 0.0  ;;  %v13292_v6 = vld [vmem:[#allocation19 + $0x84] sm:$0xf0] }
 0x8fd   : > { %v12825_v44 = vor.u32 %v13292_v6, %v12824_v49 }
 0x8fe   : > { %10227 = vmatmul.bf16.gmra.mxu1 %v9941_v31  ;;  %10325 = vmatmul.bf16.gmra.mxu3 %v9941_v31 }
 0x8ff   : > { %v9888_v41 = vpop.f32.mrf.mxu3  ;;  %10644 = vmatpush.bf16.msrb.mxu1 %v12825_v44  ;;  %10929 = vmatpush.bf16.msra.mxu0 %v13314_v0 }
 0x900   : > { %v9889_v18 = vadd.f32 %v9888_v41, %v9840_v25 }
 0x901   : > { %v9792_v51 = vpop.f32.mrf.mxu1  ;;  %v9841_v62 = vpop.f32.mrf.mxu2 }
 0x902   : > { %v9793_v30 = vadd.f32 %v9792_v51, %v9744_v13  ;;  %v9842_v29 = vadd.f32 %v9841_v62, %v19235_v59  ;;  %v9923_v54 = vmax.f32 %v9889_v18, 0.0 }
 0x903   : > { %v9746_v63 = vpop.f32.mrf.mxu0  ;;  %10978 = vmatpush.bf16.msra.mxu1 %v13322_v17 }
 0x904   : > { %v9924_v43 = vmax.f32 %v9793_v30, 0.0  ;;  %v9747_v28 = vadd.f32 %v9746_v63, %v19232_v58 }
 0x906   : > { %v9942_v34 = vpack.c.bf16 %v9924_v43, %v9922_v5 }
 0x907   : > { %v9890_v1 = vpop.f32.mrf.mxu3 }
 0x908   : > { %v9891_v20 = vadd.f32 %v9890_v1, %v9842_v29  ;;  %10183 = vmatmul.bf16.gmra.mxu0 %v9942_v34  ;;  %10281 = vmatmul.bf16.gmra.mxu2 %v9942_v34 }
 0x909   : > { %v9795_v23 = vpop.f32.mrf.mxu1  ;;  %v9844_v50 = vpop.f32.mrf.mxu2 }
 0x90a   : > { %v9925_v42 = vmax.f32 %v9891_v20, 0.0  ;;  %v9796_v48 = vadd.f32 %v9795_v23, %v9747_v28  ;;  %v9845_v22 = vadd.f32 %v9844_v50, %v19235_v59 }
 0x90b   : > { %v9748_v9 = vpop.f32.mrf.mxu0 }
 0x90c   : > { %v9943_v12 = vpack.c.bf16 %v9925_v42, %v9923_v54  ;;  %v9749_v56 = vadd.f32 %v9748_v9, %v19232_v58  ;;  %v9926_v38 = vmax.f32 %v9796_v48, 0.0  ;;  %v13313_v42 = vld [vmem:[#allocation20 + $0x30] sm:$0xff] }
 0x90d   : > { %v13321_v9 = vld [vmem:[#allocation20 + $0x70] sm:$0xff]  ;;  %10930 = vmatpush.bf16.msra.mxu0 %v13313_v42 }
 0x90e   : > { %10232 = vmatmul.bf16.gmra.mxu1 %v9943_v12  ;;  %10330 = vmatmul.bf16.gmra.mxu3 %v9943_v12 }
 0x90f   : > { %v9893_v33 = vpop.f32.mrf.mxu3  ;;  %10979 = vmatpush.bf16.msra.mxu1 %v13321_v9 }
 0x910   : > { %v9894_v19 = vadd.f32 %v9893_v33, %v9845_v22 }
 0x911   : > { %v9797_v14 = vpop.f32.mrf.mxu1  ;;  %v9846_v47 = vpop.f32.mrf.mxu2 }
 0x912   : > { %v9798_v35 = vadd.f32 %v9797_v14, %v9749_v56  ;;  %v9847_v57 = vadd.f32 %v9846_v47, %v19235_v59  ;;  %v9927_v61 = vmax.f32 %v9894_v19, 0.0  ;;  %v19268_v59 = vperm.slane %v9979_v52, 0 }
 0x914   : > { %v9928_v32 = vmax.f32 %v9798_v35, 0.0 }
 0x916   : > { %v9944_v2 = vpack.c.bf16 %v9928_v32, %v9926_v38 }
 0x917   : > { %v9895_v37 = vpop.f32.mrf.mxu3 }
 0x918   : > { %v9896_v58 = vadd.f32 %v9895_v37, %v9847_v57  ;;  %10188 = vmatmul.bf16.gmra.mxu0 %v9944_v2  ;;  %10286 = vmatmul.bf16.gmra.mxu2 %v9944_v2  ;;  %v13312_v2 = vld [vmem:[#allocation20 + $0x28] sm:$0xff] }
 0x919   : > { %10931 = vmatpush.bf16.msra.mxu0 %v13312_v2 }
 0x91a   : > { %v9929_v31 = vmax.f32 %v9896_v58, 0.0  ;;  %v13320_v58 = vld [vmem:[#allocation20 + $0x68] sm:$0xff] }
 0x91b   : > { %10980 = vmatpush.bf16.msra.mxu1 %v13320_v58 }
 0x91c   : > { %v9945_v4 = vpack.c.bf16 %v9929_v31, %v9927_v61 }
 0x91e   : > { %10237 = vmatmul.bf16.gmra.mxu1 %v9945_v4  ;;  %10335 = vmatmul.bf16.gmra.mxu3 %v9945_v4 }
 0x925   : > { %v10154_v55 = vpop.f32.mrf.mxu0 }
 0x926   : > { %v10155_v11 = vadd.f32 %v10154_v55, %v19268_v59 }
 0x92b   : > { %v10203_v3 = vpop.f32.mrf.mxu1  ;;  %v10252_v41 = vpop.f32.mrf.mxu2 }
 0x92c   : > { %v10204_v13 = vadd.f32 %v10203_v3, %v10155_v11  ;;  %v10253_v30 = vadd.f32 %v10252_v41, %v19271_v39 }
 0x92d   : > { %v10156_v21 = vpop.f32.mrf.mxu0 }
 0x92e   : > { %v10157_v7 = vadd.f32 %v10156_v21, %v19268_v59  ;;  %v10341_v27 = vmax.f32 %v10204_v13, 0.0 }
 0x931   : > { %v10301_v40 = vpop.f32.mrf.mxu3 }
 0x932   : > { %v10302_v5 = vadd.f32 %v10301_v40, %v10253_v30 }
 0x933   : > { %v10205_v45 = vpop.f32.mrf.mxu1  ;;  %v10254_v36 = vpop.f32.mrf.mxu2 }
 0x934   : > { %v10206_v51 = vadd.f32 %v10205_v45, %v10157_v7  ;;  %v10255_v43 = vadd.f32 %v10254_v36, %v19271_v39  ;;  %v10342_v20 = vmax.f32 %v10302_v5, 0.0 }
 0x935   : > { %v10159_v62 = vpop.f32.mrf.mxu0 }
 0x936   : > { %v10343_v63 = vmax.f32 %v10206_v51, 0.0  ;;  %v10160_v12 = vadd.f32 %v10159_v62, %v19268_v59 }
 0x938   : > { %v10373_v25 = vpack.c.bf16 %v10343_v63, %v10341_v27  ;;  %v13311_v27 = vld [vmem:[#allocation20 + $0x20] sm:$0xff] }
 0x939   : > { %v10303_v18 = vpop.f32.mrf.mxu3  ;;  %v13319_v63 = vld [vmem:[#allocation20 + $0x60] sm:$0xff]  ;;  %10932 = vmatpush.bf16.msra.mxu0 %v13311_v27 }
 0x93a   : > { %v10304_v29 = vadd.f32 %v10303_v18, %v10255_v43  ;;  %10596 = vmatmul.bf16.vlgmr.msrb.gmra.mxu0 %v10373_v25  ;;  %10694 = vmatmul.bf16.vlgmr.msrb.gmra.mxu2 %v10373_v25 }
 0x93b   : > { %v10208_v34 = vpop.f32.mrf.mxu1  ;;  %v10257_v1 = vpop.f32.mrf.mxu2  ;;  %10981 = vmatpush.bf16.msra.mxu1 %v13319_v63 }
 0x93c   : > { %v10344_v23 = vmax.f32 %v10304_v29, 0.0  ;;  %v10209_v46 = vadd.f32 %v10208_v34, %v10160_v12  ;;  %v10258_v56 = vadd.f32 %v10257_v1, %v19271_v39 }
 0x93d   : > { %v10161_v50 = vpop.f32.mrf.mxu0 }
 0x93e   : > { %v10374_v54 = vpack.c.bf16 %v10344_v23, %v10342_v20  ;;  %v10162_v26 = vadd.f32 %v10161_v50, %v19268_v59  ;;  %v10345_v48 = vmax.f32 %v10209_v46, 0.0 }
 0x940   : > { %10645 = vmatmul.bf16.vlgmr.msrb.gmra.mxu1 %v10374_v54  ;;  %10743 = vmatmul.bf16.vlgmr.msra.gmra.mxu3 %v10374_v54 }
 0x941   : > { %v10306_v28 = vpop.f32.mrf.mxu3 }
 0x942   : > { %v10307_v14 = vadd.f32 %v10306_v28, %v10258_v56 }
 0x943   : > { %v10210_v33 = vpop.f32.mrf.mxu1  ;;  %v10259_v15 = vpop.f32.mrf.mxu2 }
 0x944   : > { %v10211_v16 = vadd.f32 %v10210_v33, %v10162_v26  ;;  %v10260_v35 = vadd.f32 %v10259_v15, %v19271_v39  ;;  %v10346_v8 = vmax.f32 %v10307_v14, 0.0 }
 0x945   : > { %v10164_v10 = vpop.f32.mrf.mxu0 }
 0x946   : > { %v10347_v24 = vmax.f32 %v10211_v16, 0.0  ;;  %v10165_v37 = vadd.f32 %v10164_v10, %v19268_v59 }
 0x948   : > { %v10375_v47 = vpack.c.bf16 %v10347_v24, %v10345_v48  ;;  %v13310_v48 = vld [vmem:[#allocation20 + $0x18] sm:$0xff] }
 0x949   : > { %v10308_v38 = vpop.f32.mrf.mxu3  ;;  %v13318_v24 = vld [vmem:[#allocation20 + $0x58] sm:$0xff]  ;;  %10933 = vmatpush.bf16.msra.mxu0 %v13310_v48 }
 0x94a   : > { %v10309_v22 = vadd.f32 %v10308_v38, %v10260_v35  ;;  %10601 = vmatmul.bf16.gmra.mxu0 %v10375_v47  ;;  %10699 = vmatmul.bf16.gmra.mxu2 %v10375_v47 }
 0x94b   : > { %v10213_v32 = vpop.f32.mrf.mxu1  ;;  %v10262_v53 = vpop.f32.mrf.mxu2  ;;  %10982 = vmatpush.bf16.msra.mxu1 %v13318_v24 }
 0x94c   : > { %v10348_v60 = vmax.f32 %v10309_v22, 0.0  ;;  %v10214_v6 = vadd.f32 %v10213_v32, %v10165_v37  ;;  %v10263_v3 = vadd.f32 %v10262_v53, %v19271_v39 }
 0x94d   : > { %v10166_v19 = vpop.f32.mrf.mxu0 }
 0x94e   : > { %v10376_v57 = vpack.c.bf16 %v10348_v60, %v10346_v8  ;;  %v10167_v44 = vadd.f32 %v10166_v19, %v19268_v59  ;;  %v10349_v52 = vmax.f32 %v10214_v6, 0.0 }
 0x950   : > { %10650 = vmatmul.bf16.gmra.mxu1 %v10376_v57  ;;  %10748 = vmatmul.bf16.gmra.mxu3 %v10376_v57 }
 0x951   : > { %v10311_v49 = vpop.f32.mrf.mxu3 }
 0x952   : > { %v10312_v21 = vadd.f32 %v10311_v49, %v10263_v3 }
 0x953   : > { %v10215_v61 = vpop.f32.mrf.mxu1  ;;  %v10264_v31 = vpop.f32.mrf.mxu2 }
 0x954   : > { %v10216_v4 = vadd.f32 %v10215_v61, %v10167_v44  ;;  %v10265_v0 = vadd.f32 %v10264_v31, %v19271_v39  ;;  %v10350_v45 = vmax.f32 %v10312_v21, 0.0 }
 0x955   : > { %v10169_v55 = vpop.f32.mrf.mxu0 }
 0x956   : > { %v10351_v41 = vmax.f32 %v10216_v4, 0.0  ;;  %v10170_v30 = vadd.f32 %v10169_v55, %v19268_v59 }
 0x958   : > { %v10377_v11 = vpack.c.bf16 %v10351_v41, %v10349_v52  ;;  %v13309_v52 = vld [vmem:[#allocation20 + $0x10] sm:$0xff] }
 0x959   : > { %v10313_v17 = vpop.f32.mrf.mxu3  ;;  %v13317_v41 = vld [vmem:[#allocation20 + $0x50] sm:$0xff]  ;;  %10934 = vmatpush.bf16.msra.mxu0 %v13309_v52 }
 0x95a   : > { %v10314_v40 = vadd.f32 %v10313_v17, %v10265_v0  ;;  %10606 = vmatmul.bf16.gmra.mxu0 %v10377_v11  ;;  %10704 = vmatmul.bf16.gmra.mxu2 %v10377_v11 }
 0x95b   : > { %v10218_v13 = vpop.f32.mrf.mxu1  ;;  %v10267_v7 = vpop.f32.mrf.mxu2  ;;  %10983 = vmatpush.bf16.msra.mxu1 %v13317_v41 }
 0x95c   : > { %v10352_v36 = vmax.f32 %v10314_v40, 0.0  ;;  %v10219_v25 = vadd.f32 %v10218_v13, %v10170_v30  ;;  %v10268_v23 = vadd.f32 %v10267_v7, %v19271_v39 }
 0x95d   : > { %v10171_v51 = vpop.f32.mrf.mxu0 }
 0x95e   : > { %v10378_v62 = vpack.c.bf16 %v10352_v36, %v10350_v45  ;;  %v10172_v43 = vadd.f32 %v10171_v51, %v19268_v59  ;;  %v10353_v20 = vmax.f32 %v10219_v25, 0.0 }
 0x960   : > { %10655 = vmatmul.bf16.gmra.mxu1 %v10378_v62  ;;  %10753 = vmatmul.bf16.gmra.mxu3 %v10378_v62 }
 0x961   : > { %v10316_v5 = vpop.f32.mrf.mxu3 }
 0x962   : > { %v10317_v54 = vadd.f32 %v10316_v5, %v10268_v23 }
 0x963   : > { %v10220_v18 = vpop.f32.mrf.mxu1  ;;  %v10269_v29 = vpop.f32.mrf.mxu2 }
 0x964   : > { %v10221_v34 = vadd.f32 %v10220_v18, %v10172_v43  ;;  %v10270_v42 = vadd.f32 %v10269_v29, %v19271_v39  ;;  %v10354_v33 = vmax.f32 %v10317_v54, 0.0 }
 0x965   : > { %v10174_v1 = vpop.f32.mrf.mxu0 }
 0x966   : > { %v10355_v50 = vmax.f32 %v10221_v34, 0.0  ;;  %v10175_v56 = vadd.f32 %v10174_v1, %v19268_v59 }
 0x968   : > { %v10379_v12 = vpack.c.bf16 %v10355_v50, %v10353_v20  ;;  %v13308_v20 = vld [vmem:[#allocation20 + $0x8] sm:$0xff] }
 0x969   : > { %v10318_v9 = vpop.f32.mrf.mxu3  ;;  %v13316_v50 = vld [vmem:[#allocation20 + $0x48] sm:$0xff]  ;;  %10935 = vmatpush.bf16.msra.mxu0 %v13308_v20 }
 0x96a   : > { %v10319_v28 = vadd.f32 %v10318_v9, %v10270_v42  ;;  %10611 = vmatmul.bf16.gmra.mxu0 %v10379_v12  ;;  %10709 = vmatmul.bf16.gmra.mxu2 %v10379_v12 }
 0x96b   : > { %v10223_v46 = vpop.f32.mrf.mxu1  ;;  %v10272_v26 = vpop.f32.mrf.mxu2  ;;  %10984 = vmatpush.bf16.msra.mxu1 %v13316_v50 }
 0x96c   : > { %v10356_v15 = vmax.f32 %v10319_v28, 0.0  ;;  %v10224_v35 = vadd.f32 %v10223_v46, %v10175_v56  ;;  %v10273_v60 = vadd.f32 %v10272_v26, %v19271_v39 }
 0x96d   : > { %v10176_v16 = vpop.f32.mrf.mxu0 }
 0x96e   : > { %v10380_v10 = vpack.c.bf16 %v10356_v15, %v10354_v33  ;;  %v10177_v47 = vadd.f32 %v10176_v16, %v19268_v59  ;;  %v10357_v8 = vmax.f32 %v10224_v35, 0.0 }
 0x970   : > { %10660 = vmatmul.bf16.gmra.mxu1 %v10380_v10  ;;  %10758 = vmatmul.bf16.gmra.mxu3 %v10380_v10 }
 0x971   : > { %v10321_v14 = vpop.f32.mrf.mxu3 }
 0x972   : > { %v10322_v57 = vadd.f32 %v10321_v14, %v10273_v60 }
 0x973   : > { %v10225_v38 = vpop.f32.mrf.mxu1  ;;  %v10274_v22 = vpop.f32.mrf.mxu2 }
 0x974   : > { %v10226_v32 = vadd.f32 %v10225_v38, %v10177_v47  ;;  %v10275_v2 = vadd.f32 %v10274_v22, %v19271_v39  ;;  %v10358_v61 = vmax.f32 %v10322_v57, 0.0 }
 0x975   : > { %v10179_v53 = vpop.f32.mrf.mxu0 }
 0x976   : > { %v10359_v19 = vmax.f32 %v10226_v32, 0.0  ;;  %v10180_v3 = vadd.f32 %v10179_v53, %v19268_v59  ;;  %v13307_v53 = vld [vmem:[#allocation20] sm:$0xff] }
 0x977   : > { %10936 = vmatpush.bf16.msra.mxu0 %v13307_v53 }
 0x978   : > { %v10381_v37 = vpack.c.bf16 %v10359_v19, %v10357_v8  ;;  %v13315_v19 = vld [vmem:[#allocation20 + $0x40] sm:$0xff] }
 0x979   : > { %v10323_v58 = vpop.f32.mrf.mxu3  ;;  %10985 = vmatpush.bf16.msra.mxu1 %v13315_v19 }
 0x97a   : > { %v10324_v49 = vadd.f32 %v10323_v58, %v10275_v2  ;;  %10616 = vmatmul.bf16.gmra.mxu0 %v10381_v37  ;;  %10714 = vmatmul.bf16.gmra.mxu2 %v10381_v37 }
 0x97b   : > { %v10228_v6 = vpop.f32.mrf.mxu1  ;;  %v10277_v44 = vpop.f32.mrf.mxu2 }
 0x97c   : > { %v10360_v31 = vmax.f32 %v10324_v49, 0.0  ;;  %v10229_v0 = vadd.f32 %v10228_v6, %v10180_v3  ;;  %v10278_v36 = vadd.f32 %v10277_v44, %v19271_v39 }
 0x97d   : > { %v10181_v4 = vpop.f32.mrf.mxu0 }
 0x97e   : > { %v10382_v55 = vpack.c.bf16 %v10360_v31, %v10358_v61  ;;  %v10182_v11 = vadd.f32 %v10181_v4, %v19268_v59  ;;  %v10361_v45 = vmax.f32 %v10229_v0, 0.0 }
 0x980   : > { %10665 = vmatmul.bf16.gmra.mxu1 %v10382_v55  ;;  %10763 = vmatmul.bf16.gmra.mxu3 %v10382_v55 }
 0x981   : > { %v10326_v21 = vpop.f32.mrf.mxu3 }
 0x982   : > { %v10327_v62 = vadd.f32 %v10326_v21, %v10278_v36 }
 0x983   : > { %v10230_v17 = vpop.f32.mrf.mxu1  ;;  %v10279_v40 = vpop.f32.mrf.mxu2 }
 0x984   : > { %v10231_v13 = vadd.f32 %v10230_v17, %v10182_v11  ;;  %v10280_v27 = vadd.f32 %v10279_v40, %v19271_v39  ;;  %v10362_v18 = vmax.f32 %v10327_v62, 0.0  ;;  %v10422_v17 = vld [vmem:[#allocation23 + $0x10] ss:$8 sm:$0x3] }
 0x985   : > { %v10184_v7 = vpop.f32.mrf.mxu0  ;;  %v19304_v36 = vperm.slane %v10422_v17, 0 }
 0x986   : > { %v10363_v51 = vmax.f32 %v10231_v13, 0.0  ;;  %v10185_v23 = vadd.f32 %v10184_v7, %v19268_v59  ;;  %v13330_v7 = vld [vmem:[#allocation22 + $0x38] sm:$0xff] }
 0x987   : > { %11116 = vmatpush.bf16.msra.mxu2 %v13330_v7 }
 0x988   : > { %v10383_v30 = vpack.c.bf16 %v10363_v51, %v10361_v45 }
 0x989   : > { %v10328_v63 = vpop.f32.mrf.mxu3 }
 0x98a   : > { %v10329_v5 = vadd.f32 %v10328_v63, %v10280_v27  ;;  %10621 = vmatmul.bf16.gmra.mxu0 %v10383_v30  ;;  %10719 = vmatmul.bf16.gmra.mxu2 %v10383_v30 }
 0x98b   : > { %v10233_v25 = vpop.f32.mrf.mxu1  ;;  %v10282_v43 = vpop.f32.mrf.mxu2 }
 0x98c   : > { %v10364_v29 = vmax.f32 %v10329_v5, 0.0  ;;  %v10234_v42 = vadd.f32 %v10233_v25, %v10185_v23  ;;  %v10283_v15 = vadd.f32 %v10282_v43, %v19271_v39  ;;  %v19308_v5 = vperm.slane %v10422_v17, 1 }
 0x98d   : > { %v10186_v34 = vpop.f32.mrf.mxu0 }
 0x98e   : > { %v10384_v1 = vpack.c.bf16 %v10364_v29, %v10362_v18  ;;  %v10187_v12 = vadd.f32 %v10186_v34, %v19268_v59  ;;  %v10365_v33 = vmax.f32 %v10234_v42, 0.0 }
 0x990   : > { %10670 = vmatmul.bf16.gmra.mxu1 %v10384_v1  ;;  %10768 = vmatmul.bf16.gmra.mxu3 %v10384_v1 }
 0x991   : > { %v10331_v54 = vpop.f32.mrf.mxu3 }
 0x992   : > { %v10332_v10 = vadd.f32 %v10331_v54, %v10283_v15 }
 0x993   : > { %v10235_v9 = vpop.f32.mrf.mxu1  ;;  %v10284_v28 = vpop.f32.mrf.mxu2 }
 0x994   : > { %v10236_v46 = vadd.f32 %v10235_v9, %v10187_v12  ;;  %v10285_v48 = vadd.f32 %v10284_v28, %v19271_v39  ;;  %v10366_v38 = vmax.f32 %v10332_v10, 0.0  ;;  %v13329_v12 = vld [vmem:[#allocation22 + $0x30] sm:$0xff] }
 0x995   : > { %v10189_v26 = vpop.f32.mrf.mxu0  ;;  %11117 = vmatpush.bf16.msra.mxu2 %v13329_v12 }
 0x996   : > { %v10367_v16 = vmax.f32 %v10236_v46, 0.0  ;;  %v10190_v60 = vadd.f32 %v10189_v26, %v19268_v59 }
 0x998   : > { %v10385_v56 = vpack.c.bf16 %v10367_v16, %v10365_v33 }
 0x999   : > { %v10333_v24 = vpop.f32.mrf.mxu3 }
 0x99a   : > { %v10334_v14 = vadd.f32 %v10333_v24, %v10285_v48  ;;  %10626 = vmatmul.bf16.gmra.mxu0 %v10385_v56  ;;  %10724 = vmatmul.bf16.gmra.mxu2 %v10385_v56 }
 0x99b   : > { %v10238_v35 = vpop.f32.mrf.mxu1  ;;  %v10287_v47 = vpop.f32.mrf.mxu2 }
 0x99c   : > { %v10368_v22 = vmax.f32 %v10334_v14, 0.0  ;;  %v10239_v2 = vadd.f32 %v10238_v35, %v10190_v60  ;;  %v10288_v61 = vadd.f32 %v10287_v47, %v19271_v39 }
 0x99d   : > { %v10191_v8 = vpop.f32.mrf.mxu0 }
 0x99e   : > { %v10386_v32 = vpack.c.bf16 %v10368_v22, %v10366_v38  ;;  %v10192_v37 = vadd.f32 %v10191_v8, %v19268_v59  ;;  %v10369_v44 = vmax.f32 %v10239_v2, 0.0  ;;  %v13328_v8 = vld [vmem:[#allocation22 + $0x28] sm:$0xff] }
 0x99f   : > { %11118 = vmatpush.bf16.msra.mxu2 %v13328_v8 }
 0x9a0   : > { %10675 = vmatmul.bf16.gmra.mxu1 %v10386_v32  ;;  %10773 = vmatmul.bf16.gmra.mxu3 %v10386_v32 }
 0x9a1   : > { %v10336_v57 = vpop.f32.mrf.mxu3 }
 0x9a2   : > { %v10337_v4 = vadd.f32 %v10336_v57, %v10288_v61 }
 0x9a3   : > { %v10240_v58 = vpop.f32.mrf.mxu1  ;;  %v10289_v6 = vpop.f32.mrf.mxu2 }
 0x9a4   : > { %v10241_v49 = vadd.f32 %v10240_v58, %v10192_v37  ;;  %v10290_v55 = vadd.f32 %v10289_v6, %v19271_v39  ;;  %v10370_v21 = vmax.f32 %v10337_v4, 0.0 }
 0x9a6   : > { %v10371_v31 = vmax.f32 %v10241_v49, 0.0 }
 0x9a8   : > { %v10387_v52 = vpack.c.bf16 %v10371_v31, %v10369_v44 }
 0x9a9   : > { %v10338_v3 = vpop.f32.mrf.mxu3 }
 0x9aa   : > { %v10339_v41 = vadd.f32 %v10338_v3, %v10290_v55  ;;  %10631 = vmatmul.bf16.gmra.mxu0 %v10387_v52  ;;  %10729 = vmatmul.bf16.gmra.mxu2 %v10387_v52 }
 0x9ac   : > { %v10372_v0 = vmax.f32 %v10339_v41, 0.0 }
 0x9ae   : > { %v10388_v11 = vpack.c.bf16 %v10372_v0, %v10370_v21 }
 0x9b0   : > { %10680 = vmatmul.bf16.gmra.mxu1 %v10388_v11  ;;  %10778 = vmatmul.bf16.gmra.mxu3 %v10388_v11  ;;  %v13327_v11 = vld [vmem:[#allocation22 + $0x20] sm:$0xff] }
 0x9b1   : > { %11119 = vmatpush.bf16.msra.mxu2 %v13327_v11 }
 0x9b7   : > { %v10597_v59 = vpop.f32.mrf.mxu0 }
 0x9b8   : > { %v10598_v51 = vadd.f32 %v10597_v59, %v19304_v36 }
 0x9bd   : > { %v10646_v40 = vpop.f32.mrf.mxu1  ;;  %v10695_v13 = vpop.f32.mrf.mxu2 }
 0x9be   : > { %v10647_v63 = vadd.f32 %v10646_v40, %v10598_v51  ;;  %v10696_v29 = vadd.f32 %v10695_v13, %v19308_v5 }
 0x9bf   : > { %v10599_v45 = vpop.f32.mrf.mxu0 }
 0x9c0   : > { %v10600_v62 = vadd.f32 %v10599_v45, %v19304_v36 }
 0x9c3   : > { %v10744_v39 = vpop.f32.mrf.mxu3 }
 0x9c4   : > { %v10745_v20 = vadd.f32 %v10744_v39, %v10696_v29 }
 0x9c5   : > { %v10648_v27 = vpop.f32.mrf.mxu1  ;;  %v10697_v30 = vpop.f32.mrf.mxu2 }
 0x9c6   : > { %v10649_v25 = vadd.f32 %v10648_v27, %v10600_v62  ;;  %v10698_v34 = vadd.f32 %v10697_v30, %v19308_v5 }
 0x9c7   : > { %v10602_v43 = vpop.f32.mrf.mxu0 }
 0x9c8   : > { %v10784_v18 = vpack.c.bf16 %v10649_v25, %v10647_v63  ;;  %v10603_v46 = vadd.f32 %v10602_v43, %v19304_v36 }
 0x9ca   : > { %10937 = vmatmul.bf16.vlgmr.msra.gmra.mxu0 %v10784_v18 }
 0x9cb   : > { %v10746_v1 = vpop.f32.mrf.mxu3 }
 0x9cc   : > { %v10747_v23 = vadd.f32 %v10746_v1, %v10698_v34 }
 0x9cd   : > { %v10651_v50 = vpop.f32.mrf.mxu1  ;;  %v10700_v54 = vpop.f32.mrf.mxu2 }
 0x9ce   : > { %v10785_v42 = vpack.c.bf16 %v10747_v23, %v10745_v20  ;;  %v10652_v16 = vadd.f32 %v10651_v50, %v10603_v46  ;;  %v10701_v24 = vadd.f32 %v10700_v54, %v19308_v5  ;;  %v13326_v20 = vld [vmem:[#allocation22 + $0x18] sm:$0xff] }
 0x9cf   : > { %v10604_v9 = vpop.f32.mrf.mxu0  ;;  %11120 = vmatpush.bf16.msra.mxu2 %v13326_v20 }
 0x9d0   : > { %10986 = vmatmul.bf16.vlgmr.msra.gmra.mxu1 %v10785_v42  ;;  %v10605_v26 = vadd.f32 %v10604_v9, %v19304_v36 }
 0x9d3   : > { %v10749_v28 = vpop.f32.mrf.mxu3 }
 0x9d4   : > { %v10750_v47 = vadd.f32 %v10749_v28, %v10701_v24 }
 0x9d5   : > { %v10653_v33 = vpop.f32.mrf.mxu1  ;;  %v10702_v15 = vpop.f32.mrf.mxu2 }
 0x9d6   : > { %v10654_v10 = vadd.f32 %v10653_v33, %v10605_v26  ;;  %v10703_v14 = vadd.f32 %v10702_v15, %v19308_v5 }
 0x9d7   : > { %v10607_v48 = vpop.f32.mrf.mxu0 }
 0x9d8   : > { %v10786_v56 = vpack.c.bf16 %v10654_v10, %v10652_v16  ;;  %v10608_v57 = vadd.f32 %v10607_v48, %v19304_v36 }
 0x9da   : > { %10942 = vmatmul.bf16.gmra.mxu0 %v10786_v56 }
 0x9db   : > { %v10751_v35 = vpop.f32.mrf.mxu3 }
 0x9dc   : > { %v10752_v38 = vadd.f32 %v10751_v35, %v10703_v14 }
 0x9dd   : > { %v10656_v22 = vpop.f32.mrf.mxu1  ;;  %v10705_v32 = vpop.f32.mrf.mxu2 }
 0x9de   : > { %v10787_v53 = vpack.c.bf16 %v10752_v38, %v10750_v47  ;;  %v10657_v49 = vadd.f32 %v10656_v22, %v10608_v57  ;;  %v10706_v31 = vadd.f32 %v10705_v32, %v19308_v5  ;;  %v13325_v47 = vld [vmem:[#allocation22 + $0x10] sm:$0xff] }
 0x9df   : > { %v10609_v60 = vpop.f32.mrf.mxu0  ;;  %11121 = vmatpush.bf16.msra.mxu2 %v13325_v47 }
 0x9e0   : > { %10991 = vmatmul.bf16.gmra.mxu1 %v10787_v53  ;;  %v10610_v2 = vadd.f32 %v10609_v60, %v19304_v36 }
 0x9e3   : > { %v10754_v19 = vpop.f32.mrf.mxu3 }
 0x9e4   : > { %v10755_v52 = vadd.f32 %v10754_v19, %v10706_v31 }
 0x9e5   : > { %v10658_v37 = vpop.f32.mrf.mxu1  ;;  %v10707_v58 = vpop.f32.mrf.mxu2 }
 0x9e6   : > { %v10659_v6 = vadd.f32 %v10658_v37, %v10610_v2  ;;  %v10708_v4 = vadd.f32 %v10707_v58, %v19308_v5 }
 0x9e7   : > { %v10612_v44 = vpop.f32.mrf.mxu0 }
 0x9e8   : > { %v10788_v61 = vpack.c.bf16 %v10659_v6, %v10657_v49  ;;  %v10613_v40 = vadd.f32 %v10612_v44, %v19304_v36 }
 0x9ea   : > { %10947 = vmatmul.bf16.gmra.mxu0 %v10788_v61 }
 0x9eb   : > { %v10756_v55 = vpop.f32.mrf.mxu3 }
 0x9ec   : > { %v10757_v3 = vadd.f32 %v10756_v55, %v10708_v4 }
 0x9ed   : > { %v10661_v41 = vpop.f32.mrf.mxu1  ;;  %v10710_v21 = vpop.f32.mrf.mxu2 }
 0x9ee   : > { %v10789_v0 = vpack.c.bf16 %v10757_v3, %v10755_v52  ;;  %v10662_v39 = vadd.f32 %v10661_v41, %v10613_v40  ;;  %v10711_v30 = vadd.f32 %v10710_v21, %v19308_v5  ;;  %v13324_v52 = vld [vmem:[#allocation22 + $0x8] sm:$0xff] }
 0x9ef   : > { %v10614_v59 = vpop.f32.mrf.mxu0  ;;  %11122 = vmatpush.bf16.msra.mxu2 %v13324_v52 }
 0x9f0   : > { %10996 = vmatmul.bf16.gmra.mxu1 %v10789_v0  ;;  %v10615_v13 = vadd.f32 %v10614_v59, %v19304_v36 }
 0x9f3   : > { %v10759_v17 = vpop.f32.mrf.mxu3 }
 0x9f4   : > { %v10760_v43 = vadd.f32 %v10759_v17, %v10711_v30 }
 0x9f5   : > { %v10663_v7 = vpop.f32.mrf.mxu1  ;;  %v10712_v45 = vpop.f32.mrf.mxu2 }
 0x9f6   : > { %v10664_v51 = vadd.f32 %v10663_v7, %v10615_v13  ;;  %v10713_v63 = vadd.f32 %v10712_v45, %v19308_v5  ;;  %v13323_v45 = vld [vmem:[#allocation22] sm:$0xff] }
 0x9f7   : > { %v10617_v62 = vpop.f32.mrf.mxu0  ;;  %11123 = vmatpush.bf16.msra.mxu2 %v13323_v45 }
 0x9f8   : > { %v10790_v27 = vpack.c.bf16 %v10664_v51, %v10662_v39  ;;  %v10618_v54 = vadd.f32 %v10617_v62, %v19304_v36 }
 0x9fa   : > { %10952 = vmatmul.bf16.gmra.mxu0 %v10790_v27 }
 0x9fb   : > { %v10761_v25 = vpop.f32.mrf.mxu3 }
 0x9fc   : > { %v10762_v18 = vadd.f32 %v10761_v25, %v10713_v63 }
 0x9fd   : > { %v10666_v29 = vpop.f32.mrf.mxu1  ;;  %v10715_v34 = vpop.f32.mrf.mxu2 }
 0x9fe   : > { %v10791_v1 = vpack.c.bf16 %v10762_v18, %v10760_v43  ;;  %v10667_v28 = vadd.f32 %v10666_v29, %v10618_v54  ;;  %v10716_v15 = vadd.f32 %v10715_v34, %v19308_v5 }
 0x9ff   : > { %v10619_v23 = vpop.f32.mrf.mxu0 }
 0xa00   : > { %11001 = vmatmul.bf16.gmra.mxu1 %v10791_v1  ;;  %v10620_v42 = vadd.f32 %v10619_v23, %v19304_v36 }
 0xa03   : > { %v10764_v50 = vpop.f32.mrf.mxu3 }
 0xa04   : > { %v10765_v48 = vadd.f32 %v10764_v50, %v10716_v15 }
 0xa05   : > { %v10668_v12 = vpop.f32.mrf.mxu1  ;;  %v10717_v9 = vpop.f32.mrf.mxu2 }
 0xa06   : > { %v10669_v46 = vadd.f32 %v10668_v12, %v10620_v42  ;;  %v10718_v16 = vadd.f32 %v10717_v9, %v19308_v5 }
 0xa07   : > { %v10622_v26 = vpop.f32.mrf.mxu0 }
 0xa08   : > { %v10792_v33 = vpack.c.bf16 %v10669_v46, %v10667_v28  ;;  %v10623_v32 = vadd.f32 %v10622_v26, %v19304_v36 }
 0xa0a   : > { %10957 = vmatmul.bf16.gmra.mxu0 %v10792_v33 }
 0xa0b   : > { %v10766_v10 = vpop.f32.mrf.mxu3 }
 0xa0c   : > { %v10767_v56 = vadd.f32 %v10766_v10, %v10718_v16  ;;  %v19340_v10 = vld [vmem:[#allocation23 + $0x11] ss:$0 sm:$0xff] }
 0xa0d   : > { %v10671_v24 = vpop.f32.mrf.mxu1  ;;  %v10720_v14 = vpop.f32.mrf.mxu2 }
 0xa0e   : > { %v10793_v35 = vpack.c.bf16 %v10767_v56, %v10765_v48  ;;  %v10672_v19 = vadd.f32 %v10671_v24, %v10623_v32  ;;  %v10721_v58 = vadd.f32 %v10720_v14, %v19308_v5 }
 0xa0f   : > { %v10624_v38 = vpop.f32.mrf.mxu0 }
 0xa10   : > { %11006 = vmatmul.bf16.gmra.mxu1 %v10793_v35  ;;  %v10625_v53 = vadd.f32 %v10624_v38, %v19304_v36 }
 0xa13   : > { %v10769_v22 = vpop.f32.mrf.mxu3 }
 0xa14   : > { %v10770_v44 = vadd.f32 %v10769_v22, %v10721_v58 }
 0xa15   : > { %v10673_v8 = vpop.f32.mrf.mxu1  ;;  %v10722_v60 = vpop.f32.mrf.mxu2 }
 0xa16   : > { %v10674_v57 = vadd.f32 %v10673_v8, %v10625_v53  ;;  %v10723_v49 = vadd.f32 %v10722_v60, %v19308_v5 }
 0xa17   : > { %v10627_v2 = vpop.f32.mrf.mxu0 }
 0xa18   : > { %v10794_v37 = vpack.c.bf16 %v10674_v57, %v10672_v19  ;;  %v10628_v21 = vadd.f32 %v10627_v2, %v19304_v36 }
 0xa1a   : > { %10962 = vmatmul.bf16.gmra.mxu0 %v10794_v37 }
 0xa1b   : > { %v10771_v6 = vpop.f32.mrf.mxu3 }
 0xa1c   : > { %v10772_v61 = vadd.f32 %v10771_v6, %v10723_v49 }
 0xa1d   : > { %v10676_v31 = vpop.f32.mrf.mxu1  ;;  %v10725_v4 = vpop.f32.mrf.mxu2 }
 0xa1e   : > { %v10795_v55 = vpack.c.bf16 %v10772_v61, %v10770_v44  ;;  %v10677_v17 = vadd.f32 %v10676_v31, %v10628_v21  ;;  %v10726_v39 = vadd.f32 %v10725_v4, %v19308_v5 }
 0xa1f   : > { %v10629_v3 = vpop.f32.mrf.mxu0 }
 0xa20   : > { %11011 = vmatmul.bf16.gmra.mxu1 %v10795_v55  ;;  %v10630_v0 = vadd.f32 %v10629_v3, %v19304_v36 }
 0xa23   : > { %v10774_v41 = vpop.f32.mrf.mxu3 }
 0xa24   : > { %v10775_v27 = vadd.f32 %v10774_v41, %v10726_v39 }
 0xa25   : > { %v10678_v11 = vpop.f32.mrf.mxu1  ;;  %v10727_v59 = vpop.f32.mrf.mxu2 }
 0xa26   : > { %v10679_v40 = vadd.f32 %v10678_v11, %v10630_v0  ;;  %v10728_v51 = vadd.f32 %v10727_v59, %v19308_v5 }
 0xa27   : > { %v10632_v13 = vpop.f32.mrf.mxu0 }
 0xa28   : > { %v10796_v7 = vpack.c.bf16 %v10679_v40, %v10677_v17  ;;  %v10633_v34 = vadd.f32 %v10632_v13, %v19304_v36 }
 0xa2a   : > { %10967 = vmatmul.bf16.gmra.mxu0 %v10796_v7 }
 0xa2b   : > { %v10776_v62 = vpop.f32.mrf.mxu3 }
 0xa2c   : > { %v10777_v30 = vadd.f32 %v10776_v62, %v10728_v51 }
 0xa2d   : > { %v10681_v63 = vpop.f32.mrf.mxu1  ;;  %v10730_v25 = vpop.f32.mrf.mxu2 }
 0xa2e   : > { %v10797_v43 = vpack.c.bf16 %v10777_v30, %v10775_v27  ;;  %v10682_v23 = vadd.f32 %v10681_v63, %v10633_v34  ;;  %v10731_v12 = vadd.f32 %v10730_v25, %v19308_v5 }
 0xa2f   : > { %v10634_v18 = vpop.f32.mrf.mxu0 }
 0xa30   : > { %11016 = vmatmul.bf16.gmra.mxu1 %v10797_v43  ;;  %v10635_v1 = vadd.f32 %v10634_v18, %v19304_v36 }
 0xa33   : > { %v10779_v29 = vpop.f32.mrf.mxu3 }
 0xa34   : > { %v10780_v46 = vadd.f32 %v10779_v29, %v10731_v12 }
 0xa35   : > { %v10683_v20 = vpop.f32.mrf.mxu1  ;;  %v10732_v54 = vpop.f32.mrf.mxu2 }
 0xa36   : > { %v10684_v50 = vadd.f32 %v10683_v20, %v10635_v1  ;;  %v10733_v9 = vadd.f32 %v10732_v54, %v19308_v5 }
 0xa38   : > { %v10798_v42 = vpack.c.bf16 %v10684_v50, %v10682_v23 }
 0xa3a   : > { %10972 = vmatmul.bf16.gmra.mxu0 %v10798_v42 }
 0xa3b   : > { %v10781_v28 = vpop.f32.mrf.mxu3 }
 0xa3c   : > { %v10782_v26 = vadd.f32 %v10781_v28, %v10733_v9 }
 0xa3e   : > { %v10799_v33 = vpack.c.bf16 %v10782_v26, %v10780_v46 }
 0xa40   : > { %11021 = vmatmul.bf16.gmra.mxu1 %v10799_v33 }
 0xa47   : > { %v10938_v15 = vpop.f32.mrf.mxu0 }
 0xa48   : > { %v10939_v48 = vadd.f32 %v10938_v15, %v19340_v10 }
 0xa4d   : > { %v10987_v16 = vpop.f32.mrf.mxu1 }
 0xa4e   : > { %v10988_v56 = vadd.f32 %v10987_v16, %v10939_v48 }
 0xa4f   : > { %v10940_v36 = vpop.f32.mrf.mxu0 }
 0xa50   : > { %v10941_v24 = vadd.f32 %v10940_v36, %v19340_v10  ;;  %v11027_v5 = vmax.f32 %v10988_v56, 0.0 }
 0xa55   : > { %v10989_v14 = vpop.f32.mrf.mxu1 }
 0xa56   : > { %v10990_v35 = vadd.f32 %v10989_v14, %v10941_v24 }
 0xa57   : > { %v10943_v47 = vpop.f32.mrf.mxu0 }
 0xa58   : > { %v11028_v38 = vmax.f32 %v10990_v35, 0.0  ;;  %v10944_v8 = vadd.f32 %v10943_v47, %v19340_v10 }
 0xa5a   : > { %v11043_v22 = vpack.c.bf16 %v11028_v38, %v11027_v5 }
 0xa5c   : > { %11124 = vmatmul.bf16.vlgmr.msra.gmra.mxu2 %v11043_v22 }
 0xa5d   : > { %v10992_v32 = vpop.f32.mrf.mxu1 }
 0xa5e   : > { %v10993_v60 = vadd.f32 %v10992_v32, %v10944_v8 }
 0xa5f   : > { %v10945_v53 = vpop.f32.mrf.mxu0 }
 0xa60   : > { %v10946_v19 = vadd.f32 %v10945_v53, %v19340_v10  ;;  %v11029_v58 = vmax.f32 %v10993_v60, 0.0 }
 0xa65   : > { %v10994_v57 = vpop.f32.mrf.mxu1 }
 0xa66   : > { %v10995_v2 = vadd.f32 %v10994_v57, %v10946_v19 }
 0xa67   : > { %v10948_v37 = vpop.f32.mrf.mxu0 }
 0xa68   : > { %v11030_v49 = vmax.f32 %v10995_v2, 0.0  ;;  %v10949_v31 = vadd.f32 %v10948_v37, %v19340_v10 }
 0xa6a   : > { %v11044_v6 = vpack.c.bf16 %v11030_v49, %v11029_v58 }
 0xa6c   : > { %11129 = vmatmul.bf16.gmra.mxu2 %v11044_v6 }
 0xa6d   : > { %v10997_v44 = vpop.f32.mrf.mxu1 }
 0xa6e   : > { %v10998_v4 = vadd.f32 %v10997_v44, %v10949_v31  ;;  %v19358_v31 = vld [vmem:[#allocation23 + $0x12] ss:$0 sm:$0xff] }
 0xa6f   : > { %v10950_v61 = vpop.f32.mrf.mxu0 }
 0xa70   : > { %v10951_v55 = vadd.f32 %v10950_v61, %v19340_v10  ;;  %v11031_v21 = vmax.f32 %v10998_v4, 0.0 }
 0xa75   : > { %v10999_v52 = vpop.f32.mrf.mxu1 }
 0xa76   : > { %v11000_v3 = vadd.f32 %v10999_v52, %v10951_v55 }
 0xa77   : > { %v10953_v41 = vpop.f32.mrf.mxu0 }
 0xa78   : > { %v11032_v0 = vmax.f32 %v11000_v3, 0.0  ;;  %v10954_v40 = vadd.f32 %v10953_v41, %v19340_v10 }
 0xa7a   : > { %v11045_v11 = vpack.c.bf16 %v11032_v0, %v11031_v21 }
 0xa7c   : > { %11134 = vmatmul.bf16.gmra.mxu2 %v11045_v11 }
 0xa7d   : > { %v11002_v59 = vpop.f32.mrf.mxu1 }
 0xa7e   : > { %v11003_v13 = vadd.f32 %v11002_v59, %v10954_v40 }
 0xa7f   : > { %v10955_v17 = vpop.f32.mrf.mxu0 }
 0xa80   : > { %v10956_v7 = vadd.f32 %v10955_v17, %v19340_v10  ;;  %v11033_v62 = vmax.f32 %v11003_v13, 0.0 }
 0xa85   : > { %v11004_v45 = vpop.f32.mrf.mxu1 }
 0xa86   : > { %v11005_v39 = vadd.f32 %v11004_v45, %v10956_v7 }
 0xa87   : > { %v10958_v51 = vpop.f32.mrf.mxu0 }
 0xa88   : > { %v11034_v27 = vmax.f32 %v11005_v39, 0.0  ;;  %v10959_v43 = vadd.f32 %v10958_v51, %v19340_v10 }
 0xa8a   : > { %v11046_v30 = vpack.c.bf16 %v11034_v27, %v11033_v62 }
 0xa8c   : > { %11139 = vmatmul.bf16.gmra.mxu2 %v11046_v30 }
 0xa8d   : > { %v11007_v63 = vpop.f32.mrf.mxu1 }
 0xa8e   : > { %v11008_v18 = vadd.f32 %v11007_v63, %v10959_v43 }
 0xa8f   : > { %v10960_v25 = vpop.f32.mrf.mxu0 }
 0xa90   : > { %v10961_v29 = vadd.f32 %v10960_v25, %v19340_v10  ;;  %v11035_v23 = vmax.f32 %v11008_v18, 0.0 }
 0xa95   : > { %v11009_v34 = vpop.f32.mrf.mxu1 }
 0xa96   : > { %v11010_v1 = vadd.f32 %v11009_v34, %v10961_v29 }
 0xa97   : > { %v10963_v20 = vpop.f32.mrf.mxu0 }
 0xa98   : > { %v11036_v50 = vmax.f32 %v11010_v1, 0.0  ;;  %v10964_v9 = vadd.f32 %v10963_v20, %v19340_v10 }
 0xa9a   : > { %v11047_v54 = vpack.c.bf16 %v11036_v50, %v11035_v23 }
 0xa9c   : > { %11144 = vmatmul.bf16.gmra.mxu2 %v11047_v54 }
 0xa9d   : > { %v11012_v42 = vpop.f32.mrf.mxu1 }
 0xa9e   : > { %v11013_v28 = vadd.f32 %v11012_v42, %v10964_v9 }
 0xa9f   : > { %v10965_v12 = vpop.f32.mrf.mxu0 }
 0xaa0   : > { %v10966_v46 = vadd.f32 %v10965_v12, %v19340_v10  ;;  %v11037_v16 = vmax.f32 %v11013_v28, 0.0 }
 0xaa5   : > { %v11014_v26 = vpop.f32.mrf.mxu1 }
 0xaa6   : > { %v11015_v33 = vadd.f32 %v11014_v26, %v10966_v46 }
 0xaa7   : > { %v10968_v15 = vpop.f32.mrf.mxu0 }
 0xaa8   : > { %v11038_v36 = vmax.f32 %v11015_v33, 0.0  ;;  %v10969_v14 = vadd.f32 %v10968_v15, %v19340_v10 }
 0xaaa   : > { %v11048_v48 = vpack.c.bf16 %v11038_v36, %v11037_v16 }
 0xaac   : > { %11149 = vmatmul.bf16.gmra.mxu2 %v11048_v48 }
 0xaad   : > { %v11017_v56 = vpop.f32.mrf.mxu1 }
 0xaae   : > { %v11018_v35 = vadd.f32 %v11017_v56, %v10969_v14 }
 0xaaf   : > { %v10970_v24 = vpop.f32.mrf.mxu0 }
 0xab0   : > { %v10971_v47 = vadd.f32 %v10970_v24, %v19340_v10  ;;  %v11039_v32 = vmax.f32 %v11018_v35, 0.0 }
 0xab5   : > { %v11019_v5 = vpop.f32.mrf.mxu1 }
 0xab6   : > { %v11020_v38 = vadd.f32 %v11019_v5, %v10971_v47 }
 0xab7   : > { %v10973_v22 = vpop.f32.mrf.mxu0 }
 0xab8   : > { %v11040_v53 = vmax.f32 %v11020_v38, 0.0  ;;  %v10974_v57 = vadd.f32 %v10973_v22, %v19340_v10 }
 0xaba   : > { %v11049_v8 = vpack.c.bf16 %v11040_v53, %v11039_v32 }
 0xabc   : > { %11154 = vmatmul.bf16.gmra.mxu2 %v11049_v8 }
 0xabd   : > { %v11022_v60 = vpop.f32.mrf.mxu1 }
 0xabe   : > { %v11023_v2 = vadd.f32 %v11022_v60, %v10974_v57 }
 0xabf   : > { %v10975_v19 = vpop.f32.mrf.mxu0 }
 0xac0   : > { %v10976_v37 = vadd.f32 %v10975_v19, %v19340_v10  ;;  %v11041_v6 = vmax.f32 %v11023_v2, 0.0 }
 0xac5   : > { %v11024_v58 = vpop.f32.mrf.mxu1 }
 0xac6   : > { %v11025_v49 = vadd.f32 %v11024_v58, %v10976_v37 }
 0xac8   : > { %v11042_v44 = vmax.f32 %v11025_v49, 0.0 }
 0xaca   : > { %v11050_v61 = vpack.c.bf16 %v11042_v44, %v11041_v6 }
 0xacc   : > { %11159 = vmatmul.bf16.gmra.mxu2 %v11050_v61 }
 0xadf   : > { %v11125_v4 = vpop.f32.mrf.mxu2 }
 0xae0   : > { %v11126_v55 = vadd.f32 %v11125_v4, %v19358_v31 }
 0xae2   : > { %v11165_v52 = vsub.f32 0.0, %v11126_v55 }
 0xae4   : > { %v11181_v3 = vmul.f32 1.442695, %v11165_v52 }
 0xae6   : > { %13645 = vpow2.f32 %v11181_v3 }
 0xae7   : > { %v11127_v41 = vpop.f32.mrf.mxu2 }
 0xae8   : > { %v11128_v21 = vadd.f32 %v11127_v41, %v19358_v31 }
 0xaea   : > { %v11166_v10 = vsub.f32 0.0, %v11128_v21 }
 0xaec   : > { %v13646_v0 = vpop.eup %13645  ;;  %v11183_v11 = vmul.f32 1.442695, %v11166_v10 }
 0xaed   : > { %v11213_v59 = vadd.f32 1.0, %v13646_v0 }
 0xaee   : > { %13647 = vpow2.f32 %v11183_v11 }
 0xaef   : > { %13649 = vrcp.f32 %v11213_v59  ;;  %v11130_v17 = vpop.f32.mrf.mxu2 }
 0xaf0   : > { %v11131_v40 = vadd.f32 %v11130_v17, %v19358_v31 }
 0xaf2   : > { %v11167_v13 = vsub.f32 0.0, %v11131_v40 }
 0xaf4   : > { %v13648_v7 = vpop.eup %13647  ;;  %v11185_v45 = vmul.f32 1.442695, %v11167_v13 }
 0xaf5   : > { %v13650_v39 = vpop.eup %13649  ;;  %v11214_v51 = vadd.f32 1.0, %v13648_v7 }
 0xaf6   : > { %11245 = vst [vmem:[%s19366_s23] sm:$0xff] %v13650_v39  ;;  %13651 = vpow2.f32 %v11185_v45 }
 0xaf7   : > { %13653 = vrcp.f32 %v11214_v51  ;;  %v11132_v62 = vpop.f32.mrf.mxu2 }
 0xaf8   : > { %v11133_v27 = vadd.f32 %v11132_v62, %v19358_v31 }
 0xafa   : > { %v11168_v30 = vsub.f32 0.0, %v11133_v27 }
 0xafc   : > { %v13652_v63 = vpop.eup %13651  ;;  %v11187_v25 = vmul.f32 1.442695, %v11168_v30 }
 0xafd   : > { %v13654_v43 = vpop.eup %13653  ;;  %v11215_v18 = vadd.f32 1.0, %v13652_v63 }
 0xafe   : > { %11246 = vst [vmem:[%s19366_s23 + $0x8] sm:$0xff] %v13654_v43  ;;  %13655 = vpow2.f32 %v11187_v25 }
 0xaff   : > { %13657 = vrcp.f32 %v11215_v18  ;;  %v11135_v29 = vpop.f32.mrf.mxu2 }
 0xb00   : > { %v11136_v34 = vadd.f32 %v11135_v29, %v19358_v31 }
 0xb02   : > { %v11169_v1 = vsub.f32 0.0, %v11136_v34 }
 0xb04   : > { %v13656_v20 = vpop.eup %13655  ;;  %v11189_v23 = vmul.f32 1.442695, %v11169_v1 }
 0xb05   : > { %v13658_v50 = vpop.eup %13657  ;;  %v11216_v54 = vadd.f32 1.0, %v13656_v20 }
 0xb06   : > { %11247 = vst [vmem:[%s19366_s23 + $0x10] sm:$0xff] %v13658_v50  ;;  %13659 = vpow2.f32 %v11189_v23 }
 0xb07   : > { %13661 = vrcp.f32 %v11216_v54  ;;  %v11137_v42 = vpop.f32.mrf.mxu2 }
 0xb08   : > { %v11138_v12 = vadd.f32 %v11137_v42, %v19358_v31 }
 0xb0a   : > { %v11170_v9 = vsub.f32 0.0, %v11138_v12 }
 0xb0c   : > { %v13660_v28 = vpop.eup %13659  ;;  %v11191_v46 = vmul.f32 1.442695, %v11170_v9 }
 0xb0d   : > { %v13662_v26 = vpop.eup %13661  ;;  %v11217_v33 = vadd.f32 1.0, %v13660_v28 }
 0xb0e   : > { %11248 = vst [vmem:[%s19366_s23 + $0x18] sm:$0xff] %v13662_v26  ;;  %13663 = vpow2.f32 %v11191_v46 }
 0xb0f   : > { %13665 = vrcp.f32 %v11217_v33  ;;  %v11140_v15 = vpop.f32.mrf.mxu2 }
 0xb10   : > { %v11141_v16 = vadd.f32 %v11140_v15, %v19358_v31 }
 0xb12   : > { %v11171_v36 = vsub.f32 0.0, %v11141_v16 }
 0xb14   : > { %v13664_v48 = vpop.eup %13663  ;;  %v11193_v56 = vmul.f32 1.442695, %v11171_v36 }
 0xb15   : > { %v13666_v24 = vpop.eup %13665  ;;  %v11218_v14 = vadd.f32 1.0, %v13664_v48 }
 0xb16   : > { %11249 = vst [vmem:[%s19366_s23 + $0x20] sm:$0xff] %v13666_v24  ;;  %13667 = vpow2.f32 %v11193_v56 }
 0xb17   : > { %13669 = vrcp.f32 %v11218_v14  ;;  %v11142_v35 = vpop.f32.mrf.mxu2 }
 0xb18   : > { %v11143_v47 = vadd.f32 %v11142_v35, %v19358_v31 }
 0xb1a   : > { %v11172_v5 = vsub.f32 0.0, %v11143_v47 }
 0xb1c   : > { %v13668_v38 = vpop.eup %13667  ;;  %v11195_v22 = vmul.f32 1.442695, %v11172_v5 }
 0xb1d   : > { %v13670_v32 = vpop.eup %13669  ;;  %v11219_v53 = vadd.f32 1.0, %v13668_v38 }
 0xb1e   : > { %11250 = vst [vmem:[%s19366_s23 + $0x28] sm:$0xff] %v13670_v32  ;;  %13671 = vpow2.f32 %v11195_v22 }
 0xb1f   : > { %13673 = vrcp.f32 %v11219_v53  ;;  %v11145_v8 = vpop.f32.mrf.mxu2 }
 0xb20   : > { %v11146_v60 = vadd.f32 %v11145_v8, %v19358_v31 }
 0xb22   : > { %v11173_v19 = vsub.f32 0.0, %v11146_v60 }
 0xb24   : > { %v13672_v57 = vpop.eup %13671  ;;  %v11197_v2 = vmul.f32 1.442695, %v11173_v19 }
 0xb25   : > { %v13674_v37 = vpop.eup %13673  ;;  %v11220_v58 = vadd.f32 1.0, %v13672_v57 }
 0xb26   : > { %11251 = vst [vmem:[%s19366_s23 + $0x30] sm:$0xff] %v13674_v37  ;;  %13675 = vpow2.f32 %v11197_v2 }
 0xb27   : > { %13677 = vrcp.f32 %v11220_v58  ;;  %v11147_v49 = vpop.f32.mrf.mxu2 }
 0xb28   : > { %v11148_v6 = vadd.f32 %v11147_v49, %v19358_v31 }
 0xb2a   : > { %v11174_v44 = vsub.f32 0.0, %v11148_v6 }
 0xb2c   : > { %v13676_v61 = vpop.eup %13675  ;;  %v11199_v4 = vmul.f32 1.442695, %v11174_v44 }
 0xb2d   : > { %v13678_v55 = vpop.eup %13677  ;;  %v11221_v52 = vadd.f32 1.0, %v13676_v61 }
 0xb2e   : > { %11252 = vst [vmem:[%s19366_s23 + $0x38] sm:$0xff] %v13678_v55  ;;  %13679 = vpow2.f32 %v11199_v4 }
 0xb2f   : > { %13681 = vrcp.f32 %v11221_v52  ;;  %v11150_v3 = vpop.f32.mrf.mxu2 }
 0xb30   : > { %v11151_v41 = vadd.f32 %v11150_v3, %v19358_v31 }
 0xb32   : > { %v11175_v21 = vsub.f32 0.0, %v11151_v41 }
 0xb34   : > { %v13680_v10 = vpop.eup %13679  ;;  %v11201_v0 = vmul.f32 1.442695, %v11175_v21 }
 0xb35   : > { %v13682_v11 = vpop.eup %13681  ;;  %v11222_v59 = vadd.f32 1.0, %v13680_v10 }
 0xb36   : > { %11253 = vst [vmem:[%s19366_s23 + $0x40] sm:$0xff] %v13682_v11  ;;  %13683 = vpow2.f32 %v11201_v0 }
 0xb37   : > { %13685 = vrcp.f32 %v11222_v59  ;;  %v11152_v17 = vpop.f32.mrf.mxu2 }
 0xb38   : > { %v11153_v40 = vadd.f32 %v11152_v17, %v19358_v31 }
 0xb3a   : > { %v11176_v13 = vsub.f32 0.0, %v11153_v40 }
 0xb3c   : > { %v13684_v7 = vpop.eup %13683  ;;  %v11203_v45 = vmul.f32 1.442695, %v11176_v13 }
 0xb3d   : > { %v13686_v39 = vpop.eup %13685  ;;  %v11223_v51 = vadd.f32 1.0, %v13684_v7 }
 0xb3e   : > { %11254 = vst [vmem:[%s19366_s23 + $0x48] sm:$0xff] %v13686_v39  ;;  %13687 = vpow2.f32 %v11203_v45 }
 0xb3f   : > { %13689 = vrcp.f32 %v11223_v51  ;;  %v11155_v62 = vpop.f32.mrf.mxu2 }
 0xb40   : > { %v11156_v27 = vadd.f32 %v11155_v62, %v19358_v31 }
 0xb42   : > { %v11177_v30 = vsub.f32 0.0, %v11156_v27 }
 0xb44   : > { %v13688_v63 = vpop.eup %13687  ;;  %v11205_v25 = vmul.f32 1.442695, %v11177_v30 }
 0xb45   : > { %v13690_v43 = vpop.eup %13689  ;;  %v11224_v18 = vadd.f32 1.0, %v13688_v63 }
 0xb46   : > { %11255 = vst [vmem:[%s19366_s23 + $0x50] sm:$0xff] %v13690_v43  ;;  %13691 = vpow2.f32 %v11205_v25 }
 0xb47   : > { %13693 = vrcp.f32 %v11224_v18  ;;  %v11157_v29 = vpop.f32.mrf.mxu2 }
 0xb48   : > { %v11158_v34 = vadd.f32 %v11157_v29, %v19358_v31 }
 0xb4a   : > { %v11178_v1 = vsub.f32 0.0, %v11158_v34 }
 0xb4c   : > { %v13692_v20 = vpop.eup %13691  ;;  %v11207_v23 = vmul.f32 1.442695, %v11178_v1 }
 0xb4d   : > { %v13694_v50 = vpop.eup %13693  ;;  %v11225_v54 = vadd.f32 1.0, %v13692_v20 }
 0xb4e   : > { %11256 = vst [vmem:[%s19366_s23 + $0x58] sm:$0xff] %v13694_v50  ;;  %13695 = vpow2.f32 %v11207_v23 }
 0xb4f   : > { %13697 = vrcp.f32 %v11225_v54  ;;  %v11160_v42 = vpop.f32.mrf.mxu2 }
 0xb50   : > { %v11161_v12 = vadd.f32 %v11160_v42, %v19358_v31 }
 0xb52   : > { %v11179_v9 = vsub.f32 0.0, %v11161_v12 }
 0xb54   : > { %v13696_v28 = vpop.eup %13695  ;;  %v11209_v46 = vmul.f32 1.442695, %v11179_v9 }
 0xb55   : > { %v13698_v26 = vpop.eup %13697  ;;  %v11226_v33 = vadd.f32 1.0, %v13696_v28 }
 0xb56   : > { %11257 = vst [vmem:[%s19366_s23 + $0x60] sm:$0xff] %v13698_v26  ;;  %13699 = vpow2.f32 %v11209_v46 }
 0xb57   : > { %13701 = vrcp.f32 %v11226_v33  ;;  %v11162_v15 = vpop.f32.mrf.mxu2 }
 0xb58   : > { %v11163_v16 = vadd.f32 %v11162_v15, %v19358_v31 }
 0xb5a   : > { %v11180_v36 = vsub.f32 0.0, %v11163_v16 }
 0xb5c   : > { %v13700_v48 = vpop.eup %13699  ;;  %v11211_v56 = vmul.f32 1.442695, %v11180_v36 }
 0xb5d   : > { %v13702_v24 = vpop.eup %13701  ;;  %v11227_v14 = vadd.f32 1.0, %v13700_v48 }
 0xb5e   : > { %11258 = vst [vmem:[%s19366_s23 + $0x68] sm:$0xff] %v13702_v24  ;;  %13703 = vpow2.f32 %v11211_v56 }
 0xb5f   : > { %13705 = vrcp.f32 %v11227_v14 }
 0xb64   : > { %v13704_v35 = vpop.eup %13703 }
 0xb65   : > { %v13706_v47 = vpop.eup %13705  ;;  %v11228_v5 = vadd.f32 1.0, %v13704_v35 }
 0xb66   : > { %11259 = vst [vmem:[%s19366_s23 + $0x70] sm:$0xff] %v13706_v47 }
 0xb67   : > { %13707 = vrcp.f32 %v11228_v5 }
 0xb6d   : > { %v13708_v31 = vpop.eup %13707 }
 0xb6e   : > { %11260 = vst [vmem:[%s19366_s23 + $0x78] sm:$0xff] %v13708_v31 }
 0xb6f   : > { %14178 = shalt.err (!%p14175_p8)
}
 0xb70   : > { %s14279_s22 = smov 128   ;;  %s14280_s23 = smov 8  }
 0xb71   : > { %13412 = dma.vmem_to_hbm [thread:$0]  (%p14409_p5), %s11275_s17, 2048, %s11277_s29, %s11262_s6, %s14279_s22, %s14279_s22, %s14280_s23  }
 0xb72 PF: > { %s20115_s3 = sld [smem:[#allocation37_spill]] }
 0xb73   : > { %s20116_s1 = sld [smem:[#allocation35_spill]] }
 0xb78   : > { %p13489_p9 = scmp.ge.s32.totalorder %s20115_s3, 2 }
 0xb79   : > { %s11291_s30 = sand.u32 1, %s20116_s1  }
 0xb7a   : > { %p13458_p10 = pnand %p13489_p9, %p14413_p6  ;;  %s11292_s5 = scalar_lea.sflag [#allocation4], %s11291_s30 }
 0xb7c   : > { %p13459_p11 = pneg %p13458_p10 }
 0xb7e   : > { %14228 = dma.done.wait (%p13459_p11), %s11292_s5, 2048  }
 0xb7f   : > { %14230 = vsyncadd (%p13459_p11), %s11292_s5, 4294965248  ;;  %s20118_s27 = sld [smem:[#allocation38_spill]]  ;;  %s20121_s24 = smov %s14237_s25 }
 0xb80   : > { %s20119_s2 = sld [smem:[#allocation36_spill]] }
 0xb81   : > { %s20120_s26 = sld [smem:[#allocation39_spill]] }
 0xb85   : > { %p35_p12 = scmp.ge.s32.totalorder %s20118_s27, 4  }
 0xb86   : > { %s20122_s25 = smov %s20119_s2 }
 0xb87   :  { %37 = sbr.rel (!%p35_p12) target bundleno = 19 (0x13), region = 188 }
 0xb8c   :  { %11298 = vsyncpa [#allocation3], 1 }
 0xb8d   :  { %11300 = vsyncpa [#allocation3 + $0x1], 1 }
 0xb8e   :  { %11301 = vsyncpa [#allocation6], 1 }
 0xb8f   :  { %11302 = vsyncpa [#allocation9], 1 }
 0xb90   :  { %11303 = vsyncpa [#allocation12], 1 }
 0xb91   :  { %11304 = vsyncpa [#allocation15], 1 }
 0xb92   :  { %11305 = vsyncpa [#allocation18], 1 }
 0xb93   :  { %11306 = vsyncpa [#allocation21], 1 }
 0xb94   :  { %11307 = vsyncpa [#allocation24], 1 }
 0xb95   :  { %11308 = vsyncpa [#allocation4], 1 }
 0xb96   :  { %11310 = vsyncpa [#allocation4 + $0x1], 1 }

</bundles_post_ra>
